<compile_context>
chip_gen: v7x
topology: tpu7x:2x2x1
jax: 0.10.0
libtpu: 0.0.40
codegen_flags: <defaults>
</compile_context>

<pallas_src>
import jax
import jax.numpy as jnp
import numpy as np
from jax import lax
from jax.experimental import pallas as pl
from jax.experimental.pallas import tpu as pltpu

EPS = 1e-5  # PyTorch BatchNorm3d default eps


# --------------------------------------------------------------------------- #
# Kernels
# --------------------------------------------------------------------------- #
def _conv1_kernel(x_ref, w_ref, h_ref, st_ref):
    # conv1: 1x1x1 conv == channel matmul; bf16 operands, f32 accumulation.
    h = jnp.dot(x_ref[...].astype(jnp.bfloat16), w_ref[...],
                preferred_element_type=jnp.float32)
    h_ref[...] = h
    s = jnp.sum(h, axis=0, keepdims=True)
    ss = jnp.sum(h * h, axis=0, keepdims=True)
    st_ref[...] = jnp.concatenate([s, ss], axis=0)[None]       # (1, 2, C)


def _conv2_kernel(f_ref, sc_ref, sh_ref, w_ref, h_ref, st_ref):
    # One spatially padded frame per grid step: apply BN1 affine + relu, zero
    # the conv zero-pad border (the affine would otherwise leak into it), then
    # express the dilated (1,3,3) conv as ONE (H*W, 9P) @ (9P, P) matmul built
    # from 9 shifted taps of the in-VMEM halo tile.
    f = f_ref[0]                                                # (H+4, W+4, P)
    hp, wp, p = f.shape
    h, w = hp - 4, wp - 4
    a = jnp.maximum(f * sc_ref[...] + sh_ref[...], 0.0)
    row = lax.broadcasted_iota(jnp.int32, (hp, wp, p), 0)
    col = lax.broadcasted_iota(jnp.int32, (hp, wp, p), 1)
    interior = (row >= 2) & (row < hp - 2) & (col >= 2) & (col < wp - 2)
    a = jnp.where(interior, a, 0.0).astype(jnp.bfloat16)
    taps = jnp.concatenate(
        [a[2 * kh:2 * kh + h, 2 * kw:2 * kw + w, :]
         for kh in range(3) for kw in range(3)], axis=-1)       # (H, W, 9P)
    taps = taps.reshape(h * w, 9 * p)
    o = jnp.dot(taps, w_ref[...], preferred_element_type=jnp.float32)
    h_ref[...] = o
    s = jnp.sum(o, axis=0, keepdims=True)
    ss = jnp.sum(o * o, axis=0, keepdims=True)
    st_ref[...] = jnp.concatenate([s, ss], axis=0)[None]


def _conv3_kernel(x_ref, sc_ref, sh_ref, w_ref, h_ref, st_ref):
    # BN2 affine + relu fused, then conv3 (1x1x1) channel matmul.
    a = jnp.maximum(x_ref[...] * sc_ref[...] + sh_ref[...], 0.0)
    h = jnp.dot(a.astype(jnp.bfloat16), w_ref[...],
                preferred_element_type=jnp.float32)
    h_ref[...] = h
    s = jnp.sum(h, axis=0, keepdims=True)
    ss = jnp.sum(h * h, axis=0, keepdims=True)
    st_ref[...] = jnp.concatenate([s, ss], axis=0)[None]


def _residual_kernel(x_ref, sc_ref, sh_ref, res_ref, o_ref):
    # BN3 affine + residual add + relu.
    o_ref[...] = jnp.maximum(
        x_ref[...] * sc_ref[...] + sh_ref[...] + res_ref[...], 0.0)


# --------------------------------------------------------------------------- #
# Helpers
# --------------------------------------------------------------------------- #
def _bn_scale_shift(stats, gamma, beta, count):
    # Finalize training-mode BatchNorm from per-tile partial (sum, sumsq).
    s = jnp.sum(stats[:, 0, :], axis=0)
    ss = jnp.sum(stats[:, 1, :], axis=0)
    mean = s / count
    var = jnp.maximum(ss / count - mean * mean, 0.0)            # biased var
    scale = gamma * lax.rsqrt(var + EPS)
    shift = beta - mean * scale
    return scale, shift


def _pick_tile(m, cap=1024):
    # Largest power-of-two row tile (<= cap) that divides M.
    t = cap
    while t >= 8:
        if t <= m and m % t == 0:
            return t
        t //= 2
    return m


def _compiler_params(block_bytes):
    # Headroom for double-buffering + in-kernel temporaries; capped so the
    # request is valid on v7x's smaller (64 MiB physical / 32 MiB scoped) VMEM.
    vmem = int(min(max(6 * int(block_bytes), 8 << 20), 32 << 20))
    return pltpu.CompilerParams(dimension_semantics=("parallel",),
                                vmem_limit_bytes=vmem)


# --------------------------------------------------------------------------- #
# Forward pass
# --------------------------------------------------------------------------- #
@jax.jit
def bottleneck_forward(x_ncdhw, params):
    (w1, g1, b1, w2, g2, b2, w3, g3, b3) = params
    n, cin, d, hh, ww = x_ncdhw.shape
    p = w1.shape[1]
    cout = w3.shape[1]
    assert cin == cout, "downsample=None requires inplanes == planes * 4"
    nd = n * d
    m = nd * hh * ww
    mf = float(m)

    # Layout glue: NCDHW -> NDHWC, spatially flattened (M, C) slabs.
    x2d = jnp.transpose(x_ncdhw, (0, 2, 3, 4, 1)).reshape(m, cin)
    w1b = w1.astype(jnp.bfloat16)                       # (Cin, P)
    w2b = w2.reshape(9 * p, p).astype(jnp.bfloat16)     # (kh,kw,cin) x cout
    w3b = w3.astype(jnp.bfloat16)                       # (P, 4P)

    tm = _pick_tile(m)
    nt = m // tm

    # ---- K1: conv1 (1x1x1) + bn1 partial stats ------------------------------
    h1raw, st1 = pl.pallas_call(
        _conv1_kernel,
        grid=(nt,),
        in_specs=[pl.BlockSpec((tm, cin), lambda i: (i, 0)),
                  pl.BlockSpec((cin, p), lambda i: (0, 0))],
        out_specs=[pl.BlockSpec((tm, p), lambda i: (i, 0)),
                   pl.BlockSpec((1, 2, p), lambda i: (i, 0, 0))],
        out_shape=[jax.ShapeDtypeStruct((m, p), jnp.float32),
                   jax.ShapeDtypeStruct((nt, 2, p), jnp.float32)],
        compiler_params=_compiler_params(
            tm * cin * 4 + cin * p * 2 + tm * p * 6 + 2 * p * 4),
        cost_estimate=pl.CostEstimate(
            flops=2 * m * cin * p, transcendentals=0,
            bytes_accessed=m * cin * 4 + m * p * 4 + cin * p * 2),
    )(x2d, w1b)
    sc1, sh1 = _bn_scale_shift(st1, g1, b1, mf)

    # ---- K2: bn1+relu fused into dilated (1,3,3) conv2 + bn2 partial stats --
    hp4, wp4 = hh + 4, ww + 4
    h1pad = jnp.pad(h1raw.reshape(nd, hh, ww, p),
                    ((0, 0), (2, 2), (2, 2), (0, 0)))
    h2raw, st2 = pl.pallas_call(
        _conv2_kernel,
        grid=(nd,),
        in_specs=[pl.BlockSpec((1, hp4, wp4, p), lambda i: (i, 0, 0, 0)),
                  pl.BlockSpec((1, 1, p), lambda i: (0, 0, 0)),
                  pl.BlockSpec((1, 1, p), lambda i: (0, 0, 0)),
                  pl.BlockSpec((9 * p, p), lambda i: (0, 0))],
        out_specs=[pl.BlockSpec((hh * ww, p), lambda i: (i, 0)),
                   pl.BlockSpec((1, 2, p), lambda i: (i, 0, 0))],
        out_shape=[jax.ShapeDtypeStruct((m, p), jnp.float32),
                   jax.ShapeDtypeStruct((nd, 2, p), jnp.float32)],
        compiler_params=_compiler_params(
            hp4 * wp4 * p * 6 + hh * ww * p * 22 + 9 * p * p * 2),
        cost_estimate=pl.CostEstimate(
            flops=2 * m * 9 * p * p, transcendentals=0,
            bytes_accessed=nd * hp4 * wp4 * p * 4 + m * p * 4 + 9 * p * p * 2),
    )(h1pad, sc1.reshape(1, 1, p), sh1.reshape(1, 1, p), w2b)
    sc2, sh2 = _bn_scale_shift(st2, g2, b2, mf)

    # ---- K3: bn2+relu fused into conv3 (1x1x1) + bn3 partial stats ----------
    h3raw, st3 = pl.pallas_call(
        _conv3_kernel,
        grid=(nt,),
        in_specs=[pl.BlockSpec((tm, p), lambda i: (i, 0)),
                  pl.BlockSpec((1, p), lambda i: (0, 0)),
                  pl.BlockSpec((1, p), lambda i: (0, 0)),
                  pl.BlockSpec((p, cout), lambda i: (0, 0))],
        out_specs=[pl.BlockSpec((tm, cout), lambda i: (i, 0)),
                   pl.BlockSpec((1, 2, cout), lambda i: (i, 0, 0))],
        out_shape=[jax.ShapeDtypeStruct((m, cout), jnp.float32),
                   jax.ShapeDtypeStruct((nt, 2, cout), jnp.float32)],
        compiler_params=_compiler_params(
            tm * p * 6 + p * cout * 2 + tm * cout * 6 + 2 * cout * 4),
        cost_estimate=pl.CostEstimate(
            flops=2 * m * p * cout, transcendentals=0,
            bytes_accessed=m * p * 4 + m * cout * 4 + p * cout * 2),
    )(h2raw, sc2.reshape(1, p), sh2.reshape(1, p), w3b)
    sc3, sh3 = _bn_scale_shift(st3, g3, b3, mf)

    # ---- K4: bn3 + residual add + relu (output aliases the residual buffer) -
    out2d = pl.pallas_call(
        _residual_kernel,
        grid=(nt,),
        in_specs=[pl.BlockSpec((tm, cout), lambda i: (i, 0)),
                  pl.BlockSpec((1, cout), lambda i: (0, 0)),
                  pl.BlockSpec((1, cout), lambda i: (0, 0)),
                  pl.BlockSpec((tm, cout), lambda i: (i, 0))],
        out_specs=pl.BlockSpec((tm, cout), lambda i: (i, 0)),
        out_shape=jax.ShapeDtypeStruct((m, cout), jnp.float32),
        input_output_aliases={3: 0},
        compiler_params=_compiler_params(3 * tm * cout * 4 + 2 * cout * 4),
        cost_estimate=pl.CostEstimate(
            flops=3 * m * cout, transcendentals=0,
            bytes_accessed=3 * m * cout * 4),
    )(h3raw, sc3.reshape(1, cout), sh3.reshape(1, cout), x2d)

    return jnp.transpose(out2d.reshape(n, d, hh, ww, cout), (0, 4, 1, 2, 3))


# --------------------------------------------------------------------------- #
# Independent pure-JAX reference (mirrors the kernel's bf16 matmul-operand
# casts with f32 accumulation; BN / residual math stays f32).
# --------------------------------------------------------------------------- #
def bottleneck_reference(x_ncdhw, params):
    (w1, g1, b1, w2, g2, b2, w3, g3, b3) = params
    cin = x_ncdhw.shape[1]
    p = w1.shape[1]
    cout = w3.shape[1]
    x = jnp.transpose(x_ncdhw, (0, 2, 3, 4, 1))               # NDHWC

    def bn(t, g, b):
        mean = jnp.mean(t, axis=(0, 1, 2, 3), keepdims=True)
        var = jnp.mean((t - mean) ** 2, axis=(0, 1, 2, 3), keepdims=True)
        return (t - mean) * lax.rsqrt(var + EPS) * g + b

    bf = lambda t: t.astype(jnp.bfloat16)
    dn = ('NDHWC', 'DHWIO', 'NDHWC')
    h = lax.conv_general_dilated(bf(x), bf(w1.reshape(1, 1, 1, cin, p)),
                                 window_strides=(1, 1, 1), padding=[(0, 0)] * 3,
                                 rhs_dilation=(2, 2, 2), dimension_numbers=dn,
                                 preferred_element_type=jnp.float32)
    h = jax.nn.relu(bn(h, g1, b1))
    h = lax.conv_general_dilated(bf(h), bf(w2.reshape(1, 3, 3, p, p)),
                                 window_strides=(1, 1, 1),
                                 padding=[(0, 0), (2, 2), (2, 2)],
                                 rhs_dilation=(2, 2, 2), dimension_numbers=dn,
                                 preferred_element_type=jnp.float32)
    h = jax.nn.relu(bn(h, g2, b2))
    h = lax.conv_general_dilated(bf(h), bf(w3.reshape(1, 1, 1, p, cout)),
                                 window_strides=(1, 1, 1), padding=[(0, 0)] * 3,
                                 rhs_dilation=(2, 2, 2), dimension_numbers=dn,
                                 preferred_element_type=jnp.float32)
    h = bn(h, g3, b3)
    h = jax.nn.relu(h + x)
    return jnp.transpose(h, (0, 4, 1, 2, 3))


if __name__ == "__main__":
    # batch=2, frames=4, spatial=16x16, planes=8, inplanes=32 (= planes*4,
    # required because downsample is None).  M = 2*4*16*16 = 2048 -> 2 M-tiles.
    N, D, H, W = 2, 4, 16, 16
    planes = 8
    inplanes = planes * 4

    key = jax.random.PRNGKey(0)
    ks = jax.random.split(key, 10)
    x = jax.random.normal(ks[0], (N, inplanes, D, H, W), jnp.float32)

    # Deterministic synthetic parameters (shapes from the module __init__).
    w1 = 0.1 * jax.random.normal(ks[1], (inplanes, planes), jnp.float32)
    w2 = 0.1 * jax.random.normal(ks[2], (3, 3, planes, planes), jnp.float32)  # (kh,kw,in,out)
    w3 = 0.1 * jax.random.normal(ks[3], (planes, 4 * planes), jnp.float32)
    g1 = 1.0 + 0.1 * jax.random.normal(ks[4], (planes,), jnp.float32)
    b1 = 0.1 * jax.random.normal(ks[5], (planes,), jnp.float32)
    g2 = 1.0 + 0.1 * jax.random.normal(ks[6], (planes,), jnp.float32)
    b2 = 0.1 * jax.random.normal(ks[7], (planes,), jnp.float32)
    g3 = 1.0 + 0.1 * jax.random.normal(ks[8], (4 * planes,), jnp.float32)
    b3 = 0.1 * jax.random.normal(ks[9], (4 * planes,), jnp.float32)
    params = (w1, g1, b1, w2, g2, b2, w3, g3, b3)

    out = jax.block_until_ready(bottleneck_forward(x, params))
    ref = jax.block_until_ready(bottleneck_reference(x, params))
    np.testing.assert_allclose(np.asarray(out), np.asarray(ref),
                               rtol=5e-3, atol=5e-3)
    print("KERNEL_OK")
</pallas_src>

<mosaic_0001>
module attributes {stable_mosaic.version = 11 : i64} {
  func.func @_conv1_kernel(%arg0: i32, %arg1: memref<1024x32xf32, #tpu.memory_space<vmem>>, %arg2: memref<32x8xbf16, #tpu.memory_space<vmem>>, %arg3: memref<1024x8xf32, #tpu.memory_space<vmem>>, %arg4: memref<1x2x8xf32, #tpu.memory_space<vmem>>) attributes {dimension_semantics = [#tpu.dimension_semantics<parallel>], iteration_bounds = array<i64: 2>, scalar_prefetch = 0 : i64, scratch_operands = 0 : i64, tpu.core_type = #tpu.core_type<tc>, window_params = [{transform_indices = @transform_0, window_bounds = array<i64: 1024, 32>}, {pipeline_mode = #tpu.pipeline_mode<synchronous>, transform_indices = @transform_1, window_bounds = array<i64: 32, 8>}, {transform_indices = @transform_2, window_bounds = array<i64: 1024, 8>}, {transform_indices = @transform_3, window_bounds = array<i64: 1, 2, 8>}]} {
    %c0 = arith.constant 0 : index
    %c0_0 = arith.constant 0 : index
    %0 = vector.load %arg1[%c0, %c0_0] : memref<1024x32xf32, #tpu.memory_space<vmem>>, vector<1024x32xf32>
    %1 = arith.truncf %0 : vector<1024x32xf32> to vector<1024x32xbf16>
    %c0_1 = arith.constant 0 : index
    %c0_2 = arith.constant 0 : index
    %2 = vector.load %arg2[%c0_1, %c0_2] : memref<32x8xbf16, #tpu.memory_space<vmem>>, vector<32x8xbf16>
    %cst = arith.constant dense<0.000000e+00> : vector<1024x8xf32>
    %3 = tpu.matmul %1, %2, %cst {dimension_numbers = #tpu.dot_dimension_numbers<[1], [0], [0], [1], [0, 0, 1, 1], [], []>} : vector<1024x32xbf16>, vector<32x8xbf16>, vector<1024x8xf32> -> vector<1024x8xf32>
    %c0_3 = arith.constant 0 : index
    %c0_4 = arith.constant 0 : index
    %4 = vector.load %arg3[%c0_3, %c0_4] : memref<1024x8xf32, #tpu.memory_space<vmem>>, vector<1024x8xf32>
    tpu.vector_store %arg3[%c0_3, %c0_4], %3 {strides = array<i32>} : memref<1024x8xf32, #tpu.memory_space<vmem>>, vector<1024x8xf32>,
    %cst_5 = arith.constant dense<0.000000e+00> : vector<8xf32>
    %5 = vector.multi_reduction <add>, %3, %cst_5 [0] : vector<1024x8xf32> to vector<8xf32>
    %6 = vector.shape_cast %5 : vector<8xf32> to vector<1x8xf32>
    %7 = arith.mulf %3, %3 : vector<1024x8xf32>
    %cst_6 = arith.constant dense<0.000000e+00> : vector<8xf32>
    %8 = vector.multi_reduction <add>, %7, %cst_6 [0] : vector<1024x8xf32> to vector<8xf32>
    %9 = vector.shape_cast %8 : vector<8xf32> to vector<1x8xf32>
    %10 = tpu.concatenate %6, %9 in 0 : vector<1x8xf32>, vector<1x8xf32> -> vector<2x8xf32>
    %11 = vector.shape_cast %10 : vector<2x8xf32> to vector<1x2x8xf32>
    %c0_7 = arith.constant 0 : index
    %c0_8 = arith.constant 0 : index
    %c0_9 = arith.constant 0 : index
    %12 = vector.load %arg4[%c0_7, %c0_8, %c0_9] : memref<1x2x8xf32, #tpu.memory_space<vmem>>, vector<1x2x8xf32>
    tpu.vector_store %arg4[%c0_7, %c0_8, %c0_9], %11 {strides = array<i32>} : memref<1x2x8xf32, #tpu.memory_space<vmem>>, vector<1x2x8xf32>,
    return
  }
  func.func @transform_0(%arg0: i32) -> (i32, i32) {
    %c0_i32 = arith.constant 0 : i32
    %c0_i32_0 = arith.constant 0 : i32
    return %arg0, %c0_i32 : i32, i32
  }
  func.func @transform_1(%arg0: i32) -> (i32, i32) {
    %c0_i32 = arith.constant 0 : i32
    %c0_i32_0 = arith.constant 0 : i32
    %c0_i32_1 = arith.constant 0 : i32
    return %c0_i32, %c0_i32_0 : i32, i32
  }
  func.func @transform_2(%arg0: i32) -> (i32, i32) {
    %c0_i32 = arith.constant 0 : i32
    %c0_i32_0 = arith.constant 0 : i32
    return %arg0, %c0_i32 : i32, i32
  }
  func.func @transform_3(%arg0: i32) -> (i32, i32, i32) {
    %c0_i32 = arith.constant 0 : i32
    %c0_i32_0 = arith.constant 0 : i32
    %c0_i32_1 = arith.constant 0 : i32
    return %arg0, %c0_i32, %c0_i32_0 : i32, i32, i32
  }
}

module attributes {stable_mosaic.version = 11 : i64} {
  func.func @_conv2_kernel(%arg0: i32, %arg1: memref<1x20x20x8xf32, #tpu.memory_space<vmem>>, %arg2: memref<1x1x8xf32, #tpu.memory_space<vmem>>, %arg3: memref<1x1x8xf32, #tpu.memory_space<vmem>>, %arg4: memref<72x8xbf16, #tpu.memory_space<vmem>>, %arg5: memref<256x8xf32, #tpu.memory_space<vmem>>, %arg6: memref<1x2x8xf32, #tpu.memory_space<vmem>>) attributes {dimension_semantics = [#tpu.dimension_semantics<parallel>], iteration_bounds = array<i64: 8>, scalar_prefetch = 0 : i64, scratch_operands = 0 : i64, tpu.core_type = #tpu.core_type<tc>, window_params = [{transform_indices = @transform_0, window_bounds = array<i64: 1, 20, 20, 8>}, {pipeline_mode = #tpu.pipeline_mode<synchronous>, transform_indices = @transform_1, window_bounds = array<i64: 1, 1, 8>}, {pipeline_mode = #tpu.pipeline_mode<synchronous>, transform_indices = @transform_2, window_bounds = array<i64: 1, 1, 8>}, {pipeline_mode = #tpu.pipeline_mode<synchronous>, transform_indices = @transform_3, window_bounds = array<i64: 72, 8>}, {transform_indices = @transform_4, window_bounds = array<i64: 256, 8>}, {transform_indices = @transform_5, window_bounds = array<i64: 1, 2, 8>}]} {
    %c0 = arith.constant 0 : index
    %c0_0 = arith.constant 0 : index
    %c0_1 = arith.constant 0 : index
    %c0_2 = arith.constant 0 : index
    %0 = vector.load %arg1[%c0, %c0_0, %c0_1, %c0_2] : memref<1x20x20x8xf32, #tpu.memory_space<vmem>>, vector<1x20x20x8xf32>
    %1 = vector.shape_cast %0 : vector<1x20x20x8xf32> to vector<20x20x8xf32>
    %c0_3 = arith.constant 0 : index
    %c0_4 = arith.constant 0 : index
    %c0_5 = arith.constant 0 : index
    %2 = vector.load %arg2[%c0_3, %c0_4, %c0_5] : memref<1x1x8xf32, #tpu.memory_space<vmem>>, vector<1x1x8xf32>
    %3 = vector.broadcast %2 : vector<1x1x8xf32> to vector<20x20x8xf32>
    %4 = arith.mulf %1, %3 : vector<20x20x8xf32>
    %c0_6 = arith.constant 0 : index
    %c0_7 = arith.constant 0 : index
    %c0_8 = arith.constant 0 : index
    %5 = vector.load %arg3[%c0_6, %c0_7, %c0_8] : memref<1x1x8xf32, #tpu.memory_space<vmem>>, vector<1x1x8xf32>
    %6 = vector.broadcast %5 : vector<1x1x8xf32> to vector<20x20x8xf32>
    %7 = arith.addf %4, %6 : vector<20x20x8xf32>
    %cst = arith.constant 0.000000e+00 : f32
    %8 = vector.broadcast %cst : f32 to vector<20x20x8xf32>
    %9 = arith.maximumf %7, %8 : vector<20x20x8xf32>
    %10 = tpu.iota {dimensions = array<i32: 0>} : vector<20x20x8xi32>
    %11 = tpu.iota {dimensions = array<i32: 1>} : vector<20x20x8xi32>
    %c2_i32 = arith.constant 2 : i32
    %12 = vector.broadcast %c2_i32 : i32 to vector<20x20x8xi32>
    %13 = arith.cmpi sge, %10, %12 : vector<20x20x8xi32>
    %c18_i32 = arith.constant 18 : i32
    %14 = vector.broadcast %c18_i32 : i32 to vector<20x20x8xi32>
    %15 = arith.cmpi slt, %10, %14 : vector<20x20x8xi32>
    %16 = arith.andi %13, %15 : vector<20x20x8xi1>
    %c2_i32_9 = arith.constant 2 : i32
    %17 = vector.broadcast %c2_i32_9 : i32 to vector<20x20x8xi32>
    %18 = arith.cmpi sge, %11, %17 : vector<20x20x8xi32>
    %19 = arith.andi %16, %18 : vector<20x20x8xi1>
    %c18_i32_10 = arith.constant 18 : i32
    %20 = vector.broadcast %c18_i32_10 : i32 to vector<20x20x8xi32>
    %21 = arith.cmpi slt, %11, %20 : vector<20x20x8xi32>
    %22 = arith.andi %19, %21 : vector<20x20x8xi1>
    %cst_11 = arith.constant 0.000000e+00 : f32
    %23 = vector.broadcast %cst_11 : f32 to vector<20x20x8xf32>
    %24 = arith.select %22, %9, %23 : vector<20x20x8xi1>, vector<20x20x8xf32>
    %25 = arith.truncf %24 : vector<20x20x8xf32> to vector<20x20x8xbf16>
    %26 = vector.extract_strided_slice %25 {offsets = [0, 0, 0], sizes = [16, 16, 8], strides = [1, 1, 1]} : vector<20x20x8xbf16> to vector<16x16x8xbf16>
    %27 = vector.extract_strided_slice %25 {offsets = [0, 2, 0], sizes = [16, 16, 8], strides = [1, 1, 1]} : vector<20x20x8xbf16> to vector<16x16x8xbf16>
    %28 = vector.extract_strided_slice %25 {offsets = [0, 4, 0], sizes = [16, 16, 8], strides = [1, 1, 1]} : vector<20x20x8xbf16> to vector<16x16x8xbf16>
    %29 = vector.extract_strided_slice %25 {offsets = [2, 0, 0], sizes = [16, 16, 8], strides = [1, 1, 1]} : vector<20x20x8xbf16> to vector<16x16x8xbf16>
    %30 = vector.extract_strided_slice %25 {offsets = [2, 2, 0], sizes = [16, 16, 8], strides = [1, 1, 1]} : vector<20x20x8xbf16> to vector<16x16x8xbf16>
    %31 = vector.extract_strided_slice %25 {offsets = [2, 4, 0], sizes = [16, 16, 8], strides = [1, 1, 1]} : vector<20x20x8xbf16> to vector<16x16x8xbf16>
    %32 = vector.extract_strided_slice %25 {offsets = [4, 0, 0], sizes = [16, 16, 8], strides = [1, 1, 1]} : vector<20x20x8xbf16> to vector<16x16x8xbf16>
    %33 = vector.extract_strided_slice %25 {offsets = [4, 2, 0], sizes = [16, 16, 8], strides = [1, 1, 1]} : vector<20x20x8xbf16> to vector<16x16x8xbf16>
    %34 = vector.extract_strided_slice %25 {offsets = [4, 4, 0], sizes = [16, 16, 8], strides = [1, 1, 1]} : vector<20x20x8xbf16> to vector<16x16x8xbf16>
    %35 = tpu.concatenate %26, %27, %28, %29, %30, %31, %32, %33, %34 in 2 : vector<16x16x8xbf16>, vector<16x16x8xbf16>, vector<16x16x8xbf16>, vector<16x16x8xbf16>, vector<16x16x8xbf16>, vector<16x16x8xbf16>, vector<16x16x8xbf16>, vector<16x16x8xbf16>, vector<16x16x8xbf16> -> vector<16x16x72xbf16>
    %36 = vector.shape_cast %35 : vector<16x16x72xbf16> to vector<256x72xbf16>
    %c0_12 = arith.constant 0 : index
    %c0_13 = arith.constant 0 : index
    %37 = vector.load %arg4[%c0_12, %c0_13] : memref<72x8xbf16, #tpu.memory_space<vmem>>, vector<72x8xbf16>
    %cst_14 = arith.constant dense<0.000000e+00> : vector<256x8xf32>
    %38 = tpu.matmul %36, %37, %cst_14 {dimension_numbers = #tpu.dot_dimension_numbers<[1], [0], [0], [1], [0, 0, 1, 1], [], []>} : vector<256x72xbf16>, vector<72x8xbf16>, vector<256x8xf32> -> vector<256x8xf32>
    %c0_15 = arith.constant 0 : index
    %c0_16 = arith.constant 0 : index
    %39 = vector.load %arg5[%c0_15, %c0_16] : memref<256x8xf32, #tpu.memory_space<vmem>>, vector<256x8xf32>
    tpu.vector_store %arg5[%c0_15, %c0_16], %38 {strides = array<i32>} : memref<256x8xf32, #tpu.memory_space<vmem>>, vector<256x8xf32>,
    %cst_17 = arith.constant dense<0.000000e+00> : vector<8xf32>
    %40 = vector.multi_reduction <add>, %38, %cst_17 [0] : vector<256x8xf32> to vector<8xf32>
    %41 = vector.shape_cast %40 : vector<8xf32> to vector<1x8xf32>
    %42 = arith.mulf %38, %38 : vector<256x8xf32>
    %cst_18 = arith.constant dense<0.000000e+00> : vector<8xf32>
    %43 = vector.multi_reduction <add>, %42, %cst_18 [0] : vector<256x8xf32> to vector<8xf32>
    %44 = vector.shape_cast %43 : vector<8xf32> to vector<1x8xf32>
    %45 = tpu.concatenate %41, %44 in 0 : vector<1x8xf32>, vector<1x8xf32> -> vector<2x8xf32>
    %46 = vector.shape_cast %45 : vector<2x8xf32> to vector<1x2x8xf32>
    %c0_19 = arith.constant 0 : index
    %c0_20 = arith.constant 0 : index
    %c0_21 = arith.constant 0 : index
    %47 = vector.load %arg6[%c0_19, %c0_20, %c0_21] : memref<1x2x8xf32, #tpu.memory_space<vmem>>, vector<1x2x8xf32>
    tpu.vector_store %arg6[%c0_19, %c0_20, %c0_21], %46 {strides = array<i32>} : memref<1x2x8xf32, #tpu.memory_space<vmem>>, vector<1x2x8xf32>,
    return
  }
  func.func @transform_0(%arg0: i32) -> (i32, i32, i32, i32) {
    %c0_i32 = arith.constant 0 : i32
    %c0_i32_0 = arith.constant 0 : i32
    %c0_i32_1 = arith.constant 0 : i32
    %c0_i32_2 = arith.constant 0 : i32
    return %arg0, %c0_i32, %c0_i32_0, %c0_i32_1 : i32, i32, i32, i32
  }
  func.func @transform_1(%arg0: i32) -> (i32, i32, i32) {
    %c0_i32 = arith.constant 0 : i32
    %c0_i32_0 = arith.constant 0 : i32
    %c0_i32_1 = arith.constant 0 : i32
    %c0_i32_2 = arith.constant 0 : i32
    return %c0_i32, %c0_i32_0, %c0_i32_1 : i32, i32, i32
  }
  func.func @transform_2(%arg0: i32) -> (i32, i32, i32) {
    %c0_i32 = arith.constant 0 : i32
    %c0_i32_0 = arith.constant 0 : i32
    %c0_i32_1 = arith.constant 0 : i32
    %c0_i32_2 = arith.constant 0 : i32
    return %c0_i32, %c0_i32_0, %c0_i32_1 : i32, i32, i32
  }
  func.func @transform_3(%arg0: i32) -> (i32, i32) {
    %c0_i32 = arith.constant 0 : i32
    %c0_i32_0 = arith.constant 0 : i32
    %c0_i32_1 = arith.constant 0 : i32
    return %c0_i32, %c0_i32_0 : i32, i32
  }
  func.func @transform_4(%arg0: i32) -> (i32, i32) {
    %c0_i32 = arith.constant 0 : i32
    %c0_i32_0 = arith.constant 0 : i32
    return %arg0, %c0_i32 : i32, i32
  }
  func.func @transform_5(%arg0: i32) -> (i32, i32, i32) {
    %c0_i32 = arith.constant 0 : i32
    %c0_i32_0 = arith.constant 0 : i32
    %c0_i32_1 = arith.constant 0 : i32
    return %arg0, %c0_i32, %c0_i32_0 : i32, i32, i32
  }
}

module attributes {stable_mosaic.version = 11 : i64} {
  func.func @_conv3_kernel(%arg0: i32, %arg1: memref<1024x8xf32, #tpu.memory_space<vmem>>, %arg2: memref<1x8xf32, #tpu.memory_space<vmem>>, %arg3: memref<1x8xf32, #tpu.memory_space<vmem>>, %arg4: memref<8x32xbf16, #tpu.memory_space<vmem>>, %arg5: memref<1024x32xf32, #tpu.memory_space<vmem>>, %arg6: memref<1x2x32xf32, #tpu.memory_space<vmem>>) attributes {dimension_semantics = [#tpu.dimension_semantics<parallel>], iteration_bounds = array<i64: 2>, scalar_prefetch = 0 : i64, scratch_operands = 0 : i64, tpu.core_type = #tpu.core_type<tc>, window_params = [{transform_indices = @transform_0, window_bounds = array<i64: 1024, 8>}, {pipeline_mode = #tpu.pipeline_mode<synchronous>, transform_indices = @transform_1, window_bounds = array<i64: 1, 8>}, {pipeline_mode = #tpu.pipeline_mode<synchronous>, transform_indices = @transform_2, window_bounds = array<i64: 1, 8>}, {pipeline_mode = #tpu.pipeline_mode<synchronous>, transform_indices = @transform_3, window_bounds = array<i64: 8, 32>}, {transform_indices = @transform_4, window_bounds = array<i64: 1024, 32>}, {transform_indices = @transform_5, window_bounds = array<i64: 1, 2, 32>}]} {
    %c0 = arith.constant 0 : index
    %c0_0 = arith.constant 0 : index
    %0 = vector.load %arg1[%c0, %c0_0] : memref<1024x8xf32, #tpu.memory_space<vmem>>, vector<1024x8xf32>
    %c0_1 = arith.constant 0 : index
    %c0_2 = arith.constant 0 : index
    %1 = vector.load %arg2[%c0_1, %c0_2] : memref<1x8xf32, #tpu.memory_space<vmem>>, vector<1x8xf32>
    %2 = vector.broadcast %1 : vector<1x8xf32> to vector<1024x8xf32>
    %3 = arith.mulf %0, %2 : vector<1024x8xf32>
    %c0_3 = arith.constant 0 : index
    %c0_4 = arith.constant 0 : index
    %4 = vector.load %arg3[%c0_3, %c0_4] : memref<1x8xf32, #tpu.memory_space<vmem>>, vector<1x8xf32>
    %5 = vector.broadcast %4 : vector<1x8xf32> to vector<1024x8xf32>
    %6 = arith.addf %3, %5 : vector<1024x8xf32>
    %cst = arith.constant 0.000000e+00 : f32
    %7 = vector.broadcast %cst : f32 to vector<1024x8xf32>
    %8 = arith.maximumf %6, %7 : vector<1024x8xf32>
    %9 = arith.truncf %8 : vector<1024x8xf32> to vector<1024x8xbf16>
    %c0_5 = arith.constant 0 : index
    %c0_6 = arith.constant 0 : index
    %10 = vector.load %arg4[%c0_5, %c0_6] : memref<8x32xbf16, #tpu.memory_space<vmem>>, vector<8x32xbf16>
    %cst_7 = arith.constant dense<0.000000e+00> : vector<1024x32xf32>
    %11 = tpu.matmul %9, %10, %cst_7 {dimension_numbers = #tpu.dot_dimension_numbers<[1], [0], [0], [1], [0, 0, 1, 1], [], []>} : vector<1024x8xbf16>, vector<8x32xbf16>, vector<1024x32xf32> -> vector<1024x32xf32>
    %c0_8 = arith.constant 0 : index
    %c0_9 = arith.constant 0 : index
    %12 = vector.load %arg5[%c0_8, %c0_9] : memref<1024x32xf32, #tpu.memory_space<vmem>>, vector<1024x32xf32>
    tpu.vector_store %arg5[%c0_8, %c0_9], %11 {strides = array<i32>} : memref<1024x32xf32, #tpu.memory_space<vmem>>, vector<1024x32xf32>,
    %cst_10 = arith.constant dense<0.000000e+00> : vector<32xf32>
    %13 = vector.multi_reduction <add>, %11, %cst_10 [0] : vector<1024x32xf32> to vector<32xf32>
    %14 = vector.shape_cast %13 : vector<32xf32> to vector<1x32xf32>
    %15 = arith.mulf %11, %11 : vector<1024x32xf32>
    %cst_11 = arith.constant dense<0.000000e+00> : vector<32xf32>
    %16 = vector.multi_reduction <add>, %15, %cst_11 [0] : vector<1024x32xf32> to vector<32xf32>
    %17 = vector.shape_cast %16 : vector<32xf32> to vector<1x32xf32>
    %18 = tpu.concatenate %14, %17 in 0 : vector<1x32xf32>, vector<1x32xf32> -> vector<2x32xf32>
    %19 = vector.shape_cast %18 : vector<2x32xf32> to vector<1x2x32xf32>
    %c0_12 = arith.constant 0 : index
    %c0_13 = arith.constant 0 : index
    %c0_14 = arith.constant 0 : index
    %20 = vector.load %arg6[%c0_12, %c0_13, %c0_14] : memref<1x2x32xf32, #tpu.memory_space<vmem>>, vector<1x2x32xf32>
    tpu.vector_store %arg6[%c0_12, %c0_13, %c0_14], %19 {strides = array<i32>} : memref<1x2x32xf32, #tpu.memory_space<vmem>>, vector<1x2x32xf32>,
    return
  }
  func.func @transform_0(%arg0: i32) -> (i32, i32) {
    %c0_i32 = arith.constant 0 : i32
    %c0_i32_0 = arith.constant 0 : i32
    return %arg0, %c0_i32 : i32, i32
  }
  func.func @transform_1(%arg0: i32) -> (i32, i32) {
    %c0_i32 = arith.constant 0 : i32
    %c0_i32_0 = arith.constant 0 : i32
    %c0_i32_1 = arith.constant 0 : i32
    return %c0_i32, %c0_i32_0 : i32, i32
  }
  func.func @transform_2(%arg0: i32) -> (i32, i32) {
    %c0_i32 = arith.constant 0 : i32
    %c0_i32_0 = arith.constant 0 : i32
    %c0_i32_1 = arith.constant 0 : i32
    return %c0_i32, %c0_i32_0 : i32, i32
  }
  func.func @transform_3(%arg0: i32) -> (i32, i32) {
    %c0_i32 = arith.constant 0 : i32
    %c0_i32_0 = arith.constant 0 : i32
    %c0_i32_1 = arith.constant 0 : i32
    return %c0_i32, %c0_i32_0 : i32, i32
  }
  func.func @transform_4(%arg0: i32) -> (i32, i32) {
    %c0_i32 = arith.constant 0 : i32
    %c0_i32_0 = arith.constant 0 : i32
    return %arg0, %c0_i32 : i32, i32
  }
  func.func @transform_5(%arg0: i32) -> (i32, i32, i32) {
    %c0_i32 = arith.constant 0 : i32
    %c0_i32_0 = arith.constant 0 : i32
    %c0_i32_1 = arith.constant 0 : i32
    return %arg0, %c0_i32, %c0_i32_0 : i32, i32, i32
  }
}

module attributes {stable_mosaic.version = 11 : i64} {
  func.func @_residual_kernel(%arg0: i32, %arg1: memref<1024x32xf32, #tpu.memory_space<vmem>>, %arg2: memref<1x32xf32, #tpu.memory_space<vmem>>, %arg3: memref<1x32xf32, #tpu.memory_space<vmem>>, %arg4: memref<1024x32xf32, #tpu.memory_space<vmem>>, %arg5: memref<1024x32xf32, #tpu.memory_space<vmem>>) attributes {dimension_semantics = [#tpu.dimension_semantics<parallel>], iteration_bounds = array<i64: 2>, scalar_prefetch = 0 : i64, scratch_operands = 0 : i64, tpu.core_type = #tpu.core_type<tc>, window_params = [{transform_indices = @transform_0, window_bounds = array<i64: 1024, 32>}, {pipeline_mode = #tpu.pipeline_mode<synchronous>, transform_indices = @transform_1, window_bounds = array<i64: 1, 32>}, {pipeline_mode = #tpu.pipeline_mode<synchronous>, transform_indices = @transform_2, window_bounds = array<i64: 1, 32>}, {transform_indices = @transform_3, window_bounds = array<i64: 1024, 32>}, {transform_indices = @transform_4, window_bounds = array<i64: 1024, 32>}]} {
    %c0 = arith.constant 0 : index
    %c0_0 = arith.constant 0 : index
    %0 = vector.load %arg1[%c0, %c0_0] : memref<1024x32xf32, #tpu.memory_space<vmem>>, vector<1024x32xf32>
    %c0_1 = arith.constant 0 : index
    %c0_2 = arith.constant 0 : index
    %1 = vector.load %arg2[%c0_1, %c0_2] : memref<1x32xf32, #tpu.memory_space<vmem>>, vector<1x32xf32>
    %2 = vector.broadcast %1 : vector<1x32xf32> to vector<1024x32xf32>
    %3 = arith.mulf %0, %2 : vector<1024x32xf32>
    %c0_3 = arith.constant 0 : index
    %c0_4 = arith.constant 0 : index
    %4 = vector.load %arg3[%c0_3, %c0_4] : memref<1x32xf32, #tpu.memory_space<vmem>>, vector<1x32xf32>
    %5 = vector.broadcast %4 : vector<1x32xf32> to vector<1024x32xf32>
    %6 = arith.addf %3, %5 : vector<1024x32xf32>
    %c0_5 = arith.constant 0 : index
    %c0_6 = arith.constant 0 : index
    %7 = vector.load %arg4[%c0_5, %c0_6] : memref<1024x32xf32, #tpu.memory_space<vmem>>, vector<1024x32xf32>
    %8 = arith.addf %6, %7 : vector<1024x32xf32>
    %cst = arith.constant 0.000000e+00 : f32
    %9 = vector.broadcast %cst : f32 to vector<1024x32xf32>
    %10 = arith.maximumf %8, %9 : vector<1024x32xf32>
    %c0_7 = arith.constant 0 : index
    %c0_8 = arith.constant 0 : index
    %11 = vector.load %arg5[%c0_7, %c0_8] : memref<1024x32xf32, #tpu.memory_space<vmem>>, vector<1024x32xf32>
    tpu.vector_store %arg5[%c0_7, %c0_8], %10 {strides = array<i32>} : memref<1024x32xf32, #tpu.memory_space<vmem>>, vector<1024x32xf32>,
    return
  }
  func.func @transform_0(%arg0: i32) -> (i32, i32) {
    %c0_i32 = arith.constant 0 : i32
    %c0_i32_0 = arith.constant 0 : i32
    return %arg0, %c0_i32 : i32, i32
  }
  func.func @transform_1(%arg0: i32) -> (i32, i32) {
    %c0_i32 = arith.constant 0 : i32
    %c0_i32_0 = arith.constant 0 : i32
    %c0_i32_1 = arith.constant 0 : i32
    return %c0_i32, %c0_i32_0 : i32, i32
  }
  func.func @transform_2(%arg0: i32) -> (i32, i32) {
    %c0_i32 = arith.constant 0 : i32
    %c0_i32_0 = arith.constant 0 : i32
    %c0_i32_1 = arith.constant 0 : i32
    return %c0_i32, %c0_i32_0 : i32, i32
  }
  func.func @transform_3(%arg0: i32) -> (i32, i32) {
    %c0_i32 = arith.constant 0 : i32
    %c0_i32_0 = arith.constant 0 : i32
    return %arg0, %c0_i32 : i32, i32
  }
  func.func @transform_4(%arg0: i32) -> (i32, i32) {
    %c0_i32 = arith.constant 0 : i32
    %c0_i32_0 = arith.constant 0 : i32
    return %arg0, %c0_i32 : i32, i32
  }
}

</mosaic_0001>

<bundles_post_ra>
// kernel: bottleneck_forward.4
= control target key start
LH: loop header
LB: loop body
LE: loop exit
PB: predicated region body
PF: predicated region fallthrough
CT: control target
= control target key end

     0   :  { %s2320_s12 = smov 0   ;;  %s3450_s0 = inlined_call_operand.vmem [shape: f32[2048,32], index: 0, kind: input, shape index: {}]   ;;  %s3451_s1 = inlined_call_operand.vmem [shape: bf16[32,8], index: 1, kind: input, shape index: {}]   ;;  %s3452_s2 = inlined_call_operand.vmem [shape: f32[2048,8], index: 2, kind: output, shape index: {0}]   ;;  %s3453_s3 = inlined_call_operand.vmem [shape: f32[2,2,8], index: 3, kind: output, shape index: {1}]  }
   0x1 LB: > { %s2326_s13 = sadd.s32 4294967295, %s2298_s12   ;;  %p2006_p0 = scmp.ge.s32.totalorder %s2298_s12, 1  ;;  %s2298_s12 = sphi %s2320_s12, %s14_s12  }
   0x2   : > { %p141_p1 = scmp.lt.s32.totalorder %s2298_s12, 3 }
   0x4   : > { %p142_p2 = pnand %p2006_p0, %p141_p1 }
   0x6   : > { %145 = sbr.rel (%p142_p2) target bundleno = 509 (0x1fd), region = 28 }
   0xd   : > { %v2290_v0 = vld [vmem:[%s3451_s1] sm:$0xff]   ;;  %s2007_s16 = sshll.u32 %s2326_s13, 7  ;;  %v2291_v1 = vld [vmem:[%s3451_s1 + $0x8] sm:$0xff]   ;;  %vm394_vm0 = vcmask 261120   ;;  %vm1132_vm1 = vcmask 64512   ;;  %p181_p4 = scmp.lt.s32.totalorder %s2326_s13, 1 }
   0xe   : > { %p170_p3 = scmp.lt.s32.totalorder %s2007_s16, 255  ;;  %2146 = vmatprep.subr.bf16.mxu0 %v2290_v0  ;;  %2278 = vmatprep.subr.bf16.mxu1 %v2290_v0  ;;  %vm1911_vm2 = vcmask 1040384   ;;  %vm1913_vm3 = vcmask 58368  }
   0xf   : > { %2147 = vmatpush3.bf16.msra.mxu0 %v2290_v0  ;;  %2280 = vmatpush3.bf16.msra.mxu1 %v2290_v0  ;;  %s3485_s13 = smov (!%p181_p4, %s2326_s13), 1 }
  0x10   : > { %s3483_s16 = smov (!%p170_p3, %s2007_s16), 255  ;;  %2148 = vmatprep.subr.bf16.mxu0 %v2291_v1  ;;  %2279 = vmatprep.subr.bf16.mxu1 %v2291_v1  ;;  %s2011_s26 = sshll.u32 %s3485_s13, 1 }
  0x11   : > { %s2008_s19 = sshll.u32 %s3483_s16, 3  ;;  %s184_s29 = scalar_lea.vmem %s3453_s3, %s2011_s26 }
  0x12   : > { %s2345_s22 = scalar_lea.vmem %s3450_s0, %s2008_s19  ;;  %s2544_s25 = scalar_lea.vmem %s3452_s2, %s2008_s19 }
  0x13   : > { %2149 = vmatpush3.bf16.msra.mxu0 %v2291_v1  ;;  %v186_v2 = vld [vmem:[%s2345_s22] sm:$0xff]  ;;  %v187_v3 = vld [vmem:[%s2345_s22 + $0x8] sm:$0xff]  ;;  %v188_v4 = vld [vmem:[%s2345_s22 + $0x10] sm:$0xff]  ;;  %2281 = vmatpush3.bf16.msra.mxu1 %v2291_v1 }
  0x14   : > { %v314_v5 = vpack.c.bf16 %v187_v3, %v186_v2  ;;  %v189_v6 = vld [vmem:[%s2345_s22 + $0x18] sm:$0xff]  ;;  %v190_v7 = vld [vmem:[%s2345_s22 + $0x20] sm:$0xff]  ;;  %v191_v8 = vld [vmem:[%s2345_s22 + $0x28] sm:$0xff] }
  0x15   : > { %v315_v9 = vpack.c.bf16 %v189_v6, %v188_v4  ;;  %v316_v10 = vpack.c.bf16 %v191_v8, %v190_v7  ;;  %v192_v11 = vld [vmem:[%s2345_s22 + $0x30] sm:$0xff]  ;;  %v193_v12 = vld [vmem:[%s2345_s22 + $0x38] sm:$0xff]  ;;  %v194_v13 = vld [vmem:[%s2345_s22 + $0x40] sm:$0xff] }
  0x16   : > { %2150 = vmatprep.mubr.msk.bf16.mxu0 %vm394_vm0, %v314_v5  ;;  %v195_v14 = vld [vmem:[%s2345_s22 + $0x48] sm:$0xff]  ;;  %v317_v15 = vpack.c.bf16 %v193_v12, %v192_v11  ;;  %v196_v17 = vld [vmem:[%s2345_s22 + $0x50] sm:$0xff]  ;;  %v197_v18 = vld [vmem:[%s2345_s22 + $0x58] sm:$0xff] }
  0x17   : > { %2151 = vmatmul.mubr.msk.bf16.vlgmr.msra.gmra.mrb[0].mxu0 %vm394_vm0, %v315_v9  ;;  %v318_v16 = vpack.c.bf16 %v195_v14, %v194_v13  ;;  %v198_v19 = vld [vmem:[%s2345_s22 + $0x60] sm:$0xff]  ;;  %v199_v20 = vld [vmem:[%s2345_s22 + $0x68] sm:$0xff]  ;;  %v319_v21 = vpack.c.bf16 %v197_v18, %v196_v17  ;;  %v200_v23 = vld [vmem:[%s2345_s22 + $0x70] sm:$0xff] }
  0x18   : > { %2154 = vmatprep.mubr.msk.bf16.mxu0 %vm394_vm0, %v316_v10  ;;  %v320_v22 = vpack.c.bf16 %v199_v20, %v198_v19  ;;  %v201_v24 = vld [vmem:[%s2345_s22 + $0x78] sm:$0xff]  ;;  %v202_v25 = vld [vmem:[%s2345_s22 + $0x80] sm:$0xff]  ;;  %v203_v26 = vld [vmem:[%s2345_s22 + $0x88] sm:$0xff] }
  0x19   : > { %v250_v27 = vld [vmem:[%s2345_s22 + $0x200] sm:$0xff]  ;;  %v251_v28 = vld [vmem:[%s2345_s22 + $0x208] sm:$0xff]  ;;  %v252_v30 = vld [vmem:[%s2345_s22 + $0x210] sm:$0xff]  ;;  %v321_v35 = vpack.c.bf16 %v201_v24, %v200_v23  ;;  %v322_v37 = vpack.c.bf16 %v203_v26, %v202_v25 }
  0x1a   : > { %v346_v29 = vpack.c.bf16 %v251_v28, %v250_v27  ;;  %v253_v31 = vld [vmem:[%s2345_s22 + $0x218] sm:$0xff]  ;;  %v254_v32 = vld [vmem:[%s2345_s22 + $0x220] sm:$0xff]  ;;  %v255_v34 = vld [vmem:[%s2345_s22 + $0x228] sm:$0xff] }
  0x1b   : > { %v347_v33 = vpack.c.bf16 %v253_v31, %v252_v30  ;;  %v348_v36 = vpack.c.bf16 %v255_v34, %v254_v32  ;;  %v256_v38 = vld [vmem:[%s2345_s22 + $0x230] sm:$0xff]  ;;  %v257_v39 = vld [vmem:[%s2345_s22 + $0x238] sm:$0xff]  ;;  %v258_v40 = vld [vmem:[%s2345_s22 + $0x240] sm:$0xff] }
  0x1c   : > { %2214 = vmatprep.mubr.msk.bf16.mxu1 %vm394_vm0, %v346_v29  ;;  %v259_v41 = vld [vmem:[%s2345_s22 + $0x248] sm:$0xff]  ;;  %v204_v42 = vld [vmem:[%s2345_s22 + $0x90] sm:$0xff]  ;;  %v205_v43 = vld [vmem:[%s2345_s22 + $0x98] sm:$0xff]  ;;  %v349_v44 = vpack.c.bf16 %v257_v39, %v256_v38 }
  0x1d   : > { %2215 = vmatmul.mubr.msk.bf16.vlgmr.msra.gmra.mrb[0].mxu1 %vm394_vm0, %v347_v33  ;;  %v206_v45 = vld [vmem:[%s2345_s22 + $0xa0] sm:$0xff]  ;;  %v207_v46 = vld [vmem:[%s2345_s22 + $0xa8] sm:$0xff]  ;;  %v350_v47 = vpack.c.bf16 %v259_v41, %v258_v40  ;;  %v323_v48 = vpack.c.bf16 %v205_v43, %v204_v42  ;;  %v260_v50 = vld [vmem:[%s2345_s22 + $0x250] sm:$0xff] }
  0x1e   : > { %2218 = vmatprep.mubr.msk.bf16.mxu1 %vm394_vm0, %v348_v36  ;;  %v324_v49 = vpack.c.bf16 %v207_v46, %v206_v45  ;;  %v261_v51 = vld [vmem:[%s2345_s22 + $0x258] sm:$0xff]  ;;  %v262_v52 = vld [vmem:[%s2345_s22 + $0x260] sm:$0xff]  ;;  %v263_v53 = vld [vmem:[%s2345_s22 + $0x268] sm:$0xff] }
  0x1f   : > { %2155 = vmatmul.mubr.msk.bf16.gmra.mrb[4].mxu0 %vm394_vm0, %v317_v15  ;;  %v208_v54 = vld [vmem:[%s2345_s22 + $0xb0] sm:$0xff]  ;;  %v209_v55 = vld [vmem:[%s2345_s22 + $0xb8] sm:$0xff]  ;;  %v351_v56 = vpack.c.bf16 %v261_v51, %v260_v50  ;;  %v210_v57 = vld [vmem:[%s2345_s22 + $0xc0] sm:$0xff]  ;;  %v352_v59 = vpack.c.bf16 %v263_v53, %v262_v52 }
  0x20   : > { %2158 = vmatprep.mubr.msk.bf16.mxu0 %vm394_vm0, %v318_v16  ;;  %v211_v58 = vld [vmem:[%s2345_s22 + $0xc8] sm:$0xff]  ;;  %v325_v60 = vpack.c.bf16 %v209_v55, %v208_v54  ;;  %v264_v62 = vld [vmem:[%s2345_s22 + $0x270] sm:$0xff]  ;;  %v265_v63 = vld [vmem:[%s2345_s22 + $0x278] sm:$0xff] }
  0x21   : > { %v326_v61 = vpack.c.bf16 %v211_v58, %v210_v57  ;;  %v266_v0 = vld [vmem:[%s2345_s22 + $0x280] sm:$0xff]  ;;  %v267_v1 = vld [vmem:[%s2345_s22 + $0x288] sm:$0xff]  ;;  %v212_v2 = vld [vmem:[%s2345_s22 + $0xd0] sm:$0xff]  ;;  %v353_v4 = vpack.c.bf16 %v265_v63, %v264_v62 }
  0x22   : > { %v213_v3 = vld [vmem:[%s2345_s22 + $0xd8] sm:$0xff]  ;;  %v214_v5 = vld [vmem:[%s2345_s22 + $0xe0] sm:$0xff]  ;;  %v215_v6 = vld [vmem:[%s2345_s22 + $0xe8] sm:$0xff]  ;;  %v354_v7 = vpack.c.bf16 %v267_v1, %v266_v0 }
  0x23   : > { %v327_v8 = vpack.c.bf16 %v213_v3, %v212_v2  ;;  %v328_v9 = vpack.c.bf16 %v215_v6, %v214_v5  ;;  %v268_v10 = vld [vmem:[%s2345_s22 + $0x290] sm:$0xff]  ;;  %v269_v11 = vld [vmem:[%s2345_s22 + $0x298] sm:$0xff]  ;;  %v270_v12 = vld [vmem:[%s2345_s22 + $0x2a0] sm:$0xff] }
  0x24   : > { %v271_v13 = vld [vmem:[%s2345_s22 + $0x2a8] sm:$0xff]  ;;  %v216_v14 = vld [vmem:[%s2345_s22 + $0xf0] sm:$0xff]  ;;  %v217_v15 = vld [vmem:[%s2345_s22 + $0xf8] sm:$0xff]  ;;  %v355_v16 = vpack.c.bf16 %v269_v11, %v268_v10 }
  0x25   : > { %2219 = vmatmul.mubr.msk.bf16.gmra.mrb[4].mxu1 %vm394_vm0, %v349_v44  ;;  %v218_v17 = vld [vmem:[%s2345_s22 + $0x100] sm:$0xff]  ;;  %v219_v18 = vld [vmem:[%s2345_s22 + $0x108] sm:$0xff]  ;;  %v356_v19 = vpack.c.bf16 %v271_v13, %v270_v12  ;;  %v329_v20 = vpack.c.bf16 %v217_v15, %v216_v14  ;;  %v273_v23 = vld [vmem:[%s2345_s22 + $0x2b8] sm:$0xff] }
  0x26   : > { %2222 = vmatprep.mubr.msk.bf16.mxu1 %vm394_vm0, %v350_v47  ;;  %v274_v24 = vld [vmem:[%s2345_s22 + $0x2c0] sm:$0xff]  ;;  %v275_v25 = vld [vmem:[%s2345_s22 + $0x2c8] sm:$0xff]  ;;  %v220_v26 = vld [vmem:[%s2345_s22 + $0x110] sm:$0xff] }
  0x27   : > { %2159 = vmatmul.mubr.msk.bf16.gmra.mrb[8].mxu0 %vm394_vm0, %v319_v21  ;;  %v330_v21 = vpack.c.bf16 %v219_v18, %v218_v17  ;;  %v221_v27 = vld [vmem:[%s2345_s22 + $0x118] sm:$0xff]  ;;  %v222_v29 = vld [vmem:[%s2345_s22 + $0x120] sm:$0xff]  ;;  %v223_v30 = vld [vmem:[%s2345_s22 + $0x128] sm:$0xff]  ;;  %v358_v31 = vpack.c.bf16 %v275_v25, %v274_v24 }
  0x28   : > { %2162 = vmatprep.mubr.msk.bf16.mxu0 %vm394_vm0, %v320_v22  ;;  %v272_v22 = vld [vmem:[%s2345_s22 + $0x2b0] sm:$0xff]  ;;  %v331_v32 = vpack.c.bf16 %v221_v27, %v220_v26  ;;  %v332_v33 = vpack.c.bf16 %v223_v30, %v222_v29  ;;  %v278_v36 = vld [vmem:[%s2345_s22 + $0x2e0] sm:$0xff]  ;;  %v225_v39 = vld [vmem:[%s2345_s22 + $0x138] sm:$0xff] }
  0x29   : > { %v357_v28 = vpack.c.bf16 %v273_v23, %v272_v22  ;;  %v276_v34 = vld [vmem:[%s2345_s22 + $0x2d0] sm:$0xff]  ;;  %v226_v41 = vld [vmem:[%s2345_s22 + $0x140] sm:$0xff]  ;;  %v227_v42 = vld [vmem:[%s2345_s22 + $0x148] sm:$0xff] }
  0x2a   : > { %v224_v38 = vld [vmem:[%s2345_s22 + $0x130] sm:$0xff]  ;;  %v334_v45 = vpack.c.bf16 %v227_v42, %v226_v41  ;;  %v281_v47 = vld [vmem:[%s2345_s22 + $0x2f8] sm:$0xff]  ;;  %v230_v53 = vld [vmem:[%s2345_s22 + $0x160] sm:$0xff] }
  0x2b   : > { %v333_v44 = vpack.c.bf16 %v225_v39, %v224_v38  ;;  %v280_v46 = vld [vmem:[%s2345_s22 + $0x2f0] sm:$0xff]  ;;  %v229_v51 = vld [vmem:[%s2345_s22 + $0x158] sm:$0xff]  ;;  %v231_v54 = vld [vmem:[%s2345_s22 + $0x168] sm:$0xff] }
  0x2c   : > { %v228_v50 = vld [vmem:[%s2345_s22 + $0x150] sm:$0xff]  ;;  %v361_v52 = vpack.c.bf16 %v281_v47, %v280_v46  ;;  %v336_v57 = vpack.c.bf16 %v231_v54, %v230_v53  ;;  %v233_v63 = vld [vmem:[%s2345_s22 + $0x178] sm:$0xff]  ;;  %v234_v1 = vld [vmem:[%s2345_s22 + $0x180] sm:$0xff] }
  0x2d   : > { %2223 = vmatmul.mubr.msk.bf16.gmra.mrb[8].mxu1 %vm394_vm0, %v351_v56  ;;  %v335_v56 = vpack.c.bf16 %v229_v51, %v228_v50  ;;  %v284_v58 = vld [vmem:[%s2345_s22 + $0x310] sm:$0xff]  ;;  %v235_v2 = vld [vmem:[%s2345_s22 + $0x188] sm:$0xff]  ;;  %v237_v11 = vld [vmem:[%s2345_s22 + $0x198] sm:$0xff] }
  0x2e   : > { %2226 = vmatprep.mubr.msk.bf16.mxu1 %vm394_vm0, %v352_v59  ;;  %v285_v59 = vld [vmem:[%s2345_s22 + $0x318] sm:$0xff]  ;;  %v232_v62 = vld [vmem:[%s2345_s22 + $0x170] sm:$0xff]  ;;  %v338_v5 = vpack.c.bf16 %v235_v2, %v234_v1  ;;  %v238_v13 = vld [vmem:[%s2345_s22 + $0x1a0] sm:$0xff] }
  0x2f   : > { %2163 = vmatmul.mubr.msk.bf16.gmra.mrb[12].mxu0 %vm394_vm0, %v321_v35  ;;  %v277_v35 = vld [vmem:[%s2345_s22 + $0x2d8] sm:$0xff]  ;;  %v363_v0 = vpack.c.bf16 %v285_v59, %v284_v58  ;;  %v288_v6 = vld [vmem:[%s2345_s22 + $0x330] sm:$0xff]  ;;  %v239_v14 = vld [vmem:[%s2345_s22 + $0x1a8] sm:$0xff] }
  0x30   : > { %2166 = vmatprep.mubr.msk.bf16.mxu0 %vm394_vm0, %v322_v37  ;;  %v279_v37 = vld [vmem:[%s2345_s22 + $0x2e8] sm:$0xff]  ;;  %v359_v40 = vpack.c.bf16 %v277_v35, %v276_v34  ;;  %v236_v10 = vld [vmem:[%s2345_s22 + $0x190] sm:$0xff]  ;;  %v340_v17 = vpack.c.bf16 %v239_v14, %v238_v13  ;;  %v241_v23 = vld [vmem:[%s2345_s22 + $0x1b8] sm:$0xff] }
  0x31   : > { %v360_v43 = vpack.c.bf16 %v279_v37, %v278_v36  ;;  %v292_v18 = vld [vmem:[%s2345_s22 + $0x350] sm:$0xff]  ;;  %v242_v25 = vld [vmem:[%s2345_s22 + $0x1c0] sm:$0xff]  ;;  %v243_v26 = vld [vmem:[%s2345_s22 + $0x1c8] sm:$0xff] }
  0x32   : > { %v240_v22 = vld [vmem:[%s2345_s22 + $0x1b0] sm:$0xff]  ;;  %v342_v29 = vpack.c.bf16 %v243_v26, %v242_v25  ;;  %v245_v35 = vld [vmem:[%s2345_s22 + $0x1d8] sm:$0xff]  ;;  %v246_v37 = vld [vmem:[%s2345_s22 + $0x1e0] sm:$0xff] }
  0x33   : > { %v296_v30 = vld [vmem:[%s2345_s22 + $0x370] sm:$0xff]  ;;  %v247_v38 = vld [vmem:[%s2345_s22 + $0x1e8] sm:$0xff]  ;;  %v249_v47 = vld [vmem:[%s2345_s22 + $0x1f8] sm:$0xff] }
  0x34   : > { %v244_v34 = vld [vmem:[%s2345_s22 + $0x1d0] sm:$0xff]  ;;  %v344_v41 = vpack.c.bf16 %v247_v38, %v246_v37  ;;  %v306_v53 = vld [vmem:[%s2345_s22 + $0x3c0] sm:$0xff]  ;;  %v307_v54 = vld [vmem:[%s2345_s22 + $0x3c8] sm:$0xff] }
  0x35   : > { %2227 = vmatmul.mubr.msk.bf16.gmra.mrb[12].mxu1 %vm394_vm0, %v353_v4  ;;  %v337_v4 = vpack.c.bf16 %v233_v63, %v232_v62  ;;  %v300_v42 = vld [vmem:[%s2345_s22 + $0x390] sm:$0xff]  ;;  %v309_v58 = vld [vmem:[%s2345_s22 + $0x3d8] sm:$0xff]  ;;  %v310_v59 = vld [vmem:[%s2345_s22 + $0x3e0] sm:$0xff] }
  0x36   : > { %2230 = vmatprep.mubr.msk.bf16.mxu1 %vm394_vm0, %v354_v7  ;;  %v289_v7 = vld [vmem:[%s2345_s22 + $0x338] sm:$0xff]  ;;  %v248_v46 = vld [vmem:[%s2345_s22 + $0x1f0] sm:$0xff] }
  0x37   : > { %2167 = vmatmul.mubr.msk.bf16.gmra.mrb[16].mxu0 %vm394_vm0, %v323_v48  ;;  %v282_v48 = vld [vmem:[%s2345_s22 + $0x300] sm:$0xff]  ;;  %v365_v12 = vpack.c.bf16 %v289_v7, %v288_v6  ;;  %v345_v50 = vpack.c.bf16 %v249_v47, %v248_v46  ;;  %v304_v51 = vld [vmem:[%s2345_s22 + $0x3b0] sm:$0xff] }
  0x38   : > { %2170 = vmatprep.mubr.msk.bf16.mxu0 %vm394_vm0, %v324_v49  ;;  %v283_v49 = vld [vmem:[%s2345_s22 + $0x308] sm:$0xff]  ;;  %v312_v63 = vld [vmem:[%s2345_s22 + $0x3f0] sm:$0xff] }
  0x39   : > { %v362_v55 = vpack.c.bf16 %v283_v49, %v282_v48 }
  0x3d   : > { %2231 = vmatmul.mubr.msk.bf16.gmra.mrb[16].mxu1 %vm394_vm0, %v355_v16  ;;  %v339_v16 = vpack.c.bf16 %v237_v11, %v236_v10 }
  0x3e   : > { %2234 = vmatprep.mubr.msk.bf16.mxu1 %vm394_vm0, %v356_v19  ;;  %v293_v19 = vld [vmem:[%s2345_s22 + $0x358] sm:$0xff] }
  0x3f   : > { %2171 = vmatmul.mubr.msk.bf16.gmra.mrb[20].mxu0 %vm394_vm0, %v325_v60  ;;  %v286_v60 = vld [vmem:[%s2345_s22 + $0x320] sm:$0xff]  ;;  %v367_v24 = vpack.c.bf16 %v293_v19, %v292_v18 }
  0x40   : > { %2174 = vmatprep.mubr.msk.bf16.mxu0 %vm394_vm0, %v326_v61  ;;  %v287_v61 = vld [vmem:[%s2345_s22 + $0x328] sm:$0xff] }
  0x41   : > { %v364_v3 = vpack.c.bf16 %v287_v61, %v286_v60  ;;  %v311_v60 = vld [vmem:[%s2345_s22 + $0x3e8] sm:$0xff] }
  0x42   : > { %v376_v62 = vpack.c.bf16 %v311_v60, %v310_v59 }
  0x45   : > { %2235 = vmatmul.mubr.msk.bf16.gmra.mrb[20].mxu1 %vm394_vm0, %v357_v28  ;;  %v341_v28 = vpack.c.bf16 %v241_v23, %v240_v22 }
  0x46   : > { %2238 = vmatprep.mubr.msk.bf16.mxu1 %vm394_vm0, %v358_v31  ;;  %v297_v31 = vld [vmem:[%s2345_s22 + $0x378] sm:$0xff] }
  0x47   : > { %2175 = vmatmul.mubr.msk.bf16.gmra.mrb[24].mxu0 %vm394_vm0, %v327_v8  ;;  %v290_v8 = vld [vmem:[%s2345_s22 + $0x340] sm:$0xff]  ;;  %v369_v36 = vpack.c.bf16 %v297_v31, %v296_v30 }
  0x48   : > { %2178 = vmatprep.mubr.msk.bf16.mxu0 %vm394_vm0, %v328_v9  ;;  %v291_v9 = vld [vmem:[%s2345_s22 + $0x348] sm:$0xff] }
  0x49   : > { %v366_v15 = vpack.c.bf16 %v291_v9, %v290_v8 }
  0x4d   : > { %2239 = vmatmul.mubr.msk.bf16.gmra.mrb[24].mxu1 %vm394_vm0, %v359_v40  ;;  %v343_v40 = vpack.c.bf16 %v245_v35, %v244_v34 }
  0x4e   : > { %2242 = vmatprep.mubr.msk.bf16.mxu1 %vm394_vm0, %v360_v43  ;;  %v301_v43 = vld [vmem:[%s2345_s22 + $0x398] sm:$0xff] }
  0x4f   : > { %2179 = vmatmul.mubr.msk.bf16.gmra.mrb[28].mxu0 %vm394_vm0, %v329_v20  ;;  %v294_v20 = vld [vmem:[%s2345_s22 + $0x360] sm:$0xff]  ;;  %v371_v48 = vpack.c.bf16 %v301_v43, %v300_v42 }
  0x50   : > { %2182 = vmatprep.mubr.msk.bf16.mxu0 %vm394_vm0, %v330_v21  ;;  %v295_v21 = vld [vmem:[%s2345_s22 + $0x368] sm:$0xff] }
  0x51   : > { %v368_v27 = vpack.c.bf16 %v295_v21, %v294_v20 }
  0x55   : > { %2243 = vmatmul.mubr.msk.bf16.gmra.mrb[28].mxu1 %vm394_vm0, %v361_v52  ;;  %v305_v52 = vld [vmem:[%s2345_s22 + $0x3b8] sm:$0xff] }
  0x56   : > { %2246 = vmatprep.mubr.msk.bf16.mxu1 %vm394_vm0, %v362_v55  ;;  %v373_v55 = vpack.c.bf16 %v305_v52, %v304_v51 }
  0x57   : > { %2183 = vmatmul.mubr.msk.bf16.gmra.mrb[32].mxu0 %vm394_vm0, %v331_v32  ;;  %v298_v32 = vld [vmem:[%s2345_s22 + $0x380] sm:$0xff] }
  0x58   : > { %2186 = vmatprep.mubr.msk.bf16.mxu0 %vm394_vm0, %v332_v33  ;;  %v299_v33 = vld [vmem:[%s2345_s22 + $0x388] sm:$0xff] }
  0x59   : > { %v370_v39 = vpack.c.bf16 %v299_v33, %v298_v32 }
  0x5d   : > { %2247 = vmatmul.mubr.msk.bf16.gmra.mrb[32].mxu1 %vm394_vm0, %v363_v0  ;;  %v313_v0 = vld [vmem:[%s2345_s22 + $0x3f8] sm:$0xff] }
  0x5e   : > { %2250 = vmatprep.mubr.msk.bf16.mxu1 %vm394_vm0, %v364_v3  ;;  %v377_v1 = vpack.c.bf16 %v313_v0, %v312_v63 }
  0x5f   : > { %2187 = vmatmul.mubr.msk.bf16.gmra.mrb[36].mxu0 %vm394_vm0, %v333_v44  ;;  %v302_v44 = vld [vmem:[%s2345_s22 + $0x3a0] sm:$0xff] }
  0x60   : > { %2190 = vmatprep.mubr.msk.bf16.mxu0 %vm394_vm0, %v334_v45  ;;  %v303_v45 = vld [vmem:[%s2345_s22 + $0x3a8] sm:$0xff] }
  0x61   : > { %v372_v49 = vpack.c.bf16 %v303_v45, %v302_v44 }
  0x65   : > { %2251 = vmatmul.mubr.msk.bf16.gmra.mrb[36].mxu1 %vm394_vm0, %v365_v12 }
  0x66   : > { %2254 = vmatprep.mubr.msk.bf16.mxu1 %vm394_vm0, %v366_v15 }
  0x67   : > { %2191 = vmatmul.mubr.msk.bf16.gmra.mrb[40].mxu0 %vm394_vm0, %v335_v56  ;;  %v374_v56 = vpack.c.bf16 %v307_v54, %v306_v53 }
  0x68   : > { %2194 = vmatprep.mubr.msk.bf16.mxu0 %vm394_vm0, %v336_v57  ;;  %v308_v57 = vld [vmem:[%s2345_s22 + $0x3d0] sm:$0xff] }
  0x69   : > { %v375_v61 = vpack.c.bf16 %v309_v58, %v308_v57 }
  0x6d   : > { %2255 = vmatmul.mubr.msk.bf16.gmra.mrb[40].mxu1 %vm394_vm0, %v367_v24 }
  0x6e   : > { %2258 = vmatprep.mubr.msk.bf16.mxu1 %vm394_vm0, %v368_v27 }
  0x6f   : > { %2195 = vmatmul.mubr.msk.bf16.gmra.mrb[44].mxu0 %vm394_vm0, %v337_v4 }
  0x70   : > { %2198 = vmatprep.mubr.msk.bf16.mxu0 %vm394_vm0, %v338_v5 }
  0x75   : > { %2259 = vmatmul.mubr.msk.bf16.gmra.mrb[44].mxu1 %vm394_vm0, %v369_v36 }
  0x76   : > { %2262 = vmatprep.mubr.msk.bf16.mxu1 %vm394_vm0, %v370_v39 }
  0x77   : > { %2199 = vmatmul.mubr.msk.bf16.gmra.mrb[48].mxu0 %vm394_vm0, %v339_v16 }
  0x78   : > { %2202 = vmatprep.mubr.msk.bf16.mxu0 %vm394_vm0, %v340_v17 }
  0x7d   : > { %2263 = vmatmul.mubr.msk.bf16.gmra.mrb[48].mxu1 %vm394_vm0, %v371_v48 }
  0x7e   : > { %2266 = vmatprep.mubr.msk.bf16.mxu1 %vm394_vm0, %v372_v49 }
  0x7f   : > { %2203 = vmatmul.mubr.msk.bf16.gmra.mrb[52].mxu0 %vm394_vm0, %v341_v28 }
  0x80   : > { %2206 = vmatprep.mubr.msk.bf16.mxu0 %vm394_vm0, %v342_v29 }
  0x85   : > { %2267 = vmatmul.mubr.msk.bf16.gmra.mrb[52].mxu1 %vm394_vm0, %v373_v55 }
  0x86   : > { %2270 = vmatprep.mubr.msk.bf16.mxu1 %vm394_vm0, %v374_v56 }
  0x87   : > { %2207 = vmatmul.mubr.msk.bf16.gmra.mrb[56].mxu0 %vm394_vm0, %v343_v40 }
  0x88   : > { %2210 = vmatprep.mubr.msk.bf16.mxu0 %vm394_vm0, %v344_v41 }
  0x8d   : > { %2271 = vmatmul.mubr.msk.bf16.gmra.mrb[56].mxu1 %vm394_vm0, %v375_v61 }
  0x8e   : > { %2274 = vmatprep.mubr.msk.bf16.mxu1 %vm394_vm0, %v376_v62 }
  0x8f   : > { %2211 = vmatmul.mubr.msk.bf16.gmra.mrb[60].mxu0 %vm394_vm0, %v345_v50 }
  0x95   : > { %2275 = vmatmul.mubr.msk.bf16.gmra.mrb[60].mxu1 %vm394_vm0, %v377_v1 }
  0xea   : > { %v2152_v2 = vpop.f32.mrb[0].mxu0 }
  0xeb   : > { %1135 = vst.msk [vmem:[%s2544_s25 + $0x10] sm:$0xff] %vm1132_vm1, %v2152_v2  ;;  %v621_v3 = vpop.f32.mrb[1].mxu0  ;;  %v1524_v7 = vmul.f32 %v2152_v2, %v2152_v2  ;;  %v1264_v12 = vsel %vm1132_vm1, %v2152_v2, 0.0 }
  0xec   : > { %1133 = vst.msk [vmem:[%s2544_s25] sm:$0xff] %vm1132_vm1, %v621_v3  ;;  %v1522_v4 = vmul.f32 %v621_v3, %v621_v3  ;;  %v2153_v5 = vpop.f32.mrb[2].mxu0  ;;  %v1261_v8 = vsel %vm1132_vm1, %v621_v3, 0.0 }
  0xed   : > { %1136 = vst.msk [vmem:[%s2544_s25 + $0x18] sm:$0xff] %vm1132_vm1, %v2153_v5  ;;  %v624_v6 = vpop.f32.mrb[3].mxu0  ;;  %v1525_v14 = vmul.f32 %v2153_v5, %v2153_v5  ;;  %v1653_v18 = vsel %vm1132_vm1, %v1524_v7, 0.0  ;;  %v1266_v19 = vsel %vm1132_vm1, %v2153_v5, 0.0 }
  0xee   : > { %1134 = vst.msk [vmem:[%s2544_s25 + $0x8] sm:$0xff] %vm1132_vm1, %v624_v6  ;;  %v1262_v9 = vsel %vm1132_vm1, %v624_v6, 0.0  ;;  %v1523_v10 = vmul.f32 %v624_v6, %v624_v6  ;;  %v1650_v13 = vsel %vm1132_vm1, %v1522_v4, 0.0 }
  0xef   : > { %v1263_v11 = vadd.f32 %v1262_v9, %v1261_v8  ;;  %v1655_v24 = vsel %vm1132_vm1, %v1525_v14, 0.0 }
  0xf0   : > { %v1651_v15 = vsel %vm1132_vm1, %v1523_v10, 0.0  ;;  %v2589_v61 = vpop.f32.mrb[0].mxu1 }
  0xf1   : > { %v1265_v16 = vadd.f32 %v1264_v12, %v1263_v11  ;;  %v1652_v17 = vadd.f32 %v1651_v15, %v1650_v13  ;;  %1199 = vst.msk [vmem:[%s2544_s25 + $0x210] sm:$0xff] %vm1132_vm1, %v2589_v61  ;;  %v2596_v1 = vpop.f32.mrb[1].mxu1 }
  0xf2   : > { %v2156_v20 = vpop.f32.mrb[4].mxu0  ;;  %1197 = vst.msk [vmem:[%s2544_s25 + $0x200] sm:$0xff] %vm1132_vm1, %v2596_v1  ;;  %v2601_v4 = vpop.f32.mrb[2].mxu1 }
  0xf3   : > { %v1654_v21 = vadd.f32 %v1653_v18, %v1652_v17  ;;  %1139 = vst.msk [vmem:[%s2544_s25 + $0x30] sm:$0xff] %vm1132_vm1, %v2156_v20  ;;  %v637_v22 = vpop.f32.mrb[5].mxu0  ;;  %v1267_v23 = vadd.f32 %v1266_v19, %v1265_v16  ;;  %v1528_v31 = vmul.f32 %v2156_v20, %v2156_v20  ;;  %v1272_v37 = vsel %vm1132_vm1, %v2156_v20, 0.0  ;;  %1200 = vst.msk [vmem:[%s2544_s25 + $0x218] sm:$0xff] %vm1132_vm1, %v2601_v4  ;;  %v2608_v8 = vpop.f32.mrb[3].mxu1 }
  0xf4   : > { %1137 = vst.msk [vmem:[%s2544_s25 + $0x20] sm:$0xff] %vm1132_vm1, %v637_v22  ;;  %v1268_v25 = vsel %vm1132_vm1, %v637_v22, 0.0  ;;  %v1526_v26 = vmul.f32 %v637_v22, %v637_v22  ;;  %v2157_v27 = vpop.f32.mrb[6].mxu0  ;;  %1198 = vst.msk [vmem:[%s2544_s25 + $0x208] sm:$0xff] %vm1132_vm1, %v2608_v8 }
  0xf5   : > { %v1269_v28 = vadd.f32 %v1268_v25, %v1267_v23  ;;  %v1656_v29 = vadd.f32 %v1655_v24, %v1654_v21  ;;  %1140 = vst.msk [vmem:[%s2544_s25 + $0x38] sm:$0xff] %vm1132_vm1, %v2157_v27  ;;  %v640_v30 = vpop.f32.mrb[7].mxu0  ;;  %v1529_v38 = vmul.f32 %v2157_v27, %v2157_v27  ;;  %v1661_v42 = vsel %vm1132_vm1, %v1528_v31, 0.0 }
  0xf6   : > { %v1657_v32 = vsel %vm1132_vm1, %v1526_v26, 0.0  ;;  %1138 = vst.msk [vmem:[%s2544_s25 + $0x28] sm:$0xff] %vm1132_vm1, %v640_v30  ;;  %v1270_v33 = vsel %vm1132_vm1, %v640_v30, 0.0  ;;  %v1527_v34 = vmul.f32 %v640_v30, %v640_v30  ;;  %v1274_v43 = vsel %vm1132_vm1, %v2157_v27, 0.0 }
  0xf7   : > { %v1658_v35 = vadd.f32 %v1657_v32, %v1656_v29  ;;  %v1271_v36 = vadd.f32 %v1270_v33, %v1269_v28  ;;  %v1663_v48 = vsel %vm1132_vm1, %v1529_v38, 0.0 }
  0xf8   : > { %v1659_v39 = vsel %vm1132_vm1, %v1527_v34, 0.0  ;;  %v2625_v25 = vpop.f32.mrb[4].mxu1 }
  0xf9   : > { %v1273_v40 = vadd.f32 %v1272_v37, %v1271_v36  ;;  %v1660_v41 = vadd.f32 %v1659_v39, %v1658_v35  ;;  %1203 = vst.msk [vmem:[%s2544_s25 + $0x230] sm:$0xff] %vm1132_vm1, %v2625_v25  ;;  %v2632_v29 = vpop.f32.mrb[5].mxu1 }
  0xfa   : > { %v2160_v44 = vpop.f32.mrb[8].mxu0  ;;  %1201 = vst.msk [vmem:[%s2544_s25 + $0x220] sm:$0xff] %vm1132_vm1, %v2632_v29  ;;  %v2637_v32 = vpop.f32.mrb[6].mxu1 }
  0xfb   : > { %v1662_v45 = vadd.f32 %v1661_v42, %v1660_v41  ;;  %1143 = vst.msk [vmem:[%s2544_s25 + $0x50] sm:$0xff] %vm1132_vm1, %v2160_v44  ;;  %v653_v46 = vpop.f32.mrb[9].mxu0  ;;  %v1275_v47 = vadd.f32 %v1274_v43, %v1273_v40  ;;  %v1532_v55 = vmul.f32 %v2160_v44, %v2160_v44  ;;  %v1280_v62 = vsel %vm1132_vm1, %v2160_v44, 0.0  ;;  %1204 = vst.msk [vmem:[%s2544_s25 + $0x238] sm:$0xff] %vm1132_vm1, %v2637_v32  ;;  %v2644_v36 = vpop.f32.mrb[7].mxu1 }
  0xfc   : > { %1141 = vst.msk [vmem:[%s2544_s25 + $0x40] sm:$0xff] %vm1132_vm1, %v653_v46  ;;  %v1276_v49 = vsel %vm1132_vm1, %v653_v46, 0.0  ;;  %v1530_v50 = vmul.f32 %v653_v46, %v653_v46  ;;  %v2161_v51 = vpop.f32.mrb[10].mxu0  ;;  %1202 = vst.msk [vmem:[%s2544_s25 + $0x228] sm:$0xff] %vm1132_vm1, %v2644_v36 }
  0xfd   : > { %v1277_v52 = vadd.f32 %v1276_v49, %v1275_v47  ;;  %v1664_v53 = vadd.f32 %v1663_v48, %v1662_v45  ;;  %1144 = vst.msk [vmem:[%s2544_s25 + $0x58] sm:$0xff] %vm1132_vm1, %v2161_v51  ;;  %v656_v54 = vpop.f32.mrb[11].mxu0  ;;  %v1533_v63 = vmul.f32 %v2161_v51, %v2161_v51  ;;  %v1669_v5 = vsel %vm1132_vm1, %v1532_v55, 0.0 }
  0xfe   : > { %v1665_v56 = vsel %vm1132_vm1, %v1530_v50, 0.0  ;;  %1142 = vst.msk [vmem:[%s2544_s25 + $0x48] sm:$0xff] %vm1132_vm1, %v656_v54  ;;  %v1278_v57 = vsel %vm1132_vm1, %v656_v54, 0.0  ;;  %v1531_v58 = vmul.f32 %v656_v54, %v656_v54  ;;  %v1282_v6 = vsel %vm1132_vm1, %v2161_v51, 0.0 }
  0xff   : > { %v1666_v59 = vadd.f32 %v1665_v56, %v1664_v53  ;;  %v1279_v60 = vadd.f32 %v1278_v57, %v1277_v52  ;;  %v1671_v12 = vsel %vm1132_vm1, %v1533_v63, 0.0 }
 0x100   : > { %v1667_v0 = vsel %vm1132_vm1, %v1531_v58, 0.0  ;;  %v2661_v53 = vpop.f32.mrb[8].mxu1 }
 0x101   : > { %v1281_v2 = vadd.f32 %v1280_v62, %v1279_v60  ;;  %v1668_v3 = vadd.f32 %v1667_v0, %v1666_v59  ;;  %1207 = vst.msk [vmem:[%s2544_s25 + $0x250] sm:$0xff] %vm1132_vm1, %v2661_v53  ;;  %v2668_v57 = vpop.f32.mrb[9].mxu1 }
 0x102   : > { %v2164_v7 = vpop.f32.mrb[12].mxu0  ;;  %1205 = vst.msk [vmem:[%s2544_s25 + $0x240] sm:$0xff] %vm1132_vm1, %v2668_v57  ;;  %v2673_v60 = vpop.f32.mrb[10].mxu1 }
 0x103   : > { %v1670_v9 = vadd.f32 %v1669_v5, %v1668_v3  ;;  %1147 = vst.msk [vmem:[%s2544_s25 + $0x70] sm:$0xff] %vm1132_vm1, %v2164_v7  ;;  %v669_v10 = vpop.f32.mrb[13].mxu0  ;;  %v1283_v11 = vadd.f32 %v1282_v6, %v1281_v2  ;;  %v1536_v19 = vmul.f32 %v2164_v7, %v2164_v7  ;;  %v1288_v26 = vsel %vm1132_vm1, %v2164_v7, 0.0  ;;  %1208 = vst.msk [vmem:[%s2544_s25 + $0x258] sm:$0xff] %vm1132_vm1, %v2673_v60  ;;  %v2680_v2 = vpop.f32.mrb[11].mxu1 }
 0x104   : > { %1145 = vst.msk [vmem:[%s2544_s25 + $0x60] sm:$0xff] %vm1132_vm1, %v669_v10  ;;  %v1284_v13 = vsel %vm1132_vm1, %v669_v10, 0.0  ;;  %v1534_v14 = vmul.f32 %v669_v10, %v669_v10  ;;  %v2165_v15 = vpop.f32.mrb[14].mxu0  ;;  %1206 = vst.msk [vmem:[%s2544_s25 + $0x248] sm:$0xff] %vm1132_vm1, %v2680_v2 }
 0x105   : > { %v1285_v16 = vadd.f32 %v1284_v13, %v1283_v11  ;;  %v1672_v17 = vadd.f32 %v1671_v12, %v1670_v9  ;;  %1148 = vst.msk [vmem:[%s2544_s25 + $0x78] sm:$0xff] %vm1132_vm1, %v2165_v15  ;;  %v672_v18 = vpop.f32.mrb[15].mxu0  ;;  %v1537_v27 = vmul.f32 %v2165_v15, %v2165_v15  ;;  %v1677_v33 = vsel %vm1132_vm1, %v1536_v19, 0.0 }
 0x106   : > { %v1673_v20 = vsel %vm1132_vm1, %v1534_v14, 0.0  ;;  %1146 = vst.msk [vmem:[%s2544_s25 + $0x68] sm:$0xff] %vm1132_vm1, %v672_v18  ;;  %v1286_v21 = vsel %vm1132_vm1, %v672_v18, 0.0  ;;  %v1535_v22 = vmul.f32 %v672_v18, %v672_v18  ;;  %v1290_v34 = vsel %vm1132_vm1, %v2165_v15, 0.0 }
 0x107   : > { %v1674_v23 = vadd.f32 %v1673_v20, %v1672_v17  ;;  %v1287_v24 = vadd.f32 %v1286_v21, %v1285_v16  ;;  %v1679_v40 = vsel %vm1132_vm1, %v1537_v27, 0.0 }
 0x108   : > { %v1675_v28 = vsel %vm1132_vm1, %v1535_v22, 0.0  ;;  %v2697_v21 = vpop.f32.mrb[12].mxu1 }
 0x109   : > { %v1289_v30 = vadd.f32 %v1288_v26, %v1287_v24  ;;  %v1676_v31 = vadd.f32 %v1675_v28, %v1674_v23  ;;  %1211 = vst.msk [vmem:[%s2544_s25 + $0x270] sm:$0xff] %vm1132_vm1, %v2697_v21  ;;  %v2704_v26 = vpop.f32.mrb[13].mxu1 }
 0x10a   : > { %v2168_v35 = vpop.f32.mrb[16].mxu0  ;;  %1209 = vst.msk [vmem:[%s2544_s25 + $0x260] sm:$0xff] %vm1132_vm1, %v2704_v26 }
 0x10b   : > { %v1678_v37 = vadd.f32 %v1677_v33, %v1676_v31  ;;  %1151 = vst.msk [vmem:[%s2544_s25 + $0x90] sm:$0xff] %vm1132_vm1, %v2168_v35  ;;  %v685_v38 = vpop.f32.mrb[17].mxu0  ;;  %v1291_v39 = vadd.f32 %v1290_v34, %v1289_v30  ;;  %v1540_v47 = vmul.f32 %v2168_v35, %v2168_v35  ;;  %v1296_v54 = vsel %vm1132_vm1, %v2168_v35, 0.0  ;;  %v2709_v30 = vpop.f32.mrb[14].mxu1 }
 0x10c   : > { %1149 = vst.msk [vmem:[%s2544_s25 + $0x80] sm:$0xff] %vm1132_vm1, %v685_v38  ;;  %v1292_v41 = vsel %vm1132_vm1, %v685_v38, 0.0  ;;  %v1538_v42 = vmul.f32 %v685_v38, %v685_v38  ;;  %v2169_v43 = vpop.f32.mrb[18].mxu0  ;;  %1212 = vst.msk [vmem:[%s2544_s25 + $0x278] sm:$0xff] %vm1132_vm1, %v2709_v30  ;;  %v2716_v35 = vpop.f32.mrb[15].mxu1 }
 0x10d   : > { %v1293_v44 = vadd.f32 %v1292_v41, %v1291_v39  ;;  %v1680_v45 = vadd.f32 %v1679_v40, %v1678_v37  ;;  %1152 = vst.msk [vmem:[%s2544_s25 + $0x98] sm:$0xff] %vm1132_vm1, %v2169_v43  ;;  %v688_v46 = vpop.f32.mrb[19].mxu0  ;;  %v1541_v55 = vmul.f32 %v2169_v43, %v2169_v43  ;;  %v1685_v62 = vsel %vm1132_vm1, %v1540_v47, 0.0  ;;  %1210 = vst.msk [vmem:[%s2544_s25 + $0x268] sm:$0xff] %vm1132_vm1, %v2716_v35 }
 0x10e   : > { %v1681_v48 = vsel %vm1132_vm1, %v1538_v42, 0.0  ;;  %1150 = vst.msk [vmem:[%s2544_s25 + $0x88] sm:$0xff] %vm1132_vm1, %v688_v46  ;;  %v1294_v49 = vsel %vm1132_vm1, %v688_v46, 0.0  ;;  %v1539_v50 = vmul.f32 %v688_v46, %v688_v46  ;;  %v1298_v63 = vsel %vm1132_vm1, %v2169_v43, 0.0 }
 0x10f   : > { %v1682_v51 = vadd.f32 %v1681_v48, %v1680_v45  ;;  %v1295_v52 = vadd.f32 %v1294_v49, %v1293_v44  ;;  %v1687_v7 = vsel %vm1132_vm1, %v1541_v55, 0.0 }
 0x110   : > { %v1683_v56 = vsel %vm1132_vm1, %v1539_v50, 0.0 }
 0x111   : > { %v1297_v58 = vadd.f32 %v1296_v54, %v1295_v52  ;;  %v1684_v59 = vadd.f32 %v1683_v56, %v1682_v51  ;;  %v2733_v54 = vpop.f32.mrb[16].mxu1 }
 0x112   : > { %v2172_v0 = vpop.f32.mrb[20].mxu0  ;;  %1215 = vst.msk [vmem:[%s2544_s25 + $0x290] sm:$0xff] %vm1132_vm1, %v2733_v54 }
 0x113   : > { %v1686_v3 = vadd.f32 %v1685_v62, %v1684_v59  ;;  %1155 = vst.msk [vmem:[%s2544_s25 + $0xb0] sm:$0xff] %vm1132_vm1, %v2172_v0  ;;  %v701_v5 = vpop.f32.mrb[21].mxu0  ;;  %v1299_v6 = vadd.f32 %v1298_v63, %v1297_v58  ;;  %v1544_v15 = vmul.f32 %v2172_v0, %v2172_v0  ;;  %v1304_v22 = vsel %vm1132_vm1, %v2172_v0, 0.0  ;;  %v2740_v59 = vpop.f32.mrb[17].mxu1 }
 0x114   : > { %1153 = vst.msk [vmem:[%s2544_s25 + $0xa0] sm:$0xff] %vm1132_vm1, %v701_v5  ;;  %v1300_v9 = vsel %vm1132_vm1, %v701_v5, 0.0  ;;  %v1542_v10 = vmul.f32 %v701_v5, %v701_v5  ;;  %v2173_v11 = vpop.f32.mrb[22].mxu0  ;;  %1213 = vst.msk [vmem:[%s2544_s25 + $0x280] sm:$0xff] %vm1132_vm1, %v2740_v59  ;;  %v2745_v0 = vpop.f32.mrb[18].mxu1 }
 0x115   : > { %v1301_v12 = vadd.f32 %v1300_v9, %v1299_v6  ;;  %v1688_v13 = vadd.f32 %v1687_v7, %v1686_v3  ;;  %1156 = vst.msk [vmem:[%s2544_s25 + $0xb8] sm:$0xff] %vm1132_vm1, %v2173_v11  ;;  %v704_v14 = vpop.f32.mrb[23].mxu0  ;;  %v1545_v23 = vmul.f32 %v2173_v11, %v2173_v11  ;;  %v1693_v31 = vsel %vm1132_vm1, %v1544_v15, 0.0  ;;  %1216 = vst.msk [vmem:[%s2544_s25 + $0x298] sm:$0xff] %vm1132_vm1, %v2745_v0  ;;  %v2752_v7 = vpop.f32.mrb[19].mxu1 }
 0x116   : > { %v1689_v16 = vsel %vm1132_vm1, %v1542_v10, 0.0  ;;  %1154 = vst.msk [vmem:[%s2544_s25 + $0xa8] sm:$0xff] %vm1132_vm1, %v704_v14  ;;  %v1302_v17 = vsel %vm1132_vm1, %v704_v14, 0.0  ;;  %v1543_v18 = vmul.f32 %v704_v14, %v704_v14  ;;  %v1306_v33 = vsel %vm1132_vm1, %v2173_v11, 0.0  ;;  %1214 = vst.msk [vmem:[%s2544_s25 + $0x288] sm:$0xff] %vm1132_vm1, %v2752_v7 }
 0x117   : > { %v1690_v19 = vadd.f32 %v1689_v16, %v1688_v13  ;;  %v1303_v20 = vadd.f32 %v1302_v17, %v1301_v12  ;;  %v1695_v40 = vsel %vm1132_vm1, %v1545_v23, 0.0 }
 0x118   : > { %v1691_v24 = vsel %vm1132_vm1, %v1543_v18, 0.0 }
 0x119   : > { %v1305_v27 = vadd.f32 %v1304_v22, %v1303_v20  ;;  %v1692_v28 = vadd.f32 %v1691_v24, %v1690_v19 }
 0x11a   : > { %v2176_v34 = vpop.f32.mrb[24].mxu0 }
 0x11b   : > { %v1694_v37 = vadd.f32 %v1693_v31, %v1692_v28  ;;  %1159 = vst.msk [vmem:[%s2544_s25 + $0xd0] sm:$0xff] %vm1132_vm1, %v2176_v34  ;;  %v717_v38 = vpop.f32.mrb[25].mxu0  ;;  %v1307_v39 = vadd.f32 %v1306_v33, %v1305_v27  ;;  %v1548_v47 = vmul.f32 %v2176_v34, %v2176_v34  ;;  %v1312_v55 = vsel %vm1132_vm1, %v2176_v34, 0.0  ;;  %v2769_v28 = vpop.f32.mrb[20].mxu1 }
 0x11c   : > { %1157 = vst.msk [vmem:[%s2544_s25 + $0xc0] sm:$0xff] %vm1132_vm1, %v717_v38  ;;  %v1308_v41 = vsel %vm1132_vm1, %v717_v38, 0.0  ;;  %v1546_v42 = vmul.f32 %v717_v38, %v717_v38  ;;  %v2177_v43 = vpop.f32.mrb[26].mxu0  ;;  %1219 = vst.msk [vmem:[%s2544_s25 + $0x2b0] sm:$0xff] %vm1132_vm1, %v2769_v28 }
 0x11d   : > { %v1309_v44 = vadd.f32 %v1308_v41, %v1307_v39  ;;  %v1696_v45 = vadd.f32 %v1695_v40, %v1694_v37  ;;  %1160 = vst.msk [vmem:[%s2544_s25 + $0xd8] sm:$0xff] %vm1132_vm1, %v2177_v43  ;;  %v720_v46 = vpop.f32.mrb[27].mxu0  ;;  %v1549_v56 = vmul.f32 %v2177_v43, %v2177_v43  ;;  %v1701_v3 = vsel %vm1132_vm1, %v1548_v47, 0.0  ;;  %v2776_v37 = vpop.f32.mrb[21].mxu1 }
 0x11e   : > { %v1697_v48 = vsel %vm1132_vm1, %v1546_v42, 0.0  ;;  %1158 = vst.msk [vmem:[%s2544_s25 + $0xc8] sm:$0xff] %vm1132_vm1, %v720_v46  ;;  %v1310_v49 = vsel %vm1132_vm1, %v720_v46, 0.0  ;;  %v1547_v50 = vmul.f32 %v720_v46, %v720_v46  ;;  %v1314_v5 = vsel %vm1132_vm1, %v2177_v43, 0.0  ;;  %1217 = vst.msk [vmem:[%s2544_s25 + $0x2a0] sm:$0xff] %vm1132_vm1, %v2776_v37  ;;  %v2781_v40 = vpop.f32.mrb[22].mxu1 }
 0x11f   : > { %v1698_v51 = vadd.f32 %v1697_v48, %v1696_v45  ;;  %v1311_v52 = vadd.f32 %v1310_v49, %v1309_v44  ;;  %v1703_v12 = vsel %vm1132_vm1, %v1549_v56, 0.0  ;;  %1220 = vst.msk [vmem:[%s2544_s25 + $0x2b8] sm:$0xff] %vm1132_vm1, %v2781_v40  ;;  %v2788_v44 = vpop.f32.mrb[23].mxu1 }
 0x120   : > { %v1699_v58 = vsel %vm1132_vm1, %v1547_v50, 0.0  ;;  %1218 = vst.msk [vmem:[%s2544_s25 + $0x2a8] sm:$0xff] %vm1132_vm1, %v2788_v44 }
 0x121   : > { %v1313_v62 = vadd.f32 %v1312_v55, %v1311_v52  ;;  %v1700_v63 = vadd.f32 %v1699_v58, %v1698_v51 }
 0x122   : > { %v2180_v6 = vpop.f32.mrb[28].mxu0 }
 0x123   : > { %v1702_v9 = vadd.f32 %v1701_v3, %v1700_v63  ;;  %1163 = vst.msk [vmem:[%s2544_s25 + $0xf0] sm:$0xff] %vm1132_vm1, %v2180_v6  ;;  %v733_v10 = vpop.f32.mrb[29].mxu0  ;;  %v1315_v11 = vadd.f32 %v1314_v5, %v1313_v62  ;;  %v1552_v19 = vmul.f32 %v2180_v6, %v2180_v6  ;;  %v1320_v31 = vsel %vm1132_vm1, %v2180_v6, 0.0 }
 0x124   : > { %1161 = vst.msk [vmem:[%s2544_s25 + $0xe0] sm:$0xff] %vm1132_vm1, %v733_v10  ;;  %v1316_v13 = vsel %vm1132_vm1, %v733_v10, 0.0  ;;  %v1550_v14 = vmul.f32 %v733_v10, %v733_v10  ;;  %v2181_v15 = vpop.f32.mrb[30].mxu0 }
 0x125   : > { %v1317_v16 = vadd.f32 %v1316_v13, %v1315_v11  ;;  %v1704_v17 = vadd.f32 %v1703_v12, %v1702_v9  ;;  %1164 = vst.msk [vmem:[%s2544_s25 + $0xf8] sm:$0xff] %vm1132_vm1, %v2181_v15  ;;  %v736_v18 = vpop.f32.mrb[31].mxu0  ;;  %v1553_v33 = vmul.f32 %v2181_v15, %v2181_v15  ;;  %v1709_v41 = vsel %vm1132_vm1, %v1552_v19, 0.0  ;;  %v2805_v9 = vpop.f32.mrb[24].mxu1 }
 0x126   : > { %v1705_v20 = vsel %vm1132_vm1, %v1550_v14, 0.0  ;;  %1162 = vst.msk [vmem:[%s2544_s25 + $0xe8] sm:$0xff] %vm1132_vm1, %v736_v18  ;;  %v1318_v22 = vsel %vm1132_vm1, %v736_v18, 0.0  ;;  %v1551_v23 = vmul.f32 %v736_v18, %v736_v18  ;;  %v1322_v42 = vsel %vm1132_vm1, %v2181_v15, 0.0  ;;  %1223 = vst.msk [vmem:[%s2544_s25 + $0x2d0] sm:$0xff] %vm1132_vm1, %v2805_v9  ;;  %v2812_v13 = vpop.f32.mrb[25].mxu1 }
 0x127   : > { %v1706_v24 = vadd.f32 %v1705_v20, %v1704_v17  ;;  %v1319_v27 = vadd.f32 %v1318_v22, %v1317_v16  ;;  %v1711_v48 = vsel %vm1132_vm1, %v1553_v33, 0.0  ;;  %1221 = vst.msk [vmem:[%s2544_s25 + $0x2c0] sm:$0xff] %vm1132_vm1, %v2812_v13  ;;  %v2817_v16 = vpop.f32.mrb[26].mxu1 }
 0x128   : > { %v1707_v34 = vsel %vm1132_vm1, %v1551_v23, 0.0  ;;  %1224 = vst.msk [vmem:[%s2544_s25 + $0x2d8] sm:$0xff] %vm1132_vm1, %v2817_v16  ;;  %v2824_v20 = vpop.f32.mrb[27].mxu1 }
 0x129   : > { %v1321_v38 = vadd.f32 %v1320_v31, %v1319_v27  ;;  %v1708_v39 = vadd.f32 %v1707_v34, %v1706_v24  ;;  %1222 = vst.msk [vmem:[%s2544_s25 + $0x2c8] sm:$0xff] %vm1132_vm1, %v2824_v20 }
 0x12a   : > { %v2184_v43 = vpop.f32.mrb[32].mxu0 }
 0x12b   : > { %v1710_v45 = vadd.f32 %v1709_v41, %v1708_v39  ;;  %1167 = vst.msk [vmem:[%s2544_s25 + $0x110] sm:$0xff] %vm1132_vm1, %v2184_v43  ;;  %v749_v46 = vpop.f32.mrb[33].mxu0  ;;  %v1323_v47 = vadd.f32 %v1322_v42, %v1321_v38  ;;  %v1556_v58 = vmul.f32 %v2184_v43, %v2184_v43  ;;  %v1328_v10 = vsel %vm1132_vm1, %v2184_v43, 0.0 }
 0x12c   : > { %1165 = vst.msk [vmem:[%s2544_s25 + $0x100] sm:$0xff] %vm1132_vm1, %v749_v46  ;;  %v1324_v49 = vsel %vm1132_vm1, %v749_v46, 0.0  ;;  %v1554_v50 = vmul.f32 %v749_v46, %v749_v46  ;;  %v2185_v51 = vpop.f32.mrb[34].mxu0 }
 0x12d   : > { %v1325_v52 = vadd.f32 %v1324_v49, %v1323_v47  ;;  %v1712_v55 = vadd.f32 %v1711_v48, %v1710_v45  ;;  %1168 = vst.msk [vmem:[%s2544_s25 + $0x118] sm:$0xff] %vm1132_vm1, %v2185_v51  ;;  %v752_v56 = vpop.f32.mrb[35].mxu0  ;;  %v1557_v11 = vmul.f32 %v2185_v51, %v2185_v51  ;;  %v1717_v17 = vsel %vm1132_vm1, %v1556_v58, 0.0  ;;  %v2841_v49 = vpop.f32.mrb[28].mxu1 }
 0x12e   : > { %v1713_v62 = vsel %vm1132_vm1, %v1554_v50, 0.0  ;;  %1166 = vst.msk [vmem:[%s2544_s25 + $0x108] sm:$0xff] %vm1132_vm1, %v752_v56  ;;  %v1326_v63 = vsel %vm1132_vm1, %v752_v56, 0.0  ;;  %v1555_v3 = vmul.f32 %v752_v56, %v752_v56  ;;  %v1330_v18 = vsel %vm1132_vm1, %v2185_v51, 0.0  ;;  %1227 = vst.msk [vmem:[%s2544_s25 + $0x2f0] sm:$0xff] %vm1132_vm1, %v2841_v49 }
 0x12f   : > { %v1714_v5 = vadd.f32 %v1713_v62, %v1712_v55  ;;  %v1327_v6 = vadd.f32 %v1326_v63, %v1325_v52  ;;  %v1719_v27 = vsel %vm1132_vm1, %v1557_v11, 0.0  ;;  %v2848_v55 = vpop.f32.mrb[29].mxu1 }
 0x130   : > { %v1715_v12 = vsel %vm1132_vm1, %v1555_v3, 0.0  ;;  %1225 = vst.msk [vmem:[%s2544_s25 + $0x2e0] sm:$0xff] %vm1132_vm1, %v2848_v55  ;;  %v2853_v62 = vpop.f32.mrb[30].mxu1 }
 0x131   : > { %v1329_v14 = vadd.f32 %v1328_v10, %v1327_v6  ;;  %v1716_v15 = vadd.f32 %v1715_v12, %v1714_v5  ;;  %1228 = vst.msk [vmem:[%s2544_s25 + $0x2f8] sm:$0xff] %vm1132_vm1, %v2853_v62  ;;  %v2860_v6 = vpop.f32.mrb[31].mxu1 }
 0x132   : > { %v2188_v19 = vpop.f32.mrb[36].mxu0  ;;  %1226 = vst.msk [vmem:[%s2544_s25 + $0x2e8] sm:$0xff] %vm1132_vm1, %v2860_v6 }
 0x133   : > { %v1718_v22 = vadd.f32 %v1717_v17, %v1716_v15  ;;  %1171 = vst.msk [vmem:[%s2544_s25 + $0x130] sm:$0xff] %vm1132_vm1, %v2188_v19  ;;  %v765_v23 = vpop.f32.mrb[37].mxu0  ;;  %v1331_v24 = vadd.f32 %v1330_v18, %v1329_v14  ;;  %v1560_v42 = vmul.f32 %v2188_v19, %v2188_v19  ;;  %v1336_v50 = vsel %vm1132_vm1, %v2188_v19, 0.0 }
 0x134   : > { %1169 = vst.msk [vmem:[%s2544_s25 + $0x120] sm:$0xff] %vm1132_vm1, %v765_v23  ;;  %v1332_v31 = vsel %vm1132_vm1, %v765_v23, 0.0  ;;  %v1558_v33 = vmul.f32 %v765_v23, %v765_v23  ;;  %v2189_v34 = vpop.f32.mrb[38].mxu0 }
 0x135   : > { %v1333_v38 = vadd.f32 %v1332_v31, %v1331_v24  ;;  %v1720_v39 = vadd.f32 %v1719_v27, %v1718_v22  ;;  %1172 = vst.msk [vmem:[%s2544_s25 + $0x138] sm:$0xff] %vm1132_vm1, %v2189_v34  ;;  %v768_v41 = vpop.f32.mrb[39].mxu0  ;;  %v1561_v51 = vmul.f32 %v2189_v34, %v2189_v34  ;;  %v1725_v63 = vsel %vm1132_vm1, %v1560_v42, 0.0 }
 0x136   : > { %v1721_v43 = vsel %vm1132_vm1, %v1558_v33, 0.0  ;;  %1170 = vst.msk [vmem:[%s2544_s25 + $0x128] sm:$0xff] %vm1132_vm1, %v768_v41  ;;  %v1334_v45 = vsel %vm1132_vm1, %v768_v41, 0.0  ;;  %v1559_v46 = vmul.f32 %v768_v41, %v768_v41  ;;  %v1338_v3 = vsel %vm1132_vm1, %v2189_v34, 0.0 }
 0x137   : > { %v1722_v47 = vadd.f32 %v1721_v43, %v1720_v39  ;;  %v1335_v48 = vadd.f32 %v1334_v45, %v1333_v38  ;;  %v1727_v14 = vsel %vm1132_vm1, %v1561_v51, 0.0  ;;  %v2877_v39 = vpop.f32.mrb[32].mxu1 }
 0x138   : > { %v1723_v52 = vsel %vm1132_vm1, %v1559_v46, 0.0  ;;  %1231 = vst.msk [vmem:[%s2544_s25 + $0x310] sm:$0xff] %vm1132_vm1, %v2877_v39  ;;  %v2884_v45 = vpop.f32.mrb[33].mxu1 }
 0x139   : > { %v1337_v56 = vadd.f32 %v1336_v50, %v1335_v48  ;;  %v1724_v58 = vadd.f32 %v1723_v52, %v1722_v47  ;;  %1229 = vst.msk [vmem:[%s2544_s25 + $0x300] sm:$0xff] %vm1132_vm1, %v2884_v45  ;;  %v2889_v48 = vpop.f32.mrb[34].mxu1 }
 0x13a   : > { %v2192_v5 = vpop.f32.mrb[40].mxu0  ;;  %1232 = vst.msk [vmem:[%s2544_s25 + $0x318] sm:$0xff] %vm1132_vm1, %v2889_v48 }
 0x13b   : > { %v1726_v10 = vadd.f32 %v1725_v63, %v1724_v58  ;;  %1175 = vst.msk [vmem:[%s2544_s25 + $0x150] sm:$0xff] %vm1132_vm1, %v2192_v5  ;;  %v781_v11 = vpop.f32.mrb[41].mxu0  ;;  %v1339_v12 = vadd.f32 %v1338_v3, %v1337_v56  ;;  %v1564_v24 = vmul.f32 %v2192_v5, %v2192_v5  ;;  %v1344_v41 = vsel %vm1132_vm1, %v2192_v5, 0.0  ;;  %v2896_v56 = vpop.f32.mrb[35].mxu1 }
 0x13c   : > { %1173 = vst.msk [vmem:[%s2544_s25 + $0x140] sm:$0xff] %vm1132_vm1, %v781_v11  ;;  %v1340_v15 = vsel %vm1132_vm1, %v781_v11, 0.0  ;;  %v1562_v17 = vmul.f32 %v781_v11, %v781_v11  ;;  %v2193_v18 = vpop.f32.mrb[42].mxu0  ;;  %1230 = vst.msk [vmem:[%s2544_s25 + $0x308] sm:$0xff] %vm1132_vm1, %v2896_v56 }
 0x13d   : > { %v1341_v19 = vadd.f32 %v1340_v15, %v1339_v12  ;;  %v1728_v22 = vadd.f32 %v1727_v14, %v1726_v10  ;;  %1176 = vst.msk [vmem:[%s2544_s25 + $0x158] sm:$0xff] %vm1132_vm1, %v2193_v18  ;;  %v784_v23 = vpop.f32.mrb[43].mxu0  ;;  %v1565_v42 = vmul.f32 %v2193_v18, %v2193_v18  ;;  %v1733_v50 = vsel %vm1132_vm1, %v1564_v24, 0.0 }
 0x13e   : > { %v1729_v27 = vsel %vm1132_vm1, %v1562_v17, 0.0  ;;  %1174 = vst.msk [vmem:[%s2544_s25 + $0x148] sm:$0xff] %vm1132_vm1, %v784_v23  ;;  %v1342_v31 = vsel %vm1132_vm1, %v784_v23, 0.0  ;;  %v1563_v33 = vmul.f32 %v784_v23, %v784_v23  ;;  %v1346_v51 = vsel %vm1132_vm1, %v2193_v18, 0.0 }
 0x13f   : > { %v1730_v34 = vadd.f32 %v1729_v27, %v1728_v22  ;;  %v1343_v38 = vadd.f32 %v1342_v31, %v1341_v19  ;;  %v1735_v5 = vsel %vm1132_vm1, %v1565_v42, 0.0  ;;  %v2913_v31 = vpop.f32.mrb[36].mxu1 }
 0x140   : > { %v1731_v43 = vsel %vm1132_vm1, %v1563_v33, 0.0  ;;  %1235 = vst.msk [vmem:[%s2544_s25 + $0x330] sm:$0xff] %vm1132_vm1, %v2913_v31 }
 0x141   : > { %v1345_v46 = vadd.f32 %v1344_v41, %v1343_v38  ;;  %v1732_v47 = vadd.f32 %v1731_v43, %v1730_v34  ;;  %v2920_v41 = vpop.f32.mrb[37].mxu1 }
 0x142   : > { %v2196_v52 = vpop.f32.mrb[44].mxu0  ;;  %1233 = vst.msk [vmem:[%s2544_s25 + $0x320] sm:$0xff] %vm1132_vm1, %v2920_v41 }
 0x143   : > { %v1734_v58 = vadd.f32 %v1733_v50, %v1732_v47  ;;  %1179 = vst.msk [vmem:[%s2544_s25 + $0x170] sm:$0xff] %vm1132_vm1, %v2196_v52  ;;  %v797_v63 = vpop.f32.mrb[45].mxu0  ;;  %v1347_v3 = vadd.f32 %v1346_v51, %v1345_v46  ;;  %v1568_v18 = vmul.f32 %v2196_v52, %v2196_v52  ;;  %v1352_v33 = vsel %vm1132_vm1, %v2196_v52, 0.0  ;;  %v2925_v46 = vpop.f32.mrb[38].mxu1 }
 0x144   : > { %1177 = vst.msk [vmem:[%s2544_s25 + $0x160] sm:$0xff] %vm1132_vm1, %v797_v63  ;;  %v1348_v10 = vsel %vm1132_vm1, %v797_v63, 0.0  ;;  %v1566_v11 = vmul.f32 %v797_v63, %v797_v63  ;;  %v2197_v12 = vpop.f32.mrb[46].mxu0  ;;  %1236 = vst.msk [vmem:[%s2544_s25 + $0x338] sm:$0xff] %vm1132_vm1, %v2925_v46  ;;  %v2932_v52 = vpop.f32.mrb[39].mxu1 }
 0x145   : > { %v1349_v14 = vadd.f32 %v1348_v10, %v1347_v3  ;;  %v1736_v15 = vadd.f32 %v1735_v5, %v1734_v58  ;;  %1180 = vst.msk [vmem:[%s2544_s25 + $0x178] sm:$0xff] %vm1132_vm1, %v2197_v12  ;;  %v800_v17 = vpop.f32.mrb[47].mxu0  ;;  %v1569_v34 = vmul.f32 %v2197_v12, %v2197_v12  ;;  %v1741_v47 = vsel %vm1132_vm1, %v1568_v18, 0.0  ;;  %1234 = vst.msk [vmem:[%s2544_s25 + $0x328] sm:$0xff] %vm1132_vm1, %v2932_v52 }
 0x146   : > { %v1737_v19 = vsel %vm1132_vm1, %v1566_v11, 0.0  ;;  %1178 = vst.msk [vmem:[%s2544_s25 + $0x168] sm:$0xff] %vm1132_vm1, %v800_v17  ;;  %v1350_v22 = vsel %vm1132_vm1, %v800_v17, 0.0  ;;  %v1567_v23 = vmul.f32 %v800_v17, %v800_v17  ;;  %v1354_v50 = vsel %vm1132_vm1, %v2197_v12, 0.0 }
 0x147   : > { %v1738_v24 = vadd.f32 %v1737_v19, %v1736_v15  ;;  %v1351_v27 = vadd.f32 %v1350_v22, %v1349_v14  ;;  %v1743_v5 = vsel %vm1132_vm1, %v1569_v34, 0.0 }
 0x148   : > { %v1739_v38 = vsel %vm1132_vm1, %v1567_v23, 0.0 }
 0x149   : > { %v1353_v42 = vadd.f32 %v1352_v33, %v1351_v27  ;;  %v1740_v43 = vadd.f32 %v1739_v38, %v1738_v24  ;;  %v2949_v33 = vpop.f32.mrb[40].mxu1 }
 0x14a   : > { %v2200_v51 = vpop.f32.mrb[48].mxu0  ;;  %1239 = vst.msk [vmem:[%s2544_s25 + $0x350] sm:$0xff] %vm1132_vm1, %v2949_v33 }
 0x14b   : > { %v1742_v58 = vadd.f32 %v1741_v47, %v1740_v43  ;;  %1183 = vst.msk [vmem:[%s2544_s25 + $0x190] sm:$0xff] %vm1132_vm1, %v2200_v51  ;;  %v813_v63 = vpop.f32.mrb[49].mxu0  ;;  %v1355_v3 = vadd.f32 %v1354_v50, %v1353_v42  ;;  %v1572_v18 = vmul.f32 %v2200_v51, %v2200_v51  ;;  %v1360_v34 = vsel %vm1132_vm1, %v2200_v51, 0.0  ;;  %v2956_v43 = vpop.f32.mrb[41].mxu1 }
 0x14c   : > { %1181 = vst.msk [vmem:[%s2544_s25 + $0x180] sm:$0xff] %vm1132_vm1, %v813_v63  ;;  %v1356_v10 = vsel %vm1132_vm1, %v813_v63, 0.0  ;;  %v1570_v11 = vmul.f32 %v813_v63, %v813_v63  ;;  %v2201_v12 = vpop.f32.mrb[50].mxu0  ;;  %1237 = vst.msk [vmem:[%s2544_s25 + $0x340] sm:$0xff] %vm1132_vm1, %v2956_v43 }
 0x14d   : > { %v1357_v14 = vadd.f32 %v1356_v10, %v1355_v3  ;;  %v1744_v15 = vadd.f32 %v1743_v5, %v1742_v58  ;;  %1184 = vst.msk [vmem:[%s2544_s25 + $0x198] sm:$0xff] %vm1132_vm1, %v2201_v12  ;;  %v816_v17 = vpop.f32.mrb[51].mxu0  ;;  %v1573_v38 = vmul.f32 %v2201_v12, %v2201_v12  ;;  %v2961_v58 = vpop.f32.mrb[42].mxu1  ;;  %v1749_v63 = vsel %vm1132_vm1, %v1572_v18, 0.0 }
 0x14e   : > { %v1745_v19 = vsel %vm1132_vm1, %v1570_v11, 0.0  ;;  %1182 = vst.msk [vmem:[%s2544_s25 + $0x188] sm:$0xff] %vm1132_vm1, %v816_v17  ;;  %v1358_v22 = vsel %vm1132_vm1, %v816_v17, 0.0  ;;  %v1571_v23 = vmul.f32 %v816_v17, %v816_v17  ;;  %v1362_v51 = vsel %vm1132_vm1, %v2201_v12, 0.0  ;;  %1240 = vst.msk [vmem:[%s2544_s25 + $0x358] sm:$0xff] %vm1132_vm1, %v2961_v58  ;;  %v2968_v5 = vpop.f32.mrb[43].mxu1 }
 0x14f   : > { %v1746_v24 = vadd.f32 %v1745_v19, %v1744_v15  ;;  %v1359_v27 = vadd.f32 %v1358_v22, %v1357_v14  ;;  %1238 = vst.msk [vmem:[%s2544_s25 + $0x348] sm:$0xff] %vm1132_vm1, %v2968_v5  ;;  %v1751_v15 = vsel %vm1132_vm1, %v1573_v38, 0.0 }
 0x150   : > { %v1747_v42 = vsel %vm1132_vm1, %v1571_v23, 0.0 }
 0x151   : > { %v1361_v47 = vadd.f32 %v1360_v34, %v1359_v27  ;;  %v1748_v50 = vadd.f32 %v1747_v42, %v1746_v24 }
 0x152   : > { %v2204_v3 = vpop.f32.mrb[52].mxu0 }
 0x153   : > { %v1750_v10 = vadd.f32 %v1749_v63, %v1748_v50  ;;  %1187 = vst.msk [vmem:[%s2544_s25 + $0x1b0] sm:$0xff] %vm1132_vm1, %v2204_v3  ;;  %v829_v11 = vpop.f32.mrb[53].mxu0  ;;  %v1363_v14 = vadd.f32 %v1362_v51, %v1361_v47  ;;  %v1576_v24 = vmul.f32 %v2204_v3, %v2204_v3  ;;  %v2985_v50 = vpop.f32.mrb[44].mxu1  ;;  %v1368_v63 = vsel %vm1132_vm1, %v2204_v3, 0.0 }
 0x154   : > { %1185 = vst.msk [vmem:[%s2544_s25 + $0x1a0] sm:$0xff] %vm1132_vm1, %v829_v11  ;;  %v1364_v12 = vsel %vm1132_vm1, %v829_v11, 0.0  ;;  %v1574_v17 = vmul.f32 %v829_v11, %v829_v11  ;;  %v2205_v18 = vpop.f32.mrb[54].mxu0  ;;  %1243 = vst.msk [vmem:[%s2544_s25 + $0x370] sm:$0xff] %vm1132_vm1, %v2985_v50  ;;  %v2992_v11 = vpop.f32.mrb[45].mxu1 }
 0x155   : > { %v1365_v19 = vadd.f32 %v1364_v12, %v1363_v14  ;;  %v1752_v22 = vadd.f32 %v1751_v15, %v1750_v10  ;;  %1188 = vst.msk [vmem:[%s2544_s25 + $0x1b8] sm:$0xff] %vm1132_vm1, %v2205_v18  ;;  %v832_v23 = vpop.f32.mrb[55].mxu0  ;;  %v1577_v51 = vmul.f32 %v2205_v18, %v2205_v18  ;;  %1241 = vst.msk [vmem:[%s2544_s25 + $0x360] sm:$0xff] %vm1132_vm1, %v2992_v11  ;;  %v2997_v12 = vpop.f32.mrb[46].mxu1  ;;  %v1370_v3 = vsel %vm1132_vm1, %v2205_v18, 0.0 }
 0x156   : > { %v1753_v27 = vsel %vm1132_vm1, %v1574_v17, 0.0  ;;  %1186 = vst.msk [vmem:[%s2544_s25 + $0x1a8] sm:$0xff] %vm1132_vm1, %v832_v23  ;;  %v1366_v34 = vsel %vm1132_vm1, %v832_v23, 0.0  ;;  %v1575_v38 = vmul.f32 %v832_v23, %v832_v23  ;;  %3468 = vst [vmem:[#allocation2_spill] sm:$0xff] %v2997_v12  ;;  %v1757_v17 = vsel %vm1132_vm1, %v1576_v24, 0.0 }
 0x157   : > { %v1754_v42 = vadd.f32 %v1753_v27, %v1752_v22  ;;  %v1367_v47 = vadd.f32 %v1366_v34, %v1365_v19  ;;  %1244 = vst.msk [vmem:[%s2544_s25 + $0x378] sm:$0xff] %vm1132_vm1, %v2997_v12  ;;  %v3004_v22 = vpop.f32.mrb[47].mxu1  ;;  %v1759_v24 = vsel %vm1132_vm1, %v1577_v51, 0.0 }
 0x158   : > { %v1755_v10 = vsel %vm1132_vm1, %v1575_v38, 0.0  ;;  %1242 = vst.msk [vmem:[%s2544_s25 + $0x368] sm:$0xff] %vm1132_vm1, %v3004_v22 }
 0x159   : > { %v1369_v14 = vadd.f32 %v1368_v63, %v1367_v47  ;;  %v1756_v15 = vadd.f32 %v1755_v10, %v1754_v42 }
 0x15a   : > { %v2208_v19 = vpop.f32.mrb[56].mxu0 }
 0x15b   : > { %v1758_v23 = vadd.f32 %v1757_v17, %v1756_v15  ;;  %1191 = vst.msk [vmem:[%s2544_s25 + $0x1d0] sm:$0xff] %vm1132_vm1, %v2208_v19  ;;  %v845_v27 = vpop.f32.mrb[57].mxu0  ;;  %v1371_v34 = vadd.f32 %v1370_v3, %v1369_v14  ;;  %v1580_v15 = vmul.f32 %v2208_v19, %v2208_v19 }
 0x15c   : > { %1189 = vst.msk [vmem:[%s2544_s25 + $0x1c0] sm:$0xff] %vm1132_vm1, %v845_v27  ;;  %v1372_v18 = vsel %vm1132_vm1, %v845_v27, 0.0  ;;  %v1578_v38 = vmul.f32 %v845_v27, %v845_v27  ;;  %v2209_v42 = vpop.f32.mrb[58].mxu0  ;;  %v3021_v27 = vpop.f32.mrb[48].mxu1 }
 0x15d   : > { %v1373_v47 = vadd.f32 %v1372_v18, %v1371_v34  ;;  %v1760_v63 = vadd.f32 %v1759_v24, %v1758_v23  ;;  %1192 = vst.msk [vmem:[%s2544_s25 + $0x1d8] sm:$0xff] %vm1132_vm1, %v2209_v42  ;;  %v848_v10 = vpop.f32.mrb[59].mxu0  ;;  %3469 = vst [vmem:[#allocation3_spill] sm:$0xff] %v3021_v27  ;;  %v1376_v23 = vsel %vm1132_vm1, %v2208_v19, 0.0  ;;  %v1581_v34 = vmul.f32 %v2209_v42, %v2209_v42  ;;  %v3028_v18 = vpop.f32.mrb[49].mxu1 }
 0x15e   : > { %v1761_v14 = vsel %vm1132_vm1, %v1578_v38, 0.0  ;;  %1190 = vst.msk [vmem:[%s2544_s25 + $0x1c8] sm:$0xff] %vm1132_vm1, %v848_v10  ;;  %v1374_v51 = vsel %vm1132_vm1, %v848_v10, 0.0  ;;  %v1579_v17 = vmul.f32 %v848_v10, %v848_v10  ;;  %1247 = vst.msk [vmem:[%s2544_s25 + $0x390] sm:$0xff] %vm1132_vm1, %v3021_v27  ;;  %v1378_v19 = vsel %vm1132_vm1, %v2209_v42, 0.0 }
 0x15f   : > { %v1762_v3 = vadd.f32 %v1761_v14, %v1760_v63  ;;  %v1375_v12 = vadd.f32 %v1374_v51, %v1373_v47  ;;  %3470 = vst [vmem:[#allocation4_spill] sm:$0xff] %v3028_v18  ;;  %1245 = vst.msk [vmem:[%s2544_s25 + $0x380] sm:$0xff] %vm1132_vm1, %v3028_v18  ;;  %v3033_v47 = vpop.f32.mrb[50].mxu1  ;;  %v1765_v63 = vsel %vm1132_vm1, %v1580_v15, 0.0  ;;  %v1767_v15 = vsel %vm1132_vm1, %v1581_v34, 0.0 }
 0x160   : > { %v1763_v24 = vsel %vm1132_vm1, %v1579_v17, 0.0  ;;  %3471 = vst [vmem:[#allocation5_spill] sm:$0xff] %v3033_v47  ;;  %1248 = vst.msk [vmem:[%s2544_s25 + $0x398] sm:$0xff] %vm1132_vm1, %v3033_v47  ;;  %v3040_v51 = vpop.f32.mrb[51].mxu1 }
 0x161   : > { %v1377_v38 = vadd.f32 %v1376_v23, %v1375_v12  ;;  %v1764_v10 = vadd.f32 %v1763_v24, %v1762_v3  ;;  %3472 = vst [vmem:[#allocation6_spill] sm:$0xff] %v3040_v51  ;;  %1246 = vst.msk [vmem:[%s2544_s25 + $0x388] sm:$0xff] %vm1132_vm1, %v3040_v51 }
 0x162   : > { %v2212_v14 = vpop.f32.mrb[60].mxu0 }
 0x163   : > { %v1766_v17 = vadd.f32 %v1765_v63, %v1764_v10  ;;  %1195 = vst.msk [vmem:[%s2544_s25 + $0x1f0] sm:$0xff] %vm1132_vm1, %v2212_v14  ;;  %v861_v12 = vpop.f32.mrb[61].mxu0  ;;  %v1379_v3 = vadd.f32 %v1378_v19, %v1377_v38  ;;  %v1584_v63 = vmul.f32 %v2212_v14, %v2212_v14 }
 0x164   : > { %1193 = vst.msk [vmem:[%s2544_s25 + $0x1e0] sm:$0xff] %vm1132_vm1, %v861_v12  ;;  %v1380_v42 = vsel %vm1132_vm1, %v861_v12, 0.0  ;;  %v1582_v23 = vmul.f32 %v861_v12, %v861_v12  ;;  %v2213_v24 = vpop.f32.mrb[62].mxu0  ;;  %v3057_v12 = vpop.f32.mrb[52].mxu1 }
 0x165   : > { %v1381_v47 = vadd.f32 %v1380_v42, %v1379_v3  ;;  %v1768_v27 = vadd.f32 %v1767_v15, %v1766_v17  ;;  %1196 = vst.msk [vmem:[%s2544_s25 + $0x1f8] sm:$0xff] %vm1132_vm1, %v2213_v24  ;;  %v864_v10 = vpop.f32.mrb[63].mxu0  ;;  %3473 = vst [vmem:[#allocation7_spill] sm:$0xff] %v3057_v12  ;;  %v1384_v3 = vsel %vm1132_vm1, %v2212_v14, 0.0  ;;  %v1585_v17 = vmul.f32 %v2213_v24, %v2213_v24 }
 0x166   : > { %v1769_v38 = vsel %vm1132_vm1, %v1582_v23, 0.0  ;;  %1194 = vst.msk [vmem:[%s2544_s25 + $0x1e8] sm:$0xff] %vm1132_vm1, %v864_v10  ;;  %v1382_v34 = vsel %vm1132_vm1, %v864_v10, 0.0  ;;  %v1583_v19 = vmul.f32 %v864_v10, %v864_v10  ;;  %v1586_v42 = vmul.f32 %v2596_v1, %v2596_v1  ;;  %1251 = vst.msk [vmem:[%s2544_s25 + $0x3b0] sm:$0xff] %vm1132_vm1, %v3057_v12  ;;  %v3066_v23 = vpop.f32.mrb[53].mxu1 }
 0x167   : > { %v1770_v51 = vadd.f32 %v1769_v38, %v1768_v27  ;;  %v1383_v18 = vadd.f32 %v1382_v34, %v1381_v47  ;;  %1249 = vst.msk [vmem:[%s2544_s25 + $0x3a0] sm:$0xff] %vm1132_vm1, %v3066_v23  ;;  %v3071_v47 = vpop.f32.mrb[54].mxu1  ;;  %v1773_v14 = vsel %vm1132_vm1, %v1584_v63, 0.0  ;;  %v1386_v38 = vsel %vm1132_vm1, %v2213_v24, 0.0 }
 0x168   : > { %v1771_v15 = vsel %vm1132_vm1, %v1583_v19, 0.0  ;;  %v1388_v34 = vsel %vm1132_vm1, %v2596_v1, 0.0  ;;  %1252 = vst.msk [vmem:[%s2544_s25 + $0x3b8] sm:$0xff] %vm1132_vm1, %v3071_v47  ;;  %v3080_v19 = vpop.f32.mrb[55].mxu1  ;;  %v1777_v63 = vsel %vm1132_vm1, %v1586_v42, 0.0  ;;  %v1587_v24 = vmul.f32 %v2608_v8, %v2608_v8 }
 0x169   : > { %v1385_v10 = vadd.f32 %v1384_v3, %v1383_v18  ;;  %v1772_v27 = vadd.f32 %v1771_v15, %v1770_v51  ;;  %1250 = vst.msk [vmem:[%s2544_s25 + $0x3a8] sm:$0xff] %vm1132_vm1, %v3080_v19  ;;  %v1775_v51 = vsel %vm1132_vm1, %v1585_v17, 0.0  ;;  %v1588_v15 = vmul.f32 %v2589_v61, %v2589_v61 }
 0x16a   : > { %v1392_v17 = vsel %vm1132_vm1, %v2589_v61, 0.0  ;;  %v1589_v42 = vmul.f32 %v2601_v4, %v2601_v4 }
 0x16b   : > { %v1387_v12 = vadd.f32 %v1386_v38, %v1385_v10  ;;  %v1774_v18 = vadd.f32 %v1773_v14, %v1772_v27  ;;  %v1390_v10 = vsel %vm1132_vm1, %v2608_v8, 0.0  ;;  %v3093_v38 = vpop.f32.mrb[56].mxu1 }
 0x16c   : > { %1255 = vst.msk [vmem:[%s2544_s25 + $0x3d0] sm:$0xff] %vm1132_vm1, %v3093_v38  ;;  %v3105_v8 = vpop.f32.mrb[57].mxu1 }
 0x16d   : > { %v1776_v1 = vadd.f32 %v1775_v51, %v1774_v18  ;;  %v1389_v3 = vadd.f32 %v1388_v34, %v1387_v12  ;;  %v1779_v12 = vsel %vm1132_vm1, %v1587_v24, 0.0  ;;  %v1590_v34 = vmul.f32 %v2632_v29, %v2632_v29  ;;  %1253 = vst.msk [vmem:[%s2544_s25 + $0x3c0] sm:$0xff] %vm1132_vm1, %v3105_v8  ;;  %v3110_v61 = vpop.f32.mrb[58].mxu1 }
 0x16e   : > { %v1394_v24 = vsel %vm1132_vm1, %v2601_v4, 0.0  ;;  %1256 = vst.msk [vmem:[%s2544_s25 + $0x3d8] sm:$0xff] %vm1132_vm1, %v3110_v61  ;;  %v1591_v4 = vmul.f32 %v2644_v36, %v2644_v36 }
 0x16f   : > { %v1778_v27 = vadd.f32 %v1777_v63, %v1776_v1  ;;  %v1391_v14 = vadd.f32 %v1390_v10, %v1389_v3  ;;  %v1781_v63 = vsel %vm1132_vm1, %v1588_v15, 0.0  ;;  %v1396_v1 = vsel %vm1132_vm1, %v2632_v29, 0.0  ;;  %v3120_v3 = vpop.f32.mrb[59].mxu1 }
 0x170   : > { %1254 = vst.msk [vmem:[%s2544_s25 + $0x3c8] sm:$0xff] %vm1132_vm1, %v3120_v3  ;;  %v1785_v15 = vsel %vm1132_vm1, %v1590_v34, 0.0  ;;  %v1593_v34 = vmul.f32 %v2637_v32, %v2637_v32 }
 0x171   : > { %v1393_v18 = vadd.f32 %v1392_v17, %v1391_v14  ;;  %v1780_v51 = vadd.f32 %v1779_v12, %v1778_v27  ;;  %v1783_v14 = vsel %vm1132_vm1, %v1589_v42, 0.0  ;;  %v1592_v12 = vmul.f32 %v2625_v25, %v2625_v25 }
 0x172   : > { %v1400_v42 = vsel %vm1132_vm1, %v2625_v25, 0.0 }
 0x173   : > { %v1782_v10 = vadd.f32 %v1781_v63, %v1780_v51  ;;  %v1395_v27 = vadd.f32 %v1394_v24, %v1393_v18  ;;  %v1398_v18 = vsel %vm1132_vm1, %v2644_v36, 0.0  ;;  %v3133_v24 = vpop.f32.mrb[60].mxu1 }
 0x174   : > { %1259 = vst.msk [vmem:[%s2544_s25 + $0x3f0] sm:$0xff] %vm1132_vm1, %v3133_v24  ;;  %v3145_v36 = vpop.f32.mrb[61].mxu1 }
 0x175   : > { %v1397_v29 = vadd.f32 %v1396_v1, %v1395_v27  ;;  %v1784_v17 = vadd.f32 %v1783_v14, %v1782_v10  ;;  %v1787_v1 = vsel %vm1132_vm1, %v1591_v4, 0.0  ;;  %v1594_v10 = vmul.f32 %v2668_v57, %v2668_v57  ;;  %1257 = vst.msk [vmem:[%s2544_s25 + $0x3e0] sm:$0xff] %vm1132_vm1, %v3145_v36  ;;  %v3150_v25 = vpop.f32.mrb[62].mxu1 }
 0x176   : > { %3474 = vst [vmem:[#allocation8_spill] sm:$0xff] %v3150_v25  ;;  %v1402_v4 = vsel %vm1132_vm1, %v2637_v32, 0.0  ;;  %1260 = vst.msk [vmem:[%s2544_s25 + $0x3f8] sm:$0xff] %vm1132_vm1, %v3150_v25  ;;  %v1595_v32 = vmul.f32 %v2680_v2, %v2680_v2  ;;  %v1406_v25 = vsel %vm1132_vm1, %v2680_v2, 0.0  ;;  %v1410_v2 = vsel %vm1132_vm1, %v2673_v60, 0.0 }
 0x177   : > { %v1786_v51 = vadd.f32 %v1785_v15, %v1784_v17  ;;  %v1399_v63 = vadd.f32 %v1398_v18, %v1397_v29  ;;  %v1789_v15 = vsel %vm1132_vm1, %v1592_v12, 0.0  ;;  %v1404_v29 = vsel %vm1132_vm1, %v2668_v57, 0.0  ;;  %v3160_v17 = vpop.f32.mrb[63].mxu1 }
 0x178   : > { %1258 = vst.msk [vmem:[%s2544_s25 + $0x3e8] sm:$0xff] %vm1132_vm1, %v3160_v17  ;;  %v1793_v12 = vsel %vm1132_vm1, %v1594_v10, 0.0  ;;  %v1596_v57 = vmul.f32 %v2661_v53, %v2661_v53  ;;  %v1795_v10 = vsel %vm1132_vm1, %v1595_v32, 0.0  ;;  %v1599_v32 = vmul.f32 %v2716_v35, %v2716_v35 }
 0x179   : > { %v1401_v27 = vadd.f32 %v1400_v42, %v1399_v63  ;;  %v1788_v14 = vadd.f32 %v1787_v1, %v1786_v51  ;;  %v1791_v63 = vsel %vm1132_vm1, %v1593_v34, 0.0  ;;  %v1597_v34 = vmul.f32 %v2673_v60, %v2673_v60 }
 0x17a   : > { %v1414_v60 = vsel %vm1132_vm1, %v2716_v35, 0.0  ;;  %v1418_v35 = vsel %vm1132_vm1, %v2709_v30, 0.0 }
 0x17b   : > { %v1790_v18 = vadd.f32 %v1789_v15, %v1788_v14  ;;  %v1403_v51 = vadd.f32 %v1402_v4, %v1401_v27  ;;  %v1408_v15 = vsel %vm1132_vm1, %v2661_v53, 0.0  ;;  %v1598_v4 = vmul.f32 %v2704_v26, %v2704_v26 }
 0x17d   : > { %v1405_v42 = vadd.f32 %v1404_v29, %v1403_v51  ;;  %v1792_v1 = vadd.f32 %v1791_v63, %v1790_v18  ;;  %v1797_v51 = vsel %vm1132_vm1, %v1596_v57, 0.0  ;;  %v1600_v57 = vmul.f32 %v2697_v21, %v2697_v21 }
 0x17f   : > { %v1794_v14 = vadd.f32 %v1793_v12, %v1792_v1  ;;  %v1407_v27 = vadd.f32 %v1406_v25, %v1405_v42  ;;  %v1412_v25 = vsel %vm1132_vm1, %v2704_v26, 0.0  ;;  %v1799_v12 = vsel %vm1132_vm1, %v1597_v34, 0.0 }
 0x180   : > { %v1801_v42 = vsel %vm1132_vm1, %v1598_v4, 0.0  ;;  %v1416_v26 = vsel %vm1132_vm1, %v2697_v21, 0.0  ;;  %v1601_v34 = vmul.f32 %v2709_v30, %v2709_v30  ;;  %v1602_v4 = vmul.f32 %v2740_v59, %v2740_v59 }
 0x181   : > { %v1409_v29 = vadd.f32 %v1408_v15, %v1407_v27  ;;  %v1796_v18 = vadd.f32 %v1795_v10, %v1794_v14  ;;  %v1803_v10 = vsel %vm1132_vm1, %v1599_v32, 0.0  ;;  %v1422_v30 = vsel %vm1132_vm1, %v2752_v7, 0.0 }
 0x183   : > { %v1798_v63 = vadd.f32 %v1797_v51, %v1796_v18  ;;  %v1411_v53 = vadd.f32 %v1410_v2, %v1409_v29  ;;  %v1805_v51 = vsel %vm1132_vm1, %v1600_v57, 0.0  ;;  %v1420_v2 = vsel %vm1132_vm1, %v2740_v59, 0.0 }
 0x184   : > { %v1424_v59 = vsel %vm1132_vm1, %v2733_v54, 0.0 }
 0x185   : > { %v1413_v1 = vadd.f32 %v1412_v25, %v1411_v53  ;;  %v1800_v27 = vadd.f32 %v1799_v12, %v1798_v63  ;;  %v1807_v63 = vsel %vm1132_vm1, %v1601_v34, 0.0  ;;  %v1809_v53 = vsel %vm1132_vm1, %v1602_v4, 0.0 }
 0x186   : > { %v1603_v12 = vmul.f32 %v2752_v7, %v2752_v7  ;;  %v1426_v7 = vsel %vm1132_vm1, %v2745_v0, 0.0  ;;  %v1428_v4 = vsel %vm1132_vm1, %v2776_v37, 0.0 }
 0x187   : > { %v1802_v14 = vadd.f32 %v1801_v42, %v1800_v27  ;;  %v1415_v15 = vadd.f32 %v1414_v60, %v1413_v1  ;;  %v1604_v1 = vmul.f32 %v2733_v54, %v2733_v54  ;;  %v1605_v60 = vmul.f32 %v2745_v0, %v2745_v0 }
 0x188   : > { %v1430_v0 = vsel %vm1132_vm1, %v2788_v44, 0.0 }
 0x189   : > { %v1417_v29 = vadd.f32 %v1416_v26, %v1415_v15  ;;  %v1804_v18 = vadd.f32 %v1803_v10, %v1802_v14  ;;  %v1811_v14 = vsel %vm1132_vm1, %v1603_v12, 0.0  ;;  %v1606_v15 = vmul.f32 %v2776_v37, %v2776_v37 }
 0x18a   : > { %v1813_v10 = vsel %vm1132_vm1, %v1604_v1, 0.0  ;;  %v1432_v37 = vsel %vm1132_vm1, %v2769_v28, 0.0  ;;  %v1609_v12 = vmul.f32 %v2781_v40, %v2781_v40 }
 0x18b   : > { %v1806_v25 = vadd.f32 %v1805_v51, %v1804_v18  ;;  %v1419_v21 = vadd.f32 %v1418_v35, %v1417_v29  ;;  %v1815_v18 = vsel %vm1132_vm1, %v1605_v60, 0.0  ;;  %v1817_v51 = vsel %vm1132_vm1, %v1606_v15, 0.0 }
 0x18c   : > { %v1607_v35 = vmul.f32 %v2788_v44, %v2788_v44  ;;  %v1434_v44 = vsel %vm1132_vm1, %v2781_v40, 0.0  ;;  %v1823_v60 = vsel %vm1132_vm1, %v1609_v12, 0.0  ;;  %v1611_v15 = vmul.f32 %v2824_v20, %v2824_v20 }
 0x18d   : > { %v1421_v42 = vadd.f32 %v1420_v2, %v1419_v21  ;;  %v1808_v32 = vadd.f32 %v1807_v63, %v1806_v25  ;;  %v1608_v21 = vmul.f32 %v2769_v28, %v2769_v28  ;;  %v1438_v40 = vsel %vm1132_vm1, %v2824_v20, 0.0 }
 0x18e   : > { %v1442_v20 = vsel %vm1132_vm1, %v2817_v16, 0.0 }
 0x18f   : > { %v1810_v27 = vadd.f32 %v1809_v53, %v1808_v32  ;;  %v1423_v57 = vadd.f32 %v1422_v30, %v1421_v42  ;;  %v1819_v42 = vsel %vm1132_vm1, %v1607_v35, 0.0  ;;  %v1610_v32 = vmul.f32 %v2812_v13, %v2812_v13 }
 0x191   : > { %v1425_v26 = vadd.f32 %v1424_v59, %v1423_v57  ;;  %v1812_v34 = vadd.f32 %v1811_v14, %v1810_v27  ;;  %v1821_v27 = vsel %vm1132_vm1, %v1608_v21, 0.0  ;;  %v1436_v57 = vsel %vm1132_vm1, %v2812_v13, 0.0 }
 0x192   : > { %v1825_v14 = vsel %vm1132_vm1, %v1610_v32, 0.0  ;;  %v1440_v13 = vsel %vm1132_vm1, %v2805_v9, 0.0 }
 0x193   : > { %v1814_v29 = vadd.f32 %v1813_v10, %v1812_v34  ;;  %v1427_v54 = vadd.f32 %v1426_v7, %v1425_v26  ;;  %v1612_v10 = vmul.f32 %v2805_v9, %v2805_v9 }
 0x195   : > { %v1429_v2 = vadd.f32 %v1428_v4, %v1427_v54  ;;  %v1816_v25 = vadd.f32 %v1815_v18, %v1814_v29  ;;  %v1613_v29 = vmul.f32 %v2817_v16, %v2817_v16  ;;  %v1827_v54 = vsel %vm1132_vm1, %v1611_v15, 0.0 }
 0x196   : > { %v1614_v18 = vmul.f32 %v2848_v55, %v2848_v55  ;;  %v1446_v16 = vsel %vm1132_vm1, %v2860_v6, 0.0 }
 0x197   : > { %v1818_v63 = vadd.f32 %v1817_v51, %v1816_v25  ;;  %v1431_v53 = vadd.f32 %v1430_v0, %v1429_v2  ;;  %v1829_v2 = vsel %vm1132_vm1, %v1612_v10, 0.0  ;;  %v1444_v25 = vsel %vm1132_vm1, %v2848_v55, 0.0 }
 0x198   : > { %v1831_v0 = vsel %vm1132_vm1, %v1613_v29, 0.0  ;;  %v1448_v55 = vsel %vm1132_vm1, %v2841_v49, 0.0  ;;  %v1621_v29 = vmul.f32 %v2889_v48, %v2889_v48 }
 0x199   : > { %v1433_v1 = vadd.f32 %v1432_v37, %v1431_v53  ;;  %v1820_v30 = vadd.f32 %v1819_v42, %v1818_v63  ;;  %v1833_v63 = vsel %vm1132_vm1, %v1614_v18, 0.0  ;;  %v1615_v53 = vmul.f32 %v2860_v6, %v2860_v6 }
 0x19a   : > { %v1616_v42 = vmul.f32 %v2841_v49, %v2841_v49  ;;  %v1450_v6 = vsel %vm1132_vm1, %v2853_v62, 0.0  ;;  %v1622_v18 = vmul.f32 %v2920_v41, %v2920_v41 }
 0x19b   : > { %v1822_v59 = vadd.f32 %v1821_v27, %v1820_v30  ;;  %v1435_v28 = vadd.f32 %v1434_v44, %v1433_v1  ;;  %v1617_v30 = vmul.f32 %v2853_v62, %v2853_v62  ;;  %v1835_v27 = vsel %vm1132_vm1, %v1615_v53, 0.0 }
 0x19c   : > { %v1618_v44 = vmul.f32 %v2884_v45, %v2884_v45  ;;  %v1454_v62 = vsel %vm1132_vm1, %v2896_v56, 0.0 }
 0x19d   : > { %v1437_v26 = vadd.f32 %v1436_v57, %v1435_v28  ;;  %v1824_v34 = vadd.f32 %v1823_v60, %v1822_v59  ;;  %v1837_v28 = vsel %vm1132_vm1, %v1616_v42, 0.0  ;;  %v1452_v60 = vsel %vm1132_vm1, %v2884_v45, 0.0 }
 0x19e   : > { %v1839_v15 = vsel %vm1132_vm1, %v1617_v30, 0.0  ;;  %v1456_v45 = vsel %vm1132_vm1, %v2877_v39, 0.0 }
 0x19f   : > { %v1826_v7 = vadd.f32 %v1825_v14, %v1824_v34  ;;  %v1439_v4 = vadd.f32 %v1438_v40, %v1437_v26  ;;  %v1841_v26 = vsel %vm1132_vm1, %v1618_v44, 0.0  ;;  %v1619_v34 = vmul.f32 %v2896_v56, %v2896_v56 }
 0x1a0   : > { %v1458_v56 = vsel %vm1132_vm1, %v2889_v48, 0.0  ;;  %v1462_v48 = vsel %vm1132_vm1, %v2932_v52, 0.0  ;;  %v1468_v44 = vsel %vm1132_vm1, %v2956_v43, 0.0 }
 0x1a1   : > { %v1441_v51 = vadd.f32 %v1440_v13, %v1439_v4  ;;  %v1828_v35 = vadd.f32 %v1827_v54, %v1826_v7  ;;  %v1620_v7 = vmul.f32 %v2877_v39, %v2877_v39  ;;  %v1843_v54 = vsel %vm1132_vm1, %v1619_v34, 0.0 }
 0x1a2   : > { %v1629_v34 = vmul.f32 %v2961_v58, %v2961_v58 }
 0x1a3   : > { %v1830_v21 = vadd.f32 %v1829_v2, %v1828_v35  ;;  %v1443_v9 = vadd.f32 %v1442_v20, %v1441_v51  ;;  %v1845_v2 = vsel %vm1132_vm1, %v1620_v7, 0.0  ;;  %v1460_v20 = vsel %vm1132_vm1, %v2920_v41, 0.0 }
 0x1a4   : > { %v1464_v41 = vsel %vm1132_vm1, %v2913_v31, 0.0 }
 0x1a5   : > { %v1445_v37 = vadd.f32 %v1444_v25, %v1443_v9  ;;  %v1832_v12 = vadd.f32 %v1831_v0, %v1830_v21  ;;  %v1847_v21 = vsel %vm1132_vm1, %v1621_v29, 0.0  ;;  %v1849_v9 = vsel %vm1132_vm1, %v1622_v18, 0.0 }
 0x1a6   : > { %v1623_v0 = vmul.f32 %v2932_v52, %v2932_v52  ;;  %v1466_v52 = vsel %vm1132_vm1, %v2925_v46, 0.0  ;;  %v1863_v29 = vsel %vm1132_vm1, %v1629_v34, 0.0  ;;  %v1631_v18 = vmul.f32 %v3004_v22, %v3004_v22 }
 0x1a7   : > { %v1834_v32 = vadd.f32 %v1833_v63, %v1832_v12  ;;  %v1447_v1 = vadd.f32 %v1446_v16, %v1445_v37  ;;  %v1624_v37 = vmul.f32 %v2913_v31, %v2913_v31  ;;  %v1625_v16 = vmul.f32 %v2925_v46, %v2925_v46 }
 0x1a8   : > { %v1470_v46 = vsel %vm1132_vm1, %v2968_v5, 0.0 }
 0x1a9   : > { %v1449_v57 = vadd.f32 %v1448_v55, %v1447_v1  ;;  %v1836_v59 = vadd.f32 %v1835_v27, %v1834_v32  ;;  %v1851_v32 = vsel %vm1132_vm1, %v1623_v0, 0.0  ;;  %v1626_v1 = vmul.f32 %v2956_v43, %v2956_v43 }
 0x1aa   : > { %v1853_v27 = vsel %vm1132_vm1, %v1624_v37, 0.0  ;;  %v1472_v43 = vsel %vm1132_vm1, %v2949_v33, 0.0 }
 0x1ab   : > { %v1838_v14 = vadd.f32 %v1837_v28, %v1836_v59  ;;  %v1451_v49 = vadd.f32 %v1450_v6, %v1449_v57  ;;  %v1855_v59 = vsel %vm1132_vm1, %v1625_v16, 0.0  ;;  %v1857_v28 = vsel %vm1132_vm1, %v1626_v1, 0.0  ;;  %v3477_v16 = vld [vmem:[#allocation6_spill] sm:$0xff] }
 0x1ac   : > { %v1627_v6 = vmul.f32 %v2968_v5, %v2968_v5  ;;  %v1474_v5 = vsel %vm1132_vm1, %v2961_v58, 0.0  ;;  %v1478_v58 = vsel %vm1132_vm1, %v3004_v22, 0.0 }
 0x1ad   : > { %v1453_v10 = vadd.f32 %v1452_v60, %v1451_v49  ;;  %v1840_v40 = vadd.f32 %v1839_v15, %v1838_v14  ;;  %v1628_v49 = vmul.f32 %v2949_v33, %v2949_v33 }
 0x1af   : > { %v1842_v4 = vadd.f32 %v1841_v26, %v1840_v40  ;;  %v1455_v13 = vadd.f32 %v1454_v62, %v1453_v10  ;;  %v1859_v10 = vsel %vm1132_vm1, %v1627_v6, 0.0  ;;  %v1630_v40 = vmul.f32 %v2992_v11, %v2992_v11 }
 0x1b1   : > { %v1457_v51 = vadd.f32 %v1456_v45, %v1455_v13  ;;  %v1844_v35 = vadd.f32 %v1843_v54, %v1842_v4  ;;  %v1861_v4 = vsel %vm1132_vm1, %v1628_v49, 0.0  ;;  %v1476_v13 = vsel %vm1132_vm1, %v2992_v11, 0.0 }
 0x1b2   : > { %v1865_v54 = vsel %vm1132_vm1, %v1630_v40, 0.0  ;;  %v1480_v11 = vsel %vm1132_vm1, %v2985_v50, 0.0 }
 0x1b3   : > { %v1846_v25 = vadd.f32 %v1845_v2, %v1844_v35  ;;  %v1459_v39 = vadd.f32 %v1458_v56, %v1457_v51  ;;  %v1632_v2 = vmul.f32 %v2985_v50, %v2985_v50 }
 0x1b5   : > { %v1461_v63 = vadd.f32 %v1460_v20, %v1459_v39  ;;  %v1848_v53 = vadd.f32 %v1847_v21, %v1846_v25  ;;  %v3475_v25 = vld [vmem:[#allocation2_spill] sm:$0xff]  ;;  %v1867_v21 = vsel %vm1132_vm1, %v1631_v18, 0.0  ;;  %v1869_v37 = vsel %vm1132_vm1, %v1632_v2, 0.0 }
 0x1b6   : > { %v1633_v39 = vmul.f32 %v3475_v25, %v3475_v25  ;;  %v1482_v22 = vsel %vm1132_vm1, %v3475_v25, 0.0 }
 0x1b7   : > { %v1850_v12 = vadd.f32 %v1849_v9, %v1848_v53  ;;  %v1463_v42 = vadd.f32 %v1462_v48, %v1461_v63  ;;  %v3476_v9 = vld [vmem:[#allocation4_spill] sm:$0xff] }
 0x1b8   : > { %v1634_v0 = vmul.f32 %v3476_v9, %v3476_v9  ;;  %v1484_v48 = vsel %vm1132_vm1, %v3476_v9, 0.0 }
 0x1b9   : > { %v1465_v55 = vadd.f32 %v1464_v41, %v1463_v42  ;;  %v1852_v30 = vadd.f32 %v1851_v32, %v1850_v12  ;;  %v1871_v42 = vsel %vm1132_vm1, %v1633_v39, 0.0  ;;  %v1635_v32 = vmul.f32 %v3477_v16, %v3477_v16 }
 0x1ba   : > { %v1873_v41 = vsel %vm1132_vm1, %v1634_v0, 0.0 }
 0x1bb   : > { %v1854_v57 = vadd.f32 %v1853_v27, %v1852_v30  ;;  %v1467_v31 = vadd.f32 %v1466_v52, %v1465_v55  ;;  %v3478_v30 = vld [vmem:[#allocation3_spill] sm:$0xff]  ;;  %v1486_v52 = vsel %vm1132_vm1, %v3477_v16, 0.0  ;;  %v1875_v6 = vsel %vm1132_vm1, %v1635_v32, 0.0 }
 0x1bc   : > { %v1636_v27 = vmul.f32 %v3478_v30, %v3478_v30  ;;  %v1508_v16 = vsel %vm1132_vm1, %v3145_v36, 0.0 }
 0x1bd   : > { %v1469_v60 = vadd.f32 %v1468_v44, %v1467_v31  ;;  %v1856_v14 = vadd.f32 %v1855_v59, %v1854_v57  ;;  %v1488_v31 = vsel %vm1132_vm1, %v3478_v30, 0.0  ;;  %v3479_v59 = vld [vmem:[#allocation5_spill] sm:$0xff]  ;;  %v1647_v30 = vmul.f32 %v3160_v17, %v3160_v17 }
 0x1bf   : > { %v1858_v15 = vadd.f32 %v1857_v28, %v1856_v14  ;;  %v1471_v26 = vadd.f32 %v1470_v46, %v1469_v60  ;;  %v1637_v28 = vmul.f32 %v3479_v59, %v3479_v59  ;;  %v1638_v60 = vmul.f32 %v3066_v23, %v3066_v23 }
 0x1c0   : > { %v1877_v46 = vsel %vm1132_vm1, %v1636_v27, 0.0 }
 0x1c1   : > { %v1473_v7 = vadd.f32 %v1472_v43, %v1471_v26  ;;  %v1860_v62 = vadd.f32 %v1859_v10, %v1858_v15  ;;  %v1490_v15 = vsel %vm1132_vm1, %v3479_v59, 0.0  ;;  %v1492_v26 = vsel %vm1132_vm1, %v3066_v23, 0.0  ;;  %v3481_v59 = vld [vmem:[#allocation8_spill] sm:$0xff] }
 0x1c2   : > { %v1879_v10 = vsel %vm1132_vm1, %v1637_v28, 0.0  ;;  %v1881_v40 = vsel %vm1132_vm1, %v1638_v60, 0.0  ;;  %v1649_v28 = vmul.f32 %v3481_v59, %v3481_v59 }
 0x1c3   : > { %v1862_v45 = vadd.f32 %v1861_v4, %v1860_v62  ;;  %v1475_v33 = vadd.f32 %v1474_v5, %v1473_v7  ;;  %v1639_v7 = vmul.f32 %v3080_v19, %v3080_v19  ;;  %v3480_v5 = vld [vmem:[#allocation7_spill] sm:$0xff] }
 0x1c4   : > { %v1496_v23 = vsel %vm1132_vm1, %v3480_v5, 0.0 }
 0x1c5   : > { %v1477_v51 = vadd.f32 %v1476_v13, %v1475_v33  ;;  %v1864_v35 = vadd.f32 %v1863_v29, %v1862_v45  ;;  %v1640_v13 = vmul.f32 %v3480_v5, %v3480_v5  ;;  %v1494_v45 = vsel %vm1132_vm1, %v3080_v19, 0.0 }
 0x1c6   : > { %v1883_v18 = vsel %vm1132_vm1, %v1639_v7, 0.0  ;;  %v1498_v19 = vsel %vm1132_vm1, %v3071_v47, 0.0 }
 0x1c7   : > { %v1866_v56 = vadd.f32 %v1865_v54, %v1864_v35  ;;  %v1479_v20 = vadd.f32 %v1478_v58, %v1477_v51  ;;  %v1641_v54 = vmul.f32 %v3071_v47, %v3071_v47  ;;  %v1642_v51 = vmul.f32 %v3105_v8, %v3105_v8 }
 0x1c8   : > { %v1885_v58 = vsel %vm1132_vm1, %v1640_v13, 0.0  ;;  %v1502_v47 = vsel %vm1132_vm1, %v3120_v3, 0.0 }
 0x1c9   : > { %v1481_v63 = vadd.f32 %v1480_v11, %v1479_v20  ;;  %v1868_v53 = vadd.f32 %v1867_v21, %v1866_v56  ;;  %v1500_v56 = vsel %vm1132_vm1, %v3105_v8, 0.0  ;;  %v1887_v25 = vsel %vm1132_vm1, %v1641_v54, 0.0 }
 0x1ca   : > { %v1889_v39 = vsel %vm1132_vm1, %v1642_v51, 0.0  ;;  %v1643_v21 = vmul.f32 %v3120_v3, %v3120_v3  ;;  %v1504_v8 = vsel %vm1132_vm1, %v3093_v38, 0.0  ;;  %v1506_v3 = vsel %vm1132_vm1, %v3110_v61, 0.0 }
 0x1cb   : > { %v1870_v12 = vadd.f32 %v1869_v37, %v1868_v53  ;;  %v1483_v50 = vadd.f32 %v1482_v22, %v1481_v63  ;;  %v1644_v63 = vmul.f32 %v3093_v38, %v3093_v38  ;;  %v1645_v22 = vmul.f32 %v3110_v61, %v3110_v61 }
 0x1cc   : > { %v1510_v61 = vsel %vm1132_vm1, %v3160_v17, 0.0 }
 0x1cd   : > { %v1485_v1 = vadd.f32 %v1484_v48, %v1483_v50  ;;  %v1872_v55 = vadd.f32 %v1871_v42, %v1870_v12  ;;  %v1891_v48 = vsel %vm1132_vm1, %v1643_v21, 0.0  ;;  %v1646_v12 = vmul.f32 %v3145_v36, %v3145_v36 }
 0x1cf   : > { %v1874_v44 = vadd.f32 %v1873_v41, %v1872_v55  ;;  %v1487_v57 = vadd.f32 %v1486_v52, %v1485_v1  ;;  %v1893_v41 = vsel %vm1132_vm1, %v1644_v63, 0.0  ;;  %v1895_v1 = vsel %vm1132_vm1, %v1645_v22, 0.0 }
 0x1d0   : > { %v1897_v55 = vsel %vm1132_vm1, %v1646_v12, 0.0 }
 0x1d1   : > { %v1489_v14 = vadd.f32 %v1488_v31, %v1487_v57  ;;  %v1876_v49 = vadd.f32 %v1875_v6, %v1874_v44  ;;  %v1648_v44 = vmul.f32 %v3133_v24, %v3133_v24  ;;  %v1512_v31 = vsel %vm1132_vm1, %v3133_v24, 0.0 }
 0x1d2   : > { %v1899_v6 = vsel %vm1132_vm1, %v1647_v30, 0.0 }
 0x1d3   : > { %v1878_v43 = vadd.f32 %v1877_v46, %v1876_v49  ;;  %v1491_v34 = vadd.f32 %v1490_v15, %v1489_v14  ;;  %v1901_v49 = vsel %vm1132_vm1, %v1648_v44, 0.0  ;;  %v1514_v46 = vsel %vm1132_vm1, %v3481_v59, 0.0 }
 0x1d5   : > { %v1493_v62 = vadd.f32 %v1492_v26, %v1491_v34  ;;  %v1880_v4 = vadd.f32 %v1879_v10, %v1878_v43  ;;  %v1903_v26 = vsel %vm1132_vm1, %v1649_v28, 0.0 }
 0x1d7   : > { %v1882_v33 = vadd.f32 %v1881_v40, %v1880_v4  ;;  %v1495_v29 = vadd.f32 %v1494_v45, %v1493_v62 }
 0x1d9   : > { %v1497_v35 = vadd.f32 %v1496_v23, %v1495_v29  ;;  %v1884_v2 = vadd.f32 %v1883_v18, %v1882_v33 }
 0x1db   : > { %v1886_v20 = vadd.f32 %v1885_v58, %v1884_v2  ;;  %v1499_v11 = vadd.f32 %v1498_v19, %v1497_v35 }
 0x1dd   : > { %v1501_v9 = vadd.f32 %v1500_v56, %v1499_v11  ;;  %v1888_v0 = vadd.f32 %v1887_v25, %v1886_v20 }
 0x1df   : > { %v1890_v53 = vadd.f32 %v1889_v39, %v1888_v0  ;;  %v1503_v37 = vadd.f32 %v1502_v47, %v1501_v9 }
 0x1e1   : > { %v1505_v50 = vadd.f32 %v1504_v8, %v1503_v37  ;;  %v1892_v42 = vadd.f32 %v1891_v48, %v1890_v53 }
 0x1e3   : > { %v1894_v32 = vadd.f32 %v1893_v41, %v1892_v42  ;;  %v1507_v38 = vadd.f32 %v1506_v3, %v1505_v50 }
 0x1e5   : > { %v1509_v27 = vadd.f32 %v1508_v16, %v1507_v38  ;;  %v1896_v52 = vadd.f32 %v1895_v1, %v1894_v32 }
 0x1e7   : > { %v1898_v57 = vadd.f32 %v1897_v55, %v1896_v52  ;;  %v1511_v36 = vadd.f32 %v1510_v61, %v1509_v27 }
 0x1e9   : > { %v1513_v60 = vadd.f32 %v1512_v31, %v1511_v36  ;;  %v1900_v14 = vadd.f32 %v1899_v6, %v1898_v57 }
 0x1eb   : > { %v1515_v15 = vadd.f32 %v1514_v46, %v1513_v60  ;;  %v1902_v17 = vadd.f32 %v1901_v49, %v1900_v14 }
 0x1ed   : > { %v1516_v43 = vrot.slane %v1515_v15, 4  ;;  %v1904_v34 = vadd.f32 %v1903_v26, %v1902_v17 }
 0x1ef   : > { %v1517_v24 = vadd.f32 %v1516_v43, %v1515_v15  ;;  %v1905_v10 = vrot.slane %v1904_v34, 4 }
 0x1f1   : > { %v1518_v40 = vrot.slane %v1517_v24, 2  ;;  %v1906_v7 = vadd.f32 %v1905_v10, %v1904_v34 }
 0x1f3   : > { %v1519_v62 = vadd.f32 %v1518_v40, %v1517_v24  ;;  %v1907_v4 = vrot.slane %v1906_v7, 2 }
 0x1f5   : > { %v1520_v5 = vrot.slane %v1519_v62, 1  ;;  %v1908_v13 = vadd.f32 %v1907_v4, %v1906_v7 }
 0x1f7   : > { %v1909_v45 = vrot.slane %v1908_v13, 1  ;;  %v1521_v33 = vadd.f32 %v1520_v5, %v1519_v62 }
 0x1f9   : > { %v1910_v29 = vadd.f32 %v1909_v45, %v1908_v13 }
 0x1fb   : > { %v1912_v23 = vsel %vm1911_vm2, %v1521_v33, %v1910_v29 }
 0x1fc   : > { %1914 = vst.msk [vmem:[%s184_s29] sm:$0x3] %vm1913_vm3, %v1912_v23 }
 0x1fd PF: > { %s14_s12 = sadd.s32 1, %s2298_s12  }
 0x1fe   : > { %p11_p5 = scmp.ge.s32.totalorder %s14_s12, 4  }
 0x200   :  { %13 = sbr.rel (!%p11_p5) target bundleno = 1 (0x1), region = 70 }

// kernel: bottleneck_forward.5
= control target key start
LH: loop header
LB: loop body
LE: loop exit
PB: predicated region body
PF: predicated region fallthrough
CT: control target
= control target key end

     0   :  { %s2020_s18 = smov 0   ;;  %s2987_s0 = inlined_call_operand.vmem [shape: f32[8,20,20,8], index: 0, kind: input, shape index: {}]   ;;  %s2988_s1 = inlined_call_operand.vmem [shape: f32[1,1,8], index: 1, kind: input, shape index: {}]   ;;  %s2989_s2 = inlined_call_operand.vmem [shape: f32[1,1,8], index: 2, kind: input, shape index: {}]   ;;  %s2990_s3 = inlined_call_operand.vmem [shape: bf16[72,8], index: 3, kind: input, shape index: {}]   ;;  %s2991_s4 = inlined_call_operand.vmem [shape: f32[2048,8], index: 4, kind: output, shape index: {0}]   ;;  %s2992_s5 = inlined_call_operand.vmem [shape: f32[8,2,8], index: 5, kind: output, shape index: {1}]  }
   0x1 LB: > { %s2026_s19 = sadd.s32 4294967295, %s1979_s18   ;;  %p1843_p0 = scmp.ge.s32.totalorder %s1979_s18, 1  ;;  %s1979_s18 = sphi %s2020_s18, %s16_s18  }
   0x2   : > { %p190_p1 = scmp.lt.s32.totalorder %s1979_s18, 9 }
   0x4   : > { %p191_p2 = pnand %p1843_p0, %p190_p1 }
   0x5   : > { %v1981_v0 = vmov (!%p191_p2), 0.0|0.0   ;;  %p222_p3 = scmp.lt.s32.totalorder (!%p191_p2), %s2026_s19, 7  ;;  %v492_v3 = vlaneseq (!%p191_p2)  ;;  %s1982_s20 = smov (!%p191_p2), 16   ;;  %v2048_v4 = vld [vmem:[%s2988_s1] ss:$0 sm:$0xff] (!%p191_p2)  ;;  %v1967_v60 = vld [vmem:[%s2990_s3 + $0x8] sm:$0xff] (!%p191_p2)  }
   0x6   : > { %194 = sbr.rel (%p191_p2) target bundleno = 629 (0x275), region = 36  ;;  %v2031_v1 = vrot.slane (!%p191_p2), %v1981_v0, 2  ;;  %v2034_v2 = vrot.slane (!%p191_p2), %v1981_v0, 1  ;;  %s1983_s21 = smov (!%p191_p2), 8   ;;  %v2055_v6 = vld [vmem:[%s2989_s2] ss:$0 sm:$0xff] (!%p191_p2) }
   0x7   : > { %v2050_v5 = vshrl.u32 (!%p191_p2), %v492_v3, 7  ;;  %s1984_s6 = smov (!%p191_p2), 24   ;;  %v1966_v58 = vld [vmem:[%s2990_s3] sm:$0xff] (!%p191_p2)   ;;  %s1985_s11 = smov (!%p191_p2), 48   ;;  %vm646_vm2 = vcmask (!%p191_p2), 1046528   ;;  %vm727_vm3 = vcmask (!%p191_p2), 1045504  }
   0x8   : > { %776 = vrot.lane.b32.xlu1 (!%p191_p2), %v2031_v1, %s1982_s20  ;;  %695 = vrot.lane.b32.xlu0 (!%p191_p2), %v2034_v2, %s1983_s21  ;;  %s1986_s14 = smov (!%p191_p2), 32   ;;  %s1987_s17 = smov (!%p191_p2), 40   ;;  %vm1381_vm4 = vcmask (!%p191_p2), 1043456   ;;  %vm1032_vm5 = vcmask (!%p191_p2), 64512   ;;  %vm1081_vm6 = vcmask (!%p191_p2), 130048   ;;  %vm1114_vm7 = vcmask (!%p191_p2), 195584  }
   0x9   : > { %vm496_vm0 = vcmp.ge.s32.totalorder (!%p191_p2), %v2050_v5, 2  ;;  %v2082_v21 = vadd.s32 (!%p191_p2), 16, %v2050_v5  ;;  %1894 = vmatprep.subr.bf16.mxu0 (!%p191_p2), %v1966_v58  ;;  %1936 = vmatprep.subr.bf16.mxu1 (!%p191_p2), %v1966_v58  ;;  %s1989_s24 = smov (!%p191_p2), 64   ;;  %vm1147_vm8 = vcmask (!%p191_p2), 261120   ;;  %vm1180_vm9 = vcmask (!%p191_p2), 326656  }
   0xa   : > { %1895 = vmatpush3.bf16.msra.mxu0 (!%p191_p2), %v1966_v58  ;;  %1941 = vmatpush3.bf16.msra.mxu1 (!%p191_p2), %v1966_v58  ;;  %vm1213_vm10 = vcmask (!%p191_p2), 392192   ;;  %vm1246_vm11 = vcmask (!%p191_p2), 457728   ;;  %vm1279_vm12 = vcmask (!%p191_p2), 523264   ;;  %vm1348_vm13 = vcmask (!%p191_p2), 588800  }
   0xb   : > { %vm507_vm1 = vcmp.lt.s32.totalorder (!%p191_p2), %v2082_v21, 18  ;;  %1896 = vmatprep.subr.bf16.mxu0 (!%p191_p2), %v1967_v60  ;;  %1937 = vmatprep.subr.bf16.mxu1 (!%p191_p2), %v1967_v60  ;;  %vm1748_vm14 = vcmask (!%p191_p2), 1040384   ;;  %vm1750_vm15 = vcmask (!%p191_p2), 58368  }
   0xc   : > { %778 = vrot.lane.b32.xlu1 (!%p191_p2), %v2031_v1, %s1982_s20  ;;  %697 = vrot.lane.b32.xlu0 (!%p191_p2), %v2034_v2, %s1983_s21 }
   0xd   : > { %s2042_s22 = scalar_select %p222_p3, %s2026_s19, 7 }
   0xe   : > { %1897 = vmatpush3.bf16.msra.mxu0 %v1967_v60  ;;  %1942 = vmatpush3.bf16.msra.mxu1 %v1967_v60 }
   0xf   : > { %s1948_s23 = smul.u32 480, %s2042_s22 }
  0x11   : > { %s2064_s30 = scalar_lea.vmem %s2987_s0, %s1948_s23  ;;  %s1988_s23 = smov 56  }
  0x12   : > { %v247_v7 = vld [vmem:[%s2064_s30 + $0x48] sm:$0xff]  ;;  %v248_v8 = vld [vmem:[%s2064_s30 + $0x50] sm:$0xff]  ;;  %v245_v12 = vld [vmem:[%s2064_s30 + $0x38] sm:$0xff] }
  0x13   : > { %v244_v9 = vld [vmem:[%s2064_s30 + $0x30] sm:$0xff]  ;;  %v314_v10 = vmul.f32 %v2048_v4, %v247_v7  ;;  %v315_v11 = vmul.f32 %v2048_v4, %v248_v8  ;;  %v253_v14 = vld [vmem:[%s2064_s30 + $0x78] sm:$0xff]  ;;  %v254_v15 = vld [vmem:[%s2064_s30 + $0x80] sm:$0xff]  ;;  %v312_v16 = vmul.f32 %v2048_v4, %v245_v12 }
  0x14   : > { %v311_v13 = vmul.f32 %v2048_v4, %v244_v9  ;;  %v320_v17 = vmul.f32 %v2048_v4, %v253_v14  ;;  %v321_v18 = vmul.f32 %v2048_v4, %v254_v15  ;;  %v250_v19 = vld [vmem:[%s2064_s30 + $0x60] sm:$0xff]  ;;  %v251_v20 = vld [vmem:[%s2064_s30 + $0x68] sm:$0xff]  ;;  %v249_v30 = vld [vmem:[%s2064_s30 + $0x58] sm:$0xf] }
  0x15   : > { %v381_v22 = vadd.f32 %v2055_v6, %v314_v10  ;;  %v382_v23 = vadd.f32 %v2055_v6, %v315_v11  ;;  %v317_v25 = vmul.f32 %v2048_v4, %v250_v19  ;;  %v379_v26 = vadd.f32 %v2055_v6, %v312_v16  ;;  %v246_v39 = vld [vmem:[%s2064_s30 + $0x40] sm:$0xf]  ;;  %v255_v48 = vld [vmem:[%s2064_s30 + $0x88] sm:$0xf]  ;;  %v252_v52 = vld [vmem:[%s2064_s30 + $0x70] sm:$0xf] }
  0x16   : > { %v378_v24 = vadd.f32 %v2055_v6, %v311_v13  ;;  %v387_v27 = vadd.f32 %v2055_v6, %v320_v17  ;;  %v388_v28 = vadd.f32 %v2055_v6, %v321_v18  ;;  %v318_v29 = vmul.f32 %v2048_v4, %v251_v20  ;;  %v1968_v17 = vld [vmem:[%s2990_s3 + $0x10] sm:$0xff]  }
  0x17   : > { %v441_v31 = vmax.f32 %v381_v22, 0.0  ;;  %v442_v32 = vmax.f32 %v382_v23, 0.0  ;;  %v384_v34 = vadd.f32 %v2055_v6, %v317_v25  ;;  %v439_v35 = vmax.f32 %v379_v26, 0.0  ;;  %1898 = vmatprep.subr.bf16.mxu0 %v1968_v17  ;;  %1938 = vmatprep.subr.bf16.mxu1 %v1968_v17 }
  0x18   : > { %v438_v33 = vmax.f32 %v378_v24, 0.0  ;;  %v447_v36 = vmax.f32 %v387_v27, 0.0  ;;  %v448_v37 = vmax.f32 %v388_v28, 0.0  ;;  %v385_v38 = vadd.f32 %v2055_v6, %v318_v29  ;;  %1899 = vmatpush3.bf16.msra.mxu0 %v1968_v17  ;;  %1943 = vmatpush3.bf16.msra.mxu1 %v1968_v17 }
  0x19   : > { %v523_v40 = vsel %vm496_vm0, %v441_v31, 0.0  ;;  %v444_v42 = vmax.f32 %v384_v34, 0.0  ;;  %v316_v43 = vmul.f32 %v2048_v4, %v249_v30  ;;  %v313_v51 = vmul.f32 %v2048_v4, %v246_v39  ;;  %v1969_v30 = vld [vmem:[%s2990_s3 + $0x18] sm:$0xff]  }
  0x1a   : > { %v520_v41 = vsel %vm496_vm0, %v438_v33, 0.0  ;;  %v2101_v44 = vpack.c.bf16 %v442_v32, %v523_v40  ;;  %v529_v46 = vsel %vm496_vm0, %v447_v36, 0.0  ;;  %v445_v47 = vmax.f32 %v385_v38, 0.0  ;;  %1900 = vmatprep.subr.bf16.mxu0 %v1969_v30  ;;  %1939 = vmatprep.subr.bf16.mxu1 %v1969_v30 }
  0x1b   : > { %v2103_v45 = vpack.c.bf16 %v439_v35, %v520_v41  ;;  %v526_v49 = vsel %vm496_vm0, %v444_v42, 0.0  ;;  %v383_v50 = vadd.f32 %v2055_v6, %v316_v43  ;;  %v2117_v53 = vpack.c.bf16 %v448_v37, %v529_v46  ;;  %v259_v42 = vld [vmem:[%s2064_s30 + $0xa8] sm:$0xff]  ;;  %v261_v43 = vld [vmem:[%s2064_s30 + $0xb8] sm:$0xf]  ;;  %v256_v46 = vld [vmem:[%s2064_s30 + $0x90] sm:$0xff] }
  0x1c   : > { %812 = vrot.lane.b32.xlu1 %v2101_v44, %s1984_s6  ;;  %v2119_v54 = vpack.c.bf16 %v445_v47, %v526_v49  ;;  %v380_v56 = vadd.f32 %v2055_v6, %v313_v51  ;;  %v322_v57 = vmul.f32 %v2048_v4, %v255_v48  ;;  %v319_v59 = vmul.f32 %v2048_v4, %v252_v52  ;;  %v258_v47 = vld [vmem:[%s2064_s30 + $0xa0] sm:$0xf]  ;;  %v260_v48 = vld [vmem:[%s2064_s30 + $0xb0] sm:$0xff]  ;;  %v257_v52 = vld [vmem:[%s2064_s30 + $0x98] sm:$0xff] }
  0x1d   : > { %810 = vrot.lane.b32.xlu0 %v2103_v45, %s1984_s6  ;;  %v443_v55 = vmax.f32 %v383_v50, 0.0  ;;  %v656_v7 = vrot.slane %v2101_v44, 1  ;;  %v653_v10 = vrot.slane %v2103_v45, 1  ;;  %v737_v11 = vrot.slane %v2101_v44, 2  ;;  %1901 = vmatpush3.bf16.msra.mxu0 %v1969_v30 }
  0x1e   : > { %v440_v62 = vmax.f32 %v380_v56, 0.0  ;;  %v389_v63 = vadd.f32 %v2055_v6, %v322_v57  ;;  %v386_v8 = vadd.f32 %v2055_v6, %v319_v59  ;;  %v734_v22 = vrot.slane %v2103_v45, 2  ;;  %1944 = vmatpush3.bf16.msra.mxu1 %v1969_v30 }
  0x1f   : > { %v525_v61 = vsel %vm507_vm1, %v443_v55, 0.0  ;;  %v662_v28 = vrot.slane %v2117_v53, 1  ;;  %v659_v33 = vrot.slane %v2119_v54, 1  ;;  %v740_v37 = vrot.slane %v2119_v54, 2 }
  0x20   : > { %924 = vrot.lane.b32.xlu1 %v2117_v53, %s1985_s11  ;;  %v581_v3 = vpack.c.bf16 %v525_v61, %v525_v61  ;;  %v522_v9 = vsel %vm507_vm1, %v440_v62, 0.0  ;;  %v449_v12 = vmax.f32 %v389_v63, 0.0  ;;  %v446_v16 = vmax.f32 %v386_v8, 0.0  ;;  %v1970_v8 = vld [vmem:[%s2990_s3 + $0x20] ss:$0 sps:$4 sm:$0xff]  }
  0x21   : > { %922 = vrot.lane.b32.xlu0 %v2119_v54, %s1985_s11  ;;  %v579_v14 = vpack.c.bf16 %v522_v9, %v522_v9  ;;  %v743_v40 = vrot.slane %v2117_v53, 2  ;;  %v326_v49 = vmul.f32 %v2048_v4, %v259_v42  ;;  %v328_v50 = vmul.f32 %v2048_v4, %v261_v43  ;;  %1946 = vmatprep.subr.msk.bf16.mxu0 %vm1381_vm4, %v1970_v8  ;;  %v266_v42 = vld [vmem:[%s2064_s30 + $0xe0] sm:$0xff] }
  0x22   : > { %v657_v13 = vrot.slane %v581_v3, 1  ;;  %v738_v15 = vrot.slane %v581_v3, 2  ;;  %v531_v18 = vsel %vm507_vm1, %v449_v12, 0.0  ;;  %v528_v25 = vsel %vm507_vm1, %v446_v16, 0.0  ;;  %1947 = vmatprep.subr.msk.bf16.mxu1 %vm1381_vm4, %v1970_v8 }
  0x23   : > { %v654_v20 = vrot.slane %v579_v14, 1  ;;  %v735_v23 = vrot.slane %v579_v14, 2  ;;  %v585_v24 = vpack.c.bf16 %v531_v18, %v531_v18  ;;  %v583_v29 = vpack.c.bf16 %v528_v25, %v528_v25 }
  0x24   : > { %v658_v19 = vsel %vm646_vm2, %v656_v7, %v657_v13  ;;  %v739_v27 = vsel %vm727_vm3, %v737_v11, %v738_v15  ;;  %v323_v55 = vmul.f32 %v2048_v4, %v256_v46  ;;  %v325_v56 = vmul.f32 %v2048_v4, %v258_v47 }
  0x25   : > { %852 = vrot.lane.b32.xlu1 %v658_v19, %s1986_s14  ;;  %v655_v26 = vsel %vm646_vm2, %v653_v10, %v654_v20  ;;  %v663_v31 = vrot.slane %v585_v24, 1  ;;  %v736_v32 = vsel %vm727_vm3, %v734_v22, %v735_v23  ;;  %v660_v34 = vrot.slane %v583_v29, 1 }
  0x26   : > { %850 = vrot.lane.b32.xlu0 %v655_v26, %s1986_s14  ;;  %v741_v38 = vrot.slane %v583_v29, 2  ;;  %v744_v41 = vrot.slane %v585_v24, 2  ;;  %v327_v57 = vmul.f32 %v2048_v4, %v260_v48  ;;  %v393_v58 = vadd.f32 %v2055_v6, %v326_v49  ;;  %v263_v48 = vld [vmem:[%s2064_s30 + $0xc8] sm:$0xff] }
  0x27   : > { %v2165_v35 = vsel %vm646_vm2, %v662_v28, %v663_v31  ;;  %v2169_v36 = vsel %vm646_vm2, %v659_v33, %v660_v34  ;;  %v395_v59 = vadd.f32 %v2055_v6, %v328_v50  ;;  %v324_v60 = vmul.f32 %v2048_v4, %v257_v52 }
  0x28   : > { %v2177_v39 = vsel %vm727_vm3, %v740_v37, %v741_v38  ;;  %v2191_v51 = vsel %vm727_vm3, %v743_v40, %v744_v41  ;;  %v390_v61 = vadd.f32 %v2055_v6, %v323_v55  ;;  %v392_v62 = vadd.f32 %v2055_v6, %v325_v56  ;;  %v265_v37 = vld [vmem:[%s2064_s30 + $0xd8] sm:$0xff]  ;;  %v267_v38 = vld [vmem:[%s2064_s30 + $0xe8] sm:$0xf]  ;;  %v262_v40 = vld [vmem:[%s2064_s30 + $0xc0] sm:$0xff] }
  0x29   : > { %890 = vrot.lane.b32.xlu1 %v739_v27, %s1987_s17  ;;  %v394_v63 = vadd.f32 %v2055_v6, %v327_v57  ;;  %v453_v3 = vmax.f32 %v393_v58, 0.0  ;;  %v455_v7 = vmax.f32 %v395_v59, 0.0  ;;  %v391_v9 = vadd.f32 %v2055_v6, %v324_v60  ;;  %v264_v41 = vld [vmem:[%s2064_s30 + $0xd0] sm:$0xf] }
  0x2a   : > { %888 = vrot.lane.b32.xlu0 %v736_v32, %s1987_s17  ;;  %v450_v10 = vmax.f32 %v390_v61, 0.0  ;;  %v452_v11 = vmax.f32 %v392_v62, 0.0  ;;  %v1383_v16 = vsel %vm1381_vm4, %v1970_v8, 0  ;;  %v332_v43 = vmul.f32 %v2048_v4, %v265_v37  ;;  %v272_v37 = vld [vmem:[%s2064_s30 + $0x110] sm:$0xff] }
  0x2b   : > { %v454_v12 = vmax.f32 %v394_v63, 0.0  ;;  %v535_v13 = vsel %vm496_vm0, %v453_v3, 0.0  ;;  %v537_v14 = vsel %vm507_vm1, %v455_v7, 0.0  ;;  %v451_v15 = vmax.f32 %v391_v9, 0.0  ;;  %1903 = vmatpush3.bf16.msra.mxu0 %v1383_v16  ;;  %1945 = vmatpush3.bf16.msra.mxu1 %v1383_v16 }
  0x2c   : > { %v532_v17 = vsel %vm496_vm0, %v450_v10, 0.0  ;;  %v534_v18 = vsel %vm507_vm1, %v452_v11, 0.0  ;;  %v589_v20 = vpack.c.bf16 %v537_v14, %v537_v14  ;;  %v334_v46 = vmul.f32 %v2048_v4, %v267_v38 }
  0x2d   : > { %964 = vrot.lane.b32.xlu1 %v2165_v35, %s1988_s23  ;;  %v2230_v22 = vpack.c.bf16 %v451_v15, %v532_v17  ;;  %v587_v23 = vpack.c.bf16 %v534_v18, %v534_v18  ;;  %v329_v49 = vmul.f32 %v2048_v4, %v262_v40  ;;  %v333_v50 = vmul.f32 %v2048_v4, %v266_v42  ;;  %v269_v42 = vld [vmem:[%s2064_s30 + $0xf8] sm:$0xff] }
  0x2e   : > { %962 = vrot.lane.b32.xlu0 %v2169_v36, %s1988_s23  ;;  %v669_v25 = vrot.slane %v589_v20, 1  ;;  %v750_v34 = vrot.slane %v589_v20, 2  ;;  %v399_v52 = vadd.f32 %v2055_v6, %v332_v43  ;;  %v401_v55 = vadd.f32 %v2055_v6, %v334_v46 }
  0x2f   : > { %v746_v30 = vrot.slane %v2230_v22, 2  ;;  %v747_v31 = vrot.slane %v587_v23, 2  ;;  %v330_v56 = vmul.f32 %v2048_v4, %v263_v48  ;;  %v400_v58 = vadd.f32 %v2055_v6, %v333_v50 }
  0x30   : > { %v459_v59 = vmax.f32 %v399_v52, 0.0  ;;  %v461_v60 = vmax.f32 %v401_v55, 0.0  ;;  %v339_v46 = vmul.f32 %v2048_v4, %v272_v37  ;;  %v277_v37 = vld [vmem:[%s2064_s30 + $0x138] sm:$0xff] }
  0x31   : > { %699 = vrot.lane.b32.xlu1 %v655_v26, %s1983_s21  ;;  %v665_v26 = vrot.slane %v2230_v22, 1  ;;  %v397_v61 = vadd.f32 %v2055_v6, %v330_v56  ;;  %v460_v3 = vmax.f32 %v400_v58, 0.0 }
  0x32   : > { %1000 = vrot.lane.b32.xlu0 %v2177_v39, %s1989_s24  ;;  %v543_v7 = vsel %vm507_vm1, %v461_v60, 0.0  ;;  %v406_v52 = vadd.f32 %v2055_v6, %v339_v46  ;;  %v278_v46 = vld [vmem:[%s2064_s30 + $0x140] sm:$0xff] }
  0x33   : > { %v593_v11 = vpack.c.bf16 %v543_v7, %v543_v7 }
  0x35   : > { %701 = vrot.lane.b32.xlu1 %v658_v19, %s1983_s21  ;;  %v2226_v19 = vpack.c.bf16 %v454_v12, %v535_v13  ;;  %v675_v15 = vrot.slane %v593_v11, 1 }
  0x36   : > { %1002 = vrot.lane.b32.xlu0 %v2191_v51, %s1989_s24 }
  0x37   : > { %v668_v24 = vrot.slane %v2226_v19, 1  ;;  %v749_v33 = vrot.slane %v2226_v19, 2 }
  0x39   : > { %782 = vrot.lane.b32.xlu1 %v739_v27, %s1982_s20  ;;  %v666_v27 = vrot.slane %v587_v23, 1  ;;  %v2241_v28 = vsel %vm646_vm2, %v668_v24, %v669_v25  ;;  %v2269_v47 = vsel %vm727_vm3, %v749_v33, %v750_v34  ;;  %v268_v33 = vld [vmem:[%s2064_s30 + $0xf0] sm:$0xff]  ;;  %v270_v34 = vld [vmem:[%s2064_s30 + $0x100] sm:$0xf] }
  0x3a   : > { %780 = vrot.lane.b32.xlu0 %v736_v32, %s1982_s20  ;;  %v2254_v32 = vsel %vm727_vm3, %v746_v30, %v747_v31  ;;  %v271_v30 = vld [vmem:[%s2064_s30 + $0x108] sm:$0xff]  ;;  %v273_v31 = vld [vmem:[%s2064_s30 + $0x118] sm:$0xf]  ;;  %v335_v43 = vmul.f32 %v2048_v4, %v268_v33 }
  0x3b   : > { %v2246_v29 = vsel %vm646_vm2, %v665_v26, %v666_v27  ;;  %v756_v27 = vrot.slane %v593_v11, 2  ;;  %v338_v38 = vmul.f32 %v2048_v4, %v271_v30  ;;  %v340_v40 = vmul.f32 %v2048_v4, %v273_v31 }
  0x3d   : > { %816 = vrot.lane.b32.xlu1 %v2117_v53, %s1984_s6  ;;  %v405_v48 = vadd.f32 %v2055_v6, %v338_v38  ;;  %v279_v38 = vld [vmem:[%s2064_s30 + $0x148] sm:$0xf] }
  0x3e   : > { %814 = vrot.lane.b32.xlu0 %v2119_v54, %s1984_s6 }
  0x3f   : > { %v465_v55 = vmax.f32 %v405_v48, 0.0  ;;  %v344_v48 = vmul.f32 %v2048_v4, %v277_v37 }
  0x41   : > { %856 = vrot.lane.b32.xlu1 %v2165_v35, %s1986_s14 }
  0x42   : > { %854 = vrot.lane.b32.xlu0 %v2169_v36, %s1986_s14 }
  0x45   : > { %894 = vrot.lane.b32.xlu1 %v2191_v51, %s1987_s17 }
  0x46   : > { %892 = vrot.lane.b32.xlu0 %v2177_v39, %s1987_s17 }
  0x49   : > { %928 = vrot.lane.b32.xlu1 %v2226_v19, %s1985_s11 }
  0x4a   : > { %926 = vrot.lane.b32.xlu0 %v2230_v22, %s1985_s11 }
  0x4d   : > { %968 = vrot.lane.b32.xlu1 %v2241_v28, %s1988_s23 }
  0x4e   : > { %966 = vrot.lane.b32.xlu0 %v2246_v29, %s1988_s23 }
  0x51   : > { %703 = vrot.lane.b32.xlu1 %v2169_v36, %s1983_s21  ;;  %v331_v36 = vmul.f32 %v2048_v4, %v264_v41 }
  0x52   : > { %1004 = vrot.lane.b32.xlu0 %v2254_v32, %s1989_s24 }
  0x53   : > { %v398_v57 = vadd.f32 %v2055_v6, %v331_v36  ;;  %v336_v36 = vmul.f32 %v2048_v4, %v269_v42  ;;  %v274_v42 = vld [vmem:[%s2064_s30 + $0x120] sm:$0xff] }
  0x55   : > { %705 = vrot.lane.b32.xlu1 %v2165_v35, %s1983_s21  ;;  %v396_v35 = vadd.f32 %v2055_v6, %v329_v49  ;;  %v458_v63 = vmax.f32 %v398_v57, 0.0  ;;  %v407_v49 = vadd.f32 %v2055_v6, %v340_v40 }
  0x56   : > { %1006 = vrot.lane.b32.xlu0 %v2269_v47, %s1989_s24 }
  0x57   : > { %v456_v62 = vmax.f32 %v396_v35, 0.0  ;;  %v540_v9 = vsel %vm507_vm1, %v458_v63, 0.0  ;;  %v467_v56 = vmax.f32 %v407_v49, 0.0  ;;  %v403_v35 = vadd.f32 %v2055_v6, %v336_v36 }
  0x58   : > { %v591_v13 = vpack.c.bf16 %v540_v9, %v540_v9  ;;  %v346_v49 = vmul.f32 %v2048_v4, %v279_v38 }
  0x59   : > { %786 = vrot.lane.b32.xlu1 %v2191_v51, %s1982_s20  ;;  %v541_v51 = vsel %vm496_vm0, %v459_v59, 0.0  ;;  %v538_v8 = vsel %vm496_vm0, %v456_v62, 0.0  ;;  %v466_v59 = vmax.f32 %v406_v52, 0.0  ;;  %v549_v60 = vsel %vm507_vm1, %v467_v56, 0.0 }
  0x5a   : > { %784 = vrot.lane.b32.xlu0 %v2177_v39, %s1982_s20  ;;  %v457_v39 = vmax.f32 %v397_v61, 0.0  ;;  %v2304_v10 = vpack.c.bf16 %v460_v3, %v541_v51  ;;  %v672_v17 = vrot.slane %v591_v13, 1  ;;  %v753_v24 = vrot.slane %v591_v13, 2 }
  0x5b   : > { %v597_v7 = vpack.c.bf16 %v549_v60, %v549_v60  ;;  %v345_v52 = vmul.f32 %v2048_v4, %v278_v46  ;;  %v411_v56 = vadd.f32 %v2055_v6, %v344_v48 }
  0x5c   : > { %v2308_v12 = vpack.c.bf16 %v457_v39, %v538_v8  ;;  %v674_v14 = vrot.slane %v2304_v10, 1  ;;  %v755_v26 = vrot.slane %v2304_v10, 2 }
  0x5d   : > { %820 = vrot.lane.b32.xlu1 %v2226_v19, %s1984_s6  ;;  %v681_v11 = vrot.slane %v597_v7, 1 }
  0x5e   : > { %818 = vrot.lane.b32.xlu0 %v2230_v22, %s1984_s6  ;;  %v671_v16 = vrot.slane %v2308_v12, 1  ;;  %v2319_v18 = vsel %vm646_vm2, %v674_v14, %v675_v15  ;;  %v752_v23 = vrot.slane %v2308_v12, 2  ;;  %v2347_v41 = vsel %vm727_vm3, %v755_v26, %v756_v27 }
  0x60   : > { %v2324_v20 = vsel %vm646_vm2, %v671_v16, %v672_v17  ;;  %v2332_v25 = vsel %vm727_vm3, %v752_v23, %v753_v24 }
  0x61   : > { %860 = vrot.lane.b32.xlu1 %v2241_v28, %s1986_s14 }
  0x62   : > { %858 = vrot.lane.b32.xlu0 %v2246_v29, %s1986_s14 }
  0x65   : > { %898 = vrot.lane.b32.xlu1 %v2269_v47, %s1987_s17 }
  0x66   : > { %896 = vrot.lane.b32.xlu0 %v2254_v32, %s1987_s17 }
  0x69   : > { %932 = vrot.lane.b32.xlu1 %v2304_v10, %s1985_s11 }
  0x6a   : > { %930 = vrot.lane.b32.xlu0 %v2308_v12, %s1985_s11 }
  0x6d   : > { %972 = vrot.lane.b32.xlu1 %v2319_v18, %s1988_s23 }
  0x6e   : > { %970 = vrot.lane.b32.xlu0 %v2324_v20, %s1988_s23 }
  0x71   : > { %707 = vrot.lane.b32.xlu1 %v2246_v29, %s1983_s21  ;;  %v337_v29 = vmul.f32 %v2048_v4, %v270_v34  ;;  %v762_v34 = vrot.slane %v597_v7, 2 }
  0x72   : > { %1008 = vrot.lane.b32.xlu0 %v2332_v25, %s1989_s24 }
  0x73   : > { %v404_v50 = vadd.f32 %v2055_v6, %v337_v29 }
  0x75   : > { %709 = vrot.lane.b32.xlu1 %v2241_v28, %s1983_s21  ;;  %v402_v28 = vadd.f32 %v2055_v6, %v335_v43  ;;  %v464_v58 = vmax.f32 %v404_v50, 0.0  ;;  %v276_v43 = vld [vmem:[%s2064_s30 + $0x130] sm:$0xf] }
  0x76   : > { %1010 = vrot.lane.b32.xlu0 %v2347_v41, %s1989_s24  ;;  %v343_v50 = vmul.f32 %v2048_v4, %v276_v43 }
  0x77   : > { %v462_v57 = vmax.f32 %v402_v28, 0.0  ;;  %v546_v62 = vsel %vm507_vm1, %v464_v58, 0.0  ;;  %v341_v28 = vmul.f32 %v2048_v4, %v274_v42 }
  0x78   : > { %v595_v8 = vpack.c.bf16 %v546_v62, %v546_v62 }
  0x79   : > { %790 = vrot.lane.b32.xlu1 %v2269_v47, %s1982_s20  ;;  %v547_v47 = vsel %vm496_vm0, %v465_v55, 0.0  ;;  %v544_v61 = vsel %vm496_vm0, %v462_v57, 0.0 }
  0x7a   : > { %788 = vrot.lane.b32.xlu0 %v2254_v32, %s1982_s20  ;;  %v463_v32 = vmax.f32 %v403_v35, 0.0  ;;  %v2382_v63 = vpop.permute.xlu1 %776  ;;  %v696_v3 = vpop.permute.xlu0 %695  ;;  %v2384_v51 = vpack.c.bf16 %v466_v59, %v547_v47  ;;  %v678_v16 = vrot.slane %v595_v8, 1  ;;  %v759_v26 = vrot.slane %v595_v8, 2 }
  0x7b   : > { %v413_v35 = vadd.f32 %v2055_v6, %v346_v49  ;;  %v410_v59 = vadd.f32 %v2055_v6, %v343_v50  ;;  %v412_v47 = vadd.f32 %v2055_v6, %v345_v52  ;;  %v1035_v60 = vsel %vm1032_vm5, 0.0|0.0, %v696_v3 }
  0x7c   : > { %v2388_v39 = vpack.c.bf16 %v463_v32, %v544_v61  ;;  %v680_v9 = vrot.slane %v2384_v51, 1  ;;  %v761_v33 = vrot.slane %v2384_v51, 2  ;;  %v471_v61 = vmax.f32 %v411_v56, 0.0 }
  0x7d   : > { %824 = vrot.lane.b32.xlu1 %v2304_v10, %s1984_s6  ;;  %v473_v62 = vmax.f32 %v413_v35, 0.0  ;;  %v1083_v3 = vsel %vm1081_vm6, %v1035_v60, %v2382_v63 }
  0x7e   : > { %822 = vrot.lane.b32.xlu0 %v2308_v12, %s1984_s6  ;;  %v2395_v13 = vpop.permute.xlu1 %778  ;;  %v698_v14 = vpop.permute.xlu0 %697  ;;  %v677_v15 = vrot.slane %v2388_v39, 1  ;;  %v2401_v17 = vsel %vm646_vm2, %v680_v9, %v681_v11  ;;  %v758_v24 = vrot.slane %v2388_v39, 2  ;;  %v2433_v36 = vsel %vm727_vm3, %v761_v33, %v762_v34 }
  0x7f   : > { %v470_v9 = vmax.f32 %v410_v59, 0.0  ;;  %v472_v11 = vmax.f32 %v412_v47, 0.0 }
  0x80   : > { %v2406_v23 = vsel %vm646_vm2, %v677_v15, %v678_v16  ;;  %v2416_v31 = vsel %vm727_vm3, %v758_v24, %v759_v26  ;;  %v553_v24 = vsel %vm496_vm0, %v471_v61, 0.0  ;;  %v555_v26 = vsel %vm507_vm1, %v473_v62, 0.0 }
  0x81   : > { %864 = vrot.lane.b32.xlu1 %v2319_v18, %s1986_s14  ;;  %v2477_v42 = vpack.c.bf16 %v472_v11, %v553_v24  ;;  %v601_v43 = vpack.c.bf16 %v555_v26, %v555_v26  ;;  %v280_v24 = vld [vmem:[%s2064_s30 + $0x150] sm:$0xff]  ;;  %v282_v26 = vld [vmem:[%s2064_s30 + $0x160] sm:$0xf] }
  0x82   : > { %862 = vrot.lane.b32.xlu0 %v2324_v20, %s1986_s14 }
  0x83   : > { %v686_v35 = vrot.slane %v2477_v42, 1  ;;  %v768_v11 = vrot.slane %v601_v43, 2 }
  0x85   : > { %902 = vrot.lane.b32.xlu1 %v2347_v41, %s1987_s17 }
  0x86   : > { %900 = vrot.lane.b32.xlu0 %v2332_v25, %s1987_s17 }
  0x89   : > { %936 = vrot.lane.b32.xlu1 %v2384_v51, %s1985_s11 }
  0x8a   : > { %934 = vrot.lane.b32.xlu0 %v2388_v39, %s1985_s11 }
  0x8d   : > { %976 = vrot.lane.b32.xlu1 %v2401_v17, %s1988_s23 }
  0x8e   : > { %v2411_v27 = vpop.permute.xlu1 %812  ;;  %974 = vrot.lane.b32.xlu0 %v2406_v23, %s1988_s23 }
  0x8f   : > { %v811_v30 = vpop.permute.xlu0 %810 }
  0x90   : > { %v1116_v15 = vsel %vm1114_vm7, %v1083_v3, %v811_v30  ;;  %v552_v30 = vsel %vm507_vm1, %v470_v9, 0.0  ;;  %v767_v3 = vrot.slane %v2477_v42, 2 }
  0x91   : > { %711 = vrot.lane.b32.xlu1 %v2324_v20, %s1983_s21  ;;  %v275_v20 = vld [vmem:[%s2064_s30 + $0x128] sm:$0xff] }
  0x92   : > { %v2423_v40 = vpop.permute.xlu1 %924  ;;  %1012 = vrot.lane.b32.xlu0 %v2416_v31, %s1989_s24  ;;  %v342_v57 = vmul.f32 %v2048_v4, %v275_v20 }
  0x93   : > { %v923_v29 = vpop.permute.xlu0 %922 }
  0x94   : > { %v409_v7 = vadd.f32 %v2055_v6, %v342_v57  ;;  %v687_v57 = vrot.slane %v601_v43, 1  ;;  %v349_v43 = vmul.f32 %v2048_v4, %v282_v26 }
  0x95   : > { %713 = vrot.lane.b32.xlu1 %v2319_v18, %s1983_s21  ;;  %v408_v18 = vadd.f32 %v2055_v6, %v341_v28 }
  0x96   : > { %1014 = vrot.lane.b32.xlu0 %v2433_v36, %s1989_s24  ;;  %v469_v34 = vmax.f32 %v409_v7, 0.0 }
  0x97   : > { %v853_v55 = vpop.permute.xlu1 %852  ;;  %v468_v8 = vmax.f32 %v408_v18, 0.0 }
  0x98   : > { %v851_v58 = vpop.permute.xlu0 %850 }
  0x99   : > { %794 = vrot.lane.b32.xlu1 %v2347_v41, %s1982_s20  ;;  %v1149_v33 = vsel %vm1147_vm8, %v1116_v15, %v851_v58  ;;  %v285_v15 = vld [vmem:[%s2064_s30 + $0x178] sm:$0xf] }
  0x9a   : > { %792 = vrot.lane.b32.xlu0 %v2332_v25, %s1982_s20  ;;  %v1038_v25 = vsel %vm1032_vm5, 0.0|0.0, %v698_v14  ;;  %v550_v14 = vsel %vm496_vm0, %v468_v8, 0.0 }
  0x9b   : > { %v891_v32 = vpop.permute.xlu1 %890  ;;  %v1085_v38 = vsel %vm1081_vm6, %v1038_v25, %v2395_v13  ;;  %v2487_v28 = vpack.c.bf16 %v469_v34, %v550_v14  ;;  %v599_v13 = vpack.c.bf16 %v552_v30, %v552_v30  ;;  %v283_v25 = vld [vmem:[%s2064_s30 + $0x168] sm:$0xff]  ;;  %v284_v34 = vld [vmem:[%s2064_s30 + $0x170] sm:$0xff]  ;;  %v2541_v14 = vsel %vm727_vm3, %v767_v3, %v768_v11 }
  0x9c   : > { %v889_v41 = vpop.permute.xlu0 %888  ;;  %v1118_v46 = vsel %vm1114_vm7, %v1085_v38, %v2411_v27  ;;  %v281_v38 = vld [vmem:[%s2064_s30 + $0x158] sm:$0xff] }
  0x9d   : > { %828 = vrot.lane.b32.xlu1 %v2384_v51, %s1984_s6  ;;  %v1182_v63 = vsel %vm1180_vm9, %v1149_v33, %v889_v41  ;;  %v1151_v49 = vsel %vm1147_vm8, %v1118_v46, %v853_v55  ;;  %v683_v58 = vrot.slane %v2487_v28, 1  ;;  %v684_v18 = vrot.slane %v599_v13, 1 }
  0x9e   : > { %826 = vrot.lane.b32.xlu0 %v2388_v39, %s1984_s6  ;;  %v1215_v20 = vsel %vm1213_vm10, %v1182_v63, %v923_v29  ;;  %v1184_v50 = vsel %vm1180_vm9, %v1151_v49, %v891_v32  ;;  %v2508_v32 = vsel %vm646_vm2, %v686_v35, %v687_v57  ;;  %v764_v62 = vrot.slane %v2487_v28, 2 }
  0x9f   : > { %v965_v16 = vpop.permute.xlu1 %964  ;;  %v1217_v55 = vsel %vm1213_vm10, %v1184_v50, %v2423_v40  ;;  %v2516_v61 = vsel %vm646_vm2, %v683_v58, %v684_v18  ;;  %v765_v7 = vrot.slane %v599_v13, 2  ;;  %v350_v63 = vmul.f32 %v2048_v4, %v283_v25 }
  0xa0   : > { %v963_v37 = vpop.permute.xlu0 %962  ;;  %v1250_v59 = vsel %vm1246_vm11, %v1217_v55, %v965_v16  ;;  %v351_v46 = vmul.f32 %v2048_v4, %v284_v34  ;;  %v348_v50 = vmul.f32 %v2048_v4, %v281_v38 }
  0xa1   : > { %868 = vrot.lane.b32.xlu1 %v2401_v17, %s1986_s14  ;;  %v1248_v52 = vsel %vm1246_vm11, %v1215_v20, %v963_v37  ;;  %v2526_v9 = vsel %vm727_vm3, %v764_v62, %v765_v7  ;;  %v352_v37 = vmul.f32 %v2048_v4, %v285_v15  ;;  %v417_v20 = vadd.f32 %v2055_v6, %v350_v63 }
  0xa2   : > { %866 = vrot.lane.b32.xlu0 %v2406_v23, %s1986_s14  ;;  %v415_v58 = vadd.f32 %v2055_v6, %v348_v50 }
  0xa3   : > { %v2483_v48 = vpop.permute.xlu1 %699  ;;  %v419_v13 = vadd.f32 %v2055_v6, %v352_v37  ;;  %v477_v57 = vmax.f32 %v417_v20, 0.0 }
  0xa4   : > { %v1001_v56 = vpop.permute.xlu0 %1000  ;;  %v475_v7 = vmax.f32 %v415_v58, 0.0 }
  0xa5   : > { %906 = vrot.lane.b32.xlu1 %v2433_v36, %s1987_s17  ;;  %v1281_v27 = vsel %vm1279_vm12, %v1248_v52, %v1001_v56  ;;  %v416_v56 = vadd.f32 %v2055_v6, %v349_v43  ;;  %v479_v55 = vmax.f32 %v419_v13, 0.0 }
  0xa6   : > { %904 = vrot.lane.b32.xlu0 %v2416_v31, %s1987_s17  ;;  %1904 = vmatprep.mubr.msk.bf16.mxu0 %vm1348_vm13, %v1281_v27  ;;  %v418_v27 = vadd.f32 %v2055_v6, %v351_v46 }
  0xa7   : > { %v2498_v29 = vpop.permute.xlu1 %701 }
  0xa8   : > { %v1003_v47 = vpop.permute.xlu0 %1002 }
  0xa9   : > { %940 = vrot.lane.b32.xlu1 %v2477_v42, %s1985_s11  ;;  %v1283_v60 = vsel %vm1279_vm12, %v1250_v59, %v1003_v47  ;;  %v478_v59 = vmax.f32 %v418_v27, 0.0  ;;  %v1041_v47 = vsel %vm1032_vm5, %v2103_v45, %v2483_v48 }
  0xaa   : > { %938 = vrot.lane.b32.xlu0 %v2487_v28, %s1985_s11  ;;  %1905 = vmatmul.mubr.msk.bf16.vlgmr.msra.gmra.mrb[0].mxu0 %vm1348_vm13, %v1283_v60  ;;  %v559_v60 = vsel %vm496_vm0, %v477_v57, 0.0 }
  0xab   : > { %v2513_v40 = vpop.permute.xlu1 %782  ;;  %v2582_v15 = vpack.c.bf16 %v478_v59, %v559_v60 }
  0xac   : > { %v781_v41 = vpop.permute.xlu0 %780 }
  0xad   : > { %980 = vrot.lane.b32.xlu1 %v2508_v32, %s1988_s23  ;;  %v1087_v62 = vsel %vm1081_vm6, %v1041_v47, %v781_v41  ;;  %v1044_v41 = vsel %vm1032_vm5, %v2101_v44, %v2498_v29  ;;  %v289_v47 = vld [vmem:[%s2064_s30 + $0x198] sm:$0xff] }
  0xae   : > { %978 = vrot.lane.b32.xlu0 %v2516_v61, %s1988_s23  ;;  %v1089_v34 = vsel %vm1081_vm6, %v1044_v41, %v2513_v40  ;;  %v692_v40 = vrot.slane %v2582_v15, 1 }
  0xaf   : > { %v2523_v8 = vpop.permute.xlu1 %816 }
  0xb0   : > { %v815_v16 = vpop.permute.xlu0 %814  ;;  %v1122_v38 = vsel %vm1114_vm7, %v1089_v34, %v2523_v8 }
  0xb1   : > { %715 = vrot.lane.b32.xlu1 %v2406_v23, %s1983_s21  ;;  %v347_v23 = vmul.f32 %v2048_v4, %v280_v24  ;;  %v1120_v3 = vsel %vm1114_vm7, %v1087_v62, %v815_v16  ;;  %v288_v62 = vld [vmem:[%s2064_s30 + $0x190] sm:$0xf] }
  0xb2   : > { %1016 = vrot.lane.b32.xlu0 %v2526_v9, %s1989_s24 }
  0xb3   : > { %v857_v33 = vpop.permute.xlu1 %856 }
  0xb4   : > { %v855_v30 = vpop.permute.xlu0 %854 }
  0xb5   : > { %717 = vrot.lane.b32.xlu1 %v2401_v17, %s1983_s21  ;;  %v414_v17 = vadd.f32 %v2055_v6, %v347_v23  ;;  %v561_v6 = vsel %vm507_vm1, %v479_v55, 0.0  ;;  %v1153_v25 = vsel %vm1147_vm8, %v1120_v3, %v855_v30  ;;  %v1155_v23 = vsel %vm1147_vm8, %v1122_v38, %v857_v33  ;;  %v290_v3 = vld [vmem:[%s2064_s30 + $0x1a0] sm:$0xff] }
  0xb6   : > { %1018 = vrot.lane.b32.xlu0 %v2541_v14, %s1989_s24  ;;  %v605_v24 = vpack.c.bf16 %v561_v6, %v561_v6  ;;  %v286_v6 = vld [vmem:[%s2064_s30 + $0x180] sm:$0xff] }
  0xb7   : > { %v895_v49 = vpop.permute.xlu1 %894  ;;  %v474_v4 = vmax.f32 %v414_v17, 0.0 }
  0xb8   : > { %v893_v52 = vpop.permute.xlu0 %892  ;;  %v693_v46 = vrot.slane %v605_v24, 1  ;;  %v1188_v20 = vsel %vm1180_vm9, %v1155_v23, %v895_v49  ;;  %v774_v59 = vrot.slane %v605_v24, 2 }
  0xb9   : > { %798 = vrot.lane.b32.xlu1 %v2433_v36, %s1982_s20  ;;  %v476_v36 = vmax.f32 %v416_v56, 0.0  ;;  %v556_v45 = vsel %vm496_vm0, %v474_v4, 0.0  ;;  %v1186_v16 = vsel %vm1180_vm9, %v1153_v25, %v893_v52 }
  0xba   : > { %796 = vrot.lane.b32.xlu0 %v2416_v31, %s1982_s20  ;;  %v2595_v37 = vpack.c.bf16 %v475_v7, %v556_v45  ;;  %v2618_v56 = vsel %vm646_vm2, %v692_v40, %v693_v46 }
  0xbb   : > { %v929_v35 = vpop.permute.xlu1 %928  ;;  %v558_v48 = vsel %vm507_vm1, %v476_v36, 0.0  ;;  %v773_v36 = vrot.slane %v2582_v15, 2 }
  0xbc   : > { %v927_v18 = vpop.permute.xlu0 %926  ;;  %v603_v30 = vpack.c.bf16 %v558_v48, %v558_v48  ;;  %v1221_v13 = vsel %vm1213_vm10, %v1188_v20, %v929_v35  ;;  %v689_v50 = vrot.slane %v2595_v37, 1  ;;  %v770_v57 = vrot.slane %v2595_v37, 2 }
  0xbd   : > { %832 = vrot.lane.b32.xlu1 %v2477_v42, %s1984_s6  ;;  %v1219_v63 = vsel %vm1213_vm10, %v1186_v16, %v927_v18  ;;  %v2652_v25 = vsel %vm727_vm3, %v773_v36, %v774_v59 }
  0xbe   : > { %830 = vrot.lane.b32.xlu0 %v2487_v28, %s1984_s6  ;;  %v690_v52 = vrot.slane %v603_v30, 1  ;;  %v771_v55 = vrot.slane %v603_v30, 2  ;;  %v1972_v30 = vld [vmem:[%s2989_s2] ss:$0 sm:$0xff] }
  0xbf   : > { %v969_v31 = vpop.permute.xlu1 %968 }
  0xc0   : > { %v967_v11 = vpop.permute.xlu0 %966  ;;  %v1254_v33 = vsel %vm1246_vm11, %v1221_v13, %v969_v31  ;;  %v2626_v35 = vsel %vm646_vm2, %v689_v50, %v690_v52  ;;  %v2636_v4 = vsel %vm727_vm3, %v770_v57, %v771_v55  ;;  %v291_v31 = vld [vmem:[%s2064_s30 + $0x1a8] sm:$0xf] }
  0xc1   : > { %872 = vrot.lane.b32.xlu1 %v2508_v32, %s1986_s14  ;;  %v1252_v44 = vsel %vm1246_vm11, %v1219_v63, %v967_v11  ;;  %v1971_v11 = vld [vmem:[%s2988_s1] ss:$0 sm:$0xff] }
  0xc2   : > { %870 = vrot.lane.b32.xlu0 %v2516_v61, %s1986_s14  ;;  %v356_v45 = vmul.f32 %v1971_v11, %v289_v47  ;;  %v358_v48 = vmul.f32 %v1971_v11, %v291_v31  ;;  %v353_v41 = vmul.f32 %v1971_v11, %v286_v6  ;;  %v355_v16 = vmul.f32 %v1971_v11, %v288_v62 }
  0xc3   : > { %v2590_v26 = vpop.permute.xlu1 %703  ;;  %v357_v34 = vmul.f32 %v1971_v11, %v290_v3 }
  0xc4   : > { %v1005_v29 = vpop.permute.xlu0 %1004  ;;  %v423_v38 = vadd.f32 %v1972_v30, %v356_v45 }
  0xc5   : > { %910 = vrot.lane.b32.xlu1 %v2541_v14, %s1987_s17  ;;  %v1285_v43 = vsel %vm1279_vm12, %v1252_v44, %v1005_v29  ;;  %v425_v44 = vadd.f32 %v1972_v30, %v358_v48  ;;  %v424_v40 = vadd.f32 %v1972_v30, %v357_v34 }
  0xc6   : > { %908 = vrot.lane.b32.xlu0 %v2526_v9, %s1987_s17  ;;  %1908 = vmatprep.mubr.msk.bf16.mxu0 %vm1348_vm13, %v1285_v43  ;;  %v422_v43 = vadd.f32 %v1972_v30, %v355_v16  ;;  %v483_v20 = vmax.f32 %v423_v38, 0.0 }
  0xc7   : > { %v2609_v8 = vpop.permute.xlu1 %705  ;;  %v485_v13 = vmax.f32 %v425_v44, 0.0 }
  0xc8   : > { %v1007_v17 = vpop.permute.xlu0 %1006 }
  0xc9   : > { %944 = vrot.lane.b32.xlu1 %v2582_v15, %s1985_s11  ;;  %v1287_v49 = vsel %vm1279_vm12, %v1254_v33, %v1007_v17  ;;  %v482_v17 = vmax.f32 %v422_v43, 0.0  ;;  %v567_v55 = vsel %vm507_vm1, %v485_v13, 0.0 }
  0xca   : > { %942 = vrot.lane.b32.xlu0 %v2595_v37, %s1985_s11  ;;  %1909 = vmatmul.mubr.msk.bf16.gmra.mrb[4].mxu0 %vm1348_vm13, %v1287_v49  ;;  %v484_v49 = vmax.f32 %v424_v40, 0.0  ;;  %v609_v3 = vpack.c.bf16 %v567_v55, %v567_v55 }
  0xcb   : > { %v2623_v27 = vpop.permute.xlu1 %786 }
  0xcc   : > { %v785_v58 = vpop.permute.xlu0 %784  ;;  %v848_v34 = vrot.slane %v609_v3, 1 }
  0xcd   : > { %984 = vrot.lane.b32.xlu1 %v2618_v56, %s1988_s23 }
  0xce   : > { %982 = vrot.lane.b32.xlu0 %v2626_v35, %s1988_s23 }
  0xcf   : > { %v2633_v18 = vpop.permute.xlu1 %820 }
  0xd0   : > { %v819_v60 = vpop.permute.xlu0 %818 }
  0xd1   : > { %719 = vrot.lane.b32.xlu1 %v2516_v61, %s1983_s21  ;;  %v287_v61 = vld [vmem:[%s2064_s30 + $0x188] sm:$0xff] }
  0xd2   : > { %1020 = vrot.lane.b32.xlu0 %v2636_v4, %s1989_s24  ;;  %v354_v29 = vmul.f32 %v1971_v11, %v287_v61 }
  0xd3   : > { %v861_v7 = vpop.permute.xlu1 %860 }
  0xd4   : > { %v859_v24 = vpop.permute.xlu0 %858  ;;  %v421_v50 = vadd.f32 %v1972_v30, %v354_v29 }
  0xd5   : > { %721 = vrot.lane.b32.xlu1 %v2508_v32, %s1983_s21  ;;  %v420_v32 = vadd.f32 %v1972_v30, %v353_v41 }
  0xd6   : > { %1022 = vrot.lane.b32.xlu0 %v2652_v25, %s1989_s24  ;;  %v481_v59 = vmax.f32 %v421_v50, 0.0 }
  0xd7   : > { %v899_v63 = vpop.permute.xlu1 %898  ;;  %v480_v33 = vmax.f32 %v420_v32, 0.0 }
  0xd8   : > { %v897_v23 = vpop.permute.xlu0 %896 }
  0xd9   : > { %802 = vrot.lane.b32.xlu1 %v2541_v14, %s1982_s20  ;;  %v1047_v14 = vsel %vm1032_vm5, %v2119_v54, %v2590_v26  ;;  %v562_v54 = vsel %vm496_vm0, %v480_v33, 0.0  ;;  %v564_v26 = vsel %vm507_vm1, %v482_v17, 0.0  ;;  %v886_v33 = vrot.slane %v609_v3, 2 }
  0xda   : > { %800 = vrot.lane.b32.xlu0 %v2526_v9, %s1982_s20  ;;  %v565_v9 = vsel %vm496_vm0, %v483_v20, 0.0  ;;  %v1091_v36 = vsel %vm1081_vm6, %v1047_v14, %v785_v58  ;;  %v1050_v58 = vsel %vm1032_vm5, %v2117_v53, %v2609_v8  ;;  %v606_v45 = vpack.c.bf16 %v481_v59, %v562_v54 }
  0xdb   : > { %v933_v46 = vpop.permute.xlu1 %932  ;;  %v1124_v47 = vsel %vm1114_vm7, %v1091_v36, %v819_v60  ;;  %v608_v62 = vpack.c.bf16 %v484_v49, %v565_v9  ;;  %v1093_v5 = vsel %vm1081_vm6, %v1050_v58, %v2623_v27  ;;  %v607_v48 = vpack.c.bf16 %v564_v26, %v564_v26 }
  0xdc   : > { %v931_v52 = vpop.permute.xlu0 %930  ;;  %v1157_v6 = vsel %vm1147_vm8, %v1124_v47, %v859_v24  ;;  %v1126_v24 = vsel %vm1114_vm7, %v1093_v5, %v2633_v18  ;;  %v844_v38 = vrot.slane %v606_v45, 1  ;;  %v882_v40 = vrot.slane %v606_v45, 2 }
  0xdd   : > { %836 = vrot.lane.b32.xlu1 %v2582_v15, %s1984_s6  ;;  %v1190_v60 = vsel %vm1180_vm9, %v1157_v6, %v897_v23  ;;  %v1159_v53 = vsel %vm1147_vm8, %v1126_v24, %v861_v7  ;;  %v847_v16 = vrot.slane %v608_v62, 1  ;;  %v845_v44 = vrot.slane %v607_v48, 1 }
  0xde   : > { %834 = vrot.lane.b32.xlu0 %v2595_v37, %s1984_s6  ;;  %v1223_v21 = vsel %vm1213_vm10, %v1190_v60, %v931_v52  ;;  %v1192_v27 = vsel %vm1180_vm9, %v1159_v53, %v899_v63  ;;  %v885_v52 = vrot.slane %v608_v62, 2 }
  0xdf   : > { %v973_v57 = vpop.permute.xlu1 %972  ;;  %v1225_v30 = vsel %vm1213_vm10, %v1192_v27, %v933_v46  ;;  %v849_v32 = vsel %vm646_vm2, %v847_v16, %v848_v34  ;;  %v846_v43 = vsel %vm646_vm2, %v844_v38, %v845_v44  ;;  %v883_v46 = vrot.slane %v607_v48, 2 }
  0xe0   : > { %v971_v31 = vpop.permute.xlu0 %970  ;;  %v1258_v29 = vsel %vm1246_vm11, %v1225_v30, %v973_v57  ;;  %v887_v14 = vsel %vm727_vm3, %v885_v52, %v886_v33 }
  0xe1   : > { %876 = vrot.lane.b32.xlu1 %v2618_v56, %s1986_s14  ;;  %v1256_v61 = vsel %vm1246_vm11, %v1223_v21, %v971_v31  ;;  %v884_v50 = vsel %vm727_vm3, %v882_v40, %v883_v46 }
  0xe2   : > { %874 = vrot.lane.b32.xlu0 %v2626_v35, %s1986_s14 }
  0xe3   : > { %v708_v11 = vpop.permute.xlu1 %707 }
  0xe4   : > { %v1009_v41 = vpop.permute.xlu0 %1008  ;;  %v1053_v59 = vsel %vm1032_vm5, %v2230_v22, %v708_v11 }
  0xe5   : > { %914 = vrot.lane.b32.xlu1 %v2652_v25, %s1987_s17  ;;  %v1289_v8 = vsel %vm1279_vm12, %v1256_v61, %v1009_v41 }
  0xe6   : > { %912 = vrot.lane.b32.xlu0 %v2636_v4, %s1987_s17  ;;  %1912 = vmatprep.mubr.msk.bf16.mxu0 %vm1348_vm13, %v1289_v8 }
  0xe7   : > { %v710_v18 = vpop.permute.xlu1 %709 }
  0xe8   : > { %v1011_v23 = vpop.permute.xlu0 %1010 }
  0xe9   : > { %948 = vrot.lane.b32.xlu1 %v608_v62, %s1985_s11  ;;  %v1291_v7 = vsel %vm1279_vm12, %v1258_v29, %v1011_v23 }
  0xea   : > { %946 = vrot.lane.b32.xlu0 %v606_v45, %s1985_s11  ;;  %1913 = vmatmul.mubr.msk.bf16.gmra.mrb[8].mxu0 %vm1348_vm13, %v1291_v7 }
  0xeb   : > { %v791_v63 = vpop.permute.xlu1 %790 }
  0xec   : > { %v789_v20 = vpop.permute.xlu0 %788 }
  0xed   : > { %988 = vrot.lane.b32.xlu1 %v849_v32, %s1988_s23  ;;  %v1095_v47 = vsel %vm1081_vm6, %v1053_v59, %v789_v20 }
  0xee   : > { %986 = vrot.lane.b32.xlu0 %v846_v43, %s1988_s23 }
  0xef   : > { %v825_v13 = vpop.permute.xlu1 %824 }
  0xf0   : > { %v823_v17 = vpop.permute.xlu0 %822 }
  0xf1   : > { %723 = vrot.lane.b32.xlu1 %v2626_v35, %s1983_s21  ;;  %v1128_v31 = vsel %vm1114_vm7, %v1095_v47, %v823_v17 }
  0xf2   : > { %1024 = vrot.lane.b32.xlu0 %v884_v50, %s1989_s24 }
  0xf3   : > { %v865_v49 = vpop.permute.xlu1 %864 }
  0xf4   : > { %v863_v57 = vpop.permute.xlu0 %862 }
  0xf5   : > { %725 = vrot.lane.b32.xlu1 %v2618_v56, %s1983_s21 }
  0xf6   : > { %1026 = vrot.lane.b32.xlu0 %v887_v14, %s1989_s24 }
  0xf7   : > { %v903_v9 = vpop.permute.xlu1 %902 }
  0xf8   : > { %v901_v55 = vpop.permute.xlu0 %900 }
  0xf9   : > { %806 = vrot.lane.b32.xlu1 %v2652_v25, %s1982_s20  ;;  %v1161_v25 = vsel %vm1147_vm8, %v1128_v31, %v863_v57 }
  0xfa   : > { %804 = vrot.lane.b32.xlu0 %v2636_v4, %s1982_s20  ;;  %v1056_v4 = vsel %vm1032_vm5, %v2226_v19, %v710_v18  ;;  %v1194_v26 = vsel %vm1180_vm9, %v1161_v25, %v901_v55  ;;  %s1845_s20 = sshll.u32 %s2026_s19, 5  ;;  %s1847_s19 = sshll.u32 %s2042_s22, 1 }
  0xfb   : > { %v937_v35 = vpop.permute.xlu1 %936  ;;  %v1097_v6 = vsel %vm1081_vm6, %v1056_v4, %v791_v63  ;;  %p228_p4 = scmp.lt.s32.totalorder %s1845_s20, 255 }
  0xfc   : > { %v935_v36 = vpop.permute.xlu0 %934  ;;  %v1130_v3 = vsel %vm1114_vm7, %v1097_v6, %v825_v13 }
  0xfd   : > { %840 = vrot.lane.b32.xlu1 %v608_v62, %s1984_s6  ;;  %v1227_v62 = vsel %vm1213_vm10, %v1194_v26, %v935_v36  ;;  %v1163_v11 = vsel %vm1147_vm8, %v1130_v3, %v865_v49  ;;  %s2994_s20 = smov (!%p228_p4, %s1845_s20), 255 }
  0xfe   : > { %838 = vrot.lane.b32.xlu0 %v606_v45, %s1984_s6  ;;  %v1196_v5 = vsel %vm1180_vm9, %v1163_v11, %v903_v9  ;;  %s1846_s21 = sshll.u32 %s2994_s20, 3 }
  0xff   : > { %v977_v56 = vpop.permute.xlu1 %976  ;;  %v1229_v45 = vsel %vm1213_vm10, %v1196_v5, %v937_v35  ;;  %s2830_s8 = scalar_lea.vmem %s2991_s4, %s1846_s21 }
 0x100   : > { %v975_v54 = vpop.permute.xlu0 %974  ;;  %v1262_v48 = vsel %vm1246_vm11, %v1229_v45, %v977_v56 }
 0x101   : > { %880 = vrot.lane.b32.xlu1 %v849_v32, %s1986_s14  ;;  %v1260_v58 = vsel %vm1246_vm11, %v1227_v62, %v975_v54 }
 0x102   : > { %878 = vrot.lane.b32.xlu0 %v846_v43, %s1986_s14 }
 0x103   : > { %v712_v22 = vpop.permute.xlu1 %711 }
 0x104   : > { %v1013_v60 = vpop.permute.xlu0 %1012  ;;  %v1059_v44 = vsel %vm1032_vm5, %v2308_v12, %v712_v22 }
 0x105   : > { %918 = vrot.lane.b32.xlu1 %v887_v14, %s1987_s17  ;;  %v1293_v19 = vsel %vm1279_vm12, %v1260_v58, %v1013_v60 }
 0x106   : > { %916 = vrot.lane.b32.xlu0 %v884_v50, %s1987_s17  ;;  %1916 = vmatprep.mubr.msk.bf16.mxu0 %vm1348_vm13, %v1293_v19 }
 0x107   : > { %v714_v21 = vpop.permute.xlu1 %713 }
 0x108   : > { %v1015_v24 = vpop.permute.xlu0 %1014 }
 0x109   : > { %952 = vrot.lane.b32.xlu1 %v1981_v0, %s1985_s11  ;;  %v1295_v61 = vsel %vm1279_vm12, %v1262_v48, %v1015_v24 }
 0x10a   : > { %950 = vrot.lane.b32.xlu0 %v1981_v0, %s1985_s11  ;;  %1917 = vmatmul.mubr.msk.bf16.gmra.mrb[12].mxu0 %vm1348_vm13, %v1295_v61  ;;  %s236_s11 = scalar_lea.vmem %s2992_s5, %s1847_s19 }
 0x10b   : > { %v795_v41 = vpop.permute.xlu1 %794 }
 0x10c   : > { %v793_v53 = vpop.permute.xlu0 %792 }
 0x10d   : > { %992 = vrot.lane.b32.xlu1 %v2034_v2, %s1988_s23 }
 0x10e   : > { %990 = vrot.lane.b32.xlu0 %v2034_v2, %s1988_s23  ;;  %v1099_v2 = vsel %vm1081_vm6, %v1059_v44, %v793_v53 }
 0x10f   : > { %v829_v8 = vpop.permute.xlu1 %828 }
 0x110   : > { %v827_v16 = vpop.permute.xlu0 %826 }
 0x111   : > { %1030 = vrot.lane.b32.xlu1 %v2031_v1, %s1989_s24  ;;  %v1132_v23 = vsel %vm1114_vm7, %v1099_v2, %v827_v16 }
 0x112   : > { %1028 = vrot.lane.b32.xlu0 %v2031_v1, %s1989_s24  ;;  %v1062_v1 = vsel %vm1032_vm5, %v2304_v10, %v714_v21 }
 0x113   : > { %v869_v34 = vpop.permute.xlu1 %868  ;;  %v1101_v40 = vsel %vm1081_vm6, %v1062_v1, %v795_v41 }
 0x114   : > { %v867_v0 = vpop.permute.xlu0 %866  ;;  %v1134_v12 = vsel %vm1114_vm7, %v1101_v40, %v829_v8 }
 0x115   : > { %v1165_v32 = vsel %vm1147_vm8, %v1132_v23, %v867_v0  ;;  %v1167_v50 = vsel %vm1147_vm8, %v1134_v12, %v869_v34 }
 0x117   : > { %v907_v27 = vpop.permute.xlu1 %906 }
 0x118   : > { %v905_v18 = vpop.permute.xlu0 %904  ;;  %v1200_v33 = vsel %vm1180_vm9, %v1167_v50, %v907_v27 }
 0x119   : > { %v1198_v63 = vsel %vm1180_vm9, %v1165_v32, %v905_v18 }
 0x11b   : > { %v941_v30 = vpop.permute.xlu1 %940 }
 0x11c   : > { %v939_v38 = vpop.permute.xlu0 %938  ;;  %v1233_v17 = vsel %vm1213_vm10, %v1200_v33, %v941_v30 }
 0x11d   : > { %v1231_v46 = vsel %vm1213_vm10, %v1198_v63, %v939_v38 }
 0x11f   : > { %v981_v29 = vpop.permute.xlu1 %980 }
 0x120   : > { %v979_v7 = vpop.permute.xlu0 %978  ;;  %v1266_v49 = vsel %vm1246_vm11, %v1233_v17, %v981_v29 }
 0x121   : > { %v1264_v20 = vsel %vm1246_vm11, %v1231_v46, %v979_v7 }
 0x123   : > { %v716_v43 = vpop.permute.xlu1 %715 }
 0x124   : > { %v1017_v13 = vpop.permute.xlu0 %1016  ;;  %v1065_v4 = vsel %vm1032_vm5, %v2388_v39, %v716_v43 }
 0x125   : > { %v1297_v52 = vsel %vm1279_vm12, %v1264_v20, %v1017_v13 }
 0x126   : > { %1920 = vmatprep.mubr.msk.bf16.mxu1 %vm1348_vm13, %v1297_v52 }
 0x127   : > { %v718_v10 = vpop.permute.xlu1 %717 }
 0x128   : > { %v1019_v14 = vpop.permute.xlu0 %1018  ;;  %v1068_v58 = vsel %vm1032_vm5, %v2384_v51, %v718_v10 }
 0x129   : > { %v1299_v57 = vsel %vm1279_vm12, %v1266_v49, %v1019_v14 }
 0x12a   : > { %1921 = vmatmul.mubr.msk.bf16.vlgmr.msra.gmra.mrb[0].mxu1 %vm1348_vm13, %v1299_v57 }
 0x12b   : > { %v799_v9 = vpop.permute.xlu1 %798 }
 0x12c   : > { %v797_v55 = vpop.permute.xlu0 %796  ;;  %v1105_v19 = vsel %vm1081_vm6, %v1068_v58, %v799_v9 }
 0x12d   : > { %v1103_v22 = vsel %vm1081_vm6, %v1065_v4, %v797_v55 }
 0x12f   : > { %v833_v35 = vpop.permute.xlu1 %832 }
 0x130   : > { %v831_v36 = vpop.permute.xlu0 %830  ;;  %v1138_v39 = vsel %vm1114_vm7, %v1105_v19, %v833_v35 }
 0x131   : > { %v1136_v6 = vsel %vm1114_vm7, %v1103_v22, %v831_v36 }
 0x133   : > { %v873_v59 = vpop.permute.xlu1 %872 }
 0x134   : > { %v871_v56 = vpop.permute.xlu0 %870  ;;  %v1171_v48 = vsel %vm1147_vm8, %v1138_v39, %v873_v59 }
 0x135   : > { %v1169_v3 = vsel %vm1147_vm8, %v1136_v6, %v871_v56 }
 0x137   : > { %v911_v47 = vpop.permute.xlu1 %910 }
 0x138   : > { %v909_v31 = vpop.permute.xlu0 %908  ;;  %v1204_v61 = vsel %vm1180_vm9, %v1171_v48, %v911_v47 }
 0x139   : > { %v1202_v60 = vsel %vm1180_vm9, %v1169_v3, %v909_v31 }
 0x13b   : > { %v945_v54 = vpop.permute.xlu1 %944 }
 0x13c   : > { %v943_v25 = vpop.permute.xlu0 %942  ;;  %v1237_v41 = vsel %vm1213_vm10, %v1204_v61, %v945_v54 }
 0x13d   : > { %v1235_v5 = vsel %vm1213_vm10, %v1202_v60, %v943_v25 }
 0x13f   : > { %v985_v26 = vpop.permute.xlu1 %984 }
 0x140   : > { %v983_v62 = vpop.permute.xlu0 %982  ;;  %v1270_v53 = vsel %vm1246_vm11, %v1237_v41, %v985_v26 }
 0x141   : > { %v1268_v21 = vsel %vm1246_vm11, %v1235_v5, %v983_v62 }
 0x143   : > { %v720_v11 = vpop.permute.xlu1 %719 }
 0x144   : > { %v1021_v45 = vpop.permute.xlu0 %1020  ;;  %v1071_v7 = vsel %vm1032_vm5, %v2487_v28, %v720_v11 }
 0x145   : > { %v1301_v24 = vsel %vm1279_vm12, %v1268_v21, %v1021_v45 }
 0x146   : > { %1924 = vmatprep.mubr.msk.bf16.mxu1 %vm1348_vm13, %v1301_v24 }
 0x147   : > { %v722_v51 = vpop.permute.xlu1 %721 }
 0x148   : > { %v1023_v8 = vpop.permute.xlu0 %1022  ;;  %v1074_v46 = vsel %vm1032_vm5, %v2477_v42, %v722_v51 }
 0x149   : > { %v1303_v16 = vsel %vm1279_vm12, %v1270_v53, %v1023_v8 }
 0x14a   : > { %1925 = vmatmul.mubr.msk.bf16.gmra.mrb[4].mxu1 %vm1348_vm13, %v1303_v16 }
 0x14b   : > { %v803_v34 = vpop.permute.xlu1 %802 }
 0x14c   : > { %v801_v0 = vpop.permute.xlu0 %800  ;;  %v1109_v13 = vsel %vm1081_vm6, %v1074_v46, %v803_v34 }
 0x14d   : > { %v1107_v1 = vsel %vm1081_vm6, %v1071_v7, %v801_v0 }
 0x14f   : > { %v837_v27 = vpop.permute.xlu1 %836 }
 0x150   : > { %v835_v18 = vpop.permute.xlu0 %834  ;;  %v1142_v28 = vsel %vm1114_vm7, %v1109_v13, %v837_v27 }
 0x151   : > { %v1140_v63 = vsel %vm1114_vm7, %v1107_v1, %v835_v18 }
 0x153   : > { %v877_v30 = vpop.permute.xlu1 %876 }
 0x154   : > { %v875_v38 = vpop.permute.xlu0 %874  ;;  %v1175_v10 = vsel %vm1147_vm8, %v1142_v28, %v877_v30 }
 0x155   : > { %v1173_v40 = vsel %vm1147_vm8, %v1140_v63, %v875_v38 }
 0x157   : > { %v915_v44 = vpop.permute.xlu1 %914 }
 0x158   : > { %v913_v29 = vpop.permute.xlu0 %912  ;;  %v1208_v49 = vsel %vm1180_vm9, %v1175_v10, %v915_v44 }
 0x159   : > { %v1206_v12 = vsel %vm1180_vm9, %v1173_v40, %v913_v29 }
 0x15b   : > { %v949_v2 = vpop.permute.xlu1 %948 }
 0x15c   : > { %v947_v23 = vpop.permute.xlu0 %946  ;;  %v1241_v14 = vsel %vm1213_vm10, %v1208_v49, %v949_v2 }
 0x15d   : > { %v1239_v50 = vsel %vm1213_vm10, %v1206_v12, %v947_v23 }
 0x15f   : > { %v989_v32 = vpop.permute.xlu1 %988 }
 0x160   : > { %v987_v43 = vpop.permute.xlu0 %986  ;;  %v1274_v57 = vsel %vm1246_vm11, %v1241_v14, %v989_v32 }
 0x161   : > { %v1272_v52 = vsel %vm1246_vm11, %v1239_v50, %v987_v43 }
 0x163   : > { %v724_v20 = vpop.permute.xlu1 %723 }
 0x164   : > { %v1025_v33 = vpop.permute.xlu0 %1024  ;;  %v1077_v26 = vsel %vm1032_vm5, %v2595_v37, %v724_v20 }
 0x165   : > { %v1305_v17 = vsel %vm1279_vm12, %v1272_v52, %v1025_v33 }
 0x166   : > { %1928 = vmatprep.mubr.msk.bf16.mxu1 %vm1348_vm13, %v1305_v17 }
 0x167   : > { %v726_v42 = vpop.permute.xlu1 %725 }
 0x168   : > { %v1027_v9 = vpop.permute.xlu0 %1026  ;;  %v1080_v22 = vsel %vm1032_vm5, %v2582_v15, %v726_v42 }
 0x169   : > { %v1307_v55 = vsel %vm1279_vm12, %v1274_v57, %v1027_v9 }
 0x16a   : > { %1929 = vmatmul.mubr.msk.bf16.gmra.mrb[8].mxu1 %vm1348_vm13, %v1307_v55 }
 0x16b   : > { %v807_v35 = vpop.permute.xlu1 %806 }
 0x16c   : > { %v805_v36 = vpop.permute.xlu0 %804  ;;  %v1113_v62 = vsel %vm1081_vm6, %v1080_v22, %v807_v35 }
 0x16d   : > { %v1111_v3 = vsel %vm1081_vm6, %v1077_v26, %v805_v36 }
 0x16f   : > { %v841_v59 = vpop.permute.xlu1 %840 }
 0x170   : > { %v839_v56 = vpop.permute.xlu0 %838  ;;  %v1146_v60 = vsel %vm1114_vm7, %v1113_v62, %v841_v59 }
 0x171   : > { %v1144_v11 = vsel %vm1114_vm7, %v1111_v3, %v839_v56 }
 0x173   : > { %v881_v47 = vpop.permute.xlu1 %880 }
 0x174   : > { %v879_v31 = vpop.permute.xlu0 %878  ;;  %v1179_v37 = vsel %vm1147_vm8, %v1146_v60, %v881_v47 }
 0x175   : > { %v1177_v15 = vsel %vm1147_vm8, %v1144_v11, %v879_v31 }
 0x177   : > { %v919_v54 = vpop.permute.xlu1 %918 }
 0x178   : > { %v917_v25 = vpop.permute.xlu0 %916  ;;  %v1212_v45 = vsel %vm1180_vm9, %v1179_v37, %v919_v54 }
 0x179   : > { %v1210_v48 = vsel %vm1180_vm9, %v1177_v15, %v917_v25 }
 0x17b   : > { %v953_v4 = vpop.permute.xlu1 %952 }
 0x17c   : > { %v951_v6 = vpop.permute.xlu0 %950  ;;  %v1245_v16 = vsel %vm1213_vm10, %v1212_v45, %v953_v4 }
 0x17d   : > { %v1906_v58 = vpop.f32.mrb[0].mxu0  ;;  %v1243_v34 = vsel %vm1213_vm10, %v1210_v48, %v951_v6 }
 0x17e   : > { %1548 = vst.msk [vmem:[%s2830_s8 + $0x10] sm:$0xff] %vm1032_vm5, %v1906_v58  ;;  %v1419_v19 = vpop.f32.mrb[1].mxu0  ;;  %v1649_v51 = vmul.f32 %v1906_v58, %v1906_v58  ;;  %v1581_v0 = vsel %vm1032_vm5, %v1906_v58, 0.0 }
 0x17f   : > { %v993_v5 = vpop.permute.xlu1 %992  ;;  %1546 = vst.msk [vmem:[%s2830_s8] sm:$0xff] %vm1032_vm5, %v1419_v19  ;;  %v1647_v39 = vmul.f32 %v1419_v19, %v1419_v19  ;;  %v1907_v21 = vpop.f32.mrb[2].mxu0  ;;  %v1578_v41 = vsel %vm1032_vm5, %v1419_v19, 0.0 }
 0x180   : > { %1549 = vst.msk [vmem:[%s2830_s8 + $0x18] sm:$0xff] %vm1032_vm5, %v1907_v21  ;;  %v1422_v24 = vpop.f32.mrb[3].mxu0  ;;  %v991_v61 = vpop.permute.xlu0 %990  ;;  %v1650_v38 = vmul.f32 %v1907_v21, %v1907_v21  ;;  %v1278_v44 = vsel %vm1246_vm11, %v1245_v16, %v993_v5  ;;  %v1682_v63 = vsel %vm1032_vm5, %v1649_v51, 0.0  ;;  %v1583_v43 = vsel %vm1032_vm5, %v1907_v21, 0.0 }
 0x181   : > { %1547 = vst.msk [vmem:[%s2830_s8 + $0x8] sm:$0xff] %vm1032_vm5, %v1422_v24  ;;  %v1579_v53 = vsel %vm1032_vm5, %v1422_v24, 0.0  ;;  %v1648_v8 = vmul.f32 %v1422_v24, %v1422_v24  ;;  %v1679_v30 = vsel %vm1032_vm5, %v1647_v39, 0.0  ;;  %v1276_v7 = vsel %vm1246_vm11, %v1243_v34, %v991_v61 }
 0x182   : > { %v1580_v27 = vadd.f32 %v1579_v53, %v1578_v41  ;;  %v1684_v20 = vsel %vm1032_vm5, %v1650_v38, 0.0 }
 0x183   : > { %v1031_v18 = vpop.permute.xlu1 %1030  ;;  %v1680_v29 = vsel %vm1032_vm5, %v1648_v8, 0.0 }
 0x184   : > { %v1582_v2 = vadd.f32 %v1581_v0, %v1580_v27  ;;  %v1681_v23 = vadd.f32 %v1680_v29, %v1679_v30  ;;  %v1311_v32 = vsel %vm1279_vm12, %v1278_v44, %v1031_v18  ;;  %v1029_v1 = vpop.permute.xlu0 %1028 }
 0x185   : > { %v1309_v40 = vsel %vm1279_vm12, %v1276_v7, %v1029_v1 }
 0x186   : > { %v1683_v46 = vadd.f32 %v1682_v63, %v1681_v23  ;;  %1932 = vmatprep.mubr.msk.bf16.mxu1 %vm1348_vm13, %v1309_v40  ;;  %v1584_v12 = vadd.f32 %v1583_v43, %v1582_v2 }
 0x187   : > { %1933 = vmatmul.mubr.msk.bf16.gmra.mrb[12].mxu1 %vm1348_vm13, %v1311_v32 }
 0x188   : > { %v1685_v13 = vadd.f32 %v1684_v20, %v1683_v46 }
 0x19d   : > { %v1910_v50 = vpop.f32.mrb[4].mxu0 }
 0x19e   : > { %1552 = vst.msk [vmem:[%s2830_s8 + $0x30] sm:$0xff] %vm1032_vm5, %v1910_v50  ;;  %v1435_v28 = vpop.f32.mrb[5].mxu0  ;;  %v1653_v42 = vmul.f32 %v1910_v50, %v1910_v50  ;;  %v1589_v36 = vsel %vm1032_vm5, %v1910_v50, 0.0 }
 0x19f   : > { %1550 = vst.msk [vmem:[%s2830_s8 + $0x20] sm:$0xff] %vm1032_vm5, %v1435_v28  ;;  %v1585_v52 = vsel %vm1032_vm5, %v1435_v28, 0.0  ;;  %v1651_v33 = vmul.f32 %v1435_v28, %v1435_v28  ;;  %v1911_v10 = vpop.f32.mrb[6].mxu0 }
 0x1a0   : > { %v1586_v17 = vadd.f32 %v1585_v52, %v1584_v12  ;;  %1553 = vst.msk [vmem:[%s2830_s8 + $0x38] sm:$0xff] %vm1032_vm5, %v1911_v10  ;;  %v1438_v49 = vpop.f32.mrb[7].mxu0  ;;  %v1654_v59 = vmul.f32 %v1911_v10, %v1911_v10  ;;  %v1690_v54 = vsel %vm1032_vm5, %v1653_v42, 0.0  ;;  %v1591_v25 = vsel %vm1032_vm5, %v1911_v10, 0.0 }
 0x1a1   : > { %v1686_v14 = vsel %vm1032_vm5, %v1651_v33, 0.0  ;;  %1551 = vst.msk [vmem:[%s2830_s8 + $0x28] sm:$0xff] %vm1032_vm5, %v1438_v49  ;;  %v1587_v57 = vsel %vm1032_vm5, %v1438_v49, 0.0  ;;  %v1652_v9 = vmul.f32 %v1438_v49, %v1438_v49 }
 0x1a2   : > { %v1687_v55 = vadd.f32 %v1686_v14, %v1685_v13  ;;  %v1588_v35 = vadd.f32 %v1587_v57, %v1586_v17  ;;  %v1692_v22 = vsel %vm1032_vm5, %v1654_v59, 0.0 }
 0x1a3   : > { %v1688_v56 = vsel %vm1032_vm5, %v1652_v9, 0.0 }
 0x1a4   : > { %v1590_v47 = vadd.f32 %v1589_v36, %v1588_v35  ;;  %v1689_v31 = vadd.f32 %v1688_v56, %v1687_v55 }
 0x1a6   : > { %v1691_v4 = vadd.f32 %v1690_v54, %v1689_v31  ;;  %v1592_v26 = vadd.f32 %v1591_v25, %v1590_v47 }
 0x1a8   : > { %v1693_v6 = vadd.f32 %v1692_v22, %v1691_v4 }
 0x1bd   : > { %v1914_v62 = vpop.f32.mrb[8].mxu0 }
 0x1be   : > { %1556 = vst.msk [vmem:[%s2830_s8 + $0x50] sm:$0xff] %vm1032_vm5, %v1914_v62  ;;  %v1451_v3 = vpop.f32.mrb[9].mxu0  ;;  %v1657_v37 = vmul.f32 %v1914_v62, %v1914_v62  ;;  %v1597_v24 = vsel %vm1032_vm5, %v1914_v62, 0.0 }
 0x1bf   : > { %1554 = vst.msk [vmem:[%s2830_s8 + $0x40] sm:$0xff] %vm1032_vm5, %v1451_v3  ;;  %v1593_v58 = vsel %vm1032_vm5, %v1451_v3, 0.0  ;;  %v1655_v60 = vmul.f32 %v1451_v3, %v1451_v3  ;;  %v1915_v11 = vpop.f32.mrb[10].mxu0 }
 0x1c0   : > { %v1594_v19 = vadd.f32 %v1593_v58, %v1592_v26  ;;  %1557 = vst.msk [vmem:[%s2830_s8 + $0x58] sm:$0xff] %vm1032_vm5, %v1915_v11  ;;  %v1454_v5 = vpop.f32.mrb[11].mxu0  ;;  %v1658_v61 = vmul.f32 %v1915_v11, %v1915_v11  ;;  %v1698_v8 = vsel %vm1032_vm5, %v1657_v37, 0.0  ;;  %v1599_v16 = vsel %vm1032_vm5, %v1915_v11, 0.0 }
 0x1c1   : > { %v1694_v15 = vsel %vm1032_vm5, %v1655_v60, 0.0  ;;  %1555 = vst.msk [vmem:[%s2830_s8 + $0x48] sm:$0xff] %vm1032_vm5, %v1454_v5  ;;  %v1595_v39 = vsel %vm1032_vm5, %v1454_v5, 0.0  ;;  %v1656_v21 = vmul.f32 %v1454_v5, %v1454_v5 }
 0x1c2   : > { %v1695_v45 = vadd.f32 %v1694_v15, %v1693_v6  ;;  %v1596_v48 = vadd.f32 %v1595_v39, %v1594_v19  ;;  %v1700_v27 = vsel %vm1032_vm5, %v1658_v61, 0.0 }
 0x1c3   : > { %v1696_v51 = vsel %vm1032_vm5, %v1656_v21, 0.0 }
 0x1c4   : > { %v1598_v41 = vadd.f32 %v1597_v24, %v1596_v48  ;;  %v1697_v53 = vadd.f32 %v1696_v51, %v1695_v45 }
 0x1c6   : > { %v1699_v34 = vadd.f32 %v1698_v8, %v1697_v53  ;;  %v1600_v0 = vadd.f32 %v1599_v16, %v1598_v41 }
 0x1c8   : > { %v1701_v18 = vadd.f32 %v1700_v27, %v1699_v34 }
 0x1dd   : > { %v1918_v30 = vpop.f32.mrb[12].mxu0 }
 0x1de   : > { %1560 = vst.msk [vmem:[%s2830_s8 + $0x70] sm:$0xff] %vm1032_vm5, %v1918_v30  ;;  %v1467_v38 = vpop.f32.mrb[13].mxu0  ;;  %v1661_v32 = vmul.f32 %v1918_v30, %v1918_v30  ;;  %v1605_v12 = vsel %vm1032_vm5, %v1918_v30, 0.0 }
 0x1df   : > { %1558 = vst.msk [vmem:[%s2830_s8 + $0x60] sm:$0xff] %vm1032_vm5, %v1467_v38  ;;  %v1601_v44 = vsel %vm1032_vm5, %v1467_v38, 0.0  ;;  %v1659_v29 = vmul.f32 %v1467_v38, %v1467_v38  ;;  %v1919_v2 = vpop.f32.mrb[14].mxu0 }
 0x1e0   : > { %v1602_v23 = vadd.f32 %v1601_v44, %v1600_v0  ;;  %1561 = vst.msk [vmem:[%s2830_s8 + $0x78] sm:$0xff] %vm1032_vm5, %v1919_v2  ;;  %v1470_v7 = vpop.f32.mrb[15].mxu0  ;;  %v1662_v20 = vmul.f32 %v1919_v2, %v1919_v2  ;;  %v1706_v52 = vsel %vm1032_vm5, %v1661_v32, 0.0  ;;  %v1607_v33 = vsel %vm1032_vm5, %v1919_v2, 0.0 }
 0x1e1   : > { %v1702_v1 = vsel %vm1032_vm5, %v1659_v29, 0.0  ;;  %1559 = vst.msk [vmem:[%s2830_s8 + $0x68] sm:$0xff] %vm1032_vm5, %v1470_v7  ;;  %v1603_v63 = vsel %vm1032_vm5, %v1470_v7, 0.0  ;;  %v1660_v43 = vmul.f32 %v1470_v7, %v1470_v7 }
 0x1e2   : > { %v1703_v40 = vadd.f32 %v1702_v1, %v1701_v18  ;;  %v1604_v46 = vadd.f32 %v1603_v63, %v1602_v23  ;;  %v1708_v49 = vsel %vm1032_vm5, %v1662_v20, 0.0 }
 0x1e3   : > { %v1704_v13 = vsel %vm1032_vm5, %v1660_v43, 0.0 }
 0x1e4   : > { %v1606_v50 = vadd.f32 %v1605_v12, %v1604_v46  ;;  %v1705_v28 = vadd.f32 %v1704_v13, %v1703_v40 }
 0x1e6   : > { %v1707_v10 = vadd.f32 %v1706_v52, %v1705_v28  ;;  %v1608_v17 = vadd.f32 %v1607_v33, %v1606_v50 }
 0x1e8   : > { %v1709_v42 = vadd.f32 %v1708_v49, %v1707_v10 }
 0x1fd   : > { %v1922_v14 = vpop.f32.mrb[0].mxu1 }
 0x1fe   : > { %1564 = vst.msk [vmem:[%s2830_s8 + $0x90] sm:$0xff] %vm1032_vm5, %v1922_v14  ;;  %v1483_v57 = vpop.f32.mrb[1].mxu1  ;;  %v1665_v56 = vmul.f32 %v1922_v14, %v1922_v14  ;;  %v1613_v26 = vsel %vm1032_vm5, %v1922_v14, 0.0 }
 0x1ff   : > { %1562 = vst.msk [vmem:[%s2830_s8 + $0x80] sm:$0xff] %vm1032_vm5, %v1483_v57  ;;  %v1609_v9 = vsel %vm1032_vm5, %v1483_v57, 0.0  ;;  %v1663_v55 = vmul.f32 %v1483_v57, %v1483_v57  ;;  %v1923_v35 = vpop.f32.mrb[2].mxu1 }
 0x200   : > { %v1610_v36 = vadd.f32 %v1609_v9, %v1608_v17  ;;  %1565 = vst.msk [vmem:[%s2830_s8 + $0x98] sm:$0xff] %vm1032_vm5, %v1923_v35  ;;  %v1486_v59 = vpop.f32.mrb[3].mxu1  ;;  %v1666_v22 = vmul.f32 %v1923_v35, %v1923_v35  ;;  %v1714_v58 = vsel %vm1032_vm5, %v1665_v56, 0.0  ;;  %v1615_v60 = vsel %vm1032_vm5, %v1923_v35, 0.0 }
 0x201   : > { %v1710_v47 = vsel %vm1032_vm5, %v1663_v55, 0.0  ;;  %1563 = vst.msk [vmem:[%s2830_s8 + $0x88] sm:$0xff] %vm1032_vm5, %v1486_v59  ;;  %v1611_v31 = vsel %vm1032_vm5, %v1486_v59, 0.0  ;;  %v1664_v54 = vmul.f32 %v1486_v59, %v1486_v59 }
 0x202   : > { %v1711_v25 = vadd.f32 %v1710_v47, %v1709_v42  ;;  %v1612_v4 = vadd.f32 %v1611_v31, %v1610_v36  ;;  %v1716_v5 = vsel %vm1032_vm5, %v1666_v22, 0.0 }
 0x203   : > { %v1712_v6 = vsel %vm1032_vm5, %v1664_v54, 0.0 }
 0x204   : > { %v1614_v62 = vadd.f32 %v1613_v26, %v1612_v4  ;;  %v1713_v3 = vadd.f32 %v1712_v6, %v1711_v25 }
 0x206   : > { %v1715_v11 = vadd.f32 %v1714_v58, %v1713_v3  ;;  %v1616_v19 = vadd.f32 %v1615_v60, %v1614_v62 }
 0x208   : > { %v1717_v37 = vadd.f32 %v1716_v5, %v1715_v11 }
 0x21d   : > { %v1926_v15 = vpop.f32.mrb[4].mxu1 }
 0x21e   : > { %1568 = vst.msk [vmem:[%s2830_s8 + $0xb0] sm:$0xff] %vm1032_vm5, %v1926_v15  ;;  %v1499_v39 = vpop.f32.mrb[5].mxu1  ;;  %v1669_v51 = vmul.f32 %v1926_v15, %v1926_v15  ;;  %v1621_v0 = vsel %vm1032_vm5, %v1926_v15, 0.0 }
 0x21f   : > { %1566 = vst.msk [vmem:[%s2830_s8 + $0xa0] sm:$0xff] %vm1032_vm5, %v1499_v39  ;;  %v1617_v21 = vsel %vm1032_vm5, %v1499_v39, 0.0  ;;  %v1667_v45 = vmul.f32 %v1499_v39, %v1499_v39  ;;  %v1927_v48 = vpop.f32.mrb[6].mxu1 }
 0x220   : > { %v1618_v24 = vadd.f32 %v1617_v21, %v1616_v19  ;;  %1569 = vst.msk [vmem:[%s2830_s8 + $0xb8] sm:$0xff] %vm1032_vm5, %v1927_v48  ;;  %v1502_v61 = vpop.f32.mrb[7].mxu1  ;;  %v1670_v27 = vmul.f32 %v1927_v48, %v1927_v48  ;;  %v1722_v44 = vsel %vm1032_vm5, %v1669_v51, 0.0  ;;  %v1623_v29 = vsel %vm1032_vm5, %v1927_v48, 0.0 }
 0x221   : > { %v1718_v41 = vsel %vm1032_vm5, %v1667_v45, 0.0  ;;  %1567 = vst.msk [vmem:[%s2830_s8 + $0xa8] sm:$0xff] %vm1032_vm5, %v1502_v61  ;;  %v1619_v53 = vsel %vm1032_vm5, %v1502_v61, 0.0  ;;  %v1668_v8 = vmul.f32 %v1502_v61, %v1502_v61 }
 0x222   : > { %v1719_v16 = vadd.f32 %v1718_v41, %v1717_v37  ;;  %v1620_v34 = vadd.f32 %v1619_v53, %v1618_v24  ;;  %v1724_v7 = vsel %vm1032_vm5, %v1670_v27, 0.0 }
 0x223   : > { %v1720_v18 = vsel %vm1032_vm5, %v1668_v8, 0.0 }
 0x224   : > { %v1622_v30 = vadd.f32 %v1621_v0, %v1620_v34  ;;  %v1721_v38 = vadd.f32 %v1720_v18, %v1719_v16 }
 0x226   : > { %v1723_v2 = vadd.f32 %v1722_v44, %v1721_v38  ;;  %v1624_v23 = vadd.f32 %v1623_v29, %v1622_v30 }
 0x228   : > { %v1725_v32 = vadd.f32 %v1724_v7, %v1723_v2 }
 0x23d   : > { %v1930_v1 = vpop.f32.mrb[8].mxu1 }
 0x23e   : > { %1572 = vst.msk [vmem:[%s2830_s8 + $0xd0] sm:$0xff] %vm1032_vm5, %v1930_v1  ;;  %v1515_v63 = vpop.f32.mrb[9].mxu1  ;;  %v1673_v13 = vmul.f32 %v1930_v1, %v1930_v1  ;;  %v1629_v17 = vsel %vm1032_vm5, %v1930_v1, 0.0 }
 0x23f   : > { %1570 = vst.msk [vmem:[%s2830_s8 + $0xc0] sm:$0xff] %vm1032_vm5, %v1515_v63  ;;  %v1625_v43 = vsel %vm1032_vm5, %v1515_v63, 0.0  ;;  %v1671_v40 = vmul.f32 %v1515_v63, %v1515_v63  ;;  %v1931_v46 = vpop.f32.mrb[10].mxu1 }
 0x240   : > { %v1626_v12 = vadd.f32 %v1625_v43, %v1624_v23  ;;  %1573 = vst.msk [vmem:[%s2830_s8 + $0xd8] sm:$0xff] %vm1032_vm5, %v1931_v46  ;;  %v1518_v20 = vpop.f32.mrb[11].mxu1  ;;  %v1674_v49 = vmul.f32 %v1931_v46, %v1931_v46  ;;  %v1730_v9 = vsel %vm1032_vm5, %v1673_v13, 0.0  ;;  %v1631_v55 = vsel %vm1032_vm5, %v1931_v46, 0.0 }
 0x241   : > { %v1726_v50 = vsel %vm1032_vm5, %v1671_v40, 0.0  ;;  %1571 = vst.msk [vmem:[%s2830_s8 + $0xc8] sm:$0xff] %vm1032_vm5, %v1518_v20  ;;  %v1627_v28 = vsel %vm1032_vm5, %v1518_v20, 0.0  ;;  %v1672_v52 = vmul.f32 %v1518_v20, %v1518_v20 }
 0x242   : > { %v1727_v33 = vadd.f32 %v1726_v50, %v1725_v32  ;;  %v1628_v10 = vadd.f32 %v1627_v28, %v1626_v12  ;;  %v1732_v59 = vsel %vm1032_vm5, %v1674_v49, 0.0 }
 0x243   : > { %v1728_v42 = vsel %vm1032_vm5, %v1672_v52, 0.0 }
 0x244   : > { %v1630_v14 = vadd.f32 %v1629_v17, %v1628_v10  ;;  %v1729_v57 = vadd.f32 %v1728_v42, %v1727_v33 }
 0x246   : > { %v1731_v35 = vadd.f32 %v1730_v9, %v1729_v57  ;;  %v1632_v36 = vadd.f32 %v1631_v55, %v1630_v14 }
 0x248   : > { %v1733_v56 = vadd.f32 %v1732_v59, %v1731_v35 }
 0x25a   : > { %v1934_v47 = vpop.f32.mrb[12].mxu1 }
 0x25b   : > { %1576 = vst.msk [vmem:[%s2830_s8 + $0xf0] sm:$0xff] %vm1032_vm5, %v1934_v47  ;;  %v1531_v31 = vpop.f32.mrb[13].mxu1  ;;  %v1677_v6 = vmul.f32 %v1934_v47, %v1934_v47  ;;  %v1637_v19 = vsel %vm1032_vm5, %v1934_v47, 0.0 }
 0x25c   : > { %1574 = vst.msk [vmem:[%s2830_s8 + $0xe0] sm:$0xff] %vm1032_vm5, %v1531_v31  ;;  %v1633_v54 = vsel %vm1032_vm5, %v1531_v31, 0.0  ;;  %v1675_v25 = vmul.f32 %v1531_v31, %v1531_v31  ;;  %v1935_v4 = vpop.f32.mrb[14].mxu1 }
 0x25d   : > { %v1634_v26 = vadd.f32 %v1633_v54, %v1632_v36  ;;  %1577 = vst.msk [vmem:[%s2830_s8 + $0xf8] sm:$0xff] %vm1032_vm5, %v1935_v4  ;;  %v1534_v22 = vpop.f32.mrb[15].mxu1  ;;  %v1678_v5 = vmul.f32 %v1935_v4, %v1935_v4  ;;  %v1738_v21 = vsel %vm1032_vm5, %v1677_v6, 0.0  ;;  %v1639_v45 = vsel %vm1032_vm5, %v1935_v4, 0.0 }
 0x25e   : > { %v1734_v62 = vsel %vm1032_vm5, %v1675_v25, 0.0  ;;  %1575 = vst.msk [vmem:[%s2830_s8 + $0xe8] sm:$0xff] %vm1032_vm5, %v1534_v22  ;;  %v1635_v3 = vsel %vm1032_vm5, %v1534_v22, 0.0  ;;  %v1676_v58 = vmul.f32 %v1534_v22, %v1534_v22 }
 0x25f   : > { %v1735_v60 = vadd.f32 %v1734_v62, %v1733_v56  ;;  %v1636_v11 = vadd.f32 %v1635_v3, %v1634_v26  ;;  %v1740_v61 = vsel %vm1032_vm5, %v1678_v5, 0.0 }
 0x260   : > { %v1736_v37 = vsel %vm1032_vm5, %v1676_v58, 0.0 }
 0x261   : > { %v1638_v15 = vadd.f32 %v1637_v19, %v1636_v11  ;;  %v1737_v39 = vadd.f32 %v1736_v37, %v1735_v60 }
 0x263   : > { %v1640_v48 = vadd.f32 %v1639_v45, %v1638_v15  ;;  %v1739_v24 = vadd.f32 %v1738_v21, %v1737_v39 }
 0x265   : > { %v1641_v51 = vrot.slane %v1640_v48, 4  ;;  %v1741_v41 = vadd.f32 %v1740_v61, %v1739_v24 }
 0x267   : > { %v1642_v53 = vadd.f32 %v1641_v51, %v1640_v48  ;;  %v1742_v8 = vrot.slane %v1741_v41, 4 }
 0x269   : > { %v1643_v16 = vrot.slane %v1642_v53, 2  ;;  %v1743_v34 = vadd.f32 %v1742_v8, %v1741_v41 }
 0x26b   : > { %v1644_v0 = vadd.f32 %v1643_v16, %v1642_v53  ;;  %v1744_v27 = vrot.slane %v1743_v34, 2 }
 0x26d   : > { %v1645_v18 = vrot.slane %v1644_v0, 1  ;;  %v1745_v30 = vadd.f32 %v1744_v27, %v1743_v34 }
 0x26f   : > { %v1746_v38 = vrot.slane %v1745_v30, 1  ;;  %v1646_v44 = vadd.f32 %v1645_v18, %v1644_v0 }
 0x271   : > { %v1747_v29 = vadd.f32 %v1746_v38, %v1745_v30 }
 0x273   : > { %v1749_v2 = vsel %vm1748_vm14, %v1646_v44, %v1747_v29 }
 0x274   : > { %1751 = vst.msk [vmem:[%s236_s11] sm:$0x3] %vm1750_vm15, %v1749_v2 }
 0x275 PF: > { %s16_s18 = sadd.s32 1, %s1979_s18  }
 0x276   : > { %p13_p5 = scmp.ge.s32.totalorder %s16_s18, 10  }
 0x278   :  { %15 = sbr.rel (!%p13_p5) target bundleno = 1 (0x1), region = 78 }

// kernel: bottleneck_forward.6
= control target key start
LH: loop header
LB: loop body
LE: loop exit
PB: predicated region body
PF: predicated region fallthrough
CT: control target
= control target key end

     0   :  { %s2768_s18 = smov 0   ;;  %s4190_s0 = inlined_call_operand.vmem [shape: f32[2048,8], index: 0, kind: input, shape index: {}]   ;;  %s4191_s1 = inlined_call_operand.vmem [shape: f32[1,8], index: 1, kind: input, shape index: {}]   ;;  %s4192_s2 = inlined_call_operand.vmem [shape: f32[1,8], index: 2, kind: input, shape index: {}]   ;;  %s4193_s3 = inlined_call_operand.vmem [shape: bf16[8,32], index: 3, kind: input, shape index: {}]   ;;  %s4194_s4 = inlined_call_operand.vmem [shape: f32[2048,32], index: 4, kind: output, shape index: {0}]   ;;  %s4195_s5 = inlined_call_operand.vmem [shape: f32[2,2,32], index: 5, kind: output, shape index: {1}]  }
   0x1 LB: > { %s2774_s19 = sadd.s32 4294967295, %s2736_s18   ;;  %p2447_p0 = scmp.ge.s32.totalorder %s2736_s18, 1  ;;  %s2736_s18 = sphi %s2768_s18, %s16_s18  }
   0x2   : > { %p191_p1 = scmp.lt.s32.totalorder %s2736_s18, 3 }
   0x4   : > { %p192_p2 = pnand %p2447_p0, %p191_p1 }
   0x5   : > { %v830_v0 = vld [vmem:[%s4193_s3] sm:$0xf] (!%p192_p2)  ;;  %vm1024_vm0 = vcmask (!%p192_p2), 1043456   ;;  %s2448_s22 = sshll.u32 (!%p192_p2), %s2774_s19, 7  ;;  %vm831_vm1 = vcmask (!%p192_p2), 64512   ;;  %vm1573_vm2 = vcmask (!%p192_p2), 261120  }
   0x6   : > { %195 = sbr.rel (%p192_p2) target bundleno = 512 (0x200), region = 36  ;;  %2718 = vmatprep.subr.msk.bf16.mxu0 (!%p192_p2), %vm1024_vm0, %v830_v0  ;;  %v1026_v1 = vsel (!%p192_p2), %vm1024_vm0, %v830_v0, 0  ;;  %p224_p3 = scmp.lt.s32.totalorder (!%p192_p2), %s2448_s22, 255  ;;  %2719 = vmatprep.subr.msk.bf16.mxu1 (!%p192_p2), %vm1024_vm0, %v830_v0  ;;  %v2788_v2 = vld [vmem:[%s4191_s1] ss:$0 sm:$0xff] (!%p192_p2)  ;;  %vm2352_vm3 = vcmask (!%p192_p2), 1040384  }
   0x7   : > { %2587 = vmatpush3.bf16.msra.mxu0 (!%p192_p2), %v1026_v1  ;;  %2717 = vmatpush3.bf16.msra.mxu1 (!%p192_p2), %v1026_v1  ;;  %v2800_v3 = vld [vmem:[%s4192_s2] ss:$0 sm:$0xff] (!%p192_p2)  ;;  %p235_p4 = scmp.lt.s32.totalorder (!%p192_p2), %s2774_s19, 1  ;;  %vm2354_vm4 = vcmask (!%p192_p2), 254976  }
   0xd   : > { %s4197_s22 = smov (!%p224_p3, %s2448_s22), 255  ;;  %s4199_s19 = smov (!%p235_p4, %s2774_s19), 1 }
   0xe   : > { %s2449_s23 = sshll.u32 %s4197_s22, 3  ;;  %s2452_s13 = sshll.u32 %s4199_s19, 1 }
   0xf   : > { %s2795_s28 = scalar_lea.vmem %s4190_s0, %s2449_s23  ;;  %s3284_s12 = scalar_lea.vmem %s4194_s4, %s2449_s23 }
  0x10   : > { %v240_v4 = vld [vmem:[%s2795_s28] sm:$0xff]  ;;  %v241_v5 = vld [vmem:[%s2795_s28 + $0x8] sm:$0xff]  ;;  %v242_v6 = vld [vmem:[%s2795_s28 + $0x10] sm:$0xff]  ;;  %s238_s16 = scalar_lea.vmem %s4195_s5, %s2452_s13 }
  0x11   : > { %v375_v7 = vmul.f32 %v2788_v2, %v240_v4  ;;  %v376_v8 = vmul.f32 %v2788_v2, %v241_v5  ;;  %v243_v9 = vld [vmem:[%s2795_s28 + $0x18] sm:$0xff]  ;;  %v377_v10 = vmul.f32 %v2788_v2, %v242_v6  ;;  %v244_v11 = vld [vmem:[%s2795_s28 + $0x20] sm:$0xff]  ;;  %v245_v12 = vld [vmem:[%s2795_s28 + $0x28] sm:$0xff] }
  0x12   : > { %v378_v13 = vmul.f32 %v2788_v2, %v243_v9  ;;  %v379_v14 = vmul.f32 %v2788_v2, %v244_v11  ;;  %v380_v15 = vmul.f32 %v2788_v2, %v245_v12  ;;  %v246_v16 = vld [vmem:[%s2795_s28 + $0x30] sm:$0xff]  ;;  %v247_v17 = vld [vmem:[%s2795_s28 + $0x38] sm:$0xff]  ;;  %v248_v26 = vld [vmem:[%s2795_s28 + $0x40] sm:$0xff] }
  0x13   : > { %v510_v18 = vadd.f32 %v2800_v3, %v375_v7  ;;  %v511_v19 = vadd.f32 %v2800_v3, %v376_v8  ;;  %v512_v20 = vadd.f32 %v2800_v3, %v377_v10  ;;  %v381_v21 = vmul.f32 %v2788_v2, %v246_v16  ;;  %v249_v27 = vld [vmem:[%s2795_s28 + $0x48] sm:$0xff]  ;;  %v250_v39 = vld [vmem:[%s2795_s28 + $0x50] sm:$0xff]  ;;  %v251_v40 = vld [vmem:[%s2795_s28 + $0x58] sm:$0xff] }
  0x14   : > { %v513_v22 = vadd.f32 %v2800_v3, %v378_v13  ;;  %v514_v23 = vadd.f32 %v2800_v3, %v379_v14  ;;  %v515_v24 = vadd.f32 %v2800_v3, %v380_v15  ;;  %v382_v25 = vmul.f32 %v2788_v2, %v247_v17  ;;  %v252_v43 = vld [vmem:[%s2795_s28 + $0x60] sm:$0xff]  ;;  %v253_v44 = vld [vmem:[%s2795_s28 + $0x68] sm:$0xff]  ;;  %v254_v61 = vld [vmem:[%s2795_s28 + $0x70] sm:$0xff] }
  0x15   : > { %v638_v28 = vmax.f32 %v510_v18, 0.0  ;;  %v639_v29 = vmax.f32 %v511_v19, 0.0  ;;  %v640_v30 = vmax.f32 %v512_v20, 0.0  ;;  %v516_v31 = vadd.f32 %v2800_v3, %v381_v21  ;;  %v255_v62 = vld [vmem:[%s2795_s28 + $0x78] sm:$0xff]  ;;  %v256_v63 = vld [vmem:[%s2795_s28 + $0x80] sm:$0xff]  ;;  %v257_v0 = vld [vmem:[%s2795_s28 + $0x88] sm:$0xff] }
  0x16   : > { %v641_v32 = vmax.f32 %v513_v22, 0.0  ;;  %v642_v33 = vmax.f32 %v514_v23, 0.0  ;;  %v643_v34 = vmax.f32 %v515_v24, 0.0  ;;  %v517_v35 = vadd.f32 %v2800_v3, %v382_v25  ;;  %v258_v17 = vld [vmem:[%s2795_s28 + $0x90] sm:$0xff]  ;;  %v259_v18 = vld [vmem:[%s2795_s28 + $0x98] sm:$0xff]  ;;  %v260_v19 = vld [vmem:[%s2795_s28 + $0xa0] sm:$0xff] }
  0x17   : > { %v766_v36 = vpack.c.bf16 %v639_v29, %v638_v28  ;;  %v383_v37 = vmul.f32 %v2788_v2, %v248_v26  ;;  %v384_v38 = vmul.f32 %v2788_v2, %v249_v27  ;;  %v644_v47 = vmax.f32 %v516_v31, 0.0  ;;  %v261_v20 = vld [vmem:[%s2795_s28 + $0xa8] sm:$0xff] }
  0x18   : > { %v767_v41 = vpack.c.bf16 %v641_v32, %v640_v30  ;;  %v768_v42 = vpack.c.bf16 %v643_v34, %v642_v33  ;;  %v645_v48 = vmax.f32 %v517_v35, 0.0  ;;  %v385_v49 = vmul.f32 %v2788_v2, %v250_v39  ;;  %v262_v32 = vld [vmem:[%s2795_s28 + $0xb0] sm:$0xff] }
  0x19   : > { %2588 = vmatprep.mubr.msk.bf16.mxu0 %vm831_vm1, %v766_v36  ;;  %v518_v45 = vadd.f32 %v2800_v3, %v383_v37  ;;  %v519_v46 = vadd.f32 %v2800_v3, %v384_v38  ;;  %v386_v50 = vmul.f32 %v2788_v2, %v251_v40  ;;  %v387_v53 = vmul.f32 %v2788_v2, %v252_v43  ;;  %v263_v36 = vld [vmem:[%s2795_s28 + $0xb8] sm:$0xff]  ;;  %v264_v37 = vld [vmem:[%s2795_s28 + $0xc0] sm:$0xff]  ;;  %v265_v38 = vld [vmem:[%s2795_s28 + $0xc8] sm:$0xff] }
  0x1a   : > { %2589 = vmatmul.mubr.msk.bf16.vlgmr.msra.gmra.mrb[0].mxu0 %vm831_vm1, %v767_v41  ;;  %v388_v54 = vmul.f32 %v2788_v2, %v253_v44  ;;  %v769_v55 = vpack.c.bf16 %v645_v48, %v644_v47  ;;  %v520_v56 = vadd.f32 %v2800_v3, %v385_v49  ;;  %v389_v5 = vmul.f32 %v2788_v2, %v254_v61 }
  0x1b   : > { %2592 = vmatprep.mubr.msk.bf16.mxu0 %vm831_vm1, %v768_v42  ;;  %v646_v51 = vmax.f32 %v518_v45, 0.0  ;;  %v647_v52 = vmax.f32 %v519_v46, 0.0  ;;  %v521_v57 = vadd.f32 %v2800_v3, %v386_v50  ;;  %v522_v59 = vadd.f32 %v2800_v3, %v387_v53  ;;  %v266_v50 = vld [vmem:[%s2795_s28 + $0xd0] sm:$0xff] }
  0x1c   : > { %v523_v60 = vadd.f32 %v2800_v3, %v388_v54  ;;  %v648_v1 = vmax.f32 %v520_v56, 0.0  ;;  %v390_v6 = vmul.f32 %v2788_v2, %v255_v62  ;;  %v391_v9 = vmul.f32 %v2788_v2, %v256_v63  ;;  %v267_v54 = vld [vmem:[%s2795_s28 + $0xd8] sm:$0xff]  ;;  %v269_v56 = vld [vmem:[%s2795_s28 + $0xe8] sm:$0xff] }
  0x1d   : > { %v770_v58 = vpack.c.bf16 %v647_v52, %v646_v51  ;;  %v649_v4 = vmax.f32 %v521_v57, 0.0  ;;  %v650_v7 = vmax.f32 %v522_v59, 0.0  ;;  %v392_v10 = vmul.f32 %v2788_v2, %v257_v0  ;;  %v270_v57 = vld [vmem:[%s2795_s28 + $0xf0] sm:$0xff] }
  0x1e   : > { %v651_v8 = vmax.f32 %v523_v60, 0.0  ;;  %v524_v12 = vadd.f32 %v2800_v3, %v389_v5  ;;  %v525_v13 = vadd.f32 %v2800_v3, %v390_v6  ;;  %v526_v15 = vadd.f32 %v2800_v3, %v391_v9  ;;  %v273_v9 = vld [vmem:[%s2795_s28 + $0x108] sm:$0xff] }
  0x1f   : > { %v771_v11 = vpack.c.bf16 %v649_v4, %v648_v1  ;;  %v527_v16 = vadd.f32 %v2800_v3, %v392_v10  ;;  %v393_v23 = vmul.f32 %v2788_v2, %v258_v17  ;;  %v394_v24 = vmul.f32 %v2788_v2, %v259_v18 }
  0x20   : > { %v772_v14 = vpack.c.bf16 %v651_v8, %v650_v7  ;;  %v652_v21 = vmax.f32 %v524_v12, 0.0  ;;  %v653_v22 = vmax.f32 %v525_v13, 0.0  ;;  %v654_v25 = vmax.f32 %v526_v15, 0.0  ;;  %v272_v7 = vld [vmem:[%s2795_s28 + $0x100] sm:$0xff] }
  0x21   : > { %v655_v26 = vmax.f32 %v527_v16, 0.0  ;;  %v395_v27 = vmul.f32 %v2788_v2, %v260_v19  ;;  %v396_v28 = vmul.f32 %v2788_v2, %v261_v20  ;;  %v528_v30 = vadd.f32 %v2800_v3, %v393_v23  ;;  %v275_v19 = vld [vmem:[%s2795_s28 + $0x118] sm:$0xff] }
  0x22   : > { %2593 = vmatmul.mubr.msk.bf16.gmra.mrb[4].mxu0 %vm831_vm1, %v769_v55  ;;  %v773_v29 = vpack.c.bf16 %v653_v22, %v652_v21  ;;  %v529_v31 = vadd.f32 %v2800_v3, %v394_v24  ;;  %v397_v39 = vmul.f32 %v2788_v2, %v262_v32  ;;  %v398_v42 = vmul.f32 %v2788_v2, %v263_v36  ;;  %v268_v55 = vld [vmem:[%s2795_s28 + $0xe0] sm:$0xff]  ;;  %v278_v36 = vld [vmem:[%s2795_s28 + $0x130] sm:$0xff] }
  0x23   : > { %2596 = vmatprep.mubr.msk.bf16.mxu0 %vm831_vm1, %v770_v58  ;;  %v774_v33 = vpack.c.bf16 %v655_v26, %v654_v25  ;;  %v530_v34 = vadd.f32 %v2800_v3, %v395_v27  ;;  %v531_v35 = vadd.f32 %v2800_v3, %v396_v28  ;;  %v656_v40 = vmax.f32 %v528_v30, 0.0  ;;  %v271_v58 = vld [vmem:[%s2795_s28 + $0xf8] sm:$0xff]  ;;  %v276_v22 = vld [vmem:[%s2795_s28 + $0x120] sm:$0xff] }
  0x24   : > { %v657_v41 = vmax.f32 %v529_v31, 0.0  ;;  %v399_v45 = vmul.f32 %v2788_v2, %v264_v37  ;;  %v400_v46 = vmul.f32 %v2788_v2, %v265_v38  ;;  %v532_v47 = vadd.f32 %v2800_v3, %v397_v39  ;;  %v277_v31 = vld [vmem:[%s2795_s28 + $0x128] sm:$0xff] }
  0x25   : > { %v658_v43 = vmax.f32 %v530_v34, 0.0  ;;  %v659_v44 = vmax.f32 %v531_v35, 0.0  ;;  %v533_v49 = vadd.f32 %v2800_v3, %v398_v42  ;;  %v401_v60 = vmul.f32 %v2788_v2, %v266_v50  ;;  %v304_v34 = vld [vmem:[%s2795_s28 + $0x200] sm:$0xff]  ;;  %v305_v37 = vld [vmem:[%s2795_s28 + $0x208] sm:$0xff]  ;;  %v307_v42 = vld [vmem:[%s2795_s28 + $0x218] sm:$0xff] }
  0x26   : > { %v775_v48 = vpack.c.bf16 %v657_v41, %v656_v40  ;;  %v534_v52 = vadd.f32 %v2800_v3, %v399_v45  ;;  %v535_v53 = vadd.f32 %v2800_v3, %v400_v46  ;;  %v660_v59 = vmax.f32 %v532_v47, 0.0  ;;  %v306_v41 = vld [vmem:[%s2795_s28 + $0x210] sm:$0xff]  ;;  %v308_v47 = vld [vmem:[%s2795_s28 + $0x220] sm:$0xff] }
  0x27   : > { %v776_v51 = vpack.c.bf16 %v659_v44, %v658_v43  ;;  %v661_v61 = vmax.f32 %v533_v49, 0.0  ;;  %v402_v62 = vmul.f32 %v2788_v2, %v267_v54  ;;  %v403_v63 = vmul.f32 %v2788_v2, %v268_v55 }
  0x28   : > { %v404_v0 = vmul.f32 %v2788_v2, %v269_v56  ;;  %v662_v1 = vmax.f32 %v534_v52, 0.0  ;;  %v663_v4 = vmax.f32 %v535_v53, 0.0  ;;  %v405_v5 = vmul.f32 %v2788_v2, %v270_v57  ;;  %v309_v52 = vld [vmem:[%s2795_s28 + $0x228] sm:$0xff]  ;;  %v310_v57 = vld [vmem:[%s2795_s28 + $0x230] sm:$0xff] }
  0x29   : > { %v406_v6 = vmul.f32 %v2788_v2, %v271_v58  ;;  %v536_v8 = vadd.f32 %v2800_v3, %v401_v60  ;;  %v777_v10 = vpack.c.bf16 %v661_v61, %v660_v59  ;;  %v538_v12 = vadd.f32 %v2800_v3, %v403_v63 }
  0x2a   : > { %2597 = vmatmul.mubr.msk.bf16.gmra.mrb[8].mxu0 %vm831_vm1, %v771_v11  ;;  %v537_v11 = vadd.f32 %v2800_v3, %v402_v62  ;;  %v539_v13 = vadd.f32 %v2800_v3, %v404_v0  ;;  %v778_v15 = vpack.c.bf16 %v663_v4, %v662_v1  ;;  %v540_v16 = vadd.f32 %v2800_v3, %v405_v5  ;;  %v311_v62 = vld [vmem:[%s2795_s28 + $0x238] sm:$0xff]  ;;  %v312_v5 = vld [vmem:[%s2795_s28 + $0x240] sm:$0xff] }
  0x2b   : > { %2600 = vmatprep.mubr.msk.bf16.mxu0 %vm831_vm1, %v772_v14  ;;  %v274_v14 = vld [vmem:[%s2795_s28 + $0x110] sm:$0xff]  ;;  %v541_v17 = vadd.f32 %v2800_v3, %v406_v6  ;;  %v407_v18 = vmul.f32 %v2788_v2, %v272_v7  ;;  %v408_v20 = vmul.f32 %v2788_v2, %v273_v9  ;;  %v664_v23 = vmax.f32 %v536_v8, 0.0 }
  0x2c   : > { %v409_v21 = vmul.f32 %v2788_v2, %v274_v14  ;;  %v665_v24 = vmax.f32 %v537_v11, 0.0  ;;  %v666_v25 = vmax.f32 %v538_v12, 0.0  ;;  %v410_v26 = vmul.f32 %v2788_v2, %v275_v19  ;;  %v279_v11 = vld [vmem:[%s2795_s28 + $0x138] sm:$0xff] }
  0x2d   : > { %v667_v27 = vmax.f32 %v539_v13, 0.0  ;;  %v668_v28 = vmax.f32 %v540_v16, 0.0  ;;  %v542_v30 = vadd.f32 %v2800_v3, %v407_v18  ;;  %v543_v32 = vadd.f32 %v2800_v3, %v408_v20  ;;  %v314_v16 = vld [vmem:[%s2795_s28 + $0x250] sm:$0xff] }
  0x2e   : > { %v2926_v35 = vadd.f32 %v2800_v3, %v409_v21  ;;  %v779_v38 = vpack.c.bf16 %v665_v24, %v664_v23  ;;  %v2931_v39 = vadd.f32 %v2800_v3, %v410_v26  ;;  %v412_v40 = vmul.f32 %v2788_v2, %v277_v31  ;;  %v315_v21 = vld [vmem:[%s2795_s28 + $0x258] sm:$0xff]  ;;  %v316_v26 = vld [vmem:[%s2795_s28 + $0x260] sm:$0xff] }
  0x2f   : > { %v780_v43 = vpack.c.bf16 %v667_v27, %v666_v25  ;;  %v670_v45 = vmax.f32 %v542_v30, 0.0  ;;  %v439_v46 = vmul.f32 %v2788_v2, %v304_v34  ;;  %v2942_v50 = vmul.f32 %v2788_v2, %v278_v36  ;;  %v317_v27 = vld [vmem:[%s2795_s28 + $0x268] sm:$0xff] }
  0x30   : > { %v672_v53 = vmax.f32 %v2926_v35, 0.0  ;;  %v441_v55 = vmul.f32 %v2788_v2, %v306_v41  ;;  %v442_v56 = vmul.f32 %v2788_v2, %v307_v42  ;;  %v673_v58 = vmax.f32 %v2931_v39, 0.0  ;;  %v281_v30 = vld [vmem:[%s2795_s28 + $0x148] sm:$0xff] }
  0x31   : > { %v574_v54 = vadd.f32 %v2800_v3, %v439_v46  ;;  %v2954_v59 = vadd.f32 %v2800_v3, %v412_v40  ;;  %v443_v61 = vmul.f32 %v2788_v2, %v308_v47  ;;  %v444_v4 = vmul.f32 %v2788_v2, %v309_v52  ;;  %v283_v52 = vld [vmem:[%s2795_s28 + $0x158] sm:$0xff] }
  0x32   : > { %2601 = vmatmul.mubr.msk.bf16.gmra.mrb[12].mxu0 %vm831_vm1, %v773_v29  ;;  %v669_v29 = vmax.f32 %v541_v17, 0.0  ;;  %v576_v0 = vadd.f32 %v2800_v3, %v441_v55  ;;  %v577_v1 = vadd.f32 %v2800_v3, %v442_v56  ;;  %v445_v9 = vmul.f32 %v2788_v2, %v310_v57 }
  0x33   : > { %2604 = vmatprep.mubr.msk.bf16.mxu0 %vm831_vm1, %v774_v33  ;;  %v411_v33 = vmul.f32 %v2788_v2, %v276_v22  ;;  %v702_v63 = vmax.f32 %v574_v54, 0.0  ;;  %v578_v8 = vadd.f32 %v2800_v3, %v443_v61  ;;  %v579_v14 = vadd.f32 %v2800_v3, %v444_v4  ;;  %v318_v61 = vld [vmem:[%s2795_s28 + $0x270] sm:$0xff]  ;;  %v320_v4 = vld [vmem:[%s2795_s28 + $0x280] sm:$0xff] }
  0x34   : > { %v781_v44 = vpack.c.bf16 %v669_v29, %v668_v28  ;;  %v704_v12 = vmax.f32 %v576_v0, 0.0  ;;  %v705_v13 = vmax.f32 %v577_v1, 0.0  ;;  %v580_v19 = vadd.f32 %v2800_v3, %v445_v9  ;;  %v280_v29 = vld [vmem:[%s2795_s28 + $0x140] sm:$0xff] }
  0x35   : > { %v2939_v49 = vadd.f32 %v2800_v3, %v411_v33  ;;  %v706_v18 = vmax.f32 %v578_v8, 0.0  ;;  %v447_v20 = vmul.f32 %v2788_v2, %v312_v5  ;;  %v707_v23 = vmax.f32 %v579_v14, 0.0  ;;  %v321_v5 = vld [vmem:[%s2795_s28 + $0x288] sm:$0xff] }
  0x36   : > { %v799_v22 = vpack.c.bf16 %v705_v13, %v704_v12  ;;  %v414_v28 = vmul.f32 %v2788_v2, %v279_v11  ;;  %v708_v31 = vmax.f32 %v580_v19, 0.0  ;;  %v449_v33 = vmul.f32 %v2788_v2, %v314_v16 }
  0x37   : > { %v800_v34 = vpack.c.bf16 %v707_v23, %v706_v18  ;;  %v674_v40 = vmax.f32 %v2939_v49, 0.0  ;;  %v451_v42 = vmul.f32 %v2788_v2, %v316_v26  ;;  %v415_v46 = vmul.f32 %v2788_v2, %v280_v29  ;;  %v287_v23 = vld [vmem:[%s2795_s28 + $0x178] sm:$0xff] }
  0x38   : > { %v416_v47 = vmul.f32 %v2788_v2, %v281_v30  ;;  %v549_v49 = vadd.f32 %v2800_v3, %v414_v28  ;;  %v584_v55 = vadd.f32 %v2800_v3, %v449_v33  ;;  %v783_v57 = vpack.c.bf16 %v673_v58, %v672_v53  ;;  %v284_v58 = vld [vmem:[%s2795_s28 + $0x160] sm:$0xff] }
  0x39   : > { %v550_v0 = vadd.f32 %v2800_v3, %v415_v46  ;;  %v418_v53 = vmul.f32 %v2788_v2, %v283_v52  ;;  %v455_v14 = vmul.f32 %v2788_v2, %v320_v4  ;;  %v419_v18 = vmul.f32 %v2788_v2, %v284_v58  ;;  %v289_v46 = vld [vmem:[%s2795_s28 + $0x188] sm:$0xff]  ;;  %v327_v58 = vld [vmem:[%s2795_s28 + $0x2b8] sm:$0xff] }
  0x3a   : > { %2605 = vmatmul.mubr.msk.bf16.gmra.mrb[16].mxu0 %vm831_vm1, %v775_v48  ;;  %v671_v48 = vmax.f32 %v543_v32, 0.0  ;;  %v582_v32 = vadd.f32 %v2800_v3, %v447_v20  ;;  %v551_v1 = vadd.f32 %v2800_v3, %v416_v47  ;;  %v712_v8 = vmax.f32 %v584_v55, 0.0 }
  0x3b   : > { %2608 = vmatprep.mubr.msk.bf16.mxu0 %vm831_vm1, %v776_v51  ;;  %v440_v51 = vmul.f32 %v2788_v2, %v305_v37  ;;  %v678_v16 = vmax.f32 %v550_v0, 0.0  ;;  %v590_v29 = vadd.f32 %v2800_v3, %v455_v14 }
  0x3c   : > { %v782_v6 = vpack.c.bf16 %v671_v48, %v670_v45  ;;  %v710_v41 = vmax.f32 %v582_v32, 0.0  ;;  %v675_v45 = vmax.f32 %v2954_v59, 0.0  ;;  %v548_v48 = vadd.f32 %v2800_v3, %v2942_v50  ;;  %v323_v32 = vld [vmem:[%s2795_s28 + $0x298] sm:$0xff] }
  0x3d   : > { %v575_v60 = vadd.f32 %v2800_v3, %v440_v51  ;;  %v282_v51 = vld [vmem:[%s2795_s28 + $0x150] sm:$0xff]  ;;  %v586_v50 = vadd.f32 %v2800_v3, %v451_v42 }
  0x3e   : > { %v676_v35 = vmax.f32 %v548_v48, 0.0  ;;  %v417_v39 = vmul.f32 %v2788_v2, %v282_v51  ;;  %v718_v51 = vmax.f32 %v590_v29, 0.0 }
  0x3f   : > { %v703_v7 = vmax.f32 %v575_v60, 0.0  ;;  %v714_v12 = vmax.f32 %v586_v50, 0.0  ;;  %v424_v50 = vmul.f32 %v2788_v2, %v289_v46 }
  0x40   : > { %v552_v20 = vadd.f32 %v2800_v3, %v417_v39 }
  0x41   : > { %v798_v17 = vpack.c.bf16 %v703_v7, %v702_v63  ;;  %v784_v63 = vpack.c.bf16 %v675_v45, %v674_v40  ;;  %v285_v7 = vld [vmem:[%s2795_s28 + $0x168] sm:$0xff]  ;;  %v288_v45 = vld [vmem:[%s2795_s28 + $0x180] sm:$0xff] }
  0x42   : > { %2609 = vmatmul.mubr.msk.bf16.gmra.mrb[20].mxu0 %vm831_vm1, %v777_v10  ;;  %v313_v10 = vld [vmem:[%s2795_s28 + $0x248] sm:$0xff]  ;;  %v420_v19 = vmul.f32 %v2788_v2, %v285_v7  ;;  %v680_v40 = vmax.f32 %v552_v20, 0.0 }
  0x43   : > { %2612 = vmatprep.mubr.msk.bf16.mxu0 %vm831_vm1, %v778_v15  ;;  %v446_v15 = vmul.f32 %v2788_v2, %v311_v62  ;;  %v448_v25 = vmul.f32 %v2788_v2, %v313_v10  ;;  %2652 = vmatprep.mubr.msk.bf16.mxu1 %vm831_vm1, %v798_v17  ;;  %v319_v62 = vld [vmem:[%s2795_s28 + $0x278] sm:$0xff]  ;;  %v453_v10 = vmul.f32 %v2788_v2, %v318_v61  ;;  %v679_v17 = vmax.f32 %v551_v1, 0.0 }
  0x44   : > { %2653 = vmatmul.mubr.msk.bf16.vlgmr.msra.gmra.mrb[0].mxu1 %vm831_vm1, %v799_v22  ;;  %v454_v11 = vmul.f32 %v2788_v2, %v319_v62  ;;  %v286_v22 = vld [vmem:[%s2795_s28 + $0x170] sm:$0xff] }
  0x45   : > { %v581_v24 = vadd.f32 %v2800_v3, %v446_v15  ;;  %v583_v37 = vadd.f32 %v2800_v3, %v448_v25  ;;  %2656 = vmatprep.mubr.msk.bf16.mxu1 %vm831_vm1, %v800_v34  ;;  %v456_v15 = vmul.f32 %v2788_v2, %v321_v5  ;;  %v588_v25 = vadd.f32 %v2800_v3, %v453_v10  ;;  %v290_v62 = vld [vmem:[%s2795_s28 + $0x190] sm:$0xff]  ;;  %v328_v10 = vld [vmem:[%s2795_s28 + $0x2c0] sm:$0xff] }
  0x46   : > { %v589_v26 = vadd.f32 %v2800_v3, %v454_v11  ;;  %v786_v33 = vpack.c.bf16 %v679_v17, %v678_v16  ;;  %v554_v34 = vadd.f32 %v2800_v3, %v419_v18  ;;  %v421_v42 = vmul.f32 %v2788_v2, %v286_v22  ;;  %v329_v11 = vld [vmem:[%s2795_s28 + $0x2c8] sm:$0xff]  ;;  %v292_v16 = vld [vmem:[%s2795_s28 + $0x1a0] sm:$0xff] }
  0x47   : > { %v709_v36 = vmax.f32 %v581_v24, 0.0  ;;  %v591_v30 = vadd.f32 %v2800_v3, %v456_v15  ;;  %v716_v47 = vmax.f32 %v588_v25, 0.0  ;;  %v425_v14 = vmul.f32 %v2788_v2, %v290_v62  ;;  %v293_v17 = vld [vmem:[%s2795_s28 + $0x1a8] sm:$0xff] }
  0x48   : > { %v464_v25 = vmul.f32 %v2788_v2, %v329_v11  ;;  %v428_v29 = vmul.f32 %v2788_v2, %v293_v17 }
  0x49   : > { %v801_v54 = vpack.c.bf16 %v709_v36, %v708_v31  ;;  %v322_v31 = vld [vmem:[%s2795_s28 + $0x290] sm:$0xff]  ;;  %v555_v36 = vadd.f32 %v2800_v3, %v420_v19  ;;  %v719_v52 = vmax.f32 %v591_v30, 0.0  ;;  %v560_v30 = vadd.f32 %v2800_v3, %v425_v14 }
  0x4a   : > { %2613 = vmatmul.mubr.msk.bf16.gmra.mrb[24].mxu0 %vm831_vm1, %v779_v38  ;;  %v450_v38 = vmul.f32 %v2788_v2, %v315_v21  ;;  %v553_v21 = vadd.f32 %v2800_v3, %v418_v53  ;;  %v457_v48 = vmul.f32 %v2788_v2, %v322_v31  ;;  %v326_v53 = vld [vmem:[%s2795_s28 + $0x2b0] sm:$0xff] }
  0x4b   : > { %2616 = vmatprep.mubr.msk.bf16.mxu0 %vm831_vm1, %v780_v43  ;;  %v452_v43 = vmul.f32 %v2788_v2, %v317_v27  ;;  %v461_v20 = vmul.f32 %v2788_v2, %v326_v53 }
  0x4c   : > { %v585_v56 = vadd.f32 %v2800_v3, %v450_v38  ;;  %2657 = vmatmul.mubr.msk.bf16.gmra.mrb[4].mxu1 %vm831_vm1, %v801_v54  ;;  %v325_v38 = vld [vmem:[%s2795_s28 + $0x2a8] sm:$0xff]  ;;  %v592_v1 = vadd.f32 %v2800_v3, %v457_v48  ;;  %v332_v48 = vld [vmem:[%s2795_s28 + $0x2e0] sm:$0xff] }
  0x4d   : > { %v587_v60 = vadd.f32 %v2800_v3, %v452_v43  ;;  %v422_v43 = vmul.f32 %v2788_v2, %v287_v23  ;;  %v460_v55 = vmul.f32 %v2788_v2, %v325_v38 }
  0x4e   : > { %v713_v9 = vmax.f32 %v585_v56, 0.0  ;;  %v682_v56 = vmax.f32 %v554_v34, 0.0  ;;  %v720_v18 = vmax.f32 %v592_v1, 0.0 }
  0x4f   : > { %v715_v13 = vmax.f32 %v587_v60, 0.0  ;;  %v556_v60 = vadd.f32 %v2800_v3, %v421_v42  ;;  %v557_v61 = vadd.f32 %v2800_v3, %v422_v43  ;;  %v595_v39 = vadd.f32 %v2800_v3, %v460_v55  ;;  %v330_v43 = vld [vmem:[%s2795_s28 + $0x2d0] sm:$0xff] }
  0x50   : > { %v803_v24 = vpack.c.bf16 %v713_v9, %v712_v8  ;;  %v559_v9 = vadd.f32 %v2800_v3, %v424_v50  ;;  %v599_v42 = vadd.f32 %v2800_v3, %v464_v25 }
  0x51   : > { %v804_v28 = vpack.c.bf16 %v715_v13, %v714_v12  ;;  %v684_v12 = vmax.f32 %v556_v60, 0.0  ;;  %v685_v13 = vmax.f32 %v557_v61, 0.0  ;;  %v723_v23 = vmax.f32 %v595_v39, 0.0 }
  0x52   : > { %2617 = vmatmul.mubr.msk.bf16.gmra.mrb[28].mxu0 %vm831_vm1, %v781_v44  ;;  %v711_v44 = vmax.f32 %v583_v37, 0.0  ;;  %v324_v37 = vld [vmem:[%s2795_s28 + $0x2a0] sm:$0xff]  ;;  %v465_v60 = vmul.f32 %v2788_v2, %v330_v43 }
  0x53   : > { %2620 = vmatprep.mubr.msk.bf16.mxu0 %vm831_vm1, %v782_v6  ;;  %v677_v6 = vmax.f32 %v549_v49, 0.0  ;;  %v458_v49 = vmul.f32 %v2788_v2, %v323_v32  ;;  %v459_v54 = vmul.f32 %v2788_v2, %v324_v37  ;;  %v294_v32 = vld [vmem:[%s2795_s28 + $0x1b0] sm:$0xff]  ;;  %v789_v38 = vpack.c.bf16 %v685_v13, %v684_v12 }
  0x54   : > { %v802_v59 = vpack.c.bf16 %v711_v44, %v710_v41  ;;  %v681_v41 = vmax.f32 %v553_v21, 0.0  ;;  %v717_v44 = vmax.f32 %v589_v26, 0.0  ;;  %v462_v21 = vmul.f32 %v2788_v2, %v327_v58  ;;  %v298_v58 = vld [vmem:[%s2795_s28 + $0x1d0] sm:$0xff] }
  0x55   : > { %v785_v27 = vpack.c.bf16 %v677_v6, %v676_v35  ;;  %v593_v4 = vadd.f32 %v2800_v3, %v458_v49  ;;  %v806_v35 = vpack.c.bf16 %v719_v52, %v718_v51  ;;  %v594_v6 = vadd.f32 %v2800_v3, %v459_v54  ;;  %v333_v49 = vld [vmem:[%s2795_s28 + $0x2e8] sm:$0xff] }
  0x56   : > { %2660 = vmatprep.mubr.msk.bf16.mxu1 %vm831_vm1, %v802_v59  ;;  %v423_v59 = vmul.f32 %v2788_v2, %v288_v45  ;;  %v805_v0 = vpack.c.bf16 %v717_v44, %v716_v47  ;;  %v787_v5 = vpack.c.bf16 %v681_v41, %v680_v40  ;;  %v597_v37 = vadd.f32 %v2800_v3, %v462_v21  ;;  %v331_v45 = vld [vmem:[%s2795_s28 + $0x2d8] sm:$0xff]  ;;  %v337_v21 = vld [vmem:[%s2795_s28 + $0x308] sm:$0xff] }
  0x57   : > { %2661 = vmatmul.mubr.msk.bf16.gmra.mrb[8].mxu1 %vm831_vm1, %v803_v24  ;;  %v721_v19 = vmax.f32 %v593_v4, 0.0  ;;  %v722_v22 = vmax.f32 %v594_v6, 0.0  ;;  %v463_v24 = vmul.f32 %v2788_v2, %v328_v10  ;;  %v563_v44 = vadd.f32 %v2800_v3, %v428_v29 }
  0x58   : > { %2664 = vmatprep.mubr.msk.bf16.mxu1 %vm831_vm1, %v804_v28  ;;  %v558_v8 = vadd.f32 %v2800_v3, %v423_v59  ;;  %v427_v28 = vmul.f32 %v2788_v2, %v292_v16  ;;  %v688_v51 = vmax.f32 %v560_v30, 0.0  ;;  %v429_v54 = vmul.f32 %v2788_v2, %v294_v32  ;;  %v335_v16 = vld [vmem:[%s2795_s28 + $0x2f8] sm:$0xff] }
  0x59   : > { %v807_v34 = vpack.c.bf16 %v721_v19, %v720_v18  ;;  %v808_v40 = vpack.c.bf16 %v723_v23, %v722_v22  ;;  %v598_v41 = vadd.f32 %v2800_v3, %v463_v24  ;;  %v725_v50 = vmax.f32 %v597_v37, 0.0 }
  0x5a   : > { %2621 = vmatmul.mubr.msk.bf16.gmra.mrb[32].mxu0 %vm831_vm1, %v783_v57  ;;  %v683_v57 = vmax.f32 %v555_v36, 0.0  ;;  %v686_v26 = vmax.f32 %v558_v8, 0.0  ;;  %v596_v36 = vadd.f32 %v2800_v3, %v461_v20  ;;  %v562_v47 = vadd.f32 %v2800_v3, %v427_v28  ;;  %v336_v20 = vld [vmem:[%s2795_s28 + $0x300] sm:$0xff] }
  0x5b   : > { %2624 = vmatprep.mubr.msk.bf16.mxu0 %vm831_vm1, %v784_v63  ;;  %v291_v63 = vld [vmem:[%s2795_s28 + $0x198] sm:$0xff]  ;;  %v466_v61 = vmul.f32 %v2788_v2, %v331_v45  ;;  %v726_v62 = vmax.f32 %v598_v41, 0.0  ;;  %v468_v1 = vmul.f32 %v2788_v2, %v333_v49  ;;  %v564_v39 = vadd.f32 %v2800_v3, %v429_v54  ;;  %v302_v45 = vld [vmem:[%s2795_s28 + $0x1f0] sm:$0xff] }
  0x5c   : > { %v788_v7 = vpack.c.bf16 %v683_v57, %v682_v56  ;;  %v426_v15 = vmul.f32 %v2788_v2, %v291_v63  ;;  %v296_v56 = vld [vmem:[%s2795_s28 + $0x1c0] sm:$0xff]  ;;  %v297_v57 = vld [vmem:[%s2795_s28 + $0x1c8] sm:$0xff]  ;;  %v724_v59 = vmax.f32 %v596_v36, 0.0  ;;  %v727_v63 = vmax.f32 %v599_v42, 0.0 }
  0x5d   : > { %v690_v4 = vmax.f32 %v562_v47, 0.0  ;;  %v432_v6 = vmul.f32 %v2788_v2, %v297_v57  ;;  %v601_v10 = vadd.f32 %v2800_v3, %v466_v61  ;;  %v603_v14 = vadd.f32 %v2800_v3, %v468_v1  ;;  %v341_v61 = vld [vmem:[%s2795_s28 + $0x328] sm:$0xff] }
  0x5e   : > { %v561_v31 = vadd.f32 %v2800_v3, %v426_v15  ;;  %v809_v8 = vpack.c.bf16 %v725_v50, %v724_v59  ;;  %v810_v12 = vpack.c.bf16 %v727_v63, %v726_v62  ;;  %v334_v15 = vld [vmem:[%s2795_s28 + $0x2f0] sm:$0xff]  ;;  %v692_v22 = vmax.f32 %v564_v39, 0.0 }
  0x5f   : > { %2665 = vmatmul.mubr.msk.bf16.gmra.mrb[12].mxu1 %vm831_vm1, %v805_v0  ;;  %v467_v0 = vmul.f32 %v2788_v2, %v332_v48  ;;  %v567_v19 = vadd.f32 %v2800_v3, %v432_v6  ;;  %v433_v24 = vmul.f32 %v2788_v2, %v298_v58  ;;  %v729_v29 = vmax.f32 %v601_v10, 0.0 }
  0x60   : > { %2668 = vmatprep.mubr.msk.bf16.mxu1 %vm831_vm1, %v806_v35  ;;  %v689_v52 = vmax.f32 %v561_v31, 0.0  ;;  %v431_v35 = vmul.f32 %v2788_v2, %v296_v56  ;;  %v469_v30 = vmul.f32 %v2788_v2, %v334_v15  ;;  %v470_v31 = vmul.f32 %v2788_v2, %v335_v16  ;;  %v339_v56 = vld [vmem:[%s2795_s28 + $0x318] sm:$0xff] }
  0x61   : > { %v602_v13 = vadd.f32 %v2800_v3, %v467_v0  ;;  %v472_v36 = vmul.f32 %v2788_v2, %v337_v21  ;;  %v568_v42 = vadd.f32 %v2800_v3, %v433_v24  ;;  %v437_v0 = vmul.f32 %v2788_v2, %v302_v45  ;;  %v347_v45 = vld [vmem:[%s2795_s28 + $0x358] sm:$0xff] }
  0x62   : > { %2625 = vmatmul.mubr.msk.bf16.gmra.mrb[36].mxu0 %vm831_vm1, %v785_v27  ;;  %v687_v27 = vmax.f32 %v559_v9, 0.0  ;;  %v600_v9 = vadd.f32 %v2800_v3, %v465_v60  ;;  %v791_v11 = vpack.c.bf16 %v689_v52, %v688_v51  ;;  %v566_v18 = vadd.f32 %v2800_v3, %v431_v35  ;;  %v340_v60 = vld [vmem:[%s2795_s28 + $0x320] sm:$0xff] }
  0x63   : > { %2628 = vmatprep.mubr.msk.bf16.mxu0 %vm831_vm1, %v786_v33  ;;  %v295_v33 = vld [vmem:[%s2795_s28 + $0x1b8] sm:$0xff]  ;;  %v730_v32 = vmax.f32 %v602_v13, 0.0  ;;  %v605_v48 = vadd.f32 %v2800_v3, %v470_v31  ;;  %v607_v54 = vadd.f32 %v2800_v3, %v472_v36  ;;  %v696_v62 = vmax.f32 %v568_v42, 0.0  ;;  %v3183_v31 = vld [vmem:[%s4191_s1] ss:$0 sm:$0xff] }
  0x64   : > { %v790_v46 = vpack.c.bf16 %v687_v27, %v686_v26  ;;  %v430_v55 = vmul.f32 %v2788_v2, %v295_v33  ;;  %v300_v26 = vld [vmem:[%s2795_s28 + $0x1e0] sm:$0xff]  ;;  %v301_v27 = vld [vmem:[%s2795_s28 + $0x1e8] sm:$0xff]  ;;  %v728_v28 = vmax.f32 %v600_v9, 0.0  ;;  %v731_v33 = vmax.f32 %v603_v14, 0.0 }
  0x65   : > { %v694_v37 = vmax.f32 %v566_v18, 0.0  ;;  %v436_v41 = vmul.f32 %v2788_v2, %v301_v27  ;;  %v474_v6 = vmul.f32 %v2788_v2, %v339_v56  ;;  %v475_v58 = vmul.f32 %v2788_v2, %v340_v60 }
  0x66   : > { %v565_v53 = vadd.f32 %v2800_v3, %v430_v55  ;;  %v811_v47 = vpack.c.bf16 %v729_v29, %v728_v28  ;;  %v812_v51 = vpack.c.bf16 %v731_v33, %v730_v32  ;;  %v338_v55 = vld [vmem:[%s2795_s28 + $0x310] sm:$0xff]  ;;  %v572_v10 = vadd.f32 %v2800_v3, %v437_v0  ;;  %v351_v0 = vld [vmem:[%s2795_s28 + $0x378] sm:$0xff] }
  0x67   : > { %2669 = vmatmul.mubr.msk.bf16.gmra.mrb[16].mxu1 %vm831_vm1, %v807_v34  ;;  %v471_v34 = vmul.f32 %v2788_v2, %v336_v20  ;;  %v571_v50 = vadd.f32 %v2800_v3, %v436_v41  ;;  %v473_v35 = vmul.f32 %v2788_v2, %v338_v55  ;;  %v609_v14 = vadd.f32 %v2800_v3, %v474_v6  ;;  %v343_v20 = vld [vmem:[%s2795_s28 + $0x338] sm:$0xff] }
  0x68   : > { %2672 = vmatprep.mubr.msk.bf16.mxu1 %vm831_vm1, %v808_v40  ;;  %v693_v23 = vmax.f32 %v565_v53, 0.0  ;;  %v435_v40 = vmul.f32 %v2788_v2, %v300_v26  ;;  %v735_v53 = vmax.f32 %v607_v54, 0.0  ;;  %v700_v24 = vmax.f32 %v572_v10, 0.0 }
  0x69   : > { %v606_v52 = vadd.f32 %v2800_v3, %v471_v34  ;;  %v699_v9 = vmax.f32 %v571_v50, 0.0  ;;  %v608_v13 = vadd.f32 %v2800_v3, %v473_v35  ;;  %v737_v27 = vmax.f32 %v609_v14, 0.0  ;;  %v3191_v34 = vld [vmem:[%s4192_s2] ss:$0 sm:$0xff] }
  0x6a   : > { %2629 = vmatmul.mubr.msk.bf16.gmra.mrb[40].mxu0 %vm831_vm1, %v787_v5  ;;  %v691_v5 = vmax.f32 %v563_v44, 0.0  ;;  %v604_v44 = vadd.f32 %v2800_v3, %v469_v30  ;;  %v793_v49 = vpack.c.bf16 %v693_v23, %v692_v22  ;;  %v570_v59 = vadd.f32 %v2800_v3, %v435_v40  ;;  %v344_v22 = vld [vmem:[%s2795_s28 + $0x340] sm:$0xff]  ;;  %v345_v23 = vld [vmem:[%s2795_s28 + $0x348] sm:$0xff] }
  0x6b   : > { %2632 = vmatprep.mubr.msk.bf16.mxu0 %vm831_vm1, %v788_v7  ;;  %v299_v7 = vld [vmem:[%s2795_s28 + $0x1d8] sm:$0xff]  ;;  %v734_v39 = vmax.f32 %v606_v52, 0.0  ;;  %v736_v26 = vmax.f32 %v608_v13, 0.0  ;;  %v478_v29 = vmul.f32 %v2788_v2, %v343_v20  ;;  %v479_v32 = vmul.f32 %v3183_v31, %v344_v22 }
  0x6c   : > { %v792_v17 = vpack.c.bf16 %v691_v5, %v690_v4  ;;  %v434_v25 = vmul.f32 %v2788_v2, %v299_v7  ;;  %v732_v4 = vmax.f32 %v604_v44, 0.0  ;;  %v733_v5 = vmax.f32 %v605_v48, 0.0 }
  0x6d   : > { %v476_v7 = vmul.f32 %v2788_v2, %v341_v61  ;;  %v814_v16 = vpack.c.bf16 %v735_v53, %v734_v39  ;;  %v480_v33 = vmul.f32 %v3183_v31, %v345_v23  ;;  %v614_v41 = vadd.f32 %v3191_v34, %v479_v32 }
  0x6e   : > { %v569_v43 = vadd.f32 %v2800_v3, %v434_v25  ;;  %v486_v39 = vmul.f32 %v3183_v31, %v351_v0 }
  0x6f   : > { %2673 = vmatmul.mubr.msk.bf16.gmra.mrb[20].mxu1 %vm831_vm1, %v809_v8  ;;  %v698_v8 = vmax.f32 %v570_v59, 0.0  ;;  %v611_v18 = vadd.f32 %v2800_v3, %v476_v7  ;;  %v615_v42 = vadd.f32 %v3191_v34, %v480_v33  ;;  %v742_v52 = vmax.f32 %v614_v41, 0.0  ;;  %v358_v33 = vld [vmem:[%s2795_s28 + $0x3b0] sm:$0xff] }
  0x70   : > { %2676 = vmatprep.mubr.msk.bf16.mxu1 %vm831_vm1, %v810_v12  ;;  %v697_v63 = vmax.f32 %v569_v43, 0.0  ;;  %v813_v12 = vpack.c.bf16 %v733_v5, %v732_v4  ;;  %v346_v43 = vld [vmem:[%s2795_s28 + $0x350] sm:$0xff]  ;;  %v353_v4 = vld [vmem:[%s2795_s28 + $0x388] sm:$0xff]  ;;  %v493_v41 = vmul.f32 %v3183_v31, %v358_v33 }
  0x71   : > { %v796_v21 = vpack.c.bf16 %v699_v9, %v698_v8  ;;  %v739_v30 = vmax.f32 %v611_v18, 0.0  ;;  %v743_v54 = vmax.f32 %v615_v42, 0.0  ;;  %v488_v8 = vmul.f32 %v3183_v31, %v353_v4  ;;  %v357_v18 = vld [vmem:[%s2795_s28 + $0x3a8] sm:$0xff] }
  0x72   : > { %2633 = vmatmul.mubr.msk.bf16.gmra.mrb[44].mxu0 %vm831_vm1, %v789_v38  ;;  %v695_v38 = vmax.f32 %v567_v19, 0.0  ;;  %v795_v15 = vpack.c.bf16 %v697_v63, %v696_v62  ;;  %v342_v19 = vld [vmem:[%s2795_s28 + $0x330] sm:$0xff] }
  0x73   : > { %2636 = vmatprep.mubr.msk.bf16.mxu0 %vm831_vm1, %v790_v46  ;;  %v303_v46 = vld [vmem:[%s2795_s28 + $0x1f8] sm:$0xff]  ;;  %v477_v28 = vmul.f32 %v2788_v2, %v342_v19  ;;  %v818_v60 = vpack.c.bf16 %v743_v54, %v742_v52  ;;  %v350_v63 = vld [vmem:[%s2795_s28 + $0x370] sm:$0xff]  ;;  %v623_v14 = vadd.f32 %v3191_v34, %v488_v8 }
  0x74   : > { %v794_v57 = vpack.c.bf16 %v695_v38, %v694_v37  ;;  %v438_v1 = vmul.f32 %v2788_v2, %v303_v46  ;;  %v815_v2 = vpack.c.bf16 %v737_v27, %v736_v26  ;;  %v613_v37 = vadd.f32 %v3191_v34, %v478_v29  ;;  %v348_v46 = vld [vmem:[%s2795_s28 + $0x360] sm:$0xff]  ;;  %v367_v8 = vld [vmem:[%s2795_s28 + $0x3f8] sm:$0xff] }
  0x75   : > { %v612_v36 = vadd.f32 %v3191_v34, %v477_v28  ;;  %v483_v55 = vmul.f32 %v3183_v31, %v348_v46  ;;  %v485_v6 = vmul.f32 %v3183_v31, %v350_v63  ;;  %v492_v26 = vmul.f32 %v3183_v31, %v357_v18 }
  0x76   : > { %v741_v48 = vmax.f32 %v613_v37, 0.0  ;;  %v361_v37 = vld [vmem:[%s2795_s28 + $0x3c8] sm:$0xff] }
  0x77   : > { %2677 = vmatmul.mubr.msk.bf16.gmra.mrb[24].mxu1 %vm831_vm1, %v811_v47  ;;  %v349_v47 = vld [vmem:[%s2795_s28 + $0x368] sm:$0xff]  ;;  %v740_v44 = vmax.f32 %v612_v36, 0.0  ;;  %v618_v61 = vadd.f32 %v3191_v34, %v483_v55  ;;  %v620_v10 = vadd.f32 %v3191_v34, %v485_v6  ;;  %v627_v32 = vadd.f32 %v3191_v34, %v492_v26  ;;  %v360_v36 = vld [vmem:[%s2795_s28 + $0x3c0] sm:$0xff]  ;;  %v362_v55 = vld [vmem:[%s2795_s28 + $0x3d0] sm:$0xff] }
  0x78   : > { %2680 = vmatprep.mubr.msk.bf16.mxu1 %vm831_vm1, %v812_v51  ;;  %v482_v51 = vmul.f32 %v3183_v31, %v347_v45  ;;  %v484_v56 = vmul.f32 %v3183_v31, %v349_v47  ;;  %v495_v46 = vmul.f32 %v3183_v31, %v360_v36  ;;  %v496_v47 = vmul.f32 %v3183_v31, %v361_v37 }
  0x79   : > { %v746_v53 = vmax.f32 %v618_v61, 0.0  ;;  %v748_v19 = vmax.f32 %v620_v10, 0.0  ;;  %v755_v45 = vmax.f32 %v627_v32, 0.0  ;;  %v497_v61 = vmul.f32 %v3183_v31, %v362_v55 }
  0x7a   : > { %2637 = vmatmul.mubr.msk.bf16.gmra.mrb[48].mxu0 %vm831_vm1, %v791_v11  ;;  %v573_v11 = vadd.f32 %v2800_v3, %v438_v1  ;;  %v617_v50 = vadd.f32 %v3191_v34, %v482_v51  ;;  %v619_v62 = vadd.f32 %v3191_v34, %v484_v56  ;;  %v352_v1 = vld [vmem:[%s2795_s28 + $0x380] sm:$0xff]  ;;  %v630_v52 = vadd.f32 %v3191_v34, %v495_v46  ;;  %v363_v56 = vld [vmem:[%s2795_s28 + $0x3d8] sm:$0xff] }
  0x7b   : > { %2640 = vmatprep.mubr.msk.bf16.mxu0 %vm831_vm1, %v792_v17  ;;  %v610_v17 = vadd.f32 %v2800_v3, %v475_v58  ;;  %v487_v7 = vmul.f32 %v3183_v31, %v352_v1  ;;  %v631_v54 = vadd.f32 %v3191_v34, %v496_v47 }
  0x7c   : > { %v701_v25 = vmax.f32 %v573_v11, 0.0  ;;  %v745_v35 = vmax.f32 %v617_v50, 0.0  ;;  %v747_v58 = vmax.f32 %v619_v62, 0.0  ;;  %v621_v11 = vadd.f32 %v3191_v34, %v486_v39 }
  0x7d   : > { %v738_v3 = vmax.f32 %v610_v17, 0.0  ;;  %v622_v13 = vadd.f32 %v3191_v34, %v487_v7  ;;  %v356_v17 = vld [vmem:[%s2795_s28 + $0x3a0] sm:$0xff]  ;;  %v498_v62 = vmul.f32 %v3183_v31, %v363_v56  ;;  %v758_v63 = vmax.f32 %v630_v52, 0.0  ;;  %v366_v7 = vld [vmem:[%s2795_s28 + $0x3f0] sm:$0xff] }
  0x7e   : > { %v797_v38 = vpack.c.bf16 %v701_v25, %v700_v24  ;;  %v749_v20 = vmax.f32 %v621_v11, 0.0  ;;  %v751_v24 = vmax.f32 %v623_v14, 0.0  ;;  %v491_v25 = vmul.f32 %v3183_v31, %v356_v17 }
  0x7f   : > { %2681 = vmatmul.mubr.msk.bf16.gmra.mrb[28].mxu1 %vm831_vm1, %v813_v12  ;;  %v816_v40 = vpack.c.bf16 %v739_v30, %v738_v3  ;;  %v820_v12 = vpack.c.bf16 %v747_v58, %v746_v53  ;;  %v750_v23 = vmax.f32 %v622_v13, 0.0  ;;  %v759_v0 = vmax.f32 %v631_v54, 0.0 }
  0x80   : > { %2684 = vmatprep.mubr.msk.bf16.mxu1 %vm831_vm1, %v814_v16  ;;  %v355_v16 = vld [vmem:[%s2795_s28 + $0x398] sm:$0xff]  ;;  %v821_v27 = vpack.c.bf16 %v749_v20, %v748_v19  ;;  %v626_v30 = vadd.f32 %v3191_v34, %v491_v25  ;;  %v633_v6 = vadd.f32 %v3191_v34, %v498_v62  ;;  %v501_v11 = vmul.f32 %v3183_v31, %v366_v7 }
  0x81   : > { %v490_v22 = vmul.f32 %v3183_v31, %v355_v16  ;;  %v822_v3 = vpack.c.bf16 %v751_v24, %v750_v23  ;;  %v826_v39 = vpack.c.bf16 %v759_v0, %v758_v63 }
  0x82   : > { %2641 = vmatmul.mubr.msk.bf16.gmra.mrb[52].mxu0 %vm831_vm1, %v793_v49  ;;  %v481_v49 = vmul.f32 %v3183_v31, %v346_v43  ;;  %v754_v43 = vmax.f32 %v626_v30, 0.0  ;;  %v761_v10 = vmax.f32 %v633_v6, 0.0  ;;  %v636_v16 = vadd.f32 %v3191_v34, %v501_v11 }
  0x83   : > { %2644 = vmatprep.mubr.msk.bf16.mxu0 %vm831_vm1, %v794_v57  ;;  %v817_v57 = vpack.c.bf16 %v741_v48, %v740_v44  ;;  %v625_v29 = vadd.f32 %v3191_v34, %v490_v22  ;;  %v628_v48 = vadd.f32 %v3191_v34, %v493_v41 }
  0x84   : > { %v616_v59 = vadd.f32 %v3191_v34, %v481_v49  ;;  %v824_v51 = vpack.c.bf16 %v755_v45, %v754_v43  ;;  %v764_v19 = vmax.f32 %v636_v16, 0.0 }
  0x85   : > { %v756_v50 = vmax.f32 %v628_v48, 0.0 }
  0x86   : > { %v744_v5 = vmax.f32 %v616_v59, 0.0  ;;  %v365_v59 = vld [vmem:[%s2795_s28 + $0x3e8] sm:$0xff] }
  0x87   : > { %2685 = vmatmul.mubr.msk.bf16.gmra.mrb[32].mxu1 %vm831_vm1, %v815_v2  ;;  %v359_v2 = vld [vmem:[%s2795_s28 + $0x3b8] sm:$0xff]  ;;  %v500_v4 = vmul.f32 %v3183_v31, %v365_v59 }
  0x88   : > { %2688 = vmatprep.mubr.msk.bf16.mxu1 %vm831_vm1, %v816_v40  ;;  %v819_v9 = vpack.c.bf16 %v745_v35, %v744_v5  ;;  %v753_v40 = vmax.f32 %v625_v29, 0.0  ;;  %v494_v42 = vmul.f32 %v3183_v31, %v359_v2  ;;  %v632_v35 = vadd.f32 %v3191_v34, %v497_v61 }
  0x89   : > { %v635_v58 = vadd.f32 %v3191_v34, %v500_v4 }
  0x8a   : > { %2645 = vmatmul.mubr.msk.bf16.gmra.mrb[56].mxu0 %vm831_vm1, %v795_v15  ;;  %v354_v15 = vld [vmem:[%s2795_s28 + $0x390] sm:$0xff]  ;;  %v629_v49 = vadd.f32 %v3191_v34, %v494_v42 }
  0x8b   : > { %2648 = vmatprep.mubr.msk.bf16.mxu0 %vm831_vm1, %v796_v21  ;;  %v489_v21 = vmul.f32 %v3183_v31, %v354_v15  ;;  %v763_v14 = vmax.f32 %v635_v58, 0.0 }
  0x8d   : > { %v624_v28 = vadd.f32 %v3191_v34, %v489_v21 }
  0x8f   : > { %2689 = vmatmul.mubr.msk.bf16.gmra.mrb[36].mxu1 %vm831_vm1, %v817_v57  ;;  %v364_v57 = vld [vmem:[%s2795_s28 + $0x3e0] sm:$0xff] }
  0x90   : > { %2692 = vmatprep.mubr.msk.bf16.mxu1 %vm831_vm1, %v818_v60  ;;  %v757_v60 = vmax.f32 %v629_v49, 0.0  ;;  %v499_v1 = vmul.f32 %v3183_v31, %v364_v57 }
  0x92   : > { %2649 = vmatmul.mubr.msk.bf16.gmra.mrb[60].mxu0 %vm831_vm1, %v797_v38  ;;  %v752_v38 = vmax.f32 %v624_v28, 0.0  ;;  %v825_v5 = vpack.c.bf16 %v757_v60, %v756_v50  ;;  %v634_v53 = vadd.f32 %v3191_v34, %v499_v1 }
  0x94   : > { %v823_v44 = vpack.c.bf16 %v753_v40, %v752_v38  ;;  %v762_v13 = vmax.f32 %v634_v53, 0.0 }
  0x96   : > { %v828_v18 = vpack.c.bf16 %v763_v14, %v762_v13 }
  0x97   : > { %2693 = vmatmul.mubr.msk.bf16.gmra.mrb[40].mxu1 %vm831_vm1, %v819_v9  ;;  %v760_v9 = vmax.f32 %v632_v35, 0.0 }
  0x98   : > { %2696 = vmatprep.mubr.msk.bf16.mxu1 %vm831_vm1, %v820_v12  ;;  %v502_v12 = vmul.f32 %v3183_v31, %v367_v8 }
  0x99   : > { %v827_v15 = vpack.c.bf16 %v761_v10, %v760_v9 }
  0x9a   : > { %v637_v17 = vadd.f32 %v3191_v34, %v502_v12 }
  0x9c   : > { %v765_v20 = vmax.f32 %v637_v17, 0.0 }
  0x9e   : > { %v829_v21 = vpack.c.bf16 %v765_v20, %v764_v19 }
  0x9f   : > { %2697 = vmatmul.mubr.msk.bf16.gmra.mrb[44].mxu1 %vm831_vm1, %v821_v27 }
  0xa0   : > { %2700 = vmatprep.mubr.msk.bf16.mxu1 %vm831_vm1, %v822_v3 }
  0xa7   : > { %2701 = vmatmul.mubr.msk.bf16.gmra.mrb[48].mxu1 %vm831_vm1, %v823_v44 }
  0xa8   : > { %2704 = vmatprep.mubr.msk.bf16.mxu1 %vm831_vm1, %v824_v51 }
  0xaf   : > { %2705 = vmatmul.mubr.msk.bf16.gmra.mrb[52].mxu1 %vm831_vm1, %v825_v5 }
  0xb0   : > { %2708 = vmatprep.mubr.msk.bf16.mxu1 %vm831_vm1, %v826_v39 }
  0xb7   : > { %2709 = vmatmul.mubr.msk.bf16.gmra.mrb[56].mxu1 %vm831_vm1, %v827_v15 }
  0xb8   : > { %2712 = vmatprep.mubr.msk.bf16.mxu1 %vm831_vm1, %v828_v18 }
  0xbf   : > { %2713 = vmatmul.mubr.msk.bf16.gmra.mrb[60].mxu1 %vm831_vm1, %v829_v21 }
  0xed   : > { %v2590_v31 = vpop.f32.mrb[0].mxu0 }
  0xee   : > { %1576 = vst.msk [vmem:[%s3284_s12 + $0x10] sm:$0xff] %vm1573_vm2, %v2590_v31  ;;  %v1062_v34 = vpop.f32.mrb[1].mxu0  ;;  %v1965_v25 = vmul.f32 %v2590_v31, %v2590_v31  ;;  %v1705_v3 = vsel %vm1573_vm2, %v2590_v31, 0.0 }
  0xef   : > { %1574 = vst.msk [vmem:[%s3284_s12] sm:$0xff] %vm1573_vm2, %v1062_v34  ;;  %v1963_v22 = vmul.f32 %v1062_v34, %v1062_v34  ;;  %v2591_v23 = vpop.f32.mrb[2].mxu0  ;;  %v1702_v26 = vsel %vm1573_vm2, %v1062_v34, 0.0 }
  0xf0   : > { %1577 = vst.msk [vmem:[%s3284_s12 + $0x18] sm:$0xff] %vm1573_vm2, %v2591_v23  ;;  %v1065_v24 = vpop.f32.mrb[3].mxu0  ;;  %v1966_v32 = vmul.f32 %v2591_v23, %v2591_v23  ;;  %v2094_v37 = vsel %vm1573_vm2, %v1965_v25, 0.0  ;;  %v1707_v38 = vsel %vm1573_vm2, %v2591_v23, 0.0 }
  0xf1   : > { %1575 = vst.msk [vmem:[%s3284_s12 + $0x8] sm:$0xff] %vm1573_vm2, %v1065_v24  ;;  %v1703_v27 = vsel %vm1573_vm2, %v1065_v24, 0.0  ;;  %v1964_v28 = vmul.f32 %v1065_v24, %v1065_v24  ;;  %v2091_v30 = vsel %vm1573_vm2, %v1963_v22, 0.0 }
  0xf2   : > { %v1704_v29 = vadd.f32 %v1703_v27, %v1702_v26  ;;  %v2096_v45 = vsel %vm1573_vm2, %v1966_v32, 0.0 }
  0xf3   : > { %v2092_v33 = vsel %vm1573_vm2, %v1964_v28, 0.0 }
  0xf4   : > { %v1706_v2 = vadd.f32 %v1705_v3, %v1704_v29  ;;  %v2093_v36 = vadd.f32 %v2092_v33, %v2091_v30 }
  0xf5   : > { %v2594_v40 = vpop.f32.mrb[4].mxu0 }
  0xf6   : > { %v2095_v41 = vadd.f32 %v2094_v37, %v2093_v36  ;;  %1580 = vst.msk [vmem:[%s3284_s12 + $0x30] sm:$0xff] %vm1573_vm2, %v2594_v40  ;;  %v1078_v42 = vpop.f32.mrb[5].mxu0  ;;  %v1708_v43 = vadd.f32 %v1707_v38, %v1706_v2  ;;  %v1969_v52 = vmul.f32 %v2594_v40, %v2594_v40  ;;  %v1713_v50 = vsel %vm1573_vm2, %v2594_v40, 0.0 }
  0xf7   : > { %1578 = vst.msk [vmem:[%s3284_s12 + $0x20] sm:$0xff] %vm1573_vm2, %v1078_v42  ;;  %v1709_v46 = vsel %vm1573_vm2, %v1078_v42, 0.0  ;;  %v1967_v47 = vmul.f32 %v1078_v42, %v1078_v42  ;;  %v2595_v44 = vpop.f32.mrb[6].mxu0 }
  0xf8   : > { %v1710_v48 = vadd.f32 %v1709_v46, %v1708_v43  ;;  %v2097_v49 = vadd.f32 %v2096_v45, %v2095_v41  ;;  %1581 = vst.msk [vmem:[%s3284_s12 + $0x38] sm:$0xff] %vm1573_vm2, %v2595_v44  ;;  %v1081_v51 = vpop.f32.mrb[7].mxu0  ;;  %v1970_v60 = vmul.f32 %v2595_v44, %v2595_v44  ;;  %v2102_v0 = vsel %vm1573_vm2, %v1969_v52, 0.0 }
  0xf9   : > { %v2098_v54 = vsel %vm1573_vm2, %v1967_v47, 0.0  ;;  %1579 = vst.msk [vmem:[%s3284_s12 + $0x28] sm:$0xff] %vm1573_vm2, %v1081_v51  ;;  %v1711_v55 = vsel %vm1573_vm2, %v1081_v51, 0.0  ;;  %v1968_v56 = vmul.f32 %v1081_v51, %v1081_v51  ;;  %v1715_v1 = vsel %vm1573_vm2, %v2595_v44, 0.0 }
  0xfa   : > { %v2099_v57 = vadd.f32 %v2098_v54, %v2097_v49  ;;  %v1712_v59 = vadd.f32 %v1711_v55, %v1710_v48  ;;  %v2104_v39 = vsel %vm1573_vm2, %v1970_v60, 0.0 }
  0xfb   : > { %v2100_v61 = vsel %vm1573_vm2, %v1968_v56, 0.0 }
  0xfc   : > { %v1714_v62 = vadd.f32 %v1713_v50, %v1712_v59  ;;  %v2101_v63 = vadd.f32 %v2100_v61, %v2099_v57 }
  0xfd   : > { %v2598_v4 = vpop.f32.mrb[8].mxu0 }
  0xfe   : > { %v2103_v5 = vadd.f32 %v2102_v0, %v2101_v63  ;;  %1584 = vst.msk [vmem:[%s3284_s12 + $0x50] sm:$0xff] %vm1573_vm2, %v2598_v4  ;;  %v1094_v35 = vpop.f32.mrb[9].mxu0  ;;  %v1716_v6 = vadd.f32 %v1715_v1, %v1714_v62  ;;  %v1973_v11 = vmul.f32 %v2598_v4, %v2598_v4  ;;  %v1721_v17 = vsel %vm1573_vm2, %v2598_v4, 0.0 }
  0xff   : > { %1582 = vst.msk [vmem:[%s3284_s12 + $0x40] sm:$0xff] %vm1573_vm2, %v1094_v35  ;;  %v1717_v53 = vsel %vm1573_vm2, %v1094_v35, 0.0  ;;  %v1971_v58 = vmul.f32 %v1094_v35, %v1094_v35  ;;  %v2599_v7 = vpop.f32.mrb[10].mxu0 }
 0x100   : > { %v1718_v8 = vadd.f32 %v1717_v53, %v1716_v6  ;;  %v2105_v9 = vadd.f32 %v2104_v39, %v2103_v5  ;;  %1585 = vst.msk [vmem:[%s3284_s12 + $0x58] sm:$0xff] %vm1573_vm2, %v2599_v7  ;;  %v1097_v10 = vpop.f32.mrb[11].mxu0  ;;  %v1974_v18 = vmul.f32 %v2599_v7, %v2599_v7  ;;  %v2110_v31 = vsel %vm1573_vm2, %v1973_v11, 0.0 }
 0x101   : > { %v2106_v12 = vsel %vm1573_vm2, %v1971_v58, 0.0  ;;  %1583 = vst.msk [vmem:[%s3284_s12 + $0x48] sm:$0xff] %vm1573_vm2, %v1097_v10  ;;  %v1719_v13 = vsel %vm1573_vm2, %v1097_v10, 0.0  ;;  %v1972_v14 = vmul.f32 %v1097_v10, %v1097_v10  ;;  %v1723_v34 = vsel %vm1573_vm2, %v2599_v7, 0.0 }
 0x102   : > { %v2107_v15 = vadd.f32 %v2106_v12, %v2105_v9  ;;  %v1720_v16 = vadd.f32 %v1719_v13, %v1718_v8  ;;  %v2112_v26 = vsel %vm1573_vm2, %v1974_v18, 0.0 }
 0x103   : > { %v2108_v19 = vsel %vm1573_vm2, %v1972_v14, 0.0 }
 0x104   : > { %v1722_v20 = vadd.f32 %v1721_v17, %v1720_v16  ;;  %v2109_v21 = vadd.f32 %v2108_v19, %v2107_v15 }
 0x105   : > { %v2602_v22 = vpop.f32.mrb[12].mxu0 }
 0x106   : > { %v2111_v23 = vadd.f32 %v2110_v31, %v2109_v21  ;;  %1588 = vst.msk [vmem:[%s3284_s12 + $0x70] sm:$0xff] %vm1573_vm2, %v2602_v22  ;;  %v1110_v24 = vpop.f32.mrb[13].mxu0  ;;  %v1724_v25 = vadd.f32 %v1723_v34, %v1722_v20  ;;  %v1977_v33 = vmul.f32 %v2602_v22, %v2602_v22  ;;  %v1729_v41 = vsel %vm1573_vm2, %v2602_v22, 0.0 }
 0x107   : > { %1586 = vst.msk [vmem:[%s3284_s12 + $0x60] sm:$0xff] %vm1573_vm2, %v1110_v24  ;;  %v1725_v27 = vsel %vm1573_vm2, %v1110_v24, 0.0  ;;  %v1975_v28 = vmul.f32 %v1110_v24, %v1110_v24  ;;  %v2603_v29 = vpop.f32.mrb[14].mxu0 }
 0x108   : > { %v1726_v3 = vadd.f32 %v1725_v27, %v1724_v25  ;;  %v2113_v30 = vadd.f32 %v2112_v26, %v2111_v23  ;;  %1589 = vst.msk [vmem:[%s3284_s12 + $0x78] sm:$0xff] %vm1573_vm2, %v2603_v29  ;;  %v1113_v32 = vpop.f32.mrb[15].mxu0  ;;  %v1978_v42 = vmul.f32 %v2603_v29, %v2603_v29  ;;  %v2118_v47 = vsel %vm1573_vm2, %v1977_v33, 0.0 }
 0x109   : > { %v2114_v2 = vsel %vm1573_vm2, %v1975_v28, 0.0  ;;  %1587 = vst.msk [vmem:[%s3284_s12 + $0x68] sm:$0xff] %vm1573_vm2, %v1113_v32  ;;  %v1727_v36 = vsel %vm1573_vm2, %v1113_v32, 0.0  ;;  %v1976_v37 = vmul.f32 %v1113_v32, %v1113_v32  ;;  %v1731_v44 = vsel %vm1573_vm2, %v2603_v29, 0.0 }
 0x10a   : > { %v2115_v38 = vadd.f32 %v2114_v2, %v2113_v30  ;;  %v1728_v40 = vadd.f32 %v1727_v36, %v1726_v3  ;;  %v2120_v54 = vsel %vm1573_vm2, %v1978_v42, 0.0 }
 0x10b   : > { %v2116_v43 = vsel %vm1573_vm2, %v1976_v37, 0.0 }
 0x10c   : > { %v1730_v45 = vadd.f32 %v1729_v41, %v1728_v40  ;;  %v2117_v46 = vadd.f32 %v2116_v43, %v2115_v38 }
 0x10d   : > { %v2606_v48 = vpop.f32.mrb[16].mxu0 }
 0x10e   : > { %v2119_v49 = vadd.f32 %v2118_v47, %v2117_v46  ;;  %1592 = vst.msk [vmem:[%s3284_s12 + $0x90] sm:$0xff] %vm1573_vm2, %v2606_v48  ;;  %v1126_v51 = vpop.f32.mrb[17].mxu0  ;;  %v1732_v52 = vadd.f32 %v1731_v44, %v1730_v45  ;;  %v1981_v61 = vmul.f32 %v2606_v48, %v2606_v48  ;;  %v1737_v5 = vsel %vm1573_vm2, %v2606_v48, 0.0 }
 0x10f   : > { %1590 = vst.msk [vmem:[%s3284_s12 + $0x80] sm:$0xff] %vm1573_vm2, %v1126_v51  ;;  %v1733_v55 = vsel %vm1573_vm2, %v1126_v51, 0.0  ;;  %v1979_v56 = vmul.f32 %v1126_v51, %v1126_v51  ;;  %v2607_v57 = vpop.f32.mrb[18].mxu0 }
 0x110   : > { %v1734_v59 = vadd.f32 %v1733_v55, %v1732_v52  ;;  %v2121_v50 = vadd.f32 %v2120_v54, %v2119_v49  ;;  %1593 = vst.msk [vmem:[%s3284_s12 + $0x98] sm:$0xff] %vm1573_vm2, %v2607_v57  ;;  %v1129_v60 = vpop.f32.mrb[19].mxu0  ;;  %v1982_v35 = vmul.f32 %v2607_v57, %v2607_v57  ;;  %v2126_v58 = vsel %vm1573_vm2, %v1981_v61, 0.0 }
 0x111   : > { %v2122_v62 = vsel %vm1573_vm2, %v1979_v56, 0.0  ;;  %1591 = vst.msk [vmem:[%s3284_s12 + $0x88] sm:$0xff] %vm1573_vm2, %v1129_v60  ;;  %v1735_v63 = vsel %vm1573_vm2, %v1129_v60, 0.0  ;;  %v1980_v0 = vmul.f32 %v1129_v60, %v1129_v60  ;;  %v1739_v7 = vsel %vm1573_vm2, %v2607_v57, 0.0 }
 0x112   : > { %v2123_v1 = vadd.f32 %v2122_v62, %v2121_v50  ;;  %v1736_v4 = vadd.f32 %v1735_v63, %v1734_v59  ;;  %v2128_v12 = vsel %vm1573_vm2, %v1982_v35, 0.0 }
 0x113   : > { %v2124_v6 = vsel %vm1573_vm2, %v1980_v0, 0.0 }
 0x114   : > { %v1738_v39 = vadd.f32 %v1737_v5, %v1736_v4  ;;  %v2125_v53 = vadd.f32 %v2124_v6, %v2123_v1 }
 0x115   : > { %v2610_v8 = vpop.f32.mrb[20].mxu0 }
 0x116   : > { %v2127_v9 = vadd.f32 %v2126_v58, %v2125_v53  ;;  %1596 = vst.msk [vmem:[%s3284_s12 + $0xb0] sm:$0xff] %vm1573_vm2, %v2610_v8  ;;  %v1142_v10 = vpop.f32.mrb[21].mxu0  ;;  %v1740_v11 = vadd.f32 %v1739_v7, %v1738_v39  ;;  %v1985_v19 = vmul.f32 %v2610_v8, %v2610_v8  ;;  %v1745_v23 = vsel %vm1573_vm2, %v2610_v8, 0.0 }
 0x117   : > { %1594 = vst.msk [vmem:[%s3284_s12 + $0xa0] sm:$0xff] %vm1573_vm2, %v1142_v10  ;;  %v1741_v13 = vsel %vm1573_vm2, %v1142_v10, 0.0  ;;  %v1983_v14 = vmul.f32 %v1142_v10, %v1142_v10  ;;  %v2611_v15 = vpop.f32.mrb[22].mxu0  ;;  %v3395_v56 = vpop.f32.mrb[0].mxu1 }
 0x118   : > { %v1742_v16 = vadd.f32 %v1741_v13, %v1740_v11  ;;  %v2129_v17 = vadd.f32 %v2128_v12, %v2127_v9  ;;  %1597 = vst.msk [vmem:[%s3284_s12 + $0xb8] sm:$0xff] %vm1573_vm2, %v2611_v15  ;;  %v1145_v18 = vpop.f32.mrb[23].mxu0  ;;  %v1986_v24 = vmul.f32 %v2611_v15, %v2611_v15  ;;  %v2134_v28 = vsel %vm1573_vm2, %v1985_v19, 0.0  ;;  %1640 = vst.msk [vmem:[%s3284_s12 + $0x210] sm:$0xff] %vm1573_vm2, %v3395_v56  ;;  %v3402_v60 = vpop.f32.mrb[1].mxu1 }
 0x119   : > { %v2130_v20 = vsel %vm1573_vm2, %v1983_v14, 0.0  ;;  %1595 = vst.msk [vmem:[%s3284_s12 + $0xa8] sm:$0xff] %vm1573_vm2, %v1145_v18  ;;  %v1743_v21 = vsel %vm1573_vm2, %v1145_v18, 0.0  ;;  %v1984_v31 = vmul.f32 %v1145_v18, %v1145_v18  ;;  %v1747_v29 = vsel %vm1573_vm2, %v2611_v15, 0.0  ;;  %1638 = vst.msk [vmem:[%s3284_s12 + $0x200] sm:$0xff] %vm1573_vm2, %v3402_v60  ;;  %v3409_v0 = vpop.f32.mrb[2].mxu1 }
 0x11a   : > { %v2131_v34 = vadd.f32 %v2130_v20, %v2129_v17  ;;  %v1744_v22 = vadd.f32 %v1743_v21, %v1742_v16  ;;  %v2136_v2 = vsel %vm1573_vm2, %v1986_v24, 0.0  ;;  %1641 = vst.msk [vmem:[%s3284_s12 + $0x218] sm:$0xff] %vm1573_vm2, %v3409_v0  ;;  %v3418_v6 = vpop.f32.mrb[3].mxu1 }
 0x11b   : > { %v2132_v25 = vsel %vm1573_vm2, %v1984_v31, 0.0  ;;  %1639 = vst.msk [vmem:[%s3284_s12 + $0x208] sm:$0xff] %vm1573_vm2, %v3418_v6 }
 0x11c   : > { %v1746_v26 = vadd.f32 %v1745_v23, %v1744_v22  ;;  %v2133_v27 = vadd.f32 %v2132_v25, %v2131_v34 }
 0x11d   : > { %v2614_v3 = vpop.f32.mrb[24].mxu0 }
 0x11e   : > { %v2135_v30 = vadd.f32 %v2134_v28, %v2133_v27  ;;  %1600 = vst.msk [vmem:[%s3284_s12 + $0xd0] sm:$0xff] %vm1573_vm2, %v2614_v3  ;;  %v1158_v32 = vpop.f32.mrb[25].mxu0  ;;  %v1748_v33 = vadd.f32 %v1747_v29, %v1746_v26  ;;  %v1989_v43 = vmul.f32 %v2614_v3, %v2614_v3  ;;  %v1753_v49 = vsel %vm1573_vm2, %v2614_v3, 0.0 }
 0x11f   : > { %1598 = vst.msk [vmem:[%s3284_s12 + $0xc0] sm:$0xff] %vm1573_vm2, %v1158_v32  ;;  %v1749_v36 = vsel %vm1573_vm2, %v1158_v32, 0.0  ;;  %v1987_v37 = vmul.f32 %v1158_v32, %v1158_v32  ;;  %v2615_v38 = vpop.f32.mrb[26].mxu0  ;;  %v3431_v18 = vpop.f32.mrb[4].mxu1 }
 0x120   : > { %v1750_v40 = vadd.f32 %v1749_v36, %v1748_v33  ;;  %v2137_v41 = vadd.f32 %v2136_v2, %v2135_v30  ;;  %1601 = vst.msk [vmem:[%s3284_s12 + $0xd8] sm:$0xff] %vm1573_vm2, %v2615_v38  ;;  %v1161_v42 = vpop.f32.mrb[27].mxu0  ;;  %v1990_v51 = vmul.f32 %v2615_v38, %v2615_v38  ;;  %v2142_v57 = vsel %vm1573_vm2, %v1989_v43, 0.0  ;;  %1644 = vst.msk [vmem:[%s3284_s12 + $0x230] sm:$0xff] %vm1573_vm2, %v3431_v18  ;;  %v3438_v31 = vpop.f32.mrb[5].mxu1 }
 0x121   : > { %v2138_v45 = vsel %vm1573_vm2, %v1987_v37, 0.0  ;;  %1599 = vst.msk [vmem:[%s3284_s12 + $0xc8] sm:$0xff] %vm1573_vm2, %v1161_v42  ;;  %v1751_v46 = vsel %vm1573_vm2, %v1161_v42, 0.0  ;;  %v1988_v47 = vmul.f32 %v1161_v42, %v1161_v42  ;;  %v1755_v59 = vsel %vm1573_vm2, %v2615_v38, 0.0  ;;  %1642 = vst.msk [vmem:[%s3284_s12 + $0x220] sm:$0xff] %vm1573_vm2, %v3438_v31  ;;  %v3445_v24 = vpop.f32.mrb[6].mxu1 }
 0x122   : > { %v2139_v44 = vadd.f32 %v2138_v45, %v2137_v41  ;;  %v1752_v48 = vadd.f32 %v1751_v46, %v1750_v40  ;;  %v2144_v1 = vsel %vm1573_vm2, %v1990_v51, 0.0  ;;  %1645 = vst.msk [vmem:[%s3284_s12 + $0x238] sm:$0xff] %vm1573_vm2, %v3445_v24  ;;  %v3454_v29 = vpop.f32.mrb[7].mxu1 }
 0x123   : > { %v2140_v52 = vsel %vm1573_vm2, %v1988_v47, 0.0  ;;  %1643 = vst.msk [vmem:[%s3284_s12 + $0x228] sm:$0xff] %vm1573_vm2, %v3454_v29 }
 0x124   : > { %v1754_v54 = vadd.f32 %v1753_v49, %v1752_v48  ;;  %v2141_v55 = vadd.f32 %v2140_v52, %v2139_v44 }
 0x125   : > { %v2618_v50 = vpop.f32.mrb[28].mxu0 }
 0x126   : > { %v2143_v61 = vadd.f32 %v2142_v57, %v2141_v55  ;;  %1604 = vst.msk [vmem:[%s3284_s12 + $0xf0] sm:$0xff] %vm1573_vm2, %v2618_v50  ;;  %v1174_v62 = vpop.f32.mrb[29].mxu0  ;;  %v1756_v63 = vadd.f32 %v1755_v59, %v1754_v54  ;;  %v1993_v7 = vmul.f32 %v2618_v50, %v2618_v50  ;;  %v1761_v13 = vsel %vm1573_vm2, %v2618_v50, 0.0 }
 0x127   : > { %1602 = vst.msk [vmem:[%s3284_s12 + $0xe0] sm:$0xff] %vm1573_vm2, %v1174_v62  ;;  %v1757_v4 = vsel %vm1573_vm2, %v1174_v62, 0.0  ;;  %v1991_v5 = vmul.f32 %v1174_v62, %v1174_v62  ;;  %v2619_v35 = vpop.f32.mrb[30].mxu0 }
 0x128   : > { %v1758_v39 = vadd.f32 %v1757_v4, %v1756_v63  ;;  %v2145_v53 = vadd.f32 %v2144_v1, %v2143_v61  ;;  %1605 = vst.msk [vmem:[%s3284_s12 + $0xf8] sm:$0xff] %vm1573_vm2, %v2619_v35  ;;  %v1177_v58 = vpop.f32.mrb[31].mxu0  ;;  %v1994_v14 = vmul.f32 %v2619_v35, %v2619_v35  ;;  %v2150_v19 = vsel %vm1573_vm2, %v1993_v7, 0.0 }
 0x129   : > { %v2146_v8 = vsel %vm1573_vm2, %v1991_v5, 0.0  ;;  %1603 = vst.msk [vmem:[%s3284_s12 + $0xe8] sm:$0xff] %vm1573_vm2, %v1177_v58  ;;  %v1759_v9 = vsel %vm1573_vm2, %v1177_v58, 0.0  ;;  %v1992_v10 = vmul.f32 %v1177_v58, %v1177_v58  ;;  %v1763_v20 = vsel %vm1573_vm2, %v2619_v35, 0.0 }
 0x12a   : > { %v2147_v11 = vadd.f32 %v2146_v8, %v2145_v53  ;;  %v1760_v12 = vadd.f32 %v1759_v9, %v1758_v39  ;;  %v2152_v25 = vsel %vm1573_vm2, %v1994_v14, 0.0  ;;  %v3467_v47 = vpop.f32.mrb[8].mxu1 }
 0x12b   : > { %v2148_v15 = vsel %vm1573_vm2, %v1992_v10, 0.0  ;;  %1648 = vst.msk [vmem:[%s3284_s12 + $0x250] sm:$0xff] %vm1573_vm2, %v3467_v47  ;;  %v3474_v51 = vpop.f32.mrb[9].mxu1 }
 0x12c   : > { %v1762_v16 = vadd.f32 %v1761_v13, %v1760_v12  ;;  %v2149_v17 = vadd.f32 %v2148_v15, %v2147_v11  ;;  %1646 = vst.msk [vmem:[%s3284_s12 + $0x240] sm:$0xff] %vm1573_vm2, %v3474_v51  ;;  %v3481_v57 = vpop.f32.mrb[10].mxu1 }
 0x12d   : > { %v2622_v21 = vpop.f32.mrb[32].mxu0  ;;  %1649 = vst.msk [vmem:[%s3284_s12 + $0x258] sm:$0xff] %vm1573_vm2, %v3481_v57  ;;  %v3490_v63 = vpop.f32.mrb[11].mxu1 }
 0x12e   : > { %v2151_v34 = vadd.f32 %v2150_v19, %v2149_v17  ;;  %1608 = vst.msk [vmem:[%s3284_s12 + $0x110] sm:$0xff] %vm1573_vm2, %v2622_v21  ;;  %v1190_v22 = vpop.f32.mrb[33].mxu0  ;;  %v1764_v23 = vadd.f32 %v1763_v20, %v1762_v16  ;;  %v1997_v33 = vmul.f32 %v2622_v21, %v2622_v21  ;;  %v1769_v41 = vsel %vm1573_vm2, %v2622_v21, 0.0  ;;  %1647 = vst.msk [vmem:[%s3284_s12 + $0x248] sm:$0xff] %vm1573_vm2, %v3490_v63 }
 0x12f   : > { %1606 = vst.msk [vmem:[%s3284_s12 + $0x100] sm:$0xff] %vm1573_vm2, %v1190_v22  ;;  %v1765_v26 = vsel %vm1573_vm2, %v1190_v22, 0.0  ;;  %v1995_v27 = vmul.f32 %v1190_v22, %v1190_v22  ;;  %v2623_v28 = vpop.f32.mrb[34].mxu0 }
 0x130   : > { %v1766_v3 = vadd.f32 %v1765_v26, %v1764_v23  ;;  %v2153_v30 = vadd.f32 %v2152_v25, %v2151_v34  ;;  %1609 = vst.msk [vmem:[%s3284_s12 + $0x118] sm:$0xff] %vm1573_vm2, %v2623_v28  ;;  %v1193_v32 = vpop.f32.mrb[35].mxu0  ;;  %v1998_v42 = vmul.f32 %v2623_v28, %v2623_v28  ;;  %v2158_v44 = vsel %vm1573_vm2, %v1997_v33, 0.0 }
 0x131   : > { %v2154_v2 = vsel %vm1573_vm2, %v1995_v27, 0.0  ;;  %1607 = vst.msk [vmem:[%s3284_s12 + $0x108] sm:$0xff] %vm1573_vm2, %v1193_v32  ;;  %v1767_v36 = vsel %vm1573_vm2, %v1193_v32, 0.0  ;;  %v1996_v37 = vmul.f32 %v1193_v32, %v1193_v32  ;;  %v1771_v48 = vsel %vm1573_vm2, %v2623_v28, 0.0 }
 0x132   : > { %v2155_v38 = vadd.f32 %v2154_v2, %v2153_v30  ;;  %v1768_v40 = vadd.f32 %v1767_v36, %v1766_v3  ;;  %v2160_v59 = vsel %vm1573_vm2, %v1998_v42, 0.0  ;;  %v3503_v14 = vpop.f32.mrb[12].mxu1 }
 0x133   : > { %v2156_v43 = vsel %vm1573_vm2, %v1996_v37, 0.0  ;;  %1652 = vst.msk [vmem:[%s3284_s12 + $0x270] sm:$0xff] %vm1573_vm2, %v3503_v14  ;;  %v3510_v19 = vpop.f32.mrb[13].mxu1 }
 0x134   : > { %v1770_v45 = vadd.f32 %v1769_v41, %v1768_v40  ;;  %v2157_v46 = vadd.f32 %v2156_v43, %v2155_v38  ;;  %1650 = vst.msk [vmem:[%s3284_s12 + $0x260] sm:$0xff] %vm1573_vm2, %v3510_v19  ;;  %v3517_v22 = vpop.f32.mrb[14].mxu1 }
 0x135   : > { %v2626_v49 = vpop.f32.mrb[36].mxu0  ;;  %1653 = vst.msk [vmem:[%s3284_s12 + $0x278] sm:$0xff] %vm1573_vm2, %v3517_v22  ;;  %v3526_v28 = vpop.f32.mrb[15].mxu1 }
 0x136   : > { %v2159_v52 = vadd.f32 %v2158_v44, %v2157_v46  ;;  %1612 = vst.msk [vmem:[%s3284_s12 + $0x130] sm:$0xff] %vm1573_vm2, %v2626_v49  ;;  %v1206_v54 = vpop.f32.mrb[37].mxu0  ;;  %v1772_v55 = vadd.f32 %v1771_v48, %v1770_v45  ;;  %v2001_v35 = vmul.f32 %v2626_v49, %v2626_v49  ;;  %v1777_v9 = vsel %vm1573_vm2, %v2626_v49, 0.0  ;;  %1651 = vst.msk [vmem:[%s3284_s12 + $0x268] sm:$0xff] %vm1573_vm2, %v3526_v28 }
 0x137   : > { %1610 = vst.msk [vmem:[%s3284_s12 + $0x120] sm:$0xff] %vm1573_vm2, %v1206_v54  ;;  %v1773_v50 = vsel %vm1573_vm2, %v1206_v54, 0.0  ;;  %v1999_v61 = vmul.f32 %v1206_v54, %v1206_v54  ;;  %v2627_v62 = vpop.f32.mrb[38].mxu0 }
 0x138   : > { %v1774_v1 = vadd.f32 %v1773_v50, %v1772_v55  ;;  %v2161_v4 = vadd.f32 %v2160_v59, %v2159_v52  ;;  %1613 = vst.msk [vmem:[%s3284_s12 + $0x138] sm:$0xff] %vm1573_vm2, %v2627_v62  ;;  %v1209_v5 = vpop.f32.mrb[39].mxu0  ;;  %v2002_v10 = vmul.f32 %v2627_v62, %v2627_v62  ;;  %v2166_v15 = vsel %vm1573_vm2, %v2001_v35, 0.0 }
 0x139   : > { %v2162_v39 = vsel %vm1573_vm2, %v1999_v61, 0.0  ;;  %1611 = vst.msk [vmem:[%s3284_s12 + $0x128] sm:$0xff] %vm1573_vm2, %v1209_v5  ;;  %v1775_v53 = vsel %vm1573_vm2, %v1209_v5, 0.0  ;;  %v2000_v58 = vmul.f32 %v1209_v5, %v1209_v5  ;;  %v1779_v16 = vsel %vm1573_vm2, %v2627_v62, 0.0 }
 0x13a   : > { %v2163_v7 = vadd.f32 %v2162_v39, %v2161_v4  ;;  %v1776_v8 = vadd.f32 %v1775_v53, %v1774_v1  ;;  %v2168_v23 = vsel %vm1573_vm2, %v2002_v10, 0.0  ;;  %v3539_v44 = vpop.f32.mrb[16].mxu1 }
 0x13b   : > { %v2164_v11 = vsel %vm1573_vm2, %v2000_v58, 0.0  ;;  %1656 = vst.msk [vmem:[%s3284_s12 + $0x290] sm:$0xff] %vm1573_vm2, %v3539_v44  ;;  %v3546_v54 = vpop.f32.mrb[17].mxu1 }
 0x13c   : > { %v1778_v12 = vadd.f32 %v1777_v9, %v1776_v8  ;;  %v2165_v13 = vadd.f32 %v2164_v11, %v2163_v7  ;;  %1654 = vst.msk [vmem:[%s3284_s12 + $0x280] sm:$0xff] %vm1573_vm2, %v3546_v54  ;;  %v3553_v61 = vpop.f32.mrb[18].mxu1 }
 0x13d   : > { %v2630_v17 = vpop.f32.mrb[40].mxu0  ;;  %1657 = vst.msk [vmem:[%s3284_s12 + $0x298] sm:$0xff] %vm1573_vm2, %v3553_v61  ;;  %v3562_v35 = vpop.f32.mrb[19].mxu1 }
 0x13e   : > { %v2167_v20 = vadd.f32 %v2166_v15, %v2165_v13  ;;  %1616 = vst.msk [vmem:[%s3284_s12 + $0x150] sm:$0xff] %vm1573_vm2, %v2630_v17  ;;  %v1222_v21 = vpop.f32.mrb[41].mxu0  ;;  %v1780_v34 = vadd.f32 %v1779_v16, %v1778_v12  ;;  %v2005_v33 = vmul.f32 %v2630_v17, %v2630_v17  ;;  %v1785_v41 = vsel %vm1573_vm2, %v2630_v17, 0.0  ;;  %1655 = vst.msk [vmem:[%s3284_s12 + $0x288] sm:$0xff] %vm1573_vm2, %v3562_v35 }
 0x13f   : > { %1614 = vst.msk [vmem:[%s3284_s12 + $0x140] sm:$0xff] %vm1573_vm2, %v1222_v21  ;;  %v1781_v25 = vsel %vm1573_vm2, %v1222_v21, 0.0  ;;  %v2003_v26 = vmul.f32 %v1222_v21, %v1222_v21  ;;  %v2631_v27 = vpop.f32.mrb[42].mxu0 }
 0x140   : > { %v1782_v3 = vadd.f32 %v1781_v25, %v1780_v34  ;;  %v2169_v30 = vadd.f32 %v2168_v23, %v2167_v20  ;;  %1617 = vst.msk [vmem:[%s3284_s12 + $0x158] sm:$0xff] %vm1573_vm2, %v2631_v27  ;;  %v1225_v32 = vpop.f32.mrb[43].mxu0  ;;  %v2006_v42 = vmul.f32 %v2631_v27, %v2631_v27  ;;  %v2174_v48 = vsel %vm1573_vm2, %v2005_v33, 0.0 }
 0x141   : > { %v2170_v2 = vsel %vm1573_vm2, %v2003_v26, 0.0  ;;  %1615 = vst.msk [vmem:[%s3284_s12 + $0x148] sm:$0xff] %vm1573_vm2, %v1225_v32  ;;  %v1783_v36 = vsel %vm1573_vm2, %v1225_v32, 0.0  ;;  %v2004_v37 = vmul.f32 %v1225_v32, %v1225_v32  ;;  %v1787_v49 = vsel %vm1573_vm2, %v2631_v27, 0.0 }
 0x142   : > { %v2171_v38 = vadd.f32 %v2170_v2, %v2169_v30  ;;  %v1784_v40 = vadd.f32 %v1783_v36, %v1782_v3  ;;  %v2176_v62 = vsel %vm1573_vm2, %v2006_v42, 0.0  ;;  %v3575_v21 = vpop.f32.mrb[20].mxu1 }
 0x143   : > { %v2172_v43 = vsel %vm1573_vm2, %v2004_v37, 0.0  ;;  %1660 = vst.msk [vmem:[%s3284_s12 + $0x2b0] sm:$0xff] %vm1573_vm2, %v3575_v21  ;;  %v3582_v26 = vpop.f32.mrb[21].mxu1 }
 0x144   : > { %v1786_v45 = vadd.f32 %v1785_v41, %v1784_v40  ;;  %v2173_v46 = vadd.f32 %v2172_v43, %v2171_v38  ;;  %1658 = vst.msk [vmem:[%s3284_s12 + $0x2a0] sm:$0xff] %vm1573_vm2, %v3582_v26  ;;  %v3589_v32 = vpop.f32.mrb[22].mxu1 }
 0x145   : > { %v2634_v52 = vpop.f32.mrb[44].mxu0  ;;  %1661 = vst.msk [vmem:[%s3284_s12 + $0x2b8] sm:$0xff] %vm1573_vm2, %v3589_v32  ;;  %v3598_v38 = vpop.f32.mrb[23].mxu1 }
 0x146   : > { %v2175_v55 = vadd.f32 %v2174_v48, %v2173_v46  ;;  %1620 = vst.msk [vmem:[%s3284_s12 + $0x170] sm:$0xff] %vm1573_vm2, %v2634_v52  ;;  %v1238_v59 = vpop.f32.mrb[45].mxu0  ;;  %v1788_v50 = vadd.f32 %v1787_v49, %v1786_v45  ;;  %v2009_v7 = vmul.f32 %v2634_v52, %v2634_v52  ;;  %v1793_v13 = vsel %vm1573_vm2, %v2634_v52, 0.0  ;;  %1659 = vst.msk [vmem:[%s3284_s12 + $0x2a8] sm:$0xff] %vm1573_vm2, %v3598_v38 }
 0x147   : > { %1618 = vst.msk [vmem:[%s3284_s12 + $0x160] sm:$0xff] %vm1573_vm2, %v1238_v59  ;;  %v1789_v1 = vsel %vm1573_vm2, %v1238_v59, 0.0  ;;  %v2007_v4 = vmul.f32 %v1238_v59, %v1238_v59  ;;  %v2635_v5 = vpop.f32.mrb[46].mxu0 }
 0x148   : > { %v1790_v39 = vadd.f32 %v1789_v1, %v1788_v50  ;;  %v2177_v53 = vadd.f32 %v2176_v62, %v2175_v55  ;;  %1621 = vst.msk [vmem:[%s3284_s12 + $0x178] sm:$0xff] %vm1573_vm2, %v2635_v5  ;;  %v1241_v58 = vpop.f32.mrb[47].mxu0  ;;  %v2010_v15 = vmul.f32 %v2635_v5, %v2635_v5  ;;  %v2182_v34 = vsel %vm1573_vm2, %v2009_v7, 0.0 }
 0x149   : > { %v2178_v8 = vsel %vm1573_vm2, %v2007_v4, 0.0  ;;  %1619 = vst.msk [vmem:[%s3284_s12 + $0x168] sm:$0xff] %vm1573_vm2, %v1241_v58  ;;  %v1791_v9 = vsel %vm1573_vm2, %v1241_v58, 0.0  ;;  %v2008_v10 = vmul.f32 %v1241_v58, %v1241_v58  ;;  %v1795_v23 = vsel %vm1573_vm2, %v2635_v5, 0.0 }
 0x14a   : > { %v2179_v11 = vadd.f32 %v2178_v8, %v2177_v53  ;;  %v1792_v12 = vadd.f32 %v1791_v9, %v1790_v39  ;;  %v2184_v33 = vsel %vm1573_vm2, %v2010_v15, 0.0  ;;  %v3611_v4 = vpop.f32.mrb[24].mxu1 }
 0x14b   : > { %v2180_v16 = vsel %vm1573_vm2, %v2008_v10, 0.0  ;;  %1664 = vst.msk [vmem:[%s3284_s12 + $0x2d0] sm:$0xff] %vm1573_vm2, %v3611_v4  ;;  %v3618_v58 = vpop.f32.mrb[25].mxu1 }
 0x14c   : > { %v1794_v17 = vadd.f32 %v1793_v13, %v1792_v12  ;;  %v2181_v20 = vadd.f32 %v2180_v16, %v2179_v11  ;;  %1662 = vst.msk [vmem:[%s3284_s12 + $0x2c0] sm:$0xff] %vm1573_vm2, %v3618_v58  ;;  %v3625_v10 = vpop.f32.mrb[26].mxu1 }
 0x14d   : > { %v2638_v25 = vpop.f32.mrb[48].mxu0  ;;  %1665 = vst.msk [vmem:[%s3284_s12 + $0x2d8] sm:$0xff] %vm1573_vm2, %v3625_v10  ;;  %v3634_v16 = vpop.f32.mrb[27].mxu1 }
 0x14e   : > { %v2183_v27 = vadd.f32 %v2182_v34, %v2181_v20  ;;  %1624 = vst.msk [vmem:[%s3284_s12 + $0x190] sm:$0xff] %vm1573_vm2, %v2638_v25  ;;  %v1254_v3 = vpop.f32.mrb[49].mxu0  ;;  %v1796_v30 = vadd.f32 %v1795_v23, %v1794_v17  ;;  %v2013_v43 = vmul.f32 %v2638_v25, %v2638_v25  ;;  %v1801_v55 = vsel %vm1573_vm2, %v2638_v25, 0.0  ;;  %1663 = vst.msk [vmem:[%s3284_s12 + $0x2c8] sm:$0xff] %vm1573_vm2, %v3634_v16 }
 0x14f   : > { %1622 = vst.msk [vmem:[%s3284_s12 + $0x180] sm:$0xff] %vm1573_vm2, %v1254_v3  ;;  %v1797_v2 = vsel %vm1573_vm2, %v1254_v3, 0.0  ;;  %v2011_v36 = vmul.f32 %v1254_v3, %v1254_v3  ;;  %v2639_v37 = vpop.f32.mrb[50].mxu0 }
 0x150   : > { %v1798_v40 = vadd.f32 %v1797_v2, %v1796_v30  ;;  %v2185_v41 = vadd.f32 %v2184_v33, %v2183_v27  ;;  %1625 = vst.msk [vmem:[%s3284_s12 + $0x198] sm:$0xff] %vm1573_vm2, %v2639_v37  ;;  %v1257_v42 = vpop.f32.mrb[51].mxu0  ;;  %v2014_v59 = vmul.f32 %v2639_v37, %v2639_v37  ;;  %v2190_v5 = vsel %vm1573_vm2, %v2013_v43, 0.0 }
 0x151   : > { %v2186_v45 = vsel %vm1573_vm2, %v2011_v36, 0.0  ;;  %1623 = vst.msk [vmem:[%s3284_s12 + $0x188] sm:$0xff] %vm1573_vm2, %v1257_v42  ;;  %v1799_v46 = vsel %vm1573_vm2, %v1257_v42, 0.0  ;;  %v2012_v48 = vmul.f32 %v1257_v42, %v1257_v42  ;;  %v1803_v39 = vsel %vm1573_vm2, %v2639_v37, 0.0 }
 0x152   : > { %v2187_v49 = vadd.f32 %v2186_v45, %v2185_v41  ;;  %v1800_v52 = vadd.f32 %v1799_v46, %v1798_v40  ;;  %v2192_v11 = vsel %vm1573_vm2, %v2014_v59, 0.0  ;;  %v3647_v42 = vpop.f32.mrb[28].mxu1 }
 0x153   : > { %v2188_v50 = vsel %vm1573_vm2, %v2012_v48, 0.0  ;;  %1668 = vst.msk [vmem:[%s3284_s12 + $0x2f0] sm:$0xff] %vm1573_vm2, %v3647_v42  ;;  %v3654_v48 = vpop.f32.mrb[29].mxu1 }
 0x154   : > { %v1802_v62 = vadd.f32 %v1801_v55, %v1800_v52  ;;  %v2189_v1 = vadd.f32 %v2188_v50, %v2187_v49  ;;  %1666 = vst.msk [vmem:[%s3284_s12 + $0x2e0] sm:$0xff] %vm1573_vm2, %v3654_v48  ;;  %v3661_v59 = vpop.f32.mrb[30].mxu1 }
 0x155   : > { %v2642_v53 = vpop.f32.mrb[52].mxu0  ;;  %1669 = vst.msk [vmem:[%s3284_s12 + $0x2f8] sm:$0xff] %vm1573_vm2, %v3661_v59 }
 0x156   : > { %v2191_v7 = vadd.f32 %v2190_v5, %v2189_v1  ;;  %1628 = vst.msk [vmem:[%s3284_s12 + $0x1b0] sm:$0xff] %vm1573_vm2, %v2642_v53  ;;  %v1270_v8 = vpop.f32.mrb[53].mxu0  ;;  %v1804_v9 = vadd.f32 %v1803_v39, %v1802_v62  ;;  %v2017_v23 = vmul.f32 %v2642_v53, %v2642_v53  ;;  %v1809_v2 = vsel %vm1573_vm2, %v2642_v53, 0.0  ;;  %v3670_v39 = vpop.f32.mrb[31].mxu1 }
 0x157   : > { %1626 = vst.msk [vmem:[%s3284_s12 + $0x1a0] sm:$0xff] %vm1573_vm2, %v1270_v8  ;;  %v1805_v12 = vsel %vm1573_vm2, %v1270_v8, 0.0  ;;  %v2015_v13 = vmul.f32 %v1270_v8, %v1270_v8  ;;  %v2643_v15 = vpop.f32.mrb[54].mxu0  ;;  %1667 = vst.msk [vmem:[%s3284_s12 + $0x2e8] sm:$0xff] %vm1573_vm2, %v3670_v39 }
 0x158   : > { %v1806_v17 = vadd.f32 %v1805_v12, %v1804_v9  ;;  %v2193_v20 = vadd.f32 %v2192_v11, %v2191_v7  ;;  %1629 = vst.msk [vmem:[%s3284_s12 + $0x1b8] sm:$0xff] %vm1573_vm2, %v2643_v15  ;;  %v1273_v34 = vpop.f32.mrb[55].mxu0  ;;  %v2018_v36 = vmul.f32 %v2643_v15, %v2643_v15  ;;  %v2198_v43 = vsel %vm1573_vm2, %v2017_v23, 0.0 }
 0x159   : > { %v2194_v25 = vsel %vm1573_vm2, %v2015_v13, 0.0  ;;  %1627 = vst.msk [vmem:[%s3284_s12 + $0x1a8] sm:$0xff] %vm1573_vm2, %v1273_v34  ;;  %v1807_v27 = vsel %vm1573_vm2, %v1273_v34, 0.0  ;;  %v2016_v3 = vmul.f32 %v1273_v34, %v1273_v34  ;;  %v1811_v45 = vsel %vm1573_vm2, %v2643_v15, 0.0 }
 0x15a   : > { %v2195_v30 = vadd.f32 %v2194_v25, %v2193_v20  ;;  %v1808_v33 = vadd.f32 %v1807_v27, %v1806_v17  ;;  %v2200_v50 = vsel %vm1573_vm2, %v2018_v36, 0.0 }
 0x15b   : > { %v2196_v37 = vsel %vm1573_vm2, %v2016_v3, 0.0  ;;  %v3683_v3 = vpop.f32.mrb[32].mxu1 }
 0x15c   : > { %v1810_v40 = vadd.f32 %v1809_v2, %v1808_v33  ;;  %v2197_v41 = vadd.f32 %v2196_v37, %v2195_v30  ;;  %1672 = vst.msk [vmem:[%s3284_s12 + $0x310] sm:$0xff] %vm1573_vm2, %v3683_v3  ;;  %v3690_v36 = vpop.f32.mrb[33].mxu1 }
 0x15d   : > { %v2646_v46 = vpop.f32.mrb[56].mxu0  ;;  %1670 = vst.msk [vmem:[%s3284_s12 + $0x300] sm:$0xff] %vm1573_vm2, %v3690_v36 }
 0x15e   : > { %v2199_v49 = vadd.f32 %v2198_v43, %v2197_v41  ;;  %1632 = vst.msk [vmem:[%s3284_s12 + $0x1d0] sm:$0xff] %vm1573_vm2, %v2646_v46  ;;  %v1286_v52 = vpop.f32.mrb[57].mxu0  ;;  %v1812_v55 = vadd.f32 %v1811_v45, %v1810_v40  ;;  %v2021_v9 = vmul.f32 %v2646_v46, %v2646_v46  ;;  %v1817_v20 = vsel %vm1573_vm2, %v2646_v46, 0.0  ;;  %v3697_v43 = vpop.f32.mrb[34].mxu1 }
 0x15f   : > { %1630 = vst.msk [vmem:[%s3284_s12 + $0x1c0] sm:$0xff] %vm1573_vm2, %v1286_v52  ;;  %v1813_v62 = vsel %vm1573_vm2, %v1286_v52, 0.0  ;;  %v2019_v1 = vmul.f32 %v1286_v52, %v1286_v52  ;;  %v2647_v5 = vpop.f32.mrb[58].mxu0  ;;  %1673 = vst.msk [vmem:[%s3284_s12 + $0x318] sm:$0xff] %vm1573_vm2, %v3697_v43 }
 0x160   : > { %v1814_v53 = vadd.f32 %v1813_v62, %v1812_v55  ;;  %v2201_v7 = vadd.f32 %v2200_v50, %v2199_v49  ;;  %1633 = vst.msk [vmem:[%s3284_s12 + $0x1d8] sm:$0xff] %vm1573_vm2, %v2647_v5  ;;  %v1289_v8 = vpop.f32.mrb[59].mxu0  ;;  %v2022_v34 = vmul.f32 %v2647_v5, %v2647_v5  ;;  %v2206_v30 = vsel %vm1573_vm2, %v2021_v9, 0.0  ;;  %v3706_v55 = vpop.f32.mrb[35].mxu1 }
 0x161   : > { %v2202_v11 = vsel %vm1573_vm2, %v2019_v1, 0.0  ;;  %1631 = vst.msk [vmem:[%s3284_s12 + $0x1c8] sm:$0xff] %vm1573_vm2, %v1289_v8  ;;  %v1815_v12 = vsel %vm1573_vm2, %v1289_v8, 0.0  ;;  %v2020_v13 = vmul.f32 %v1289_v8, %v1289_v8  ;;  %v1819_v33 = vsel %vm1573_vm2, %v2647_v5, 0.0  ;;  %1671 = vst.msk [vmem:[%s3284_s12 + $0x308] sm:$0xff] %vm1573_vm2, %v3706_v55 }
 0x162   : > { %v2203_v15 = vadd.f32 %v2202_v11, %v2201_v7  ;;  %v1816_v17 = vadd.f32 %v1815_v12, %v1814_v53  ;;  %v2208_v45 = vsel %vm1573_vm2, %v2022_v34, 0.0 }
 0x163   : > { %v2204_v23 = vsel %vm1573_vm2, %v2020_v13, 0.0 }
 0x164   : > { %v1818_v25 = vadd.f32 %v1817_v20, %v1816_v17  ;;  %v2205_v27 = vadd.f32 %v2204_v23, %v2203_v15  ;;  %v2027_v17 = vmul.f32 %v3402_v60, %v3402_v60  ;;  %v3721_v23 = vpop.f32.mrb[36].mxu1 }
 0x165   : > { %v2650_v2 = vpop.f32.mrb[60].mxu0  ;;  %1676 = vst.msk [vmem:[%s3284_s12 + $0x330] sm:$0xff] %vm1573_vm2, %v3721_v23 }
 0x166   : > { %v2207_v37 = vadd.f32 %v2206_v30, %v2205_v27  ;;  %1636 = vst.msk [vmem:[%s3284_s12 + $0x1f0] sm:$0xff] %vm1573_vm2, %v2650_v2  ;;  %v1302_v40 = vpop.f32.mrb[61].mxu0  ;;  %v1820_v41 = vadd.f32 %v1819_v33, %v1818_v25  ;;  %v2025_v5 = vmul.f32 %v2650_v2, %v2650_v2  ;;  %v1825_v12 = vsel %vm1573_vm2, %v2650_v2, 0.0  ;;  %v3730_v33 = vpop.f32.mrb[37].mxu1 }
 0x167   : > { %1634 = vst.msk [vmem:[%s3284_s12 + $0x1e0] sm:$0xff] %vm1573_vm2, %v1302_v40  ;;  %v1821_v46 = vsel %vm1573_vm2, %v1302_v40, 0.0  ;;  %v2023_v49 = vmul.f32 %v1302_v40, %v1302_v40  ;;  %v2651_v52 = vpop.f32.mrb[62].mxu0  ;;  %v1829_v30 = vsel %vm1573_vm2, %v3402_v60, 0.0  ;;  %1674 = vst.msk [vmem:[%s3284_s12 + $0x320] sm:$0xff] %vm1573_vm2, %v3730_v33  ;;  %v3735_v40 = vpop.f32.mrb[38].mxu1 }
 0x168   : > { %v1822_v50 = vadd.f32 %v1821_v46, %v1820_v41  ;;  %v2209_v62 = vadd.f32 %v2208_v45, %v2207_v37  ;;  %1637 = vst.msk [vmem:[%s3284_s12 + $0x1f8] sm:$0xff] %vm1573_vm2, %v2651_v52  ;;  %v1305_v1 = vpop.f32.mrb[63].mxu0  ;;  %v2026_v13 = vmul.f32 %v2651_v52, %v2651_v52  ;;  %v2214_v25 = vsel %vm1573_vm2, %v2025_v5, 0.0  ;;  %1677 = vst.msk [vmem:[%s3284_s12 + $0x338] sm:$0xff] %vm1573_vm2, %v3735_v40  ;;  %v3744_v60 = vpop.f32.mrb[39].mxu1 }
 0x169   : > { %v2210_v53 = vsel %vm1573_vm2, %v2023_v49, 0.0  ;;  %1635 = vst.msk [vmem:[%s3284_s12 + $0x1e8] sm:$0xff] %vm1573_vm2, %v1305_v1  ;;  %v1823_v7 = vsel %vm1573_vm2, %v1305_v1, 0.0  ;;  %v2024_v8 = vmul.f32 %v1305_v1, %v1305_v1  ;;  %v1827_v27 = vsel %vm1573_vm2, %v2651_v52, 0.0  ;;  %1675 = vst.msk [vmem:[%s3284_s12 + $0x328] sm:$0xff] %vm1573_vm2, %v3744_v60 }
 0x16a   : > { %v2211_v9 = vadd.f32 %v2210_v53, %v2209_v62  ;;  %v1824_v11 = vadd.f32 %v1823_v7, %v1822_v50  ;;  %v2216_v41 = vsel %vm1573_vm2, %v2026_v13, 0.0  ;;  %v2218_v45 = vsel %vm1573_vm2, %v2027_v17, 0.0  ;;  %v3760_v13 = vpop.f32.mrb[40].mxu1 }
 0x16b   : > { %v2212_v15 = vsel %vm1573_vm2, %v2024_v8, 0.0  ;;  %v2028_v46 = vmul.f32 %v3418_v6, %v3418_v6  ;;  %v2029_v50 = vmul.f32 %v3395_v56, %v3395_v56  ;;  %v1831_v62 = vsel %vm1573_vm2, %v3418_v6, 0.0  ;;  %1680 = vst.msk [vmem:[%s3284_s12 + $0x350] sm:$0xff] %vm1573_vm2, %v3760_v13  ;;  %v3770_v17 = vpop.f32.mrb[41].mxu1 }
 0x16c   : > { %v1826_v20 = vadd.f32 %v1825_v12, %v1824_v11  ;;  %v2213_v34 = vadd.f32 %v2212_v15, %v2211_v9  ;;  %v1833_v53 = vsel %vm1573_vm2, %v3395_v56, 0.0  ;;  %v2030_v7 = vmul.f32 %v3409_v0, %v3409_v0  ;;  %1678 = vst.msk [vmem:[%s3284_s12 + $0x340] sm:$0xff] %vm1573_vm2, %v3770_v17 }
 0x16d   : > { %v2220_v8 = vsel %vm1573_vm2, %v2028_v46, 0.0  ;;  %v2031_v9 = vmul.f32 %v3438_v31, %v3438_v31  ;;  %v2222_v6 = vsel %vm1573_vm2, %v2029_v50, 0.0  ;;  %v1835_v15 = vsel %vm1573_vm2, %v3409_v0, 0.0 }
 0x16e   : > { %v1828_v2 = vadd.f32 %v1827_v27, %v1826_v20  ;;  %v2215_v37 = vadd.f32 %v2214_v25, %v2213_v34  ;;  %v1837_v56 = vsel %vm1573_vm2, %v3438_v31, 0.0  ;;  %v3775_v25 = vpop.f32.mrb[42].mxu1  ;;  %v2224_v27 = vsel %vm1573_vm2, %v2030_v7, 0.0 }
 0x16f   : > { %v2032_v0 = vmul.f32 %v3454_v29, %v3454_v29  ;;  %1681 = vst.msk [vmem:[%s3284_s12 + $0x358] sm:$0xff] %vm1573_vm2, %v3775_v25  ;;  %v3784_v31 = vpop.f32.mrb[43].mxu1  ;;  %v2034_v50 = vmul.f32 %v3445_v24, %v3445_v24 }
 0x170   : > { %v2217_v49 = vadd.f32 %v2216_v41, %v2215_v37  ;;  %v1830_v52 = vadd.f32 %v1829_v30, %v1828_v2  ;;  %v2226_v30 = vsel %vm1573_vm2, %v2031_v9, 0.0  ;;  %1679 = vst.msk [vmem:[%s3284_s12 + $0x348] sm:$0xff] %vm1573_vm2, %v3784_v31  ;;  %v2033_v41 = vmul.f32 %v3431_v18, %v3431_v18 }
 0x172   : > { %v2219_v1 = vadd.f32 %v2218_v45, %v2217_v49  ;;  %v1832_v5 = vadd.f32 %v1831_v62, %v1830_v52  ;;  %v1839_v45 = vsel %vm1573_vm2, %v3454_v29, 0.0  ;;  %v1841_v52 = vsel %vm1573_vm2, %v3431_v18, 0.0  ;;  %v3800_v7 = vpop.f32.mrb[44].mxu1 }
 0x173   : > { %v2228_v62 = vsel %vm1573_vm2, %v2032_v0, 0.0  ;;  %v2230_v29 = vsel %vm1573_vm2, %v2033_v41, 0.0  ;;  %v1845_v18 = vsel %vm1573_vm2, %v3474_v51, 0.0  ;;  %1684 = vst.msk [vmem:[%s3284_s12 + $0x370] sm:$0xff] %vm1573_vm2, %v3800_v7  ;;  %v3810_v9 = vpop.f32.mrb[45].mxu1  ;;  %v2038_v41 = vmul.f32 %v3481_v57, %v3481_v57 }
 0x174   : > { %v1834_v11 = vadd.f32 %v1833_v53, %v1832_v5  ;;  %v2221_v12 = vadd.f32 %v2220_v8, %v2219_v1  ;;  %v2035_v1 = vmul.f32 %v3474_v51, %v3474_v51  ;;  %v1843_v8 = vsel %vm1573_vm2, %v3445_v24, 0.0  ;;  %1682 = vst.msk [vmem:[%s3284_s12 + $0x360] sm:$0xff] %vm1573_vm2, %v3810_v9 }
 0x175   : > { %v2036_v24 = vmul.f32 %v3490_v63, %v3490_v63 }
 0x176   : > { %v2223_v20 = vadd.f32 %v2222_v6, %v2221_v12  ;;  %v1836_v34 = vadd.f32 %v1835_v15, %v1834_v11  ;;  %v3815_v6 = vpop.f32.mrb[46].mxu1  ;;  %v2232_v15 = vsel %vm1573_vm2, %v2034_v50, 0.0 }
 0x177   : > { %1685 = vst.msk [vmem:[%s3284_s12 + $0x378] sm:$0xff] %vm1573_vm2, %v3815_v6  ;;  %v3824_v51 = vpop.f32.mrb[47].mxu1 }
 0x178   : > { %v1838_v2 = vadd.f32 %v1837_v56, %v1836_v34  ;;  %v2225_v37 = vadd.f32 %v2224_v27, %v2223_v20  ;;  %v2234_v56 = vsel %vm1573_vm2, %v2035_v1, 0.0  ;;  %1683 = vst.msk [vmem:[%s3284_s12 + $0x368] sm:$0xff] %vm1573_vm2, %v3824_v51  ;;  %v2037_v27 = vmul.f32 %v3467_v47, %v3467_v47 }
 0x17a   : > { %v2227_v46 = vadd.f32 %v2226_v30, %v2225_v37  ;;  %v1840_v49 = vadd.f32 %v1839_v45, %v1838_v2  ;;  %v1847_v30 = vsel %vm1573_vm2, %v3490_v63, 0.0  ;;  %v1849_v37 = vsel %vm1573_vm2, %v3467_v47, 0.0  ;;  %v3840_v50 = vpop.f32.mrb[48].mxu1 }
 0x17b   : > { %v2236_v45 = vsel %vm1573_vm2, %v2036_v24, 0.0  ;;  %v2238_v63 = vsel %vm1573_vm2, %v2037_v27, 0.0  ;;  %v1853_v47 = vsel %vm1573_vm2, %v3510_v19, 0.0  ;;  %1688 = vst.msk [vmem:[%s3284_s12 + $0x390] sm:$0xff] %vm1573_vm2, %v3840_v50  ;;  %v3850_v1 = vpop.f32.mrb[49].mxu1  ;;  %v2042_v27 = vmul.f32 %v3517_v22, %v3517_v22 }
 0x17c   : > { %v1842_v5 = vadd.f32 %v1841_v52, %v1840_v49  ;;  %v2229_v53 = vadd.f32 %v2228_v62, %v2227_v46  ;;  %v2039_v46 = vmul.f32 %v3510_v19, %v3510_v19  ;;  %v1851_v62 = vsel %vm1573_vm2, %v3481_v57, 0.0  ;;  %1686 = vst.msk [vmem:[%s3284_s12 + $0x380] sm:$0xff] %vm1573_vm2, %v3850_v1 }
 0x17d   : > { %v2040_v57 = vmul.f32 %v3526_v28, %v3526_v28 }
 0x17e   : > { %v2231_v11 = vadd.f32 %v2230_v29, %v2229_v53  ;;  %v1844_v12 = vadd.f32 %v1843_v8, %v1842_v5  ;;  %v3855_v29 = vpop.f32.mrb[50].mxu1  ;;  %v2240_v8 = vsel %vm1573_vm2, %v2038_v41, 0.0 }
 0x17f   : > { %1689 = vst.msk [vmem:[%s3284_s12 + $0x398] sm:$0xff] %vm1573_vm2, %v3855_v29  ;;  %v3864_v19 = vpop.f32.mrb[51].mxu1 }
 0x180   : > { %v1846_v20 = vadd.f32 %v1845_v18, %v1844_v12  ;;  %v2233_v34 = vadd.f32 %v2232_v15, %v2231_v11  ;;  %v2242_v18 = vsel %vm1573_vm2, %v2039_v46, 0.0  ;;  %1687 = vst.msk [vmem:[%s3284_s12 + $0x388] sm:$0xff] %vm1573_vm2, %v3864_v19  ;;  %v2041_v15 = vmul.f32 %v3503_v14, %v3503_v14 }
 0x182   : > { %v2235_v0 = vadd.f32 %v2234_v56, %v2233_v34  ;;  %v1848_v2 = vadd.f32 %v1847_v30, %v1846_v20  ;;  %v1855_v56 = vsel %vm1573_vm2, %v3526_v28, 0.0  ;;  %v1857_v34 = vsel %vm1573_vm2, %v3503_v14, 0.0  ;;  %v3880_v41 = vpop.f32.mrb[52].mxu1 }
 0x183   : > { %v2244_v30 = vsel %vm1573_vm2, %v2040_v57, 0.0  ;;  %v2246_v28 = vsel %vm1573_vm2, %v2041_v15, 0.0  ;;  %v1861_v14 = vsel %vm1573_vm2, %v3546_v54, 0.0  ;;  %1692 = vst.msk [vmem:[%s3284_s12 + $0x3b0] sm:$0xff] %vm1573_vm2, %v3880_v41  ;;  %v3890_v46 = vpop.f32.mrb[53].mxu1  ;;  %v2046_v15 = vmul.f32 %v3553_v61, %v3553_v61 }
 0x184   : > { %v1850_v49 = vadd.f32 %v1849_v37, %v1848_v2  ;;  %v2237_v52 = vadd.f32 %v2236_v45, %v2235_v0  ;;  %v2043_v0 = vmul.f32 %v3546_v54, %v3546_v54  ;;  %v1859_v45 = vsel %vm1573_vm2, %v3517_v22, 0.0  ;;  %1690 = vst.msk [vmem:[%s3284_s12 + $0x3a0] sm:$0xff] %vm1573_vm2, %v3890_v46 }
 0x185   : > { %v2044_v22 = vmul.f32 %v3562_v35, %v3562_v35 }
 0x186   : > { %v2239_v5 = vadd.f32 %v2238_v63, %v2237_v52  ;;  %v1852_v53 = vadd.f32 %v1851_v62, %v1850_v49  ;;  %v3895_v63 = vpop.f32.mrb[54].mxu1  ;;  %v2248_v62 = vsel %vm1573_vm2, %v2042_v27, 0.0 }
 0x187   : > { %1693 = vst.msk [vmem:[%s3284_s12 + $0x3b8] sm:$0xff] %vm1573_vm2, %v3895_v63  ;;  %v3904_v54 = vpop.f32.mrb[55].mxu1 }
 0x188   : > { %v1854_v11 = vadd.f32 %v1853_v47, %v1852_v53  ;;  %v2241_v12 = vadd.f32 %v2240_v8, %v2239_v5  ;;  %v2250_v47 = vsel %vm1573_vm2, %v2043_v0, 0.0  ;;  %1691 = vst.msk [vmem:[%s3284_s12 + $0x3a8] sm:$0xff] %vm1573_vm2, %v3904_v54  ;;  %v2045_v8 = vmul.f32 %v3539_v44, %v3539_v44 }
 0x18a   : > { %v2243_v24 = vadd.f32 %v2242_v18, %v2241_v12  ;;  %v1856_v20 = vadd.f32 %v1855_v56, %v1854_v11  ;;  %v1863_v18 = vsel %vm1573_vm2, %v3562_v35, 0.0  ;;  %v1865_v12 = vsel %vm1573_vm2, %v3539_v44, 0.0  ;;  %v3920_v27 = vpop.f32.mrb[56].mxu1 }
 0x18b   : > { %v2252_v56 = vsel %vm1573_vm2, %v2044_v22, 0.0  ;;  %v2254_v35 = vsel %vm1573_vm2, %v2045_v8, 0.0  ;;  %v1869_v44 = vsel %vm1573_vm2, %v3582_v26, 0.0  ;;  %1696 = vst.msk [vmem:[%s3284_s12 + $0x3d0] sm:$0xff] %vm1573_vm2, %v3920_v27  ;;  %v3930_v0 = vpop.f32.mrb[57].mxu1  ;;  %v2050_v8 = vmul.f32 %v3589_v32, %v3589_v32 }
 0x18c   : > { %v1858_v2 = vadd.f32 %v1857_v34, %v1856_v20  ;;  %v2245_v37 = vadd.f32 %v2244_v30, %v2243_v24  ;;  %v2047_v24 = vmul.f32 %v3582_v26, %v3582_v26  ;;  %v1867_v30 = vsel %vm1573_vm2, %v3553_v61, 0.0  ;;  %1694 = vst.msk [vmem:[%s3284_s12 + $0x3c0] sm:$0xff] %vm1573_vm2, %v3930_v0 }
 0x18d   : > { %v2048_v61 = vmul.f32 %v3598_v38, %v3598_v38 }
 0x18e   : > { %v2247_v49 = vadd.f32 %v2246_v28, %v2245_v37  ;;  %v1860_v52 = vadd.f32 %v1859_v45, %v1858_v2  ;;  %v3935_v28 = vpop.f32.mrb[58].mxu1  ;;  %v2256_v45 = vsel %vm1573_vm2, %v2046_v15, 0.0 }
 0x18f   : > { %1697 = vst.msk [vmem:[%s3284_s12 + $0x3d8] sm:$0xff] %vm1573_vm2, %v3935_v28  ;;  %v3944_v26 = vpop.f32.mrb[59].mxu1 }
 0x190   : > { %v1862_v5 = vadd.f32 %v1861_v14, %v1860_v52  ;;  %v2249_v53 = vadd.f32 %v2248_v62, %v2247_v49  ;;  %v2258_v14 = vsel %vm1573_vm2, %v2047_v24, 0.0  ;;  %1695 = vst.msk [vmem:[%s3284_s12 + $0x3c8] sm:$0xff] %vm1573_vm2, %v3944_v26  ;;  %v2049_v62 = vmul.f32 %v3575_v21, %v3575_v21 }
 0x192   : > { %v2251_v57 = vadd.f32 %v2250_v47, %v2249_v53  ;;  %v1864_v11 = vadd.f32 %v1863_v18, %v1862_v5  ;;  %v1871_v47 = vsel %vm1573_vm2, %v3598_v38, 0.0  ;;  %v1873_v53 = vsel %vm1573_vm2, %v3575_v21, 0.0  ;;  %v3960_v15 = vpop.f32.mrb[60].mxu1 }
 0x193   : > { %v2260_v18 = vsel %vm1573_vm2, %v2048_v61, 0.0  ;;  %v2262_v38 = vsel %vm1573_vm2, %v2049_v62, 0.0  ;;  %v1877_v21 = vsel %vm1573_vm2, %v3618_v58, 0.0  ;;  %1700 = vst.msk [vmem:[%s3284_s12 + $0x3f0] sm:$0xff] %vm1573_vm2, %v3960_v15  ;;  %v3970_v24 = vpop.f32.mrb[61].mxu1  ;;  %v2054_v62 = vmul.f32 %v3625_v10, %v3625_v10 }
 0x194   : > { %v1866_v20 = vadd.f32 %v1865_v12, %v1864_v11  ;;  %v2253_v34 = vadd.f32 %v2252_v56, %v2251_v57  ;;  %v2051_v57 = vmul.f32 %v3618_v58, %v3618_v58  ;;  %v1875_v56 = vsel %vm1573_vm2, %v3589_v32, 0.0  ;;  %1698 = vst.msk [vmem:[%s3284_s12 + $0x3e0] sm:$0xff] %vm1573_vm2, %v3970_v24 }
 0x195   : > { %v2052_v32 = vmul.f32 %v3634_v16, %v3634_v16 }
 0x196   : > { %v2255_v2 = vadd.f32 %v2254_v35, %v2253_v34  ;;  %v1868_v37 = vadd.f32 %v1867_v30, %v1866_v20  ;;  %v3975_v35 = vpop.f32.mrb[62].mxu1  ;;  %v2264_v30 = vsel %vm1573_vm2, %v2050_v8, 0.0 }
 0x197   : > { %1701 = vst.msk [vmem:[%s3284_s12 + $0x3f8] sm:$0xff] %vm1573_vm2, %v3975_v35  ;;  %v3984_v58 = vpop.f32.mrb[63].mxu1 }
 0x198   : > { %v1870_v49 = vadd.f32 %v1869_v44, %v1868_v37  ;;  %v2257_v52 = vadd.f32 %v2256_v45, %v2255_v2  ;;  %v2266_v44 = vsel %vm1573_vm2, %v2051_v57, 0.0  ;;  %1699 = vst.msk [vmem:[%s3284_s12 + $0x3e8] sm:$0xff] %vm1573_vm2, %v3984_v58  ;;  %v2053_v45 = vmul.f32 %v3611_v4, %v3611_v4 }
 0x19a   : > { %v2259_v22 = vadd.f32 %v2258_v14, %v2257_v52  ;;  %v1872_v5 = vadd.f32 %v1871_v47, %v1870_v49  ;;  %v1879_v14 = vsel %vm1573_vm2, %v3634_v16, 0.0  ;;  %v1881_v52 = vsel %vm1573_vm2, %v3611_v4, 0.0 }
 0x19b   : > { %v2268_v47 = vsel %vm1573_vm2, %v2052_v32, 0.0  ;;  %v2270_v8 = vsel %vm1573_vm2, %v2053_v45, 0.0  ;;  %v1883_v16 = vsel %vm1573_vm2, %v3625_v10, 0.0  ;;  %v1887_v10 = vsel %vm1573_vm2, %v3670_v39, 0.0 }
 0x19c   : > { %v1874_v11 = vadd.f32 %v1873_v53, %v1872_v5  ;;  %v2261_v12 = vadd.f32 %v2260_v18, %v2259_v22  ;;  %v2055_v22 = vmul.f32 %v3654_v48, %v3654_v48  ;;  %v1885_v18 = vsel %vm1573_vm2, %v3654_v48, 0.0 }
 0x19d   : > { %v1889_v48 = vsel %vm1573_vm2, %v3647_v42, 0.0 }
 0x19e   : > { %v2263_v20 = vadd.f32 %v2262_v38, %v2261_v12  ;;  %v1876_v34 = vadd.f32 %v1875_v56, %v1874_v11  ;;  %v2272_v11 = vsel %vm1573_vm2, %v2054_v62, 0.0  ;;  %v2274_v12 = vsel %vm1573_vm2, %v2055_v22, 0.0 }
 0x19f   : > { %v2056_v38 = vmul.f32 %v3670_v39, %v3670_v39  ;;  %v1891_v39 = vsel %vm1573_vm2, %v3661_v59, 0.0 }
 0x1a0   : > { %v1878_v2 = vadd.f32 %v1877_v21, %v1876_v34  ;;  %v2265_v37 = vadd.f32 %v2264_v30, %v2263_v20  ;;  %v2057_v20 = vmul.f32 %v3647_v42, %v3647_v42 }
 0x1a1   : > { %v2276_v32 = vsel %vm1573_vm2, %v2056_v38, 0.0 }
 0x1a2   : > { %v2267_v61 = vadd.f32 %v2266_v44, %v2265_v37  ;;  %v1880_v49 = vadd.f32 %v1879_v14, %v1878_v2  ;;  %v2058_v44 = vmul.f32 %v3661_v59, %v3661_v59  ;;  %v2059_v2 = vmul.f32 %v3690_v36, %v3690_v36 }
 0x1a3   : > { %v2278_v14 = vsel %vm1573_vm2, %v2057_v20, 0.0  ;;  %v1895_v59 = vsel %vm1573_vm2, %v3706_v55, 0.0 }
 0x1a4   : > { %v1882_v5 = vadd.f32 %v1881_v52, %v1880_v49  ;;  %v2269_v53 = vadd.f32 %v2268_v47, %v2267_v61  ;;  %v1893_v61 = vsel %vm1573_vm2, %v3690_v36, 0.0  ;;  %v2280_v52 = vsel %vm1573_vm2, %v2058_v44, 0.0 }
 0x1a5   : > { %v2282_v62 = vsel %vm1573_vm2, %v2059_v2, 0.0  ;;  %v2060_v47 = vmul.f32 %v3706_v55, %v3706_v55  ;;  %v1897_v36 = vsel %vm1573_vm2, %v3683_v3, 0.0  ;;  %v1899_v55 = vsel %vm1573_vm2, %v3697_v43, 0.0 }
 0x1a6   : > { %v2271_v57 = vadd.f32 %v2270_v8, %v2269_v53  ;;  %v1884_v4 = vadd.f32 %v1883_v16, %v1882_v5  ;;  %v2061_v53 = vmul.f32 %v3683_v3, %v3683_v3  ;;  %v2065_v44 = vmul.f32 %v3721_v23, %v3721_v23 }
 0x1a8   : > { %v1886_v56 = vadd.f32 %v1885_v18, %v1884_v4  ;;  %v2273_v21 = vadd.f32 %v2272_v11, %v2271_v57  ;;  %v2062_v18 = vmul.f32 %v3697_v43, %v3697_v43  ;;  %v2284_v57 = vsel %vm1573_vm2, %v2060_v47, 0.0 }
 0x1a9   : > { %v2063_v4 = vmul.f32 %v3730_v33, %v3730_v33  ;;  %v2286_v38 = vsel %vm1573_vm2, %v2061_v53, 0.0  ;;  %v1903_v43 = vsel %vm1573_vm2, %v3744_v60, 0.0 }
 0x1aa   : > { %v2275_v34 = vadd.f32 %v2274_v12, %v2273_v21  ;;  %v1888_v30 = vadd.f32 %v1887_v10, %v1886_v56  ;;  %v1901_v56 = vsel %vm1573_vm2, %v3730_v33, 0.0  ;;  %v2288_v20 = vsel %vm1573_vm2, %v2062_v18, 0.0 }
 0x1ab   : > { %v2290_v10 = vsel %vm1573_vm2, %v2063_v4, 0.0  ;;  %v1905_v33 = vsel %vm1573_vm2, %v3721_v23, 0.0 }
 0x1ac   : > { %v1890_v37 = vadd.f32 %v1889_v48, %v1888_v30  ;;  %v2277_v45 = vadd.f32 %v2276_v32, %v2275_v34  ;;  %v2064_v34 = vmul.f32 %v3744_v60, %v3744_v60  ;;  %v1907_v60 = vsel %vm1573_vm2, %v3735_v40, 0.0 }
 0x1ae   : > { %v2279_v49 = vadd.f32 %v2278_v14, %v2277_v45  ;;  %v1892_v42 = vadd.f32 %v1891_v39, %v1890_v37  ;;  %v2066_v37 = vmul.f32 %v3735_v40, %v3735_v40  ;;  %v2292_v45 = vsel %vm1573_vm2, %v2064_v34, 0.0 }
 0x1af   : > { %v2067_v14 = vmul.f32 %v3770_v17, %v3770_v17  ;;  %v1911_v40 = vsel %vm1573_vm2, %v3784_v31, 0.0  ;;  %v2073_v34 = vmul.f32 %v3800_v7, %v3800_v7 }
 0x1b0   : > { %v1894_v22 = vadd.f32 %v1893_v61, %v1892_v42  ;;  %v2281_v5 = vadd.f32 %v2280_v52, %v2279_v49  ;;  %v2294_v49 = vsel %vm1573_vm2, %v2065_v44, 0.0  ;;  %v1909_v42 = vsel %vm1573_vm2, %v3770_v17, 0.0 }
 0x1b1   : > { %v2298_v47 = vsel %vm1573_vm2, %v2067_v14, 0.0  ;;  %v1913_v17 = vsel %vm1573_vm2, %v3760_v13, 0.0  ;;  %v2074_v44 = vmul.f32 %v3815_v6, %v3815_v6 }
 0x1b2   : > { %v2283_v8 = vadd.f32 %v2282_v62, %v2281_v5  ;;  %v1896_v16 = vadd.f32 %v1895_v59, %v1894_v22  ;;  %v2296_v62 = vsel %vm1573_vm2, %v2066_v37, 0.0  ;;  %v2068_v22 = vmul.f32 %v3784_v31, %v3784_v31 }
 0x1b3   : > { %v2069_v59 = vmul.f32 %v3760_v13, %v3760_v13  ;;  %v1915_v31 = vsel %vm1573_vm2, %v3775_v25, 0.0  ;;  %v2310_v37 = vsel %vm1573_vm2, %v2073_v34, 0.0 }
 0x1b4   : > { %v1898_v11 = vadd.f32 %v1897_v36, %v1896_v16  ;;  %v2285_v12 = vadd.f32 %v2284_v57, %v2283_v8  ;;  %v2070_v36 = vmul.f32 %v3775_v25, %v3775_v25  ;;  %v2300_v18 = vsel %vm1573_vm2, %v2068_v22, 0.0 }
 0x1b5   : > { %v2071_v57 = vmul.f32 %v3810_v9, %v3810_v9  ;;  %v1919_v25 = vsel %vm1573_vm2, %v3824_v51, 0.0 }
 0x1b6   : > { %v2287_v21 = vadd.f32 %v2286_v38, %v2285_v12  ;;  %v1900_v3 = vadd.f32 %v1899_v55, %v1898_v11  ;;  %v2302_v12 = vsel %vm1573_vm2, %v2069_v59, 0.0  ;;  %v1917_v38 = vsel %vm1573_vm2, %v3810_v9, 0.0 }
 0x1b7   : > { %v1921_v9 = vsel %vm1573_vm2, %v3800_v7, 0.0 }
 0x1b8   : > { %v1902_v30 = vadd.f32 %v1901_v56, %v1900_v3  ;;  %v2289_v48 = vadd.f32 %v2288_v20, %v2287_v21  ;;  %v2304_v56 = vsel %vm1573_vm2, %v2070_v36, 0.0  ;;  %v2306_v21 = vsel %vm1573_vm2, %v2071_v57, 0.0 }
 0x1b9   : > { %v2072_v3 = vmul.f32 %v3824_v51, %v3824_v51  ;;  %v1923_v51 = vsel %vm1573_vm2, %v3815_v6, 0.0  ;;  %v1927_v6 = vsel %vm1573_vm2, %v3864_v19, 0.0 }
 0x1ba   : > { %v2291_v32 = vadd.f32 %v2290_v10, %v2289_v48  ;;  %v1904_v2 = vadd.f32 %v1903_v43, %v1902_v30 }
 0x1bb   : > { %v2308_v43 = vsel %vm1573_vm2, %v2072_v3, 0.0 }
 0x1bc   : > { %v1906_v39 = vadd.f32 %v1905_v33, %v1904_v2  ;;  %v2293_v61 = vadd.f32 %v2292_v45, %v2291_v32  ;;  %v2075_v32 = vmul.f32 %v3850_v1, %v3850_v1  ;;  %v1925_v45 = vsel %vm1573_vm2, %v3850_v1, 0.0 }
 0x1bd   : > { %v1929_v1 = vsel %vm1573_vm2, %v3840_v50, 0.0 }
 0x1be   : > { %v2295_v52 = vadd.f32 %v2294_v49, %v2293_v61  ;;  %v1908_v23 = vadd.f32 %v1907_v60, %v1906_v39  ;;  %v2312_v39 = vsel %vm1573_vm2, %v2074_v44, 0.0  ;;  %v2314_v61 = vsel %vm1573_vm2, %v2075_v32, 0.0 }
 0x1bf   : > { %v2076_v49 = vmul.f32 %v3864_v19, %v3864_v19  ;;  %v1931_v19 = vsel %vm1573_vm2, %v3855_v29, 0.0  ;;  %v2085_v44 = vmul.f32 %v3920_v27, %v3920_v27 }
 0x1c0   : > { %v1910_v5 = vadd.f32 %v1909_v42, %v1908_v23  ;;  %v2297_v53 = vadd.f32 %v2296_v62, %v2295_v52  ;;  %v2077_v52 = vmul.f32 %v3840_v50, %v3840_v50 }
 0x1c1   : > { %v2316_v22 = vsel %vm1573_vm2, %v2076_v49, 0.0 }
 0x1c2   : > { %v2299_v8 = vadd.f32 %v2298_v47, %v2297_v53  ;;  %v1912_v16 = vadd.f32 %v1911_v40, %v1910_v5  ;;  %v2078_v47 = vmul.f32 %v3855_v29, %v3855_v29  ;;  %v2079_v5 = vmul.f32 %v3890_v46, %v3890_v46 }
 0x1c3   : > { %v2318_v40 = vsel %vm1573_vm2, %v2077_v52, 0.0  ;;  %v1935_v29 = vsel %vm1573_vm2, %v3904_v54, 0.0 }
 0x1c4   : > { %v1914_v4 = vadd.f32 %v1913_v17, %v1912_v16  ;;  %v2301_v11 = vadd.f32 %v2300_v18, %v2299_v8  ;;  %v1933_v8 = vsel %vm1573_vm2, %v3890_v46, 0.0  ;;  %v2320_v17 = vsel %vm1573_vm2, %v2078_v47, 0.0 }
 0x1c5   : > { %v2322_v36 = vsel %vm1573_vm2, %v2079_v5, 0.0  ;;  %v2080_v18 = vmul.f32 %v3904_v54, %v3904_v54  ;;  %v1937_v46 = vsel %vm1573_vm2, %v3880_v41, 0.0  ;;  %v1939_v54 = vsel %vm1573_vm2, %v3895_v63, 0.0 }
 0x1c6   : > { %v2303_v55 = vadd.f32 %v2302_v12, %v2301_v11  ;;  %v1916_v13 = vadd.f32 %v1915_v31, %v1914_v4  ;;  %v2081_v11 = vmul.f32 %v3880_v41, %v3880_v41 }
 0x1c8   : > { %v1918_v20 = vadd.f32 %v1917_v38, %v1916_v13  ;;  %v2305_v10 = vadd.f32 %v2304_v56, %v2303_v55  ;;  %v2082_v38 = vmul.f32 %v3895_v63, %v3895_v63  ;;  %v2324_v55 = vsel %vm1573_vm2, %v2080_v18, 0.0 }
 0x1c9   : > { %v2083_v13 = vmul.f32 %v3930_v0, %v3930_v0  ;;  %v2326_v3 = vsel %vm1573_vm2, %v2081_v11, 0.0  ;;  %v1943_v63 = vsel %vm1573_vm2, %v3944_v26, 0.0 }
 0x1ca   : > { %v2307_v30 = vadd.f32 %v2306_v21, %v2305_v10  ;;  %v1920_v48 = vadd.f32 %v1919_v25, %v1918_v20  ;;  %v1941_v20 = vsel %vm1573_vm2, %v3930_v0, 0.0  ;;  %v2328_v34 = vsel %vm1573_vm2, %v2082_v38, 0.0 }
 0x1cb   : > { %v2330_v25 = vsel %vm1573_vm2, %v2083_v13, 0.0  ;;  %v1945_v0 = vsel %vm1573_vm2, %v3920_v27, 0.0 }
 0x1cc   : > { %v1922_v2 = vadd.f32 %v1921_v9, %v1920_v48  ;;  %v2309_v33 = vadd.f32 %v2308_v43, %v2307_v30  ;;  %v2084_v30 = vmul.f32 %v3944_v26, %v3944_v26  ;;  %v1947_v26 = vsel %vm1573_vm2, %v3935_v28, 0.0 }
 0x1ce   : > { %v2311_v14 = vadd.f32 %v2310_v37, %v2309_v33  ;;  %v1924_v7 = vadd.f32 %v1923_v51, %v1922_v2  ;;  %v2086_v2 = vmul.f32 %v3935_v28, %v3935_v28  ;;  %v2332_v33 = vsel %vm1573_vm2, %v2084_v30, 0.0 }
 0x1cf   : > { %v2087_v37 = vmul.f32 %v3970_v24, %v3970_v24  ;;  %v1951_v28 = vsel %vm1573_vm2, %v3984_v58, 0.0 }
 0x1d0   : > { %v1926_v60 = vadd.f32 %v1925_v45, %v1924_v7  ;;  %v2313_v42 = vadd.f32 %v2312_v39, %v2311_v14  ;;  %v2334_v14 = vsel %vm1573_vm2, %v2085_v44, 0.0  ;;  %v1949_v7 = vsel %vm1573_vm2, %v3970_v24, 0.0 }
 0x1d1   : > { %v2338_v49 = vsel %vm1573_vm2, %v2087_v37, 0.0 }
 0x1d2   : > { %v2315_v23 = vadd.f32 %v2314_v61, %v2313_v42  ;;  %v1928_v62 = vadd.f32 %v1927_v6, %v1926_v60  ;;  %v2336_v61 = vsel %vm1573_vm2, %v2086_v2, 0.0  ;;  %v2088_v60 = vmul.f32 %v3984_v58, %v3984_v58 }
 0x1d3   : > { %v2089_v6 = vmul.f32 %v3960_v15, %v3960_v15 }
 0x1d4   : > { %v1930_v53 = vadd.f32 %v1929_v1, %v1928_v62  ;;  %v2317_v59 = vadd.f32 %v2316_v22, %v2315_v23  ;;  %v1953_v62 = vsel %vm1573_vm2, %v3960_v15, 0.0  ;;  %v2090_v1 = vmul.f32 %v3975_v35, %v3975_v35 }
 0x1d5   : > { %v2340_v47 = vsel %vm1573_vm2, %v2088_v60, 0.0 }
 0x1d6   : > { %v2319_v16 = vadd.f32 %v2318_v40, %v2317_v59  ;;  %v1932_v50 = vadd.f32 %v1931_v19, %v1930_v53  ;;  %v2342_v53 = vsel %vm1573_vm2, %v2089_v6, 0.0  ;;  %v1955_v59 = vsel %vm1573_vm2, %v3975_v35, 0.0 }
 0x1d7   : > { %v2344_v19 = vsel %vm1573_vm2, %v2090_v1, 0.0 }
 0x1d8   : > { %v1934_v57 = vadd.f32 %v1933_v8, %v1932_v50  ;;  %v2321_v4 = vadd.f32 %v2320_v17, %v2319_v16 }
 0x1da   : > { %v2323_v12 = vadd.f32 %v2322_v36, %v2321_v4  ;;  %v1936_v31 = vadd.f32 %v1935_v29, %v1934_v57 }
 0x1dc   : > { %v1938_v56 = vadd.f32 %v1937_v46, %v1936_v31  ;;  %v2325_v21 = vadd.f32 %v2324_v55, %v2323_v12 }
 0x1de   : > { %v2327_v10 = vadd.f32 %v2326_v3, %v2325_v21  ;;  %v1940_v41 = vadd.f32 %v1939_v54, %v1938_v56 }
 0x1e0   : > { %v1942_v48 = vadd.f32 %v1941_v20, %v1940_v41  ;;  %v2329_v9 = vadd.f32 %v2328_v34, %v2327_v10 }
 0x1e2   : > { %v2331_v43 = vadd.f32 %v2330_v25, %v2329_v9  ;;  %v1944_v32 = vadd.f32 %v1943_v63, %v1942_v48 }
 0x1e4   : > { %v1946_v51 = vadd.f32 %v1945_v0, %v1944_v32  ;;  %v2333_v45 = vadd.f32 %v2332_v33, %v2331_v43 }
 0x1e6   : > { %v2335_v39 = vadd.f32 %v2334_v14, %v2333_v45  ;;  %v1948_v27 = vadd.f32 %v1947_v26, %v1946_v51 }
 0x1e8   : > { %v1950_v42 = vadd.f32 %v1949_v7, %v1948_v27  ;;  %v2337_v52 = vadd.f32 %v2336_v61, %v2335_v39 }
 0x1ea   : > { %v2339_v23 = vadd.f32 %v2338_v49, %v2337_v52  ;;  %v1952_v24 = vadd.f32 %v1951_v28, %v1950_v42 }
 0x1ec   : > { %v1954_v22 = vadd.f32 %v1953_v62, %v1952_v24  ;;  %v2341_v5 = vadd.f32 %v2340_v47, %v2339_v23 }
 0x1ee   : > { %v1956_v40 = vadd.f32 %v1955_v59, %v1954_v22  ;;  %v2343_v58 = vadd.f32 %v2342_v53, %v2341_v5 }
 0x1f0   : > { %v1957_v8 = vrot.slane %v1956_v40, 4  ;;  %v2345_v16 = vadd.f32 %v2344_v19, %v2343_v58 }
 0x1f2   : > { %v1958_v15 = vadd.f32 %v1957_v8, %v1956_v40  ;;  %v2346_v50 = vrot.slane %v2345_v16, 4 }
 0x1f4   : > { %v1959_v17 = vrot.slane %v1958_v15, 2  ;;  %v2347_v36 = vadd.f32 %v2346_v50, %v2345_v16 }
 0x1f6   : > { %v1960_v18 = vadd.f32 %v1959_v17, %v1958_v15  ;;  %v2348_v57 = vrot.slane %v2347_v36, 2 }
 0x1f8   : > { %v1961_v4 = vrot.slane %v1960_v18, 1  ;;  %v2349_v11 = vadd.f32 %v2348_v57, %v2347_v36 }
 0x1fa   : > { %v2350_v29 = vrot.slane %v2349_v11, 1  ;;  %v1962_v35 = vadd.f32 %v1961_v4, %v1960_v18 }
 0x1fc   : > { %v2351_v12 = vadd.f32 %v2350_v29, %v2349_v11 }
 0x1fe   : > { %v2353_v31 = vsel %vm2352_vm3, %v1962_v35, %v2351_v12 }
 0x1ff   : > { %2355 = vst.msk [vmem:[%s238_s16] sm:$0x3] %vm2354_vm4, %v2353_v31 }
 0x200 PF: > { %s16_s18 = sadd.s32 1, %s2736_s18  }
 0x201   : > { %p13_p5 = scmp.ge.s32.totalorder %s16_s18, 4  }
 0x203   :  { %15 = sbr.rel (!%p13_p5) target bundleno = 1 (0x1), region = 78 }

// kernel: bottleneck_forward.7
= control target key start
LH: loop header
LB: loop body
LE: loop exit
PB: predicated region body
PF: predicated region fallthrough
CT: control target
= control target key end

     0   :  { %s1260_s15 = smov 0   ;;  %s2460_s0 = inlined_call_operand.vmem [shape: f32[2048,32], index: 0, kind: input, shape index: {}]   ;;  %s2461_s1 = inlined_call_operand.vmem [shape: f32[1,32], index: 1, kind: input, shape index: {}]   ;;  %s2462_s2 = inlined_call_operand.vmem [shape: f32[1,32], index: 2, kind: input, shape index: {}]   ;;  %s2463_s3 = inlined_call_operand.vmem [shape: f32[2048,32], index: 3, kind: input, shape index: {}, may-alias: {3,4}]   ;;  %s2464_s4 = inlined_call_operand.vmem [shape: f32[2048,32], index: 4, kind: output, shape index: {}, may-alias: {3,4}]  }
   0x1 LB: > { %s1202_s16 = sadd.s32 4294967295, %s1233_s15   ;;  %p1206_p0 = scmp.ge.s32.totalorder %s1233_s15, 1  ;;  %s1233_s15 = sphi %s1260_s15, %s14_s15  }
   0x2   : > { %p174_p1 = scmp.lt.s32.totalorder %s1233_s15, 3 }
   0x4   : > { %p175_p2 = pnand %p1206_p0, %p174_p1 }
   0x6   : > { %178 = sbr.rel (%p175_p2) target bundleno = 209 (0xd1), region = 36 }
   0xd   : > { %s1207_s17 = sshll.u32 %s1202_s16, 7  ;;  %v1277_v1 = vld [vmem:[%s2461_s1] ss:$0 sm:$0xff]  ;;  %vm1005_vm0 = vcmask 261120  }
   0xe   : > { %p206_p3 = scmp.lt.s32.totalorder %s1207_s17, 255  ;;  %v1283_v3 = vld [vmem:[%s2462_s2] ss:$0 sm:$0xff] }
  0x10   : > { %s2631_s17 = smov (!%p206_p3, %s1207_s17), 255 }
  0x11   : > { %s1208_s18 = sshll.u32 %s2631_s17, 3 }
  0x12   : > { %s1271_s21 = scalar_lea.vmem %s2460_s0, %s1208_s18  ;;  %s1288_s28 = scalar_lea.vmem %s2463_s3, %s1208_s18 }
  0x13   : > { %v223_v0 = vld [vmem:[%s1271_s21] sm:$0xff]  ;;  %s1298_s5 = scalar_lea.vmem %s2464_s4, %s1208_s18  ;;  %v1301_v8 = vld [vmem:[%s1288_s28 + $0x8] sm:$0xff]  ;;  %v1304_v9 = vld [vmem:[%s1288_s28 + $0x10] sm:$0xff] }
  0x14   : > { %v358_v2 = vmul.f32 %v1277_v1, %v223_v0  ;;  %v621_v5 = vld [vmem:[%s1288_s28] sm:$0xff]  ;;  %v1307_v10 = vld [vmem:[%s1288_s28 + $0x18] sm:$0xff]  ;;  %v1313_v12 = vld [vmem:[%s1288_s28 + $0x28] sm:$0xff] }
  0x15   : > { %v1310_v11 = vld [vmem:[%s1288_s28 + $0x20] sm:$0xff]  ;;  %v1316_v13 = vld [vmem:[%s1288_s28 + $0x30] sm:$0xff]  ;;  %v1319_v14 = vld [vmem:[%s1288_s28 + $0x38] sm:$0xff] }
  0x16   : > { %v493_v4 = vadd.f32 %v1283_v3, %v358_v2  ;;  %v1322_v15 = vld [vmem:[%s1288_s28 + $0x40] sm:$0xff]  ;;  %v1325_v16 = vld [vmem:[%s1288_s28 + $0x48] sm:$0xff]  ;;  %v1328_v17 = vld [vmem:[%s1288_s28 + $0x50] sm:$0xff] }
  0x17   : > { %v1331_v18 = vld [vmem:[%s1288_s28 + $0x58] sm:$0xff]  ;;  %v1334_v19 = vld [vmem:[%s1288_s28 + $0x60] sm:$0xff]  ;;  %v1337_v20 = vld [vmem:[%s1288_s28 + $0x68] sm:$0xff] }
  0x18   : > { %v1292_v6 = vadd.f32 %v621_v5, %v493_v4  ;;  %v1340_v21 = vld [vmem:[%s1288_s28 + $0x70] sm:$0xff]  ;;  %v1343_v22 = vld [vmem:[%s1288_s28 + $0x78] sm:$0xff]  ;;  %v1346_v23 = vld [vmem:[%s1288_s28 + $0x80] sm:$0xff] }
  0x19   : > { %v1349_v24 = vld [vmem:[%s1288_s28 + $0x88] sm:$0xff]  ;;  %v1352_v25 = vld [vmem:[%s1288_s28 + $0x90] sm:$0xff]  ;;  %v1355_v26 = vld [vmem:[%s1288_s28 + $0x98] sm:$0xff] }
  0x1a   : > { %v1358_v27 = vld [vmem:[%s1288_s28 + $0xa0] sm:$0xff]  ;;  %v1361_v28 = vld [vmem:[%s1288_s28 + $0xa8] sm:$0xff]  ;;  %v1364_v29 = vld [vmem:[%s1288_s28 + $0xb0] sm:$0xff] }
  0x1b   : > { %v1367_v30 = vld [vmem:[%s1288_s28 + $0xb8] sm:$0xff]  ;;  %v1370_v31 = vld [vmem:[%s1288_s28 + $0xc0] sm:$0xff]  ;;  %v1373_v32 = vld [vmem:[%s1288_s28 + $0xc8] sm:$0xff] }
  0x1c   : > { %v1376_v33 = vld [vmem:[%s1288_s28 + $0xd0] sm:$0xff]  ;;  %v1379_v34 = vld [vmem:[%s1288_s28 + $0xd8] sm:$0xff]  ;;  %v1382_v35 = vld [vmem:[%s1288_s28 + $0xe0] sm:$0xff] }
  0x1d   : > { %v1385_v36 = vld [vmem:[%s1288_s28 + $0xe8] sm:$0xff]  ;;  %v1388_v37 = vld [vmem:[%s1288_s28 + $0xf0] sm:$0xff]  ;;  %v1391_v38 = vld [vmem:[%s1288_s28 + $0xf8] sm:$0xff] }
  0x1e   : > { %v1394_v39 = vld [vmem:[%s1288_s28 + $0x100] sm:$0xff]  ;;  %v1397_v40 = vld [vmem:[%s1288_s28 + $0x108] sm:$0xff]  ;;  %v1400_v41 = vld [vmem:[%s1288_s28 + $0x110] sm:$0xff] }
  0x1f   : > { %v1403_v42 = vld [vmem:[%s1288_s28 + $0x118] sm:$0xff]  ;;  %v1406_v43 = vld [vmem:[%s1288_s28 + $0x120] sm:$0xff]  ;;  %v1409_v44 = vld [vmem:[%s1288_s28 + $0x128] sm:$0xff] }
  0x20   : > { %v1412_v45 = vld [vmem:[%s1288_s28 + $0x130] sm:$0xff]  ;;  %v1415_v46 = vld [vmem:[%s1288_s28 + $0x138] sm:$0xff]  ;;  %v1418_v47 = vld [vmem:[%s1288_s28 + $0x140] sm:$0xff] }
  0x21   : > { %v1421_v48 = vld [vmem:[%s1288_s28 + $0x148] sm:$0xff]  ;;  %v1424_v49 = vld [vmem:[%s1288_s28 + $0x150] sm:$0xff]  ;;  %v1427_v50 = vld [vmem:[%s1288_s28 + $0x158] sm:$0xff] }
  0x22   : > { %v1430_v51 = vld [vmem:[%s1288_s28 + $0x160] sm:$0xff]  ;;  %v1433_v52 = vld [vmem:[%s1288_s28 + $0x168] sm:$0xff]  ;;  %v1436_v53 = vld [vmem:[%s1288_s28 + $0x170] sm:$0xff] }
  0x23   : > { %2465 = vst [vmem:[#allocation2_spill] sm:$0xff] %v1436_v53  ;;  %v1439_v54 = vld [vmem:[%s1288_s28 + $0x178] sm:$0xff]  ;;  %v1442_v55 = vld [vmem:[%s1288_s28 + $0x180] sm:$0xff]  ;;  %v1445_v56 = vld [vmem:[%s1288_s28 + $0x188] sm:$0xff] }
  0x24   : > { %2466 = vst [vmem:[#allocation3_spill] sm:$0xff] %v1439_v54  ;;  %2467 = vst [vmem:[#allocation4_spill] sm:$0xff] %v1442_v55  ;;  %v1448_v57 = vld [vmem:[%s1288_s28 + $0x190] sm:$0xff]  ;;  %v1451_v58 = vld [vmem:[%s1288_s28 + $0x198] sm:$0xff] }
  0x25   : > { %2468 = vst [vmem:[#allocation5_spill] sm:$0xff] %v1445_v56  ;;  %2469 = vst [vmem:[#allocation6_spill] sm:$0xff] %v1448_v57  ;;  %v1454_v59 = vld [vmem:[%s1288_s28 + $0x1a0] sm:$0xff]  ;;  %v1457_v60 = vld [vmem:[%s1288_s28 + $0x1a8] sm:$0xff] }
  0x26   : > { %2470 = vst [vmem:[#allocation7_spill] sm:$0xff] %v1451_v58  ;;  %2471 = vst [vmem:[#allocation8_spill] sm:$0xff] %v1454_v59  ;;  %v1460_v61 = vld [vmem:[%s1288_s28 + $0x1b0] sm:$0xff]  ;;  %v1463_v62 = vld [vmem:[%s1288_s28 + $0x1b8] sm:$0xff] }
  0x27   : > { %2472 = vst [vmem:[#allocation9_spill] sm:$0xff] %v1457_v60  ;;  %2473 = vst [vmem:[#allocation10_spill] sm:$0xff] %v1460_v61  ;;  %v1466_v63 = vld [vmem:[%s1288_s28 + $0x1c0] sm:$0xff]  ;;  %v1469_v0 = vld [vmem:[%s1288_s28 + $0x1c8] sm:$0xff] }
  0x28   : > { %2474 = vst [vmem:[#allocation11_spill] sm:$0xff] %v1463_v62  ;;  %2475 = vst [vmem:[#allocation12_spill] sm:$0xff] %v1466_v63  ;;  %v1472_v2 = vld [vmem:[%s1288_s28 + $0x1d0] sm:$0xff]  ;;  %v1475_v4 = vld [vmem:[%s1288_s28 + $0x1d8] sm:$0xff] }
  0x29   : > { %2476 = vst [vmem:[#allocation13_spill] sm:$0xff] %v1469_v0  ;;  %2477 = vst [vmem:[#allocation14_spill] sm:$0xff] %v1472_v2  ;;  %v1478_v5 = vld [vmem:[%s1288_s28 + $0x1e0] sm:$0xff]  ;;  %v1481_v7 = vld [vmem:[%s1288_s28 + $0x1e8] sm:$0xff] }
  0x2a   : > { %2478 = vst [vmem:[#allocation15_spill] sm:$0xff] %v1475_v4  ;;  %2479 = vst [vmem:[#allocation16_spill] sm:$0xff] %v1478_v5  ;;  %v1484_v62 = vld [vmem:[%s1288_s28 + $0x1f0] sm:$0xff]  ;;  %v1487_v63 = vld [vmem:[%s1288_s28 + $0x1f8] sm:$0xff] }
  0x2b   : > { %2480 = vst [vmem:[#allocation17_spill] sm:$0xff] %v1481_v7  ;;  %2481 = vst [vmem:[#allocation18_spill] sm:$0xff] %v1484_v62  ;;  %v1490_v0 = vld [vmem:[%s1288_s28 + $0x200] sm:$0xff]  ;;  %v1493_v2 = vld [vmem:[%s1288_s28 + $0x208] sm:$0xff] }
  0x2c   : > { %2482 = vst [vmem:[#allocation19_spill] sm:$0xff] %v1487_v63  ;;  %2483 = vst [vmem:[#allocation20_spill] sm:$0xff] %v1490_v0  ;;  %v1496_v4 = vld [vmem:[%s1288_s28 + $0x210] sm:$0xff]  ;;  %v1499_v5 = vld [vmem:[%s1288_s28 + $0x218] sm:$0xff] }
  0x2d   : > { %2484 = vst [vmem:[#allocation21_spill] sm:$0xff] %v1493_v2  ;;  %2485 = vst [vmem:[#allocation22_spill] sm:$0xff] %v1496_v4  ;;  %v1502_v7 = vld [vmem:[%s1288_s28 + $0x220] sm:$0xff]  ;;  %v1505_v62 = vld [vmem:[%s1288_s28 + $0x228] sm:$0xff] }
  0x2e   : > { %2486 = vst [vmem:[#allocation23_spill] sm:$0xff] %v1499_v5  ;;  %2487 = vst [vmem:[#allocation24_spill] sm:$0xff] %v1502_v7  ;;  %v1508_v63 = vld [vmem:[%s1288_s28 + $0x230] sm:$0xff]  ;;  %v1511_v0 = vld [vmem:[%s1288_s28 + $0x238] sm:$0xff] }
  0x2f   : > { %2488 = vst [vmem:[#allocation25_spill] sm:$0xff] %v1505_v62  ;;  %2489 = vst [vmem:[#allocation26_spill] sm:$0xff] %v1508_v63  ;;  %v1514_v2 = vld [vmem:[%s1288_s28 + $0x240] sm:$0xff]  ;;  %v1517_v4 = vld [vmem:[%s1288_s28 + $0x248] sm:$0xff] }
  0x30   : > { %2490 = vst [vmem:[#allocation27_spill] sm:$0xff] %v1511_v0  ;;  %2491 = vst [vmem:[#allocation28_spill] sm:$0xff] %v1514_v2  ;;  %v1520_v5 = vld [vmem:[%s1288_s28 + $0x250] sm:$0xff]  ;;  %v1523_v7 = vld [vmem:[%s1288_s28 + $0x258] sm:$0xff] }
  0x31   : > { %2492 = vst [vmem:[#allocation29_spill] sm:$0xff] %v1517_v4  ;;  %2493 = vst [vmem:[#allocation30_spill] sm:$0xff] %v1520_v5  ;;  %v1526_v62 = vld [vmem:[%s1288_s28 + $0x260] sm:$0xff]  ;;  %v1529_v63 = vld [vmem:[%s1288_s28 + $0x268] sm:$0xff] }
  0x32   : > { %2494 = vst [vmem:[#allocation31_spill] sm:$0xff] %v1523_v7  ;;  %2495 = vst [vmem:[#allocation32_spill] sm:$0xff] %v1526_v62  ;;  %v1532_v0 = vld [vmem:[%s1288_s28 + $0x270] sm:$0xff]  ;;  %v1535_v2 = vld [vmem:[%s1288_s28 + $0x278] sm:$0xff] }
  0x33   : > { %2496 = vst [vmem:[#allocation33_spill] sm:$0xff] %v1529_v63  ;;  %2497 = vst [vmem:[#allocation34_spill] sm:$0xff] %v1532_v0  ;;  %v1538_v4 = vld [vmem:[%s1288_s28 + $0x280] sm:$0xff]  ;;  %v1541_v5 = vld [vmem:[%s1288_s28 + $0x288] sm:$0xff] }
  0x34   : > { %2498 = vst [vmem:[#allocation35_spill] sm:$0xff] %v1535_v2  ;;  %2499 = vst [vmem:[#allocation36_spill] sm:$0xff] %v1538_v4  ;;  %v1544_v7 = vld [vmem:[%s1288_s28 + $0x290] sm:$0xff]  ;;  %v1547_v62 = vld [vmem:[%s1288_s28 + $0x298] sm:$0xff] }
  0x35   : > { %2500 = vst [vmem:[#allocation37_spill] sm:$0xff] %v1541_v5  ;;  %2501 = vst [vmem:[#allocation38_spill] sm:$0xff] %v1544_v7  ;;  %v1550_v63 = vld [vmem:[%s1288_s28 + $0x2a0] sm:$0xff]  ;;  %v1553_v0 = vld [vmem:[%s1288_s28 + $0x2a8] sm:$0xff] }
  0x36   : > { %2502 = vst [vmem:[#allocation39_spill] sm:$0xff] %v1547_v62  ;;  %2503 = vst [vmem:[#allocation40_spill] sm:$0xff] %v1550_v63  ;;  %v1556_v2 = vld [vmem:[%s1288_s28 + $0x2b0] sm:$0xff]  ;;  %v1559_v4 = vld [vmem:[%s1288_s28 + $0x2b8] sm:$0xff] }
  0x37   : > { %2504 = vst [vmem:[#allocation41_spill] sm:$0xff] %v1553_v0  ;;  %2505 = vst [vmem:[#allocation42_spill] sm:$0xff] %v1556_v2  ;;  %v1562_v5 = vld [vmem:[%s1288_s28 + $0x2c0] sm:$0xff]  ;;  %v1565_v7 = vld [vmem:[%s1288_s28 + $0x2c8] sm:$0xff] }
  0x38   : > { %2506 = vst [vmem:[#allocation43_spill] sm:$0xff] %v1559_v4  ;;  %2507 = vst [vmem:[#allocation44_spill] sm:$0xff] %v1562_v5  ;;  %v1568_v62 = vld [vmem:[%s1288_s28 + $0x2d0] sm:$0xff]  ;;  %v1571_v63 = vld [vmem:[%s1288_s28 + $0x2d8] sm:$0xff] }
  0x39   : > { %2508 = vst [vmem:[#allocation45_spill] sm:$0xff] %v1565_v7  ;;  %2509 = vst [vmem:[#allocation46_spill] sm:$0xff] %v1568_v62  ;;  %v1574_v0 = vld [vmem:[%s1288_s28 + $0x2e0] sm:$0xff]  ;;  %v1577_v2 = vld [vmem:[%s1288_s28 + $0x2e8] sm:$0xff] }
  0x3a   : > { %2510 = vst [vmem:[#allocation47_spill] sm:$0xff] %v1571_v63  ;;  %2511 = vst [vmem:[#allocation48_spill] sm:$0xff] %v1574_v0  ;;  %v1580_v4 = vld [vmem:[%s1288_s28 + $0x2f0] sm:$0xff]  ;;  %v1583_v5 = vld [vmem:[%s1288_s28 + $0x2f8] sm:$0xff] }
  0x3b   : > { %2512 = vst [vmem:[#allocation49_spill] sm:$0xff] %v1577_v2  ;;  %2513 = vst [vmem:[#allocation50_spill] sm:$0xff] %v1580_v4  ;;  %v1586_v7 = vld [vmem:[%s1288_s28 + $0x300] sm:$0xff]  ;;  %v1589_v62 = vld [vmem:[%s1288_s28 + $0x308] sm:$0xff] }
  0x3c   : > { %2514 = vst [vmem:[#allocation51_spill] sm:$0xff] %v1583_v5  ;;  %2515 = vst [vmem:[#allocation52_spill] sm:$0xff] %v1586_v7  ;;  %v1592_v63 = vld [vmem:[%s1288_s28 + $0x310] sm:$0xff]  ;;  %v1595_v0 = vld [vmem:[%s1288_s28 + $0x318] sm:$0xff] }
  0x3d   : > { %2516 = vst [vmem:[#allocation53_spill] sm:$0xff] %v1589_v62  ;;  %2517 = vst [vmem:[#allocation54_spill] sm:$0xff] %v1592_v63  ;;  %v1598_v2 = vld [vmem:[%s1288_s28 + $0x320] sm:$0xff]  ;;  %v1601_v4 = vld [vmem:[%s1288_s28 + $0x328] sm:$0xff] }
  0x3e   : > { %2518 = vst [vmem:[#allocation55_spill] sm:$0xff] %v1595_v0  ;;  %2519 = vst [vmem:[#allocation56_spill] sm:$0xff] %v1598_v2  ;;  %v1604_v5 = vld [vmem:[%s1288_s28 + $0x330] sm:$0xff]  ;;  %v1607_v7 = vld [vmem:[%s1288_s28 + $0x338] sm:$0xff] }
  0x3f   : > { %2520 = vst [vmem:[#allocation57_spill] sm:$0xff] %v1601_v4  ;;  %2521 = vst [vmem:[#allocation58_spill] sm:$0xff] %v1604_v5  ;;  %v1610_v62 = vld [vmem:[%s1288_s28 + $0x340] sm:$0xff]  ;;  %v1613_v63 = vld [vmem:[%s1288_s28 + $0x348] sm:$0xff] }
  0x40   : > { %2522 = vst [vmem:[#allocation59_spill] sm:$0xff] %v1607_v7  ;;  %2523 = vst [vmem:[#allocation60_spill] sm:$0xff] %v1610_v62  ;;  %v1616_v0 = vld [vmem:[%s1288_s28 + $0x350] sm:$0xff]  ;;  %v1619_v61 = vld [vmem:[%s1288_s28 + $0x358] sm:$0xff] }
  0x41   : > { %2524 = vst [vmem:[#allocation61_spill] sm:$0xff] %v1613_v63  ;;  %2525 = vst [vmem:[#allocation62_spill] sm:$0xff] %v1616_v0  ;;  %v1622_v2 = vld [vmem:[%s1288_s28 + $0x360] sm:$0xff]  ;;  %v1625_v4 = vld [vmem:[%s1288_s28 + $0x368] sm:$0xff] }
  0x42   : > { %2526 = vst [vmem:[#allocation63_spill] sm:$0xff] %v1619_v61  ;;  %2527 = vst [vmem:[#allocation64_spill] sm:$0xff] %v1622_v2  ;;  %v1628_v5 = vld [vmem:[%s1288_s28 + $0x370] sm:$0xff]  ;;  %v1631_v7 = vld [vmem:[%s1288_s28 + $0x378] sm:$0xff] }
  0x43   : > { %2528 = vst [vmem:[#allocation65_spill] sm:$0xff] %v1625_v4  ;;  %2529 = vst [vmem:[#allocation66_spill] sm:$0xff] %v1628_v5  ;;  %v1634_v62 = vld [vmem:[%s1288_s28 + $0x380] sm:$0xff]  ;;  %v1637_v63 = vld [vmem:[%s1288_s28 + $0x388] sm:$0xff] }
  0x44   : > { %2530 = vst [vmem:[#allocation67_spill] sm:$0xff] %v1631_v7  ;;  %2531 = vst [vmem:[#allocation68_spill] sm:$0xff] %v1634_v62  ;;  %v1640_v61 = vld [vmem:[%s1288_s28 + $0x390] sm:$0xff]  ;;  %v1643_v2 = vld [vmem:[%s1288_s28 + $0x398] sm:$0xff] }
  0x45   : > { %2532 = vst [vmem:[#allocation69_spill] sm:$0xff] %v1637_v63  ;;  %2533 = vst [vmem:[#allocation70_spill] sm:$0xff] %v1640_v61  ;;  %v1646_v4 = vld [vmem:[%s1288_s28 + $0x3a0] sm:$0xff]  ;;  %v1649_v5 = vld [vmem:[%s1288_s28 + $0x3a8] sm:$0xff] }
  0x46   : > { %2534 = vst [vmem:[#allocation71_spill] sm:$0xff] %v1643_v2  ;;  %2535 = vst [vmem:[#allocation72_spill] sm:$0xff] %v1646_v4  ;;  %v1652_v0 = vld [vmem:[%s1288_s28 + $0x3b0] sm:$0xff]  ;;  %v1655_v7 = vld [vmem:[%s1288_s28 + $0x3b8] sm:$0xff] }
  0x47   : > { %2536 = vst [vmem:[#allocation73_spill] sm:$0xff] %v1649_v5  ;;  %2537 = vst [vmem:[#allocation74_spill] sm:$0xff] %v1652_v0  ;;  %v1658_v62 = vld [vmem:[%s1288_s28 + $0x3c0] sm:$0xff]  ;;  %v1661_v63 = vld [vmem:[%s1288_s28 + $0x3c8] sm:$0xff] }
  0x48   : > { %2538 = vst [vmem:[#allocation75_spill] sm:$0xff] %v1655_v7  ;;  %2539 = vst [vmem:[#allocation76_spill] sm:$0xff] %v1658_v62  ;;  %v1664_v61 = vld [vmem:[%s1288_s28 + $0x3d0] sm:$0xff]  ;;  %v1667_v2 = vld [vmem:[%s1288_s28 + $0x3d8] sm:$0xff]  ;;  %v2547_v62 = vmax.f32 %v1292_v6, 0.0 }
  0x49   : > { %2540 = vst [vmem:[#allocation77_spill] sm:$0xff] %v1661_v63  ;;  %2541 = vst [vmem:[#allocation78_spill] sm:$0xff] %v1664_v61  ;;  %v1670_v4 = vld [vmem:[%s1288_s28 + $0x3e0] sm:$0xff]  ;;  %v1673_v60 = vld [vmem:[%s1288_s28 + $0x3e8] sm:$0xff] }
  0x4a   : > { %2542 = vst [vmem:[#allocation79_spill] sm:$0xff] %v1667_v2  ;;  %2543 = vst [vmem:[#allocation80_spill] sm:$0xff] %v1670_v4  ;;  %v1676_v0 = vld [vmem:[%s1288_s28 + $0x3f0] sm:$0xff]  ;;  %v1679_v7 = vld [vmem:[%s1288_s28 + $0x3f8] sm:$0xff] }
  0x4b   : > { %2544 = vst [vmem:[#allocation81_spill] sm:$0xff] %v1673_v60  ;;  %2545 = vst [vmem:[#allocation82_spill] sm:$0xff] %v1676_v0  ;;  %v224_v63 = vld [vmem:[%s1271_s21 + $0x8] sm:$0xff]  ;;  %v225_v5 = vld [vmem:[%s1271_s21 + $0x10] sm:$0xff] }
  0x4c   : > { %2546 = vst [vmem:[#allocation83_spill] sm:$0xff] %v1679_v7  ;;  %1006 = vst.msk [vmem:[%s1298_s5] sm:$0xff] %vm1005_vm0, %v2547_v62  ;;  %v226_v59 = vld [vmem:[%s1271_s21 + $0x18] sm:$0xff]  ;;  %v359_v61 = vmul.f32 %v1277_v1, %v224_v63  ;;  %v360_v2 = vmul.f32 %v1277_v1, %v225_v5  ;;  %v227_v60 = vld [vmem:[%s1271_s21 + $0x20] sm:$0xff] }
  0x4d   : > { %v361_v4 = vmul.f32 %v1277_v1, %v226_v59  ;;  %v228_v58 = vld [vmem:[%s1271_s21 + $0x28] sm:$0xff]  ;;  %v229_v57 = vld [vmem:[%s1271_s21 + $0x30] sm:$0xff]  ;;  %v362_v0 = vmul.f32 %v1277_v1, %v227_v60  ;;  %v230_v56 = vld [vmem:[%s1271_s21 + $0x38] sm:$0xff] }
  0x4e   : > { %v363_v7 = vmul.f32 %v1277_v1, %v228_v58  ;;  %v364_v6 = vmul.f32 %v1277_v1, %v229_v57  ;;  %v231_v62 = vld [vmem:[%s1271_s21 + $0x40] sm:$0xff]  ;;  %v494_v55 = vadd.f32 %v1283_v3, %v359_v61  ;;  %v495_v63 = vadd.f32 %v1283_v3, %v360_v2 }
  0x4f   : > { %v496_v5 = vadd.f32 %v1283_v3, %v361_v4  ;;  %v365_v59 = vmul.f32 %v1277_v1, %v230_v56  ;;  %v497_v54 = vadd.f32 %v1283_v3, %v362_v0  ;;  %v366_v57 = vmul.f32 %v1277_v1, %v231_v62  ;;  %v232_v62 = vld [vmem:[%s1271_s21 + $0x48] sm:$0xff] }
  0x50   : > { %v498_v60 = vadd.f32 %v1283_v3, %v363_v7  ;;  %v499_v58 = vadd.f32 %v1283_v3, %v364_v6  ;;  %v750_v61 = vadd.f32 %v1301_v8, %v494_v55  ;;  %v751_v2 = vadd.f32 %v1304_v9, %v495_v63  ;;  %v233_v8 = vld [vmem:[%s1271_s21 + $0x50] sm:$0xff]  ;;  %v234_v9 = vld [vmem:[%s1271_s21 + $0x58] sm:$0xff] }
  0x51   : > { %v752_v4 = vadd.f32 %v1307_v10, %v496_v5  ;;  %v500_v53 = vadd.f32 %v1283_v3, %v365_v59  ;;  %v753_v56 = vadd.f32 %v1310_v11, %v497_v54  ;;  %v501_v6 = vadd.f32 %v1283_v3, %v366_v57  ;;  %v235_v11 = vld [vmem:[%s1271_s21 + $0x60] sm:$0xff]  ;;  %v238_v57 = vld [vmem:[%s1271_s21 + $0x78] sm:$0xff] }
  0x52   : > { %v754_v0 = vadd.f32 %v1313_v12, %v498_v60  ;;  %v755_v7 = vadd.f32 %v1316_v13, %v499_v58  ;;  %v878_v55 = vmax.f32 %v750_v61, 0.0  ;;  %v879_v63 = vmax.f32 %v751_v2, 0.0  ;;  %v236_v12 = vld [vmem:[%s1271_s21 + $0x68] sm:$0xff]  ;;  %v237_v13 = vld [vmem:[%s1271_s21 + $0x70] sm:$0xff] }
  0x53   : > { %v880_v10 = vmax.f32 %v752_v4, 0.0  ;;  %v756_v5 = vadd.f32 %v1319_v14, %v500_v53  ;;  %v881_v54 = vmax.f32 %v753_v56, 0.0  ;;  %v757_v58 = vadd.f32 %v1322_v15, %v501_v6  ;;  %v239_v4 = vld [vmem:[%s1271_s21 + $0x80] sm:$0xff] }
  0x54   : > { %v882_v59 = vmax.f32 %v754_v0, 0.0  ;;  %v883_v60 = vmax.f32 %v755_v7, 0.0  ;;  %1007 = vst.msk [vmem:[%s1298_s5 + $0x8] sm:$0xff] %vm1005_vm0, %v878_v55  ;;  %1008 = vst.msk [vmem:[%s1298_s5 + $0x10] sm:$0xff] %vm1005_vm0, %v879_v63  ;;  %v367_v53 = vmul.f32 %v1277_v1, %v232_v62  ;;  %v368_v61 = vmul.f32 %v1277_v1, %v233_v8 }
  0x55   : > { %1009 = vst.msk [vmem:[%s1298_s5 + $0x18] sm:$0xff] %vm1005_vm0, %v880_v10  ;;  %v884_v14 = vmax.f32 %v756_v5, 0.0  ;;  %v369_v2 = vmul.f32 %v1277_v1, %v234_v9  ;;  %1010 = vst.msk [vmem:[%s1298_s5 + $0x20] sm:$0xff] %vm1005_vm0, %v881_v54  ;;  %v885_v15 = vmax.f32 %v757_v58, 0.0  ;;  %v370_v56 = vmul.f32 %v1277_v1, %v235_v11 }
  0x56   : > { %1011 = vst.msk [vmem:[%s1298_s5 + $0x28] sm:$0xff] %vm1005_vm0, %v882_v59  ;;  %1012 = vst.msk [vmem:[%s1298_s5 + $0x30] sm:$0xff] %vm1005_vm0, %v883_v60  ;;  %v371_v0 = vmul.f32 %v1277_v1, %v236_v12  ;;  %v372_v7 = vmul.f32 %v1277_v1, %v237_v13  ;;  %v502_v6 = vadd.f32 %v1283_v3, %v367_v53 }
  0x57   : > { %1013 = vst.msk [vmem:[%s1298_s5 + $0x38] sm:$0xff] %vm1005_vm0, %v884_v14  ;;  %v503_v62 = vadd.f32 %v1283_v3, %v368_v61  ;;  %v504_v8 = vadd.f32 %v1283_v3, %v369_v2  ;;  %v373_v9 = vmul.f32 %v1277_v1, %v238_v57  ;;  %1014 = vst.msk [vmem:[%s1298_s5 + $0x40] sm:$0xff] %vm1005_vm0, %v885_v15  ;;  %v240_v14 = vld [vmem:[%s1271_s21 + $0x88] sm:$0xff] }
  0x58   : > { %v505_v55 = vadd.f32 %v1283_v3, %v370_v56  ;;  %v506_v63 = vadd.f32 %v1283_v3, %v371_v0  ;;  %v507_v10 = vadd.f32 %v1283_v3, %v372_v7  ;;  %v374_v5 = vmul.f32 %v1277_v1, %v239_v4  ;;  %v246_v7 = vld [vmem:[%s1271_s21 + $0xb8] sm:$0xff] }
  0x59   : > { %v758_v11 = vadd.f32 %v1325_v16, %v502_v6  ;;  %v759_v12 = vadd.f32 %v1328_v17, %v503_v62  ;;  %v760_v13 = vadd.f32 %v1331_v18, %v504_v8  ;;  %v508_v54 = vadd.f32 %v1283_v3, %v373_v9  ;;  %v241_v16 = vld [vmem:[%s1271_s21 + $0x90] sm:$0xff]  ;;  %v242_v17 = vld [vmem:[%s1271_s21 + $0x98] sm:$0xff]  ;;  %v247_v9 = vld [vmem:[%s1271_s21 + $0xc0] sm:$0xff] }
  0x5a   : > { %v761_v59 = vadd.f32 %v1334_v19, %v505_v55  ;;  %v762_v60 = vadd.f32 %v1337_v20, %v506_v63  ;;  %v763_v58 = vadd.f32 %v1340_v21, %v507_v10  ;;  %v509_v57 = vadd.f32 %v1283_v3, %v374_v5  ;;  %v243_v19 = vld [vmem:[%s1271_s21 + $0xa0] sm:$0xff]  ;;  %v244_v20 = vld [vmem:[%s1271_s21 + $0xa8] sm:$0xff]  ;;  %v245_v21 = vld [vmem:[%s1271_s21 + $0xb0] sm:$0xff] }
  0x5b   : > { %v886_v53 = vmax.f32 %v758_v11, 0.0  ;;  %v887_v61 = vmax.f32 %v759_v12, 0.0  ;;  %v888_v18 = vmax.f32 %v760_v13, 0.0  ;;  %v764_v2 = vadd.f32 %v1343_v22, %v508_v54 }
  0x5c   : > { %v889_v4 = vmax.f32 %v761_v59, 0.0  ;;  %v890_v15 = vmax.f32 %v762_v60, 0.0  ;;  %v891_v56 = vmax.f32 %v763_v58, 0.0  ;;  %v765_v0 = vadd.f32 %v1346_v23, %v509_v57 }
  0x5d   : > { %1015 = vst.msk [vmem:[%s1298_s5 + $0x48] sm:$0xff] %vm1005_vm0, %v886_v53  ;;  %1016 = vst.msk [vmem:[%s1298_s5 + $0x50] sm:$0xff] %vm1005_vm0, %v887_v61  ;;  %v892_v22 = vmax.f32 %v764_v2, 0.0  ;;  %v375_v6 = vmul.f32 %v1277_v1, %v240_v14  ;;  %v376_v62 = vmul.f32 %v1277_v1, %v241_v16  ;;  %v377_v8 = vmul.f32 %v1277_v1, %v242_v17 }
  0x5e   : > { %1017 = vst.msk [vmem:[%s1298_s5 + $0x58] sm:$0xff] %vm1005_vm0, %v888_v18  ;;  %1018 = vst.msk [vmem:[%s1298_s5 + $0x60] sm:$0xff] %vm1005_vm0, %v889_v4  ;;  %v893_v23 = vmax.f32 %v765_v0, 0.0  ;;  %v378_v55 = vmul.f32 %v1277_v1, %v243_v19  ;;  %v379_v63 = vmul.f32 %v1277_v1, %v244_v20  ;;  %v380_v10 = vmul.f32 %v1277_v1, %v245_v21  ;;  %v248_v19 = vld [vmem:[%s1271_s21 + $0xc8] sm:$0xff] }
  0x5f   : > { %1019 = vst.msk [vmem:[%s1298_s5 + $0x68] sm:$0xff] %vm1005_vm0, %v890_v15  ;;  %1020 = vst.msk [vmem:[%s1298_s5 + $0x70] sm:$0xff] %vm1005_vm0, %v891_v56  ;;  %v510_v5 = vadd.f32 %v1283_v3, %v375_v6  ;;  %v511_v11 = vadd.f32 %v1283_v3, %v376_v62  ;;  %v512_v12 = vadd.f32 %v1283_v3, %v377_v8 }
  0x60   : > { %1021 = vst.msk [vmem:[%s1298_s5 + $0x78] sm:$0xff] %vm1005_vm0, %v892_v22  ;;  %v381_v13 = vmul.f32 %v1277_v1, %v246_v7  ;;  %1022 = vst.msk [vmem:[%s1298_s5 + $0x80] sm:$0xff] %vm1005_vm0, %v893_v23  ;;  %v513_v54 = vadd.f32 %v1283_v3, %v378_v55  ;;  %v514_v59 = vadd.f32 %v1283_v3, %v379_v63  ;;  %v254_v22 = vld [vmem:[%s1271_s21 + $0xf8] sm:$0xff] }
  0x61   : > { %v515_v60 = vadd.f32 %v1283_v3, %v380_v10  ;;  %v382_v58 = vmul.f32 %v1277_v1, %v247_v9  ;;  %v766_v57 = vadd.f32 %v1349_v24, %v510_v5  ;;  %v767_v14 = vadd.f32 %v1352_v25, %v511_v11  ;;  %v249_v24 = vld [vmem:[%s1271_s21 + $0xd0] sm:$0xff]  ;;  %v250_v25 = vld [vmem:[%s1271_s21 + $0xd8] sm:$0xff]  ;;  %v255_v9 = vld [vmem:[%s1271_s21 + $0x100] sm:$0xff] }
  0x62   : > { %v768_v16 = vadd.f32 %v1355_v26, %v512_v12  ;;  %v516_v17 = vadd.f32 %v1283_v3, %v381_v13  ;;  %v769_v53 = vadd.f32 %v1358_v27, %v513_v54  ;;  %v770_v61 = vadd.f32 %v1361_v28, %v514_v59  ;;  %v251_v27 = vld [vmem:[%s1271_s21 + $0xe0] sm:$0xff]  ;;  %v252_v28 = vld [vmem:[%s1271_s21 + $0xe8] sm:$0xff] }
  0x63   : > { %v771_v18 = vadd.f32 %v1364_v29, %v515_v60  ;;  %v517_v2 = vadd.f32 %v1283_v3, %v382_v58  ;;  %v894_v20 = vmax.f32 %v766_v57, 0.0  ;;  %v895_v21 = vmax.f32 %v767_v14, 0.0  ;;  %v253_v29 = vld [vmem:[%s1271_s21 + $0xf0] sm:$0xff] }
  0x64   : > { %v896_v26 = vmax.f32 %v768_v16, 0.0  ;;  %v772_v4 = vadd.f32 %v1367_v30, %v516_v17  ;;  %v897_v15 = vmax.f32 %v769_v53, 0.0  ;;  %v898_v56 = vmax.f32 %v770_v61, 0.0 }
  0x65   : > { %v899_v0 = vmax.f32 %v771_v18, 0.0  ;;  %v773_v7 = vadd.f32 %v1370_v31, %v517_v2  ;;  %1023 = vst.msk [vmem:[%s1298_s5 + $0x88] sm:$0xff] %vm1005_vm0, %v894_v20  ;;  %1024 = vst.msk [vmem:[%s1298_s5 + $0x90] sm:$0xff] %vm1005_vm0, %v895_v21  ;;  %v383_v6 = vmul.f32 %v1277_v1, %v248_v19  ;;  %v384_v62 = vmul.f32 %v1277_v1, %v249_v24  ;;  %v256_v2 = vld [vmem:[%s1271_s21 + $0x108] sm:$0xff] }
  0x66   : > { %1025 = vst.msk [vmem:[%s1298_s5 + $0x98] sm:$0xff] %vm1005_vm0, %v896_v26  ;;  %v900_v30 = vmax.f32 %v772_v4, 0.0  ;;  %v385_v8 = vmul.f32 %v1277_v1, %v250_v25  ;;  %1026 = vst.msk [vmem:[%s1298_s5 + $0xa0] sm:$0xff] %vm1005_vm0, %v897_v15  ;;  %v386_v23 = vmul.f32 %v1277_v1, %v251_v27  ;;  %v387_v55 = vmul.f32 %v1277_v1, %v252_v28  ;;  %v262_v27 = vld [vmem:[%s1271_s21 + $0x138] sm:$0xff] }
  0x67   : > { %1027 = vst.msk [vmem:[%s1298_s5 + $0xa8] sm:$0xff] %vm1005_vm0, %v898_v56  ;;  %1028 = vst.msk [vmem:[%s1298_s5 + $0xb0] sm:$0xff] %vm1005_vm0, %v899_v0  ;;  %v901_v31 = vmax.f32 %v773_v7, 0.0  ;;  %v388_v63 = vmul.f32 %v1277_v1, %v253_v29  ;;  %v518_v10 = vadd.f32 %v1283_v3, %v383_v6  ;;  %v519_v5 = vadd.f32 %v1283_v3, %v384_v62  ;;  %v263_v56 = vld [vmem:[%s1271_s21 + $0x140] sm:$0xff] }
  0x68   : > { %1029 = vst.msk [vmem:[%s1298_s5 + $0xb8] sm:$0xff] %vm1005_vm0, %v900_v30  ;;  %v520_v11 = vadd.f32 %v1283_v3, %v385_v8  ;;  %v389_v12 = vmul.f32 %v1277_v1, %v254_v22  ;;  %v521_v13 = vadd.f32 %v1283_v3, %v386_v23  ;;  %v522_v54 = vadd.f32 %v1283_v3, %v387_v55 }
  0x69   : > { %1030 = vst.msk [vmem:[%s1298_s5 + $0xc0] sm:$0xff] %vm1005_vm0, %v901_v31  ;;  %v523_v59 = vadd.f32 %v1283_v3, %v388_v63  ;;  %v390_v60 = vmul.f32 %v1277_v1, %v255_v9  ;;  %v774_v58 = vadd.f32 %v1373_v32, %v518_v10  ;;  %v775_v57 = vadd.f32 %v1376_v33, %v519_v5  ;;  %v257_v32 = vld [vmem:[%s1271_s21 + $0x110] sm:$0xff]  ;;  %v258_v33 = vld [vmem:[%s1271_s21 + $0x118] sm:$0xff] }
  0x6a   : > { %v776_v14 = vadd.f32 %v1379_v34, %v520_v11  ;;  %v524_v16 = vadd.f32 %v1283_v3, %v389_v12  ;;  %v777_v17 = vadd.f32 %v1382_v35, %v521_v13  ;;  %v778_v53 = vadd.f32 %v1385_v36, %v522_v54  ;;  %v259_v35 = vld [vmem:[%s1271_s21 + $0x120] sm:$0xff]  ;;  %v260_v36 = vld [vmem:[%s1271_s21 + $0x128] sm:$0xff] }
  0x6b   : > { %v779_v61 = vadd.f32 %v1388_v37, %v523_v59  ;;  %v525_v18 = vadd.f32 %v1283_v3, %v390_v60  ;;  %v902_v19 = vmax.f32 %v774_v58, 0.0  ;;  %v903_v24 = vmax.f32 %v775_v57, 0.0  ;;  %v261_v37 = vld [vmem:[%s1271_s21 + $0x130] sm:$0xff]  ;;  %v264_v60 = vld [vmem:[%s1271_s21 + $0x148] sm:$0xff] }
  0x6c   : > { %v904_v34 = vmax.f32 %v776_v14, 0.0  ;;  %v780_v25 = vadd.f32 %v1391_v38, %v524_v16  ;;  %v905_v20 = vmax.f32 %v777_v17, 0.0  ;;  %v906_v21 = vmax.f32 %v778_v53, 0.0 }
  0x6d   : > { %v907_v26 = vmax.f32 %v779_v61, 0.0  ;;  %v781_v4 = vadd.f32 %v1394_v39, %v525_v18  ;;  %1031 = vst.msk [vmem:[%s1298_s5 + $0xc8] sm:$0xff] %vm1005_vm0, %v902_v19  ;;  %1032 = vst.msk [vmem:[%s1298_s5 + $0xd0] sm:$0xff] %vm1005_vm0, %v903_v24  ;;  %v391_v28 = vmul.f32 %v1277_v1, %v256_v2  ;;  %v392_v29 = vmul.f32 %v1277_v1, %v257_v32  ;;  %v270_v18 = vld [vmem:[%s1271_s21 + $0x178] sm:$0xff]  ;;  %v271_v19 = vld [vmem:[%s1271_s21 + $0x180] sm:$0xff] }
  0x6e   : > { %1033 = vst.msk [vmem:[%s1298_s5 + $0xd8] sm:$0xff] %vm1005_vm0, %v904_v34  ;;  %v908_v38 = vmax.f32 %v780_v25, 0.0  ;;  %v393_v15 = vmul.f32 %v1277_v1, %v258_v33  ;;  %1034 = vst.msk [vmem:[%s1298_s5 + $0xe0] sm:$0xff] %vm1005_vm0, %v905_v20  ;;  %v394_v0 = vmul.f32 %v1277_v1, %v259_v35  ;;  %v395_v7 = vmul.f32 %v1277_v1, %v260_v36 }
  0x6f   : > { %1035 = vst.msk [vmem:[%s1298_s5 + $0xe8] sm:$0xff] %vm1005_vm0, %v906_v21  ;;  %1036 = vst.msk [vmem:[%s1298_s5 + $0xf0] sm:$0xff] %vm1005_vm0, %v907_v26  ;;  %v909_v39 = vmax.f32 %v781_v4, 0.0  ;;  %v396_v22 = vmul.f32 %v1277_v1, %v261_v37  ;;  %v526_v30 = vadd.f32 %v1283_v3, %v391_v28  ;;  %v527_v6 = vadd.f32 %v1283_v3, %v392_v29 }
  0x70   : > { %1037 = vst.msk [vmem:[%s1298_s5 + $0xf8] sm:$0xff] %vm1005_vm0, %v908_v38  ;;  %v528_v62 = vadd.f32 %v1283_v3, %v393_v15  ;;  %v397_v8 = vmul.f32 %v1277_v1, %v262_v27  ;;  %v529_v9 = vadd.f32 %v1283_v3, %v394_v0  ;;  %v530_v31 = vadd.f32 %v1283_v3, %v395_v7  ;;  %v2548_v0 = vld [vmem:[#allocation2_spill] sm:$0xff] }
  0x71   : > { %1038 = vst.msk [vmem:[%s1298_s5 + $0x100] sm:$0xff] %vm1005_vm0, %v909_v39  ;;  %v531_v23 = vadd.f32 %v1283_v3, %v396_v22  ;;  %v398_v55 = vmul.f32 %v1277_v1, %v263_v56  ;;  %v782_v63 = vadd.f32 %v1397_v40, %v526_v30  ;;  %v783_v10 = vadd.f32 %v1400_v41, %v527_v6  ;;  %v265_v40 = vld [vmem:[%s1271_s21 + $0x150] sm:$0xff]  ;;  %v266_v41 = vld [vmem:[%s1271_s21 + $0x158] sm:$0xff]  ;;  %v272_v30 = vld [vmem:[%s1271_s21 + $0x188] sm:$0xff] }
  0x72   : > { %v784_v5 = vadd.f32 %v1403_v42, %v528_v62  ;;  %v532_v11 = vadd.f32 %v1283_v3, %v397_v8  ;;  %v785_v12 = vadd.f32 %v1406_v43, %v529_v9  ;;  %v786_v13 = vadd.f32 %v1409_v44, %v530_v31  ;;  %v267_v43 = vld [vmem:[%s1271_s21 + $0x160] sm:$0xff]  ;;  %v268_v44 = vld [vmem:[%s1271_s21 + $0x168] sm:$0xff]  ;;  %v277_v31 = vld [vmem:[%s1271_s21 + $0x1b0] sm:$0xff] }
  0x73   : > { %v787_v54 = vadd.f32 %v1412_v45, %v531_v23  ;;  %v533_v59 = vadd.f32 %v1283_v3, %v398_v55  ;;  %v910_v58 = vmax.f32 %v782_v63, 0.0  ;;  %v911_v57 = vmax.f32 %v783_v10, 0.0  ;;  %v269_v45 = vld [vmem:[%s1271_s21 + $0x170] sm:$0xff]  ;;  %v2549_v8 = vld [vmem:[#allocation3_spill] sm:$0xff] }
  0x74   : > { %v912_v42 = vmax.f32 %v784_v5, 0.0  ;;  %v788_v14 = vadd.f32 %v1415_v46, %v532_v11  ;;  %v913_v16 = vmax.f32 %v785_v12, 0.0  ;;  %v914_v17 = vmax.f32 %v786_v13, 0.0  ;;  %v2550_v10 = vld [vmem:[#allocation4_spill] sm:$0xff]  ;;  %v278_v11 = vld [vmem:[%s1271_s21 + $0x1b8] sm:$0xff] }
  0x75   : > { %v915_v53 = vmax.f32 %v787_v54, 0.0  ;;  %v789_v61 = vadd.f32 %v1418_v47, %v533_v59  ;;  %1039 = vst.msk [vmem:[%s1298_s5 + $0x108] sm:$0xff] %vm1005_vm0, %v910_v58  ;;  %1040 = vst.msk [vmem:[%s1298_s5 + $0x110] sm:$0xff] %vm1005_vm0, %v911_v57  ;;  %v399_v2 = vmul.f32 %v1277_v1, %v264_v60  ;;  %v400_v32 = vmul.f32 %v1277_v1, %v265_v40  ;;  %v279_v60 = vld [vmem:[%s1271_s21 + $0x1c0] sm:$0xff] }
  0x76   : > { %1041 = vst.msk [vmem:[%s1298_s5 + $0x118] sm:$0xff] %vm1005_vm0, %v912_v42  ;;  %v916_v46 = vmax.f32 %v788_v14, 0.0  ;;  %v401_v33 = vmul.f32 %v1277_v1, %v266_v41  ;;  %1042 = vst.msk [vmem:[%s1298_s5 + $0x120] sm:$0xff] %vm1005_vm0, %v913_v16  ;;  %v402_v24 = vmul.f32 %v1277_v1, %v267_v43  ;;  %v403_v34 = vmul.f32 %v1277_v1, %v268_v44 }
  0x77   : > { %1043 = vst.msk [vmem:[%s1298_s5 + $0x128] sm:$0xff] %vm1005_vm0, %v914_v17  ;;  %1044 = vst.msk [vmem:[%s1298_s5 + $0x130] sm:$0xff] %vm1005_vm0, %v915_v53  ;;  %v917_v47 = vmax.f32 %v789_v61, 0.0  ;;  %v404_v25 = vmul.f32 %v1277_v1, %v269_v45  ;;  %v534_v35 = vadd.f32 %v1283_v3, %v399_v2  ;;  %v535_v36 = vadd.f32 %v1283_v3, %v400_v32  ;;  %v2551_v61 = vld [vmem:[#allocation5_spill] sm:$0xff]  ;;  %v2553_v32 = vld [vmem:[#allocation7_spill] sm:$0xff] }
  0x78   : > { %1045 = vst.msk [vmem:[%s1298_s5 + $0x138] sm:$0xff] %vm1005_vm0, %v916_v46  ;;  %v536_v37 = vadd.f32 %v1283_v3, %v401_v33  ;;  %v405_v20 = vmul.f32 %v1277_v1, %v270_v18  ;;  %v537_v21 = vadd.f32 %v1283_v3, %v402_v24  ;;  %v538_v26 = vadd.f32 %v1283_v3, %v403_v34  ;;  %v2552_v46 = vld [vmem:[#allocation6_spill] sm:$0xff]  ;;  %v2555_v34 = vld [vmem:[#allocation9_spill] sm:$0xff] }
  0x79   : > { %1046 = vst.msk [vmem:[%s1298_s5 + $0x140] sm:$0xff] %vm1005_vm0, %v917_v47  ;;  %v539_v4 = vadd.f32 %v1283_v3, %v404_v25  ;;  %v406_v27 = vmul.f32 %v1277_v1, %v271_v19  ;;  %v790_v38 = vadd.f32 %v1421_v48, %v534_v35  ;;  %v791_v28 = vadd.f32 %v1424_v49, %v535_v36  ;;  %v273_v48 = vld [vmem:[%s1271_s21 + $0x190] sm:$0xff]  ;;  %v274_v49 = vld [vmem:[%s1271_s21 + $0x198] sm:$0xff]  ;;  %v2556_v35 = vld [vmem:[#allocation10_spill] sm:$0xff] }
  0x7a   : > { %v792_v29 = vadd.f32 %v1427_v50, %v536_v37  ;;  %v540_v15 = vadd.f32 %v1283_v3, %v405_v20  ;;  %v793_v56 = vadd.f32 %v1430_v51, %v537_v21  ;;  %v794_v39 = vadd.f32 %v1433_v52, %v538_v26  ;;  %v275_v51 = vld [vmem:[%s1271_s21 + $0x1a0] sm:$0xff]  ;;  %v276_v52 = vld [vmem:[%s1271_s21 + $0x1a8] sm:$0xff]  ;;  %v2554_v47 = vld [vmem:[#allocation8_spill] sm:$0xff] }
  0x7b   : > { %v795_v7 = vadd.f32 %v2548_v0, %v539_v4  ;;  %v541_v22 = vadd.f32 %v1283_v3, %v406_v27  ;;  %v918_v6 = vmax.f32 %v790_v38, 0.0  ;;  %v919_v62 = vmax.f32 %v791_v28, 0.0  ;;  %v280_v20 = vld [vmem:[%s1271_s21 + $0x1c8] sm:$0xff]  ;;  %v281_v21 = vld [vmem:[%s1271_s21 + $0x1d0] sm:$0xff]  ;;  %v282_v26 = vld [vmem:[%s1271_s21 + $0x1d8] sm:$0xff] }
  0x7c   : > { %v920_v50 = vmax.f32 %v792_v29, 0.0  ;;  %v796_v9 = vadd.f32 %v2549_v8, %v540_v15  ;;  %v921_v23 = vmax.f32 %v793_v56, 0.0  ;;  %v922_v55 = vmax.f32 %v794_v39, 0.0  ;;  %v2557_v28 = vld [vmem:[#allocation11_spill] sm:$0xff]  ;;  %v283_v15 = vld [vmem:[%s1271_s21 + $0x1e0] sm:$0xff]  ;;  %v285_v39 = vld [vmem:[%s1271_s21 + $0x1f0] sm:$0xff] }
  0x7d   : > { %v923_v63 = vmax.f32 %v795_v7, 0.0  ;;  %v797_v5 = vadd.f32 %v2550_v10, %v541_v22  ;;  %1047 = vst.msk [vmem:[%s1298_s5 + $0x148] sm:$0xff] %vm1005_vm0, %v918_v6  ;;  %1048 = vst.msk [vmem:[%s1298_s5 + $0x150] sm:$0xff] %vm1005_vm0, %v919_v62  ;;  %v407_v13 = vmul.f32 %v1277_v1, %v272_v30  ;;  %v408_v54 = vmul.f32 %v1277_v1, %v273_v48  ;;  %v284_v56 = vld [vmem:[%s1271_s21 + $0x1e8] sm:$0xff]  ;;  %v2558_v30 = vld [vmem:[#allocation12_spill] sm:$0xff] }
  0x7e   : > { %1049 = vst.msk [vmem:[%s1298_s5 + $0x158] sm:$0xff] %vm1005_vm0, %v920_v50  ;;  %v924_v12 = vmax.f32 %v796_v9, 0.0  ;;  %v409_v59 = vmul.f32 %v1277_v1, %v274_v49  ;;  %1050 = vst.msk [vmem:[%s1298_s5 + $0x160] sm:$0xff] %vm1005_vm0, %v921_v23  ;;  %v410_v41 = vmul.f32 %v1277_v1, %v275_v51  ;;  %v411_v58 = vmul.f32 %v1277_v1, %v276_v52  ;;  %v286_v49 = vld [vmem:[%s1271_s21 + $0x1f8] sm:$0xff]  ;;  %v287_v9 = vld [vmem:[%s1271_s21 + $0x200] sm:$0xff] }
  0x7f   : > { %1051 = vst.msk [vmem:[%s1298_s5 + $0x168] sm:$0xff] %vm1005_vm0, %v922_v55  ;;  %1052 = vst.msk [vmem:[%s1298_s5 + $0x170] sm:$0xff] %vm1005_vm0, %v923_v63  ;;  %v925_v40 = vmax.f32 %v797_v5, 0.0  ;;  %v412_v57 = vmul.f32 %v1277_v1, %v277_v31  ;;  %v542_v42 = vadd.f32 %v1283_v3, %v407_v13  ;;  %v543_v14 = vadd.f32 %v1283_v3, %v408_v54 }
  0x80   : > { %1053 = vst.msk [vmem:[%s1298_s5 + $0x178] sm:$0xff] %vm1005_vm0, %v924_v12  ;;  %v544_v43 = vadd.f32 %v1283_v3, %v409_v59  ;;  %v413_v44 = vmul.f32 %v1277_v1, %v278_v11  ;;  %v545_v45 = vadd.f32 %v1283_v3, %v410_v41  ;;  %v546_v16 = vadd.f32 %v1283_v3, %v411_v58  ;;  %v2559_v59 = vld [vmem:[#allocation13_spill] sm:$0xff]  ;;  %v2561_v58 = vld [vmem:[#allocation15_spill] sm:$0xff] }
  0x81   : > { %1054 = vst.msk [vmem:[%s1298_s5 + $0x180] sm:$0xff] %vm1005_vm0, %v925_v40  ;;  %v547_v17 = vadd.f32 %v1283_v3, %v412_v57  ;;  %v414_v53 = vmul.f32 %v1277_v1, %v279_v60  ;;  %v798_v18 = vadd.f32 %v2551_v61, %v542_v42  ;;  %v799_v2 = vadd.f32 %v2552_v46, %v543_v14  ;;  %v2560_v40 = vld [vmem:[#allocation14_spill] sm:$0xff]  ;;  %v2562_v14 = vld [vmem:[#allocation16_spill] sm:$0xff] }
  0x82   : > { %v800_v33 = vadd.f32 %v2553_v32, %v544_v43  ;;  %v548_v19 = vadd.f32 %v1283_v3, %v413_v44  ;;  %v801_v24 = vadd.f32 %v2554_v47, %v545_v45  ;;  %v802_v25 = vadd.f32 %v2555_v34, %v546_v16  ;;  %v2563_v44 = vld [vmem:[#allocation17_spill] sm:$0xff]  ;;  %v2564_v16 = vld [vmem:[#allocation18_spill] sm:$0xff]  ;;  %v289_v61 = vld [vmem:[%s1271_s21 + $0x210] sm:$0xff] }
  0x83   : > { %v803_v36 = vadd.f32 %v2556_v35, %v547_v17  ;;  %v549_v37 = vadd.f32 %v1283_v3, %v414_v53  ;;  %v926_v4 = vmax.f32 %v798_v18, 0.0  ;;  %v927_v27 = vmax.f32 %v799_v2, 0.0  ;;  %v288_v53 = vld [vmem:[%s1271_s21 + $0x208] sm:$0xff]  ;;  %v290_v18 = vld [vmem:[%s1271_s21 + $0x218] sm:$0xff]  ;;  %v291_v47 = vld [vmem:[%s1271_s21 + $0x220] sm:$0xff] }
  0x84   : > { %v928_v38 = vmax.f32 %v800_v33, 0.0  ;;  %v804_v29 = vadd.f32 %v2557_v28, %v548_v19  ;;  %v929_v0 = vmax.f32 %v801_v24, 0.0  ;;  %v930_v7 = vmax.f32 %v802_v25, 0.0  ;;  %v2565_v33 = vld [vmem:[#allocation19_spill] sm:$0xff]  ;;  %v293_v34 = vld [vmem:[%s1271_s21 + $0x230] sm:$0xff]  ;;  %v295_v28 = vld [vmem:[%s1271_s21 + $0x240] sm:$0xff] }
  0x85   : > { %v931_v22 = vmax.f32 %v803_v36, 0.0  ;;  %v805_v48 = vadd.f32 %v2558_v30, %v549_v37  ;;  %1055 = vst.msk [vmem:[%s1298_s5 + $0x188] sm:$0xff] %vm1005_vm0, %v926_v4  ;;  %1056 = vst.msk [vmem:[%s1298_s5 + $0x190] sm:$0xff] %vm1005_vm0, %v927_v27  ;;  %v415_v62 = vmul.f32 %v1277_v1, %v280_v20  ;;  %v416_v50 = vmul.f32 %v1277_v1, %v281_v21  ;;  %v292_v24 = vld [vmem:[%s1271_s21 + $0x228] sm:$0xff]  ;;  %v2566_v36 = vld [vmem:[#allocation20_spill] sm:$0xff] }
  0x86   : > { %1057 = vst.msk [vmem:[%s1298_s5 + $0x198] sm:$0xff] %vm1005_vm0, %v928_v38  ;;  %v932_v6 = vmax.f32 %v804_v29, 0.0  ;;  %v417_v8 = vmul.f32 %v1277_v1, %v282_v26  ;;  %1058 = vst.msk [vmem:[%s1298_s5 + $0x1a0] sm:$0xff] %vm1005_vm0, %v929_v0  ;;  %v418_v52 = vmul.f32 %v1277_v1, %v283_v15  ;;  %v419_v31 = vmul.f32 %v1277_v1, %v284_v56  ;;  %v294_v20 = vld [vmem:[%s1271_s21 + $0x238] sm:$0xff]  ;;  %v2069_v26 = vld [vmem:[%s2461_s1] ss:$0 sm:$0xff] }
  0x87   : > { %1059 = vst.msk [vmem:[%s1298_s5 + $0x1a8] sm:$0xff] %vm1005_vm0, %v930_v7  ;;  %1060 = vst.msk [vmem:[%s1298_s5 + $0x1b0] sm:$0xff] %vm1005_vm0, %v931_v22  ;;  %v933_v51 = vmax.f32 %v805_v48, 0.0  ;;  %v420_v23 = vmul.f32 %v1277_v1, %v285_v39  ;;  %v550_v55 = vadd.f32 %v1283_v3, %v415_v62  ;;  %v551_v63 = vadd.f32 %v1283_v3, %v416_v50  ;;  %v2089_v0 = vld [vmem:[%s2462_s2] ss:$0 sm:$0xff] }
  0x88   : > { %1061 = vst.msk [vmem:[%s1298_s5 + $0x1b8] sm:$0xff] %vm1005_vm0, %v932_v6  ;;  %v552_v10 = vadd.f32 %v1283_v3, %v417_v8  ;;  %v421_v5 = vmul.f32 %v1277_v1, %v286_v49  ;;  %v553_v11 = vadd.f32 %v1283_v3, %v418_v52  ;;  %v554_v12 = vadd.f32 %v1283_v3, %v419_v31  ;;  %v2567_v8 = vld [vmem:[#allocation21_spill] sm:$0xff]  ;;  %v2569_v31 = vld [vmem:[#allocation23_spill] sm:$0xff] }
  0x89   : > { %1062 = vst.msk [vmem:[%s1298_s5 + $0x1c0] sm:$0xff] %vm1005_vm0, %v933_v51  ;;  %v555_v13 = vadd.f32 %v1283_v3, %v420_v23  ;;  %v422_v54 = vmul.f32 %v1277_v1, %v287_v9  ;;  %v806_v60 = vadd.f32 %v2559_v59, %v550_v55  ;;  %v807_v41 = vadd.f32 %v2560_v40, %v551_v63  ;;  %v2568_v51 = vld [vmem:[#allocation22_spill] sm:$0xff]  ;;  %v2570_v63 = vld [vmem:[#allocation24_spill] sm:$0xff]  ;;  %v296_v59 = vld [vmem:[%s1271_s21 + $0x248] sm:$0xff] }
  0x8a   : > { %v808_v57 = vadd.f32 %v2561_v58, %v552_v10  ;;  %v556_v42 = vadd.f32 %v1283_v3, %v421_v5  ;;  %v809_v43 = vadd.f32 %v2562_v14, %v553_v11  ;;  %v810_v45 = vadd.f32 %v2563_v44, %v554_v12  ;;  %v2571_v5 = vld [vmem:[#allocation25_spill] sm:$0xff]  ;;  %v2572_v12 = vld [vmem:[#allocation26_spill] sm:$0xff]  ;;  %v300_v44 = vld [vmem:[%s1271_s21 + $0x268] sm:$0xff] }
  0x8b   : > { %v811_v17 = vadd.f32 %v2564_v16, %v555_v13  ;;  %v557_v1 = vadd.f32 %v1283_v3, %v422_v54  ;;  %v934_v46 = vmax.f32 %v806_v60, 0.0  ;;  %v935_v2 = vmax.f32 %v807_v41, 0.0  ;;  %v297_v60 = vld [vmem:[%s1271_s21 + $0x250] sm:$0xff]  ;;  %v298_v40 = vld [vmem:[%s1271_s21 + $0x258] sm:$0xff] }
  0x8c   : > { %v936_v32 = vmax.f32 %v808_v57, 0.0  ;;  %v812_v19 = vadd.f32 %v2565_v33, %v556_v42  ;;  %v937_v25 = vmax.f32 %v809_v43, 0.0  ;;  %v938_v3 = vmax.f32 %v810_v45, 0.0  ;;  %v2573_v42 = vld [vmem:[#allocation27_spill] sm:$0xff]  ;;  %v299_v43 = vld [vmem:[%s1271_s21 + $0x260] sm:$0xff]  ;;  %v301_v45 = vld [vmem:[%s1271_s21 + $0x270] sm:$0xff] }
  0x8d   : > { %v939_v35 = vmax.f32 %v811_v17, 0.0  ;;  %v813_v37 = vadd.f32 %v2566_v36, %v557_v1  ;;  %1063 = vst.msk [vmem:[%s1298_s5 + $0x1c8] sm:$0xff] %vm1005_vm0, %v934_v46  ;;  %1064 = vst.msk [vmem:[%s1298_s5 + $0x1d0] sm:$0xff] %vm1005_vm0, %v935_v2  ;;  %v423_v4 = vmul.f32 %v2069_v26, %v288_v53  ;;  %v424_v27 = vmul.f32 %v2069_v26, %v289_v61  ;;  %v2574_v53 = vld [vmem:[#allocation28_spill] sm:$0xff] }
  0x8e   : > { %1065 = vst.msk [vmem:[%s1298_s5 + $0x1d8] sm:$0xff] %vm1005_vm0, %v936_v32  ;;  %v940_v21 = vmax.f32 %v812_v19, 0.0  ;;  %v425_v38 = vmul.f32 %v2069_v26, %v290_v18  ;;  %1066 = vst.msk [vmem:[%s1298_s5 + $0x1e0] sm:$0xff] %vm1005_vm0, %v937_v25  ;;  %v426_v15 = vmul.f32 %v2069_v26, %v291_v47  ;;  %v427_v56 = vmul.f32 %v2069_v26, %v292_v24  ;;  %v302_v18 = vld [vmem:[%s1271_s21 + $0x278] sm:$0xff]  ;;  %v303_v19 = vld [vmem:[%s1271_s21 + $0x280] sm:$0xff] }
  0x8f   : > { %1067 = vst.msk [vmem:[%s1298_s5 + $0x1e8] sm:$0xff] %vm1005_vm0, %v938_v3  ;;  %1068 = vst.msk [vmem:[%s1298_s5 + $0x1f0] sm:$0xff] %vm1005_vm0, %v939_v35  ;;  %v941_v29 = vmax.f32 %v813_v37, 0.0  ;;  %v428_v39 = vmul.f32 %v2069_v26, %v293_v34  ;;  %v558_v7 = vadd.f32 %v2089_v0, %v423_v4  ;;  %v559_v22 = vadd.f32 %v2089_v0, %v424_v27 }
  0x90   : > { %1069 = vst.msk [vmem:[%s1298_s5 + $0x1f8] sm:$0xff] %vm1005_vm0, %v940_v21  ;;  %v560_v30 = vadd.f32 %v2089_v0, %v425_v38  ;;  %v429_v48 = vmul.f32 %v2069_v26, %v294_v20  ;;  %v561_v49 = vadd.f32 %v2089_v0, %v426_v15  ;;  %v562_v6 = vadd.f32 %v2089_v0, %v427_v56  ;;  %v2575_v38 = vld [vmem:[#allocation29_spill] sm:$0xff]  ;;  %v2577_v56 = vld [vmem:[#allocation31_spill] sm:$0xff] }
  0x91   : > { %1070 = vst.msk [vmem:[%s1298_s5 + $0x200] sm:$0xff] %vm1005_vm0, %v941_v29  ;;  %v563_v62 = vadd.f32 %v2089_v0, %v428_v39  ;;  %v430_v50 = vmul.f32 %v2069_v26, %v295_v28  ;;  %v814_v9 = vadd.f32 %v2567_v8, %v558_v7  ;;  %v815_v52 = vadd.f32 %v2568_v51, %v559_v22  ;;  %v2576_v29 = vld [vmem:[#allocation30_spill] sm:$0xff]  ;;  %v2578_v22 = vld [vmem:[#allocation32_spill] sm:$0xff]  ;;  %v304_v8 = vld [vmem:[%s1271_s21 + $0x288] sm:$0xff] }
  0x92   : > { %v816_v23 = vadd.f32 %v2569_v31, %v560_v30  ;;  %v564_v55 = vadd.f32 %v2089_v0, %v429_v48  ;;  %v817_v10 = vadd.f32 %v2570_v63, %v561_v49  ;;  %v818_v11 = vadd.f32 %v2571_v5, %v562_v6  ;;  %v2579_v48 = vld [vmem:[#allocation33_spill] sm:$0xff]  ;;  %v2580_v6 = vld [vmem:[#allocation34_spill] sm:$0xff]  ;;  %v308_v5 = vld [vmem:[%s1271_s21 + $0x2a8] sm:$0xff] }
  0x93   : > { %v819_v13 = vadd.f32 %v2572_v12, %v563_v62  ;;  %v565_v54 = vadd.f32 %v2089_v0, %v430_v50  ;;  %v942_v41 = vmax.f32 %v814_v9, 0.0  ;;  %v943_v58 = vmax.f32 %v815_v52, 0.0  ;;  %v305_v9 = vld [vmem:[%s1271_s21 + $0x290] sm:$0xff]  ;;  %v306_v51 = vld [vmem:[%s1271_s21 + $0x298] sm:$0xff] }
  0x94   : > { %v944_v57 = vmax.f32 %v816_v23, 0.0  ;;  %v820_v14 = vadd.f32 %v2573_v42, %v564_v55  ;;  %v945_v16 = vmax.f32 %v817_v10, 0.0  ;;  %v946_v17 = vmax.f32 %v818_v11, 0.0  ;;  %v2581_v55 = vld [vmem:[#allocation35_spill] sm:$0xff]  ;;  %v307_v10 = vld [vmem:[%s1271_s21 + $0x2a0] sm:$0xff]  ;;  %v309_v11 = vld [vmem:[%s1271_s21 + $0x2b0] sm:$0xff] }
  0x95   : > { %v947_v1 = vmax.f32 %v819_v13, 0.0  ;;  %v821_v61 = vadd.f32 %v2574_v53, %v565_v54  ;;  %1071 = vst.msk [vmem:[%s1298_s5 + $0x208] sm:$0xff] %vm1005_vm0, %v942_v41  ;;  %1072 = vst.msk [vmem:[%s1298_s5 + $0x210] sm:$0xff] %vm1005_vm0, %v943_v58  ;;  %v431_v2 = vmul.f32 %v2069_v26, %v296_v59  ;;  %v432_v32 = vmul.f32 %v2069_v26, %v297_v60  ;;  %v2582_v59 = vld [vmem:[#allocation36_spill] sm:$0xff] }
  0x96   : > { %1073 = vst.msk [vmem:[%s1298_s5 + $0x218] sm:$0xff] %vm1005_vm0, %v944_v57  ;;  %v948_v46 = vmax.f32 %v820_v14, 0.0  ;;  %v433_v33 = vmul.f32 %v2069_v26, %v298_v40  ;;  %1074 = vst.msk [vmem:[%s1298_s5 + $0x220] sm:$0xff] %vm1005_vm0, %v945_v16  ;;  %v434_v24 = vmul.f32 %v2069_v26, %v299_v43  ;;  %v435_v34 = vmul.f32 %v2069_v26, %v300_v44  ;;  %v310_v40 = vld [vmem:[%s1271_s21 + $0x2b8] sm:$0xff]  ;;  %v311_v14 = vld [vmem:[%s1271_s21 + $0x2c0] sm:$0xff] }
  0x97   : > { %1075 = vst.msk [vmem:[%s1298_s5 + $0x228] sm:$0xff] %vm1005_vm0, %v946_v17  ;;  %1076 = vst.msk [vmem:[%s1298_s5 + $0x230] sm:$0xff] %vm1005_vm0, %v947_v1  ;;  %v949_v47 = vmax.f32 %v821_v61, 0.0  ;;  %v436_v25 = vmul.f32 %v2069_v26, %v301_v45  ;;  %v566_v3 = vadd.f32 %v2089_v0, %v431_v2  ;;  %v567_v35 = vadd.f32 %v2089_v0, %v432_v32 }
  0x98   : > { %1077 = vst.msk [vmem:[%s1298_s5 + $0x238] sm:$0xff] %vm1005_vm0, %v948_v46  ;;  %v568_v36 = vadd.f32 %v2089_v0, %v433_v33  ;;  %v437_v37 = vmul.f32 %v2069_v26, %v302_v18  ;;  %v569_v20 = vadd.f32 %v2089_v0, %v434_v24  ;;  %v570_v21 = vadd.f32 %v2089_v0, %v435_v34  ;;  %v2583_v33 = vld [vmem:[#allocation37_spill] sm:$0xff]  ;;  %v2585_v34 = vld [vmem:[#allocation39_spill] sm:$0xff] }
  0x99   : > { %1078 = vst.msk [vmem:[%s1298_s5 + $0x240] sm:$0xff] %vm1005_vm0, %v949_v47  ;;  %v571_v4 = vadd.f32 %v2089_v0, %v436_v25  ;;  %v438_v27 = vmul.f32 %v2069_v26, %v303_v19  ;;  %v822_v28 = vadd.f32 %v2575_v38, %v566_v3  ;;  %v823_v15 = vadd.f32 %v2576_v29, %v567_v35  ;;  %v2584_v47 = vld [vmem:[#allocation38_spill] sm:$0xff]  ;;  %v2586_v35 = vld [vmem:[#allocation40_spill] sm:$0xff]  ;;  %v312_v38 = vld [vmem:[%s1271_s21 + $0x2c8] sm:$0xff] }
  0x9a   : > { %v824_v39 = vadd.f32 %v2577_v56, %v568_v36  ;;  %v572_v7 = vadd.f32 %v2089_v0, %v437_v37  ;;  %v825_v30 = vadd.f32 %v2578_v22, %v569_v20  ;;  %v826_v49 = vadd.f32 %v2579_v48, %v570_v21  ;;  %v2587_v37 = vld [vmem:[#allocation41_spill] sm:$0xff]  ;;  %v2588_v21 = vld [vmem:[#allocation42_spill] sm:$0xff]  ;;  %v316_v48 = vld [vmem:[%s1271_s21 + $0x2e8] sm:$0xff] }
  0x9b   : > { %v827_v62 = vadd.f32 %v2580_v6, %v571_v4  ;;  %v573_v50 = vadd.f32 %v2089_v0, %v438_v27  ;;  %v950_v52 = vmax.f32 %v822_v28, 0.0  ;;  %v951_v31 = vmax.f32 %v823_v15, 0.0  ;;  %v313_v28 = vld [vmem:[%s1271_s21 + $0x2d0] sm:$0xff]  ;;  %v314_v29 = vld [vmem:[%s1271_s21 + $0x2d8] sm:$0xff] }
  0x9c   : > { %v952_v23 = vmax.f32 %v824_v39, 0.0  ;;  %v828_v63 = vadd.f32 %v2581_v55, %v572_v7  ;;  %v953_v12 = vmax.f32 %v825_v30, 0.0  ;;  %v954_v13 = vmax.f32 %v826_v49, 0.0  ;;  %v2589_v7 = vld [vmem:[#allocation43_spill] sm:$0xff]  ;;  %v315_v30 = vld [vmem:[%s1271_s21 + $0x2e0] sm:$0xff]  ;;  %v317_v49 = vld [vmem:[%s1271_s21 + $0x2f0] sm:$0xff] }
  0x9d   : > { %v955_v54 = vmax.f32 %v827_v62, 0.0  ;;  %v829_v60 = vadd.f32 %v2582_v59, %v573_v50  ;;  %1079 = vst.msk [vmem:[%s1298_s5 + $0x248] sm:$0xff] %vm1005_vm0, %v950_v52  ;;  %1080 = vst.msk [vmem:[%s1298_s5 + $0x250] sm:$0xff] %vm1005_vm0, %v951_v31  ;;  %v439_v58 = vmul.f32 %v2069_v26, %v304_v8  ;;  %v440_v57 = vmul.f32 %v2069_v26, %v305_v9  ;;  %v2590_v8 = vld [vmem:[#allocation44_spill] sm:$0xff] }
  0x9e   : > { %1081 = vst.msk [vmem:[%s1298_s5 + $0x258] sm:$0xff] %vm1005_vm0, %v952_v23  ;;  %v956_v41 = vmax.f32 %v828_v63, 0.0  ;;  %v441_v42 = vmul.f32 %v2069_v26, %v306_v51  ;;  %1082 = vst.msk [vmem:[%s1298_s5 + $0x260] sm:$0xff] %vm1005_vm0, %v953_v12  ;;  %v442_v44 = vmul.f32 %v2069_v26, %v307_v10  ;;  %v443_v45 = vmul.f32 %v2069_v26, %v308_v5  ;;  %v318_v51 = vld [vmem:[%s1271_s21 + $0x2f8] sm:$0xff]  ;;  %v319_v63 = vld [vmem:[%s1271_s21 + $0x300] sm:$0xff] }
  0x9f   : > { %1083 = vst.msk [vmem:[%s1298_s5 + $0x268] sm:$0xff] %vm1005_vm0, %v954_v13  ;;  %1084 = vst.msk [vmem:[%s1298_s5 + $0x270] sm:$0xff] %vm1005_vm0, %v955_v54  ;;  %v957_v43 = vmax.f32 %v829_v60, 0.0  ;;  %v444_v16 = vmul.f32 %v2069_v26, %v309_v11  ;;  %v574_v17 = vadd.f32 %v2089_v0, %v439_v58  ;;  %v575_v1 = vadd.f32 %v2089_v0, %v440_v57 }
  0xa0   : > { %1085 = vst.msk [vmem:[%s1298_s5 + $0x278] sm:$0xff] %vm1005_vm0, %v956_v41  ;;  %v576_v53 = vadd.f32 %v2089_v0, %v441_v42  ;;  %v445_v61 = vmul.f32 %v2069_v26, %v310_v40  ;;  %v577_v18 = vadd.f32 %v2089_v0, %v442_v44  ;;  %v578_v46 = vadd.f32 %v2089_v0, %v443_v45  ;;  %v2591_v42 = vld [vmem:[#allocation45_spill] sm:$0xff]  ;;  %v2593_v45 = vld [vmem:[#allocation47_spill] sm:$0xff] }
  0xa1   : > { %1086 = vst.msk [vmem:[%s1298_s5 + $0x280] sm:$0xff] %vm1005_vm0, %v957_v43  ;;  %v579_v2 = vadd.f32 %v2089_v0, %v444_v16  ;;  %v446_v32 = vmul.f32 %v2069_v26, %v311_v14  ;;  %v830_v19 = vadd.f32 %v2583_v33, %v574_v17  ;;  %v831_v24 = vadd.f32 %v2584_v47, %v575_v1  ;;  %v2592_v43 = vld [vmem:[#allocation46_spill] sm:$0xff]  ;;  %v2594_v1 = vld [vmem:[#allocation48_spill] sm:$0xff]  ;;  %v320_v33 = vld [vmem:[%s1271_s21 + $0x308] sm:$0xff] }
  0xa2   : > { %v832_v25 = vadd.f32 %v2585_v34, %v576_v53  ;;  %v580_v3 = vadd.f32 %v2089_v0, %v445_v61  ;;  %v833_v36 = vadd.f32 %v2586_v35, %v577_v18  ;;  %v834_v20 = vadd.f32 %v2587_v37, %v578_v46  ;;  %v2595_v61 = vld [vmem:[#allocation49_spill] sm:$0xff]  ;;  %v2596_v46 = vld [vmem:[#allocation50_spill] sm:$0xff]  ;;  %v324_v37 = vld [vmem:[%s1271_s21 + $0x328] sm:$0xff] }
  0xa3   : > { %v835_v4 = vadd.f32 %v2588_v21, %v579_v2  ;;  %v581_v27 = vadd.f32 %v2089_v0, %v446_v32  ;;  %v958_v15 = vmax.f32 %v830_v19, 0.0  ;;  %v959_v56 = vmax.f32 %v831_v24, 0.0  ;;  %v321_v19 = vld [vmem:[%s1271_s21 + $0x310] sm:$0xff]  ;;  %v322_v47 = vld [vmem:[%s1271_s21 + $0x318] sm:$0xff] }
  0xa4   : > { %v960_v39 = vmax.f32 %v832_v25, 0.0  ;;  %v836_v22 = vadd.f32 %v2589_v7, %v580_v3  ;;  %v961_v6 = vmax.f32 %v833_v36, 0.0  ;;  %v962_v62 = vmax.f32 %v834_v20, 0.0  ;;  %v2597_v3 = vld [vmem:[#allocation51_spill] sm:$0xff]  ;;  %v323_v36 = vld [vmem:[%s1271_s21 + $0x320] sm:$0xff]  ;;  %v325_v20 = vld [vmem:[%s1271_s21 + $0x330] sm:$0xff] }
  0xa5   : > { %v963_v50 = vmax.f32 %v835_v4, 0.0  ;;  %v837_v9 = vadd.f32 %v2590_v8, %v581_v27  ;;  %1087 = vst.msk [vmem:[%s1298_s5 + $0x288] sm:$0xff] %vm1005_vm0, %v958_v15  ;;  %1088 = vst.msk [vmem:[%s1298_s5 + $0x290] sm:$0xff] %vm1005_vm0, %v959_v56  ;;  %v447_v31 = vmul.f32 %v2069_v26, %v312_v38  ;;  %v448_v23 = vmul.f32 %v2069_v26, %v313_v28  ;;  %v2598_v38 = vld [vmem:[#allocation52_spill] sm:$0xff] }
  0xa6   : > { %1089 = vst.msk [vmem:[%s1298_s5 + $0x298] sm:$0xff] %vm1005_vm0, %v960_v39  ;;  %v964_v52 = vmax.f32 %v836_v22, 0.0  ;;  %v449_v55 = vmul.f32 %v2069_v26, %v314_v29  ;;  %1090 = vst.msk [vmem:[%s1298_s5 + $0x2a0] sm:$0xff] %vm1005_vm0, %v961_v6  ;;  %v450_v5 = vmul.f32 %v2069_v26, %v315_v30  ;;  %v451_v11 = vmul.f32 %v2069_v26, %v316_v48  ;;  %v326_v29 = vld [vmem:[%s1271_s21 + $0x338] sm:$0xff]  ;;  %v327_v22 = vld [vmem:[%s1271_s21 + $0x340] sm:$0xff] }
  0xa7   : > { %1091 = vst.msk [vmem:[%s1298_s5 + $0x2a8] sm:$0xff] %vm1005_vm0, %v962_v62  ;;  %1092 = vst.msk [vmem:[%s1298_s5 + $0x2b0] sm:$0xff] %vm1005_vm0, %v963_v50  ;;  %v965_v10 = vmax.f32 %v837_v9, 0.0  ;;  %v452_v12 = vmul.f32 %v2069_v26, %v317_v49  ;;  %v582_v13 = vadd.f32 %v2089_v0, %v447_v31  ;;  %v583_v54 = vadd.f32 %v2089_v0, %v448_v23 }
  0xa8   : > { %1093 = vst.msk [vmem:[%s1298_s5 + $0x2b8] sm:$0xff] %vm1005_vm0, %v964_v52  ;;  %v584_v59 = vadd.f32 %v2089_v0, %v449_v55  ;;  %v453_v60 = vmul.f32 %v2069_v26, %v318_v51  ;;  %v585_v40 = vadd.f32 %v2089_v0, %v450_v5  ;;  %v586_v41 = vadd.f32 %v2089_v0, %v451_v11  ;;  %v2599_v55 = vld [vmem:[#allocation53_spill] sm:$0xff]  ;;  %v2601_v11 = vld [vmem:[#allocation55_spill] sm:$0xff] }
  0xa9   : > { %1094 = vst.msk [vmem:[%s1298_s5 + $0x2c0] sm:$0xff] %vm1005_vm0, %v965_v10  ;;  %v587_v58 = vadd.f32 %v2089_v0, %v452_v12  ;;  %v454_v57 = vmul.f32 %v2069_v26, %v319_v63  ;;  %v838_v14 = vadd.f32 %v2591_v42, %v582_v13  ;;  %v839_v44 = vadd.f32 %v2592_v43, %v583_v54  ;;  %v2600_v10 = vld [vmem:[#allocation54_spill] sm:$0xff]  ;;  %v2602_v54 = vld [vmem:[#allocation56_spill] sm:$0xff]  ;;  %v328_v42 = vld [vmem:[%s1271_s21 + $0x348] sm:$0xff] }
  0xaa   : > { %v840_v16 = vadd.f32 %v2593_v45, %v584_v59  ;;  %v588_v17 = vadd.f32 %v2089_v0, %v453_v60  ;;  %v841_v53 = vadd.f32 %v2594_v1, %v585_v40  ;;  %v842_v18 = vadd.f32 %v2595_v61, %v586_v41  ;;  %v2603_v60 = vld [vmem:[#allocation57_spill] sm:$0xff]  ;;  %v2604_v41 = vld [vmem:[#allocation58_spill] sm:$0xff]  ;;  %v332_v61 = vld [vmem:[%s1271_s21 + $0x368] sm:$0xff] }
  0xab   : > { %v843_v2 = vadd.f32 %v2596_v46, %v587_v58  ;;  %v589_v32 = vadd.f32 %v2089_v0, %v454_v57  ;;  %v966_v24 = vmax.f32 %v838_v14, 0.0  ;;  %v967_v34 = vmax.f32 %v839_v44, 0.0  ;;  %v329_v14 = vld [vmem:[%s1271_s21 + $0x350] sm:$0xff]  ;;  %v330_v43 = vld [vmem:[%s1271_s21 + $0x358] sm:$0xff] }
  0xac   : > { %v968_v25 = vmax.f32 %v840_v16, 0.0  ;;  %v844_v35 = vadd.f32 %v2597_v3, %v588_v17  ;;  %v969_v21 = vmax.f32 %v841_v53, 0.0  ;;  %v970_v4 = vmax.f32 %v842_v18, 0.0  ;;  %v2605_v17 = vld [vmem:[#allocation59_spill] sm:$0xff]  ;;  %v331_v53 = vld [vmem:[%s1271_s21 + $0x360] sm:$0xff]  ;;  %v333_v18 = vld [vmem:[%s1271_s21 + $0x370] sm:$0xff] }
  0xad   : > { %v971_v27 = vmax.f32 %v843_v2, 0.0  ;;  %v845_v28 = vadd.f32 %v2598_v38, %v589_v32  ;;  %1095 = vst.msk [vmem:[%s1298_s5 + $0x2c8] sm:$0xff] %vm1005_vm0, %v966_v24  ;;  %1096 = vst.msk [vmem:[%s1298_s5 + $0x2d0] sm:$0xff] %vm1005_vm0, %v967_v34  ;;  %v455_v56 = vmul.f32 %v2069_v26, %v320_v33  ;;  %v456_v39 = vmul.f32 %v2069_v26, %v321_v19  ;;  %v2606_v33 = vld [vmem:[#allocation60_spill] sm:$0xff] }
  0xae   : > { %1097 = vst.msk [vmem:[%s1298_s5 + $0x2d8] sm:$0xff] %vm1005_vm0, %v968_v25  ;;  %v972_v15 = vmax.f32 %v844_v35, 0.0  ;;  %v457_v7 = vmul.f32 %v2069_v26, %v322_v47  ;;  %1098 = vst.msk [vmem:[%s1298_s5 + $0x2e0] sm:$0xff] %vm1005_vm0, %v969_v21  ;;  %v458_v48 = vmul.f32 %v2069_v26, %v323_v36  ;;  %v459_v49 = vmul.f32 %v2069_v26, %v324_v37  ;;  %v334_v47 = vld [vmem:[%s1271_s21 + $0x378] sm:$0xff]  ;;  %v335_v35 = vld [vmem:[%s1271_s21 + $0x380] sm:$0xff] }
  0xaf   : > { %1099 = vst.msk [vmem:[%s1298_s5 + $0x2e8] sm:$0xff] %vm1005_vm0, %v970_v4  ;;  %1100 = vst.msk [vmem:[%s1298_s5 + $0x2f0] sm:$0xff] %vm1005_vm0, %v971_v27  ;;  %v973_v30 = vmax.f32 %v845_v28, 0.0  ;;  %v460_v6 = vmul.f32 %v2069_v26, %v325_v20  ;;  %v590_v62 = vadd.f32 %v2089_v0, %v455_v56  ;;  %v591_v50 = vadd.f32 %v2089_v0, %v456_v39 }
  0xb0   : > { %1101 = vst.msk [vmem:[%s1298_s5 + $0x2f8] sm:$0xff] %vm1005_vm0, %v972_v15  ;;  %v592_v8 = vadd.f32 %v2089_v0, %v457_v7  ;;  %v461_v9 = vmul.f32 %v2069_v26, %v326_v29  ;;  %v593_v51 = vadd.f32 %v2089_v0, %v458_v48  ;;  %v594_v52 = vadd.f32 %v2089_v0, %v459_v49  ;;  %v2607_v7 = vld [vmem:[#allocation61_spill] sm:$0xff]  ;;  %v2609_v49 = vld [vmem:[#allocation63_spill] sm:$0xff] }
  0xb1   : > { %1102 = vst.msk [vmem:[%s1298_s5 + $0x300] sm:$0xff] %vm1005_vm0, %v973_v30  ;;  %v595_v31 = vadd.f32 %v2089_v0, %v460_v6  ;;  %v462_v23 = vmul.f32 %v2069_v26, %v327_v22  ;;  %v846_v63 = vadd.f32 %v2599_v55, %v590_v62  ;;  %v847_v5 = vadd.f32 %v2600_v10, %v591_v50  ;;  %v2608_v30 = vld [vmem:[#allocation62_spill] sm:$0xff]  ;;  %v2610_v50 = vld [vmem:[#allocation64_spill] sm:$0xff]  ;;  %v336_v55 = vld [vmem:[%s1271_s21 + $0x388] sm:$0xff] }
  0xb2   : > { %v848_v12 = vadd.f32 %v2601_v11, %v592_v8  ;;  %v596_v13 = vadd.f32 %v2089_v0, %v461_v9  ;;  %v849_v59 = vadd.f32 %v2602_v54, %v593_v51  ;;  %v850_v40 = vadd.f32 %v2603_v60, %v594_v52  ;;  %v2611_v9 = vld [vmem:[#allocation65_spill] sm:$0xff]  ;;  %v2612_v52 = vld [vmem:[#allocation66_spill] sm:$0xff]  ;;  %v340_v60 = vld [vmem:[%s1271_s21 + $0x3a8] sm:$0xff] }
  0xb3   : > { %v851_v58 = vadd.f32 %v2604_v41, %v595_v31  ;;  %v597_v57 = vadd.f32 %v2089_v0, %v462_v23  ;;  %v974_v44 = vmax.f32 %v846_v63, 0.0  ;;  %v975_v45 = vmax.f32 %v847_v5, 0.0  ;;  %v337_v63 = vld [vmem:[%s1271_s21 + $0x390] sm:$0xff]  ;;  %v338_v10 = vld [vmem:[%s1271_s21 + $0x398] sm:$0xff] }
  0xb4   : > { %v976_v16 = vmax.f32 %v848_v12, 0.0  ;;  %v852_v1 = vadd.f32 %v2605_v17, %v596_v13  ;;  %v977_v46 = vmax.f32 %v849_v59, 0.0  ;;  %v978_v2 = vmax.f32 %v850_v40, 0.0  ;;  %v2613_v13 = vld [vmem:[#allocation67_spill] sm:$0xff]  ;;  %v339_v59 = vld [vmem:[%s1271_s21 + $0x3a0] sm:$0xff]  ;;  %v341_v40 = vld [vmem:[%s1271_s21 + $0x3b0] sm:$0xff] }
  0xb5   : > { %v979_v32 = vmax.f32 %v851_v58, 0.0  ;;  %v853_v19 = vadd.f32 %v2606_v33, %v597_v57  ;;  %1103 = vst.msk [vmem:[%s1298_s5 + $0x308] sm:$0xff] %vm1005_vm0, %v974_v44  ;;  %1104 = vst.msk [vmem:[%s1298_s5 + $0x310] sm:$0xff] %vm1005_vm0, %v975_v45  ;;  %v463_v34 = vmul.f32 %v2069_v26, %v328_v42  ;;  %v464_v25 = vmul.f32 %v2069_v26, %v329_v14  ;;  %v2614_v42 = vld [vmem:[#allocation68_spill] sm:$0xff] }
  0xb6   : > { %1105 = vst.msk [vmem:[%s1298_s5 + $0x318] sm:$0xff] %vm1005_vm0, %v976_v16  ;;  %v980_v24 = vmax.f32 %v852_v1, 0.0  ;;  %v465_v3 = vmul.f32 %v2069_v26, %v330_v43  ;;  %1106 = vst.msk [vmem:[%s1298_s5 + $0x320] sm:$0xff] %vm1005_vm0, %v977_v46  ;;  %v466_v37 = vmul.f32 %v2069_v26, %v331_v53  ;;  %v467_v20 = vmul.f32 %v2069_v26, %v332_v61  ;;  %v342_v43 = vld [vmem:[%s1271_s21 + $0x3b8] sm:$0xff]  ;;  %v343_v1 = vld [vmem:[%s1271_s21 + $0x3c0] sm:$0xff] }
  0xb7   : > { %1107 = vst.msk [vmem:[%s1298_s5 + $0x328] sm:$0xff] %vm1005_vm0, %v978_v2  ;;  %1108 = vst.msk [vmem:[%s1298_s5 + $0x330] sm:$0xff] %vm1005_vm0, %v979_v32  ;;  %v981_v36 = vmax.f32 %v853_v19, 0.0  ;;  %v468_v21 = vmul.f32 %v2069_v26, %v333_v18  ;;  %v598_v4 = vadd.f32 %v2089_v0, %v463_v34  ;;  %v599_v27 = vadd.f32 %v2089_v0, %v464_v25 }
  0xb8   : > { %1109 = vst.msk [vmem:[%s1298_s5 + $0x338] sm:$0xff] %vm1005_vm0, %v980_v24  ;;  %v600_v38 = vadd.f32 %v2089_v0, %v465_v3  ;;  %v469_v28 = vmul.f32 %v2069_v26, %v334_v47  ;;  %v601_v29 = vadd.f32 %v2089_v0, %v466_v37  ;;  %v602_v15 = vadd.f32 %v2089_v0, %v467_v20  ;;  %v2615_v3 = vld [vmem:[#allocation69_spill] sm:$0xff]  ;;  %v2617_v20 = vld [vmem:[#allocation71_spill] sm:$0xff] }
  0xb9   : > { %1110 = vst.msk [vmem:[%s1298_s5 + $0x340] sm:$0xff] %vm1005_vm0, %v981_v36  ;;  %v603_v56 = vadd.f32 %v2089_v0, %v468_v21  ;;  %v470_v39 = vmul.f32 %v2069_v26, %v335_v35  ;;  %v854_v22 = vadd.f32 %v2607_v7, %v598_v4  ;;  %v855_v48 = vadd.f32 %v2608_v30, %v599_v27  ;;  %v2616_v36 = vld [vmem:[#allocation70_spill] sm:$0xff]  ;;  %v2618_v27 = vld [vmem:[#allocation72_spill] sm:$0xff]  ;;  %v344_v7 = vld [vmem:[%s1271_s21 + $0x3c8] sm:$0xff] }
  0xba   : > { %v856_v6 = vadd.f32 %v2609_v49, %v600_v38  ;;  %v604_v62 = vadd.f32 %v2089_v0, %v469_v28  ;;  %v857_v8 = vadd.f32 %v2610_v50, %v601_v29  ;;  %v858_v51 = vadd.f32 %v2611_v9, %v602_v15  ;;  %v2619_v28 = vld [vmem:[#allocation73_spill] sm:$0xff]  ;;  %v2620_v15 = vld [vmem:[#allocation74_spill] sm:$0xff]  ;;  %v348_v9 = vld [vmem:[%s1271_s21 + $0x3e8] sm:$0xff] }
  0xbb   : > { %v859_v31 = vadd.f32 %v2612_v52, %v603_v56  ;;  %v605_v23 = vadd.f32 %v2089_v0, %v470_v39  ;;  %v982_v5 = vmax.f32 %v854_v22, 0.0  ;;  %v983_v11 = vmax.f32 %v855_v48, 0.0  ;;  %v345_v22 = vld [vmem:[%s1271_s21 + $0x3d0] sm:$0xff]  ;;  %v346_v30 = vld [vmem:[%s1271_s21 + $0x3d8] sm:$0xff] }
  0xbc   : > { %v984_v12 = vmax.f32 %v856_v6, 0.0  ;;  %v860_v54 = vadd.f32 %v2613_v13, %v604_v62  ;;  %v985_v41 = vmax.f32 %v857_v8, 0.0  ;;  %v986_v58 = vmax.f32 %v858_v51, 0.0  ;;  %v2621_v62 = vld [vmem:[#allocation75_spill] sm:$0xff]  ;;  %v347_v8 = vld [vmem:[%s1271_s21 + $0x3e0] sm:$0xff]  ;;  %v349_v51 = vld [vmem:[%s1271_s21 + $0x3f0] sm:$0xff] }
  0xbd   : > { %v987_v57 = vmax.f32 %v859_v31, 0.0  ;;  %v861_v14 = vadd.f32 %v2614_v42, %v605_v23  ;;  %1111 = vst.msk [vmem:[%s1298_s5 + $0x348] sm:$0xff] %vm1005_vm0, %v982_v5  ;;  %1112 = vst.msk [vmem:[%s1298_s5 + $0x350] sm:$0xff] %vm1005_vm0, %v983_v11  ;;  %v471_v45 = vmul.f32 %v2069_v26, %v336_v55  ;;  %v472_v16 = vmul.f32 %v2069_v26, %v337_v63  ;;  %v2622_v55 = vld [vmem:[#allocation76_spill] sm:$0xff] }
  0xbe   : > { %1113 = vst.msk [vmem:[%s1298_s5 + $0x358] sm:$0xff] %vm1005_vm0, %v984_v12  ;;  %v988_v44 = vmax.f32 %v860_v54, 0.0  ;;  %v473_v17 = vmul.f32 %v2069_v26, %v338_v10  ;;  %1114 = vst.msk [vmem:[%s1298_s5 + $0x360] sm:$0xff] %vm1005_vm0, %v985_v41  ;;  %v474_v61 = vmul.f32 %v2069_v26, %v339_v59  ;;  %v475_v18 = vmul.f32 %v2069_v26, %v340_v60  ;;  %v350_v10 = vld [vmem:[%s1271_s21 + $0x3f8] sm:$0xff] }
  0xbf   : > { %1115 = vst.msk [vmem:[%s1298_s5 + $0x368] sm:$0xff] %vm1005_vm0, %v986_v58  ;;  %1116 = vst.msk [vmem:[%s1298_s5 + $0x370] sm:$0xff] %vm1005_vm0, %v987_v57  ;;  %v989_v53 = vmax.f32 %v861_v14, 0.0  ;;  %v476_v46 = vmul.f32 %v2069_v26, %v341_v40  ;;  %v606_v2 = vadd.f32 %v2089_v0, %v471_v45  ;;  %v607_v32 = vadd.f32 %v2089_v0, %v472_v16  ;;  %v2623_v45 = vld [vmem:[#allocation77_spill] sm:$0xff] }
  0xc0   : > { %1117 = vst.msk [vmem:[%s1298_s5 + $0x378] sm:$0xff] %vm1005_vm0, %v988_v44  ;;  %v608_v33 = vadd.f32 %v2089_v0, %v473_v17  ;;  %v477_v19 = vmul.f32 %v2069_v26, %v342_v43  ;;  %v609_v47 = vadd.f32 %v2089_v0, %v474_v61  ;;  %v610_v24 = vadd.f32 %v2089_v0, %v475_v18  ;;  %v2624_v17 = vld [vmem:[#allocation78_spill] sm:$0xff]  ;;  %v2626_v18 = vld [vmem:[#allocation80_spill] sm:$0xff] }
  0xc1   : > { %1118 = vst.msk [vmem:[%s1298_s5 + $0x380] sm:$0xff] %vm1005_vm0, %v989_v53  ;;  %v611_v34 = vadd.f32 %v2089_v0, %v476_v46  ;;  %v478_v25 = vmul.f32 %v2069_v26, %v343_v1  ;;  %v862_v35 = vadd.f32 %v2615_v3, %v606_v2  ;;  %v863_v37 = vadd.f32 %v2616_v36, %v607_v32  ;;  %v2625_v53 = vld [vmem:[#allocation79_spill] sm:$0xff]  ;;  %v2627_v2 = vld [vmem:[#allocation81_spill] sm:$0xff] }
  0xc2   : > { %v864_v21 = vadd.f32 %v2617_v20, %v608_v33  ;;  %v612_v4 = vadd.f32 %v2089_v0, %v477_v19  ;;  %v865_v38 = vadd.f32 %v2618_v27, %v609_v47  ;;  %v866_v29 = vadd.f32 %v2619_v28, %v610_v24  ;;  %v2628_v33 = vld [vmem:[#allocation82_spill] sm:$0xff] }
  0xc3   : > { %v867_v56 = vadd.f32 %v2620_v15, %v611_v34  ;;  %v613_v39 = vadd.f32 %v2089_v0, %v478_v25  ;;  %v990_v48 = vmax.f32 %v862_v35, 0.0  ;;  %v991_v49 = vmax.f32 %v863_v37, 0.0  ;;  %v2629_v25 = vld [vmem:[#allocation83_spill] sm:$0xff] }
  0xc4   : > { %v992_v6 = vmax.f32 %v864_v21, 0.0  ;;  %v868_v50 = vadd.f32 %v2621_v62, %v612_v4  ;;  %v993_v52 = vmax.f32 %v865_v38, 0.0  ;;  %v994_v31 = vmax.f32 %v866_v29, 0.0 }
  0xc5   : > { %v995_v23 = vmax.f32 %v867_v56, 0.0  ;;  %v869_v63 = vadd.f32 %v2622_v55, %v613_v39  ;;  %1119 = vst.msk [vmem:[%s1298_s5 + $0x388] sm:$0xff] %vm1005_vm0, %v990_v48  ;;  %1120 = vst.msk [vmem:[%s1298_s5 + $0x390] sm:$0xff] %vm1005_vm0, %v991_v49  ;;  %v479_v11 = vmul.f32 %v2069_v26, %v344_v7  ;;  %v480_v12 = vmul.f32 %v2069_v26, %v345_v22 }
  0xc6   : > { %1121 = vst.msk [vmem:[%s1298_s5 + $0x398] sm:$0xff] %vm1005_vm0, %v992_v6  ;;  %v996_v5 = vmax.f32 %v868_v50, 0.0  ;;  %v481_v13 = vmul.f32 %v2069_v26, %v346_v30  ;;  %1122 = vst.msk [vmem:[%s1298_s5 + $0x3a0] sm:$0xff] %vm1005_vm0, %v993_v52  ;;  %v482_v59 = vmul.f32 %v2069_v26, %v347_v8  ;;  %v483_v60 = vmul.f32 %v2069_v26, %v348_v9 }
  0xc7   : > { %1123 = vst.msk [vmem:[%s1298_s5 + $0x3a8] sm:$0xff] %vm1005_vm0, %v994_v31  ;;  %1124 = vst.msk [vmem:[%s1298_s5 + $0x3b0] sm:$0xff] %vm1005_vm0, %v995_v23  ;;  %v997_v54 = vmax.f32 %v869_v63, 0.0  ;;  %v484_v40 = vmul.f32 %v2069_v26, %v349_v51  ;;  %v614_v41 = vadd.f32 %v2089_v0, %v479_v11  ;;  %v615_v58 = vadd.f32 %v2089_v0, %v480_v12 }
  0xc8   : > { %1125 = vst.msk [vmem:[%s1298_s5 + $0x3b8] sm:$0xff] %vm1005_vm0, %v996_v5  ;;  %v616_v57 = vadd.f32 %v2089_v0, %v481_v13  ;;  %v485_v42 = vmul.f32 %v2069_v26, %v350_v10  ;;  %v617_v14 = vadd.f32 %v2089_v0, %v482_v59  ;;  %v618_v43 = vadd.f32 %v2089_v0, %v483_v60 }
  0xc9   : > { %1126 = vst.msk [vmem:[%s1298_s5 + $0x3c0] sm:$0xff] %vm1005_vm0, %v997_v54  ;;  %v619_v44 = vadd.f32 %v2089_v0, %v484_v40  ;;  %v870_v16 = vadd.f32 %v2623_v45, %v614_v41  ;;  %v871_v1 = vadd.f32 %v2624_v17, %v615_v58 }
  0xca   : > { %v872_v61 = vadd.f32 %v2625_v53, %v616_v57  ;;  %v620_v26 = vadd.f32 %v2089_v0, %v485_v42  ;;  %v873_v46 = vadd.f32 %v2626_v18, %v617_v14  ;;  %v874_v32 = vadd.f32 %v2627_v2, %v618_v43 }
  0xcb   : > { %v875_v19 = vadd.f32 %v2628_v33, %v619_v44  ;;  %v998_v47 = vmax.f32 %v870_v16, 0.0  ;;  %v999_v24 = vmax.f32 %v871_v1, 0.0 }
  0xcc   : > { %v1000_v34 = vmax.f32 %v872_v61, 0.0  ;;  %v876_v3 = vadd.f32 %v2629_v25, %v620_v26  ;;  %v1001_v35 = vmax.f32 %v873_v46, 0.0  ;;  %v1002_v36 = vmax.f32 %v874_v32, 0.0 }
  0xcd   : > { %v1003_v37 = vmax.f32 %v875_v19, 0.0  ;;  %1127 = vst.msk [vmem:[%s1298_s5 + $0x3c8] sm:$0xff] %vm1005_vm0, %v998_v47  ;;  %1128 = vst.msk [vmem:[%s1298_s5 + $0x3d0] sm:$0xff] %vm1005_vm0, %v999_v24 }
  0xce   : > { %1129 = vst.msk [vmem:[%s1298_s5 + $0x3d8] sm:$0xff] %vm1005_vm0, %v1000_v34  ;;  %v1004_v0 = vmax.f32 %v876_v3, 0.0  ;;  %1130 = vst.msk [vmem:[%s1298_s5 + $0x3e0] sm:$0xff] %vm1005_vm0, %v1001_v35 }
  0xcf   : > { %1131 = vst.msk [vmem:[%s1298_s5 + $0x3e8] sm:$0xff] %vm1005_vm0, %v1002_v36  ;;  %1132 = vst.msk [vmem:[%s1298_s5 + $0x3f0] sm:$0xff] %vm1005_vm0, %v1003_v37 }
  0xd0   : > { %1133 = vst.msk [vmem:[%s1298_s5 + $0x3f8] sm:$0xff] %vm1005_vm0, %v1004_v0 }
  0xd1 PF: > { %s14_s15 = sadd.s32 1, %s1233_s15  }
  0xd2   : > { %p11_p4 = scmp.ge.s32.totalorder %s14_s15, 4  }
  0xd4   :  { %13 = sbr.rel (!%p11_p4) target bundleno = 1 (0x1), region = 69 }

</bundles_post_ra>
